<compile_context>
chip_gen: v6e
topology: v6e:2x2x1
jax: 0.10.0
libtpu: 0.0.40
codegen_flags: <defaults>
</compile_context>

<pallas_src>
import numpy as np
import jax
import jax.numpy as jnp
from jax import lax
from jax.experimental import pallas as pl
from jax.experimental.pallas import tpu as pltpu

EPS = 1e-5
LANE = 128


def _round_up(x, m):
    return (x + m - 1) // m * m


def _vmem_limit():
    """Per-generation scoped-VMEM budget with a safe fallback (v7x = 64 MiB phys)."""
    try:
        cap = int(pltpu.get_tpu_info().vmem_capacity_bytes)
    except Exception:
        cap = 64 * 1024 * 1024
    return max(32 * 1024 * 1024, min(cap * 3 // 4, 112 * 1024 * 1024))


def _make_conv_kernel(apply_in_act: bool):
    """3x3 'same' conv as 9 accumulated shifted-window MXU matmuls, with optional
    fused scale/shift + ReLU on the *input* activation (previous layer's folded
    BatchNorm).  Emits the bf16 conv output and per-tile (sum, sumsq) BN stats."""

    def kernel(s_ref, x_ref, w_ref, y_ref, stat_ref, pad_ref, acc_ref):
        TN, H, W, Cin = x_ref.shape
        Coutp = y_ref.shape[-1]
        M = TN * H * W

        xin = x_ref[...].astype(jnp.float32)                  # (TN,H,W,Cin)
        if apply_in_act:
            sc = s_ref[0:1, :]                                 # (1, Cin) scale
            sh = s_ref[1:2, :]                                 # (1, Cin) shift
            xin = jnp.maximum(xin * sc + sh, 0.0)              # folded BN + ReLU

        # 1-px zero halo: zero only the four edge strips, write interior once.
        zrow = jnp.zeros((TN, 1, W + 2, Cin), jnp.float32)
        zcol = jnp.zeros((TN, H + 2, 1, Cin), jnp.float32)
        pad_ref[:, 0:1, 0:W + 2, :] = zrow
        pad_ref[:, H + 1:H + 2, 0:W + 2, :] = zrow
        pad_ref[:, :, 0:1, :] = zcol
        pad_ref[:, :, W + 1:W + 2, :] = zcol
        pad_ref[:, 1:H + 1, 1:W + 1, :] = xin

        # 9 shifted-window matmuls accumulated into the f32 VMEM accumulator.
        # (No im2col patch matrix: nothing is staged 9x in VMEM.)
        j = 0
        for ky in range(3):
            for kx in range(3):
                patch = pad_ref[:, ky:ky + H, kx:kx + W, :].reshape(M, Cin)
                contrib = jnp.dot(patch.astype(jnp.bfloat16), w_ref[j],
                                  preferred_element_type=jnp.float32)
                if j == 0:
                    acc_ref[...] = contrib
                else:
                    acc_ref[...] += contrib
                j += 1

        y_bf = acc_ref[...].astype(jnp.bfloat16)               # stored activation
        y_f = y_bf.astype(jnp.float32)                         # stats match storage

        # single-pass per-channel partial BN statistics for this tile
        sums = jnp.sum(y_f, axis=0, keepdims=True)             # (1, Coutp)
        sumsq = jnp.sum(y_f * y_f, axis=0, keepdims=True)      # (1, Coutp)
        rows = lax.broadcasted_iota(jnp.int32, (8, Coutp), 0)
        stat_ref[0] = jnp.where(rows == 0, sums,
                                jnp.where(rows == 1, sumsq, 0.0))

        y_ref[...] = y_bf.reshape(TN, H, W, Coutp)

    return kernel


def _bn_relu_kernel(s_ref, y_ref, o_ref):
    # folded BatchNorm (scale/shift) + ReLU, one FMA + one max per element
    sc = s_ref[0:1, :]
    sh = s_ref[1:2, :]
    y = y_ref[...].astype(jnp.float32)
    o_ref[...] = jnp.maximum(y * sc + sh, 0.0).astype(o_ref.dtype)


def _conv_stats_call(x, w, s, apply_in_act):
    """x: (N,H,W,Cin), w: (9,Cin,Cp) bf16, s: (8,Cin) scale/shift rows."""
    N, H, W, Cin = x.shape
    _, _, Cp = w.shape
    M = H * W                        # rows per batch-tile (TN = 1)
    Wp = _round_up(W + 2, 8)         # sublane-aligned halo scratch width
    y, stats = pl.pallas_call(
        _make_conv_kernel(apply_in_act),
        out_shape=(jax.ShapeDtypeStruct((N, H, W, Cp), jnp.bfloat16),
                   jax.ShapeDtypeStruct((N, 8, Cp), jnp.float32)),
        grid_spec=pltpu.PrefetchScalarGridSpec(
            num_scalar_prefetch=0,
            grid=(N,),
            in_specs=[
                pl.BlockSpec((8, Cin), lambda i: (0, 0)),
                pl.BlockSpec((1, H, W, Cin), lambda i: (i, 0, 0, 0)),
                pl.BlockSpec((9, Cin, Cp), lambda i: (0, 0, 0)),
            ],
            out_specs=[
                pl.BlockSpec((1, H, W, Cp), lambda i: (i, 0, 0, 0)),
                pl.BlockSpec((1, 8, Cp), lambda i: (i, 0, 0)),
            ],
            scratch_shapes=[
                pltpu.VMEM((1, H + 2, Wp, Cin), jnp.float32),   # halo-padded input
                pltpu.VMEM((M, Cp), jnp.float32),               # conv accumulator
            ],
        ),
        compiler_params=pltpu.CompilerParams(
            dimension_semantics=("parallel",),
            vmem_limit_bytes=_vmem_limit()),
    )(s, x, w)
    return y, stats


def _bn_relu_call(y, s):
    N, H, W, Cp = y.shape
    return pl.pallas_call(
        _bn_relu_kernel,
        out_shape=jax.ShapeDtypeStruct((N, H, W, Cp), jnp.float32),
        grid_spec=pltpu.PrefetchScalarGridSpec(
            num_scalar_prefetch=0,
            grid=(N,),
            in_specs=[
                pl.BlockSpec((8, Cp), lambda i: (0, 0)),
                pl.BlockSpec((1, H, W, Cp), lambda i: (i, 0, 0, 0)),
            ],
            out_specs=pl.BlockSpec((1, H, W, Cp), lambda i: (i, 0, 0, 0)),
        ),
        compiler_params=pltpu.CompilerParams(
            dimension_semantics=("parallel",),
            vmem_limit_bytes=_vmem_limit()),
    )(s, y)


def _fold_bn(stats, gamma, beta, count):
    """Reduce per-tile partial (sum, sumsq) -> per-channel folded scale/shift."""
    s = jnp.sum(stats[:, 0, :], axis=0)
    ss = jnp.sum(stats[:, 1, :], axis=0)
    mean = s / count
    var = jnp.maximum(ss / count - mean * mean, 0.0)   # biased (training-mode)
    scale = gamma * lax.rsqrt(var + EPS)
    shift = beta - mean * scale
    pack = jnp.zeros((8, scale.shape[0]), jnp.float32)
    return pack.at[0].set(scale).at[1].set(shift)


@jax.jit
def double_conv(x_nchw, w1, g1, b1, w2, g2, b2):
    """DoubleConv forward. x_nchw: (N, Cin, H, W) f32 -> (N, Cout, H, W) f32."""
    N, Cin, H, W = x_nchw.shape
    Cout = w1.shape[-1]
    # lane-dense channels only when it pays off; small layers pad to 8 only
    Cp = _round_up(Cout, LANE) if Cout >= 64 else _round_up(Cout, 8)

    x = jnp.transpose(x_nchw, (0, 2, 3, 1)).astype(jnp.float32)   # NHWC

    # (9, Cin, Cp) weight layout matching the ky/kx shifted-window order, bf16.
    w1f = jnp.pad(w1, ((0, 0), (0, 0), (0, 0), (0, Cp - Cout))
                  ).reshape(9, Cin, Cp).astype(jnp.bfloat16)
    w2f = jnp.pad(w2, ((0, 0), (0, 0), (0, Cp - Cout), (0, Cp - Cout))
                  ).reshape(9, Cp, Cp).astype(jnp.bfloat16)
    g1p = jnp.pad(g1, (0, Cp - Cout))
    b1p = jnp.pad(b1, (0, Cp - Cout))
    g2p = jnp.pad(g2, (0, Cp - Cout))
    b2p = jnp.pad(b2, (0, Cp - Cout))

    count = float(N * H * W)
    s_unused = jnp.zeros((8, Cin), jnp.float32)

    # pass 1: conv1 + partial BN1 stats (per batch-tile), y1 stored bf16
    y1, st1 = _conv_stats_call(x, w1f, s_unused, apply_in_act=False)
    s1 = _fold_bn(st1, g1p, b1p, count)
    # pass 2: BN1+ReLU fused into the input load, conv2 + partial BN2 stats
    y2, st2 = _conv_stats_call(y1, w2f, s1, apply_in_act=True)
    s2 = _fold_bn(st2, g2p, b2p, count)
    # pass 3: BN2+ReLU (kept standalone since this block isn't chained here)
    out = _bn_relu_call(y2, s2)

    out = out[..., :Cout]                              # drop channel padding
    return jnp.transpose(out, (0, 3, 1, 2))            # back to NCHW


def _reference(x, w1, g1, b1, w2, g2, b2):
    """Pure-JAX reference in NCHW, mirroring PyTorch training-mode forward."""
    def conv(x, w_hwio):
        w = jnp.transpose(w_hwio, (3, 2, 0, 1))        # OIHW
        return lax.conv_general_dilated(
            x, w, (1, 1), ((1, 1), (1, 1)),
            dimension_numbers=("NCHW", "OIHW", "NCHW"))

    def bn_relu(y, g, b):
        mean = jnp.mean(y, axis=(0, 2, 3), keepdims=True)
        var = jnp.mean((y - mean) ** 2, axis=(0, 2, 3), keepdims=True)
        yhat = (y - mean) / jnp.sqrt(var + EPS)
        return jnp.maximum(yhat * g.reshape(1, -1, 1, 1)
                           + b.reshape(1, -1, 1, 1), 0.0)

    y = bn_relu(conv(x, w1), g1, b1)
    return bn_relu(conv(y, w2), g2, b2)


if __name__ == "__main__":
    N, Cin, Cout, H, W = 2, 4, 8, 16, 16
    key = jax.random.PRNGKey(0)
    k = jax.random.split(key, 7)

    x = jax.random.normal(k[0], (N, Cin, H, W), jnp.float32)
    # Conv2d(in, out, 3, 1, 1, bias=False) weights (HWIO), BatchNorm gamma/beta.
    w1 = jax.random.normal(k[1], (3, 3, Cin, Cout), jnp.float32) * 0.2
    g1 = 1.0 + 0.1 * jax.random.normal(k[2], (Cout,), jnp.float32)
    b1 = 0.1 * jax.random.normal(k[3], (Cout,), jnp.float32)
    w2 = jax.random.normal(k[4], (3, 3, Cout, Cout), jnp.float32) * 0.2
    g2 = 1.0 + 0.1 * jax.random.normal(k[5], (Cout,), jnp.float32)
    b2 = 0.1 * jax.random.normal(k[6], (Cout,), jnp.float32)

    out = jax.block_until_ready(double_conv(x, w1, g1, b1, w2, g2, b2))
    ref = jax.block_until_ready(_reference(x, w1, g1, b1, w2, g2, b2))

    assert out.shape == (N, Cout, H, W), out.shape
    # bf16 MXU operands + bf16 inter-pass activations (f32 accumulation)
    # -> tolerance loosened vs pure f32.
    np.testing.assert_allclose(np.asarray(out), np.asarray(ref),
                               atol=5e-2, rtol=5e-2)
    print("KERNEL_OK")
</pallas_src>

<mosaic_0001>
module attributes {stable_mosaic.version = 11 : i64} {
  func.func @kernel(%arg0: i32, %arg1: memref<8x4xf32, #tpu.memory_space<vmem>>, %arg2: memref<1x16x16x4xf32, #tpu.memory_space<vmem>>, %arg3: memref<9x4x8xbf16, #tpu.memory_space<vmem>>, %arg4: memref<1x16x16x8xbf16, #tpu.memory_space<vmem>>, %arg5: memref<1x8x8xf32, #tpu.memory_space<vmem>>, %arg6: memref<1x18x24x4xf32, #tpu.memory_space<vmem>>, %arg7: memref<256x8xf32, #tpu.memory_space<vmem>>) attributes {dimension_semantics = [#tpu.dimension_semantics<parallel>], iteration_bounds = array<i64: 2>, scalar_prefetch = 0 : i64, scratch_operands = 2 : i64, tpu.core_type = #tpu.core_type<tc>, window_params = [{pipeline_mode = #tpu.pipeline_mode<synchronous>, transform_indices = @transform_0, window_bounds = array<i64: 8, 4>}, {transform_indices = @transform_1, window_bounds = array<i64: 1, 16, 16, 4>}, {pipeline_mode = #tpu.pipeline_mode<synchronous>, transform_indices = @transform_2, window_bounds = array<i64: 9, 4, 8>}, {transform_indices = @transform_3, window_bounds = array<i64: 1, 16, 16, 8>}, {transform_indices = @transform_4, window_bounds = array<i64: 1, 8, 8>}]} {
    %c0 = arith.constant 0 : index
    %c0_0 = arith.constant 0 : index
    %c0_1 = arith.constant 0 : index
    %c0_2 = arith.constant 0 : index
    %0 = vector.load %arg2[%c0, %c0_0, %c0_1, %c0_2] : memref<1x16x16x4xf32, #tpu.memory_space<vmem>>, vector<1x16x16x4xf32>
    %cst = arith.constant 0.000000e+00 : f32
    %1 = vector.broadcast %cst : f32 to vector<1x1x18x4xf32>
    %cst_3 = arith.constant 0.000000e+00 : f32
    %2 = vector.broadcast %cst_3 : f32 to vector<1x18x1x4xf32>
    %c0_4 = arith.constant 0 : index
    %c0_5 = arith.constant 0 : index
    %c0_6 = arith.constant 0 : index
    %c0_7 = arith.constant 0 : index
    %3 = vector.load %arg6[%c0_4, %c0_5, %c0_6, %c0_7] : memref<1x18x24x4xf32, #tpu.memory_space<vmem>>, vector<1x1x18x4xf32>
    tpu.vector_store %arg6[%c0_4, %c0_5, %c0_6, %c0_7], %1 {strides = array<i32>} : memref<1x18x24x4xf32, #tpu.memory_space<vmem>>, vector<1x1x18x4xf32>,
    %c0_8 = arith.constant 0 : index
    %c17 = arith.constant 17 : index
    %c0_9 = arith.constant 0 : index
    %c0_10 = arith.constant 0 : index
    %4 = vector.load %arg6[%c0_8, %c17, %c0_9, %c0_10] : memref<1x18x24x4xf32, #tpu.memory_space<vmem>>, vector<1x1x18x4xf32>
    tpu.vector_store %arg6[%c0_8, %c17, %c0_9, %c0_10], %1 {strides = array<i32>} : memref<1x18x24x4xf32, #tpu.memory_space<vmem>>, vector<1x1x18x4xf32>,
    %c0_11 = arith.constant 0 : index
    %c0_12 = arith.constant 0 : index
    %c0_13 = arith.constant 0 : index
    %c0_14 = arith.constant 0 : index
    %5 = vector.load %arg6[%c0_11, %c0_12, %c0_13, %c0_14] : memref<1x18x24x4xf32, #tpu.memory_space<vmem>>, vector<1x18x1x4xf32>
    tpu.vector_store %arg6[%c0_11, %c0_12, %c0_13, %c0_14], %2 {strides = array<i32>} : memref<1x18x24x4xf32, #tpu.memory_space<vmem>>, vector<1x18x1x4xf32>,
    %c0_15 = arith.constant 0 : index
    %c0_16 = arith.constant 0 : index
    %c17_17 = arith.constant 17 : index
    %c0_18 = arith.constant 0 : index
    %6 = vector.load %arg6[%c0_15, %c0_16, %c17_17, %c0_18] : memref<1x18x24x4xf32, #tpu.memory_space<vmem>>, vector<1x18x1x4xf32>
    tpu.vector_store %arg6[%c0_15, %c0_16, %c17_17, %c0_18], %2 {strides = array<i32>} : memref<1x18x24x4xf32, #tpu.memory_space<vmem>>, vector<1x18x1x4xf32>,
    %c0_19 = arith.constant 0 : index
    %c1 = arith.constant 1 : index
    %c1_20 = arith.constant 1 : index
    %c0_21 = arith.constant 0 : index
    %7 = vector.load %arg6[%c0_19, %c1, %c1_20, %c0_21] : memref<1x18x24x4xf32, #tpu.memory_space<vmem>>, vector<1x16x16x4xf32>
    tpu.vector_store %arg6[%c0_19, %c1, %c1_20, %c0_21], %0 {strides = array<i32>} : memref<1x18x24x4xf32, #tpu.memory_space<vmem>>, vector<1x16x16x4xf32>,
    %c0_22 = arith.constant 0 : index
    %c0_23 = arith.constant 0 : index
    %c0_24 = arith.constant 0 : index
    %c0_25 = arith.constant 0 : index
    %8 = vector.load %arg6[%c0_22, %c0_23, %c0_24, %c0_25] : memref<1x18x24x4xf32, #tpu.memory_space<vmem>>, vector<1x16x16x4xf32>
    %9 = vector.shape_cast %8 : vector<1x16x16x4xf32> to vector<256x4xf32>
    %10 = arith.truncf %9 : vector<256x4xf32> to vector<256x4xbf16>
    %c0_26 = arith.constant 0 : index
    %c0_27 = arith.constant 0 : index
    %c0_28 = arith.constant 0 : index
    %11 = vector.load %arg3[%c0_26, %c0_27, %c0_28] : memref<9x4x8xbf16, #tpu.memory_space<vmem>>, vector<1x4x8xbf16>
    %12 = vector.shape_cast %11 : vector<1x4x8xbf16> to vector<4x8xbf16>
    %cst_29 = arith.constant dense<0.000000e+00> : vector<256x8xf32>
    %13 = tpu.matmul %10, %12, %cst_29 {dimension_numbers = #tpu.dot_dimension_numbers<[1], [0], [0], [1], [0, 0, 1, 1], [], []>} : vector<256x4xbf16>, vector<4x8xbf16>, vector<256x8xf32> -> vector<256x8xf32>
    %c0_30 = arith.constant 0 : index
    %c0_31 = arith.constant 0 : index
    %14 = vector.load %arg7[%c0_30, %c0_31] : memref<256x8xf32, #tpu.memory_space<vmem>>, vector<256x8xf32>
    tpu.vector_store %arg7[%c0_30, %c0_31], %13 {strides = array<i32>} : memref<256x8xf32, #tpu.memory_space<vmem>>, vector<256x8xf32>,
    %c0_32 = arith.constant 0 : index
    %c0_33 = arith.constant 0 : index
    %c1_34 = arith.constant 1 : index
    %c0_35 = arith.constant 0 : index
    %15 = vector.load %arg6[%c0_32, %c0_33, %c1_34, %c0_35] : memref<1x18x24x4xf32, #tpu.memory_space<vmem>>, vector<1x16x16x4xf32>
    %16 = vector.shape_cast %15 : vector<1x16x16x4xf32> to vector<256x4xf32>
    %17 = arith.truncf %16 : vector<256x4xf32> to vector<256x4xbf16>
    %c1_36 = arith.constant 1 : index
    %c0_37 = arith.constant 0 : index
    %c0_38 = arith.constant 0 : index
    %18 = vector.load %arg3[%c1_36, %c0_37, %c0_38] : memref<9x4x8xbf16, #tpu.memory_space<vmem>>, vector<1x4x8xbf16>
    %19 = vector.shape_cast %18 : vector<1x4x8xbf16> to vector<4x8xbf16>
    %cst_39 = arith.constant dense<0.000000e+00> : vector<256x8xf32>
    %20 = tpu.matmul %17, %19, %cst_39 {dimension_numbers = #tpu.dot_dimension_numbers<[1], [0], [0], [1], [0, 0, 1, 1], [], []>} : vector<256x4xbf16>, vector<4x8xbf16>, vector<256x8xf32> -> vector<256x8xf32>
    %c0_40 = arith.constant 0 : index
    %c0_41 = arith.constant 0 : index
    %21 = vector.load %arg7[%c0_40, %c0_41] : memref<256x8xf32, #tpu.memory_space<vmem>>, vector<256x8xf32>
    %22 = arith.addf %21, %20 : vector<256x8xf32>
    %c0_42 = arith.constant 0 : index
    %c0_43 = arith.constant 0 : index
    %23 = vector.load %arg7[%c0_42, %c0_43] : memref<256x8xf32, #tpu.memory_space<vmem>>, vector<256x8xf32>
    tpu.vector_store %arg7[%c0_42, %c0_43], %22 {strides = array<i32>} : memref<256x8xf32, #tpu.memory_space<vmem>>, vector<256x8xf32>,
    %c0_44 = arith.constant 0 : index
    %c0_45 = arith.constant 0 : index
    %c2 = arith.constant 2 : index
    %c0_46 = arith.constant 0 : index
    %24 = vector.load %arg6[%c0_44, %c0_45, %c2, %c0_46] : memref<1x18x24x4xf32, #tpu.memory_space<vmem>>, vector<1x16x16x4xf32>
    %25 = vector.shape_cast %24 : vector<1x16x16x4xf32> to vector<256x4xf32>
    %26 = arith.truncf %25 : vector<256x4xf32> to vector<256x4xbf16>
    %c2_47 = arith.constant 2 : index
    %c0_48 = arith.constant 0 : index
    %c0_49 = arith.constant 0 : index
    %27 = vector.load %arg3[%c2_47, %c0_48, %c0_49] : memref<9x4x8xbf16, #tpu.memory_space<vmem>>, vector<1x4x8xbf16>
    %28 = vector.shape_cast %27 : vector<1x4x8xbf16> to vector<4x8xbf16>
    %cst_50 = arith.constant dense<0.000000e+00> : vector<256x8xf32>
    %29 = tpu.matmul %26, %28, %cst_50 {dimension_numbers = #tpu.dot_dimension_numbers<[1], [0], [0], [1], [0, 0, 1, 1], [], []>} : vector<256x4xbf16>, vector<4x8xbf16>, vector<256x8xf32> -> vector<256x8xf32>
    %c0_51 = arith.constant 0 : index
    %c0_52 = arith.constant 0 : index
    %30 = vector.load %arg7[%c0_51, %c0_52] : memref<256x8xf32, #tpu.memory_space<vmem>>, vector<256x8xf32>
    %31 = arith.addf %30, %29 : vector<256x8xf32>
    %c0_53 = arith.constant 0 : index
    %c0_54 = arith.constant 0 : index
    %32 = vector.load %arg7[%c0_53, %c0_54] : memref<256x8xf32, #tpu.memory_space<vmem>>, vector<256x8xf32>
    tpu.vector_store %arg7[%c0_53, %c0_54], %31 {strides = array<i32>} : memref<256x8xf32, #tpu.memory_space<vmem>>, vector<256x8xf32>,
    %c0_55 = arith.constant 0 : index
    %c1_56 = arith.constant 1 : index
    %c0_57 = arith.constant 0 : index
    %c0_58 = arith.constant 0 : index
    %33 = vector.load %arg6[%c0_55, %c1_56, %c0_57, %c0_58] : memref<1x18x24x4xf32, #tpu.memory_space<vmem>>, vector<1x16x16x4xf32>
    %34 = vector.shape_cast %33 : vector<1x16x16x4xf32> to vector<256x4xf32>
    %35 = arith.truncf %34 : vector<256x4xf32> to vector<256x4xbf16>
    %c3 = arith.constant 3 : index
    %c0_59 = arith.constant 0 : index
    %c0_60 = arith.constant 0 : index
    %36 = vector.load %arg3[%c3, %c0_59, %c0_60] : memref<9x4x8xbf16, #tpu.memory_space<vmem>>, vector<1x4x8xbf16>
    %37 = vector.shape_cast %36 : vector<1x4x8xbf16> to vector<4x8xbf16>
    %cst_61 = arith.constant dense<0.000000e+00> : vector<256x8xf32>
    %38 = tpu.matmul %35, %37, %cst_61 {dimension_numbers = #tpu.dot_dimension_numbers<[1], [0], [0], [1], [0, 0, 1, 1], [], []>} : vector<256x4xbf16>, vector<4x8xbf16>, vector<256x8xf32> -> vector<256x8xf32>
    %c0_62 = arith.constant 0 : index
    %c0_63 = arith.constant 0 : index
    %39 = vector.load %arg7[%c0_62, %c0_63] : memref<256x8xf32, #tpu.memory_space<vmem>>, vector<256x8xf32>
    %40 = arith.addf %39, %38 : vector<256x8xf32>
    %c0_64 = arith.constant 0 : index
    %c0_65 = arith.constant 0 : index
    %41 = vector.load %arg7[%c0_64, %c0_65] : memref<256x8xf32, #tpu.memory_space<vmem>>, vector<256x8xf32>
    tpu.vector_store %arg7[%c0_64, %c0_65], %40 {strides = array<i32>} : memref<256x8xf32, #tpu.memory_space<vmem>>, vector<256x8xf32>,
    %c0_66 = arith.constant 0 : index
    %c1_67 = arith.constant 1 : index
    %c1_68 = arith.constant 1 : index
    %c0_69 = arith.constant 0 : index
    %42 = vector.load %arg6[%c0_66, %c1_67, %c1_68, %c0_69] : memref<1x18x24x4xf32, #tpu.memory_space<vmem>>, vector<1x16x16x4xf32>
    %43 = vector.shape_cast %42 : vector<1x16x16x4xf32> to vector<256x4xf32>
    %44 = arith.truncf %43 : vector<256x4xf32> to vector<256x4xbf16>
    %c4 = arith.constant 4 : index
    %c0_70 = arith.constant 0 : index
    %c0_71 = arith.constant 0 : index
    %45 = vector.load %arg3[%c4, %c0_70, %c0_71] : memref<9x4x8xbf16, #tpu.memory_space<vmem>>, vector<1x4x8xbf16>
    %46 = vector.shape_cast %45 : vector<1x4x8xbf16> to vector<4x8xbf16>
    %cst_72 = arith.constant dense<0.000000e+00> : vector<256x8xf32>
    %47 = tpu.matmul %44, %46, %cst_72 {dimension_numbers = #tpu.dot_dimension_numbers<[1], [0], [0], [1], [0, 0, 1, 1], [], []>} : vector<256x4xbf16>, vector<4x8xbf16>, vector<256x8xf32> -> vector<256x8xf32>
    %c0_73 = arith.constant 0 : index
    %c0_74 = arith.constant 0 : index
    %48 = vector.load %arg7[%c0_73, %c0_74] : memref<256x8xf32, #tpu.memory_space<vmem>>, vector<256x8xf32>
    %49 = arith.addf %48, %47 : vector<256x8xf32>
    %c0_75 = arith.constant 0 : index
    %c0_76 = arith.constant 0 : index
    %50 = vector.load %arg7[%c0_75, %c0_76] : memref<256x8xf32, #tpu.memory_space<vmem>>, vector<256x8xf32>
    tpu.vector_store %arg7[%c0_75, %c0_76], %49 {strides = array<i32>} : memref<256x8xf32, #tpu.memory_space<vmem>>, vector<256x8xf32>,
    %c0_77 = arith.constant 0 : index
    %c1_78 = arith.constant 1 : index
    %c2_79 = arith.constant 2 : index
    %c0_80 = arith.constant 0 : index
    %51 = vector.load %arg6[%c0_77, %c1_78, %c2_79, %c0_80] : memref<1x18x24x4xf32, #tpu.memory_space<vmem>>, vector<1x16x16x4xf32>
    %52 = vector.shape_cast %51 : vector<1x16x16x4xf32> to vector<256x4xf32>
    %53 = arith.truncf %52 : vector<256x4xf32> to vector<256x4xbf16>
    %c5 = arith.constant 5 : index
    %c0_81 = arith.constant 0 : index
    %c0_82 = arith.constant 0 : index
    %54 = vector.load %arg3[%c5, %c0_81, %c0_82] : memref<9x4x8xbf16, #tpu.memory_space<vmem>>, vector<1x4x8xbf16>
    %55 = vector.shape_cast %54 : vector<1x4x8xbf16> to vector<4x8xbf16>
    %cst_83 = arith.constant dense<0.000000e+00> : vector<256x8xf32>
    %56 = tpu.matmul %53, %55, %cst_83 {dimension_numbers = #tpu.dot_dimension_numbers<[1], [0], [0], [1], [0, 0, 1, 1], [], []>} : vector<256x4xbf16>, vector<4x8xbf16>, vector<256x8xf32> -> vector<256x8xf32>
    %c0_84 = arith.constant 0 : index
    %c0_85 = arith.constant 0 : index
    %57 = vector.load %arg7[%c0_84, %c0_85] : memref<256x8xf32, #tpu.memory_space<vmem>>, vector<256x8xf32>
    %58 = arith.addf %57, %56 : vector<256x8xf32>
    %c0_86 = arith.constant 0 : index
    %c0_87 = arith.constant 0 : index
    %59 = vector.load %arg7[%c0_86, %c0_87] : memref<256x8xf32, #tpu.memory_space<vmem>>, vector<256x8xf32>
    tpu.vector_store %arg7[%c0_86, %c0_87], %58 {strides = array<i32>} : memref<256x8xf32, #tpu.memory_space<vmem>>, vector<256x8xf32>,
    %c0_88 = arith.constant 0 : index
    %c2_89 = arith.constant 2 : index
    %c0_90 = arith.constant 0 : index
    %c0_91 = arith.constant 0 : index
    %60 = vector.load %arg6[%c0_88, %c2_89, %c0_90, %c0_91] : memref<1x18x24x4xf32, #tpu.memory_space<vmem>>, vector<1x16x16x4xf32>
    %61 = vector.shape_cast %60 : vector<1x16x16x4xf32> to vector<256x4xf32>
    %62 = arith.truncf %61 : vector<256x4xf32> to vector<256x4xbf16>
    %c6 = arith.constant 6 : index
    %c0_92 = arith.constant 0 : index
    %c0_93 = arith.constant 0 : index
    %63 = vector.load %arg3[%c6, %c0_92, %c0_93] : memref<9x4x8xbf16, #tpu.memory_space<vmem>>, vector<1x4x8xbf16>
    %64 = vector.shape_cast %63 : vector<1x4x8xbf16> to vector<4x8xbf16>
    %cst_94 = arith.constant dense<0.000000e+00> : vector<256x8xf32>
    %65 = tpu.matmul %62, %64, %cst_94 {dimension_numbers = #tpu.dot_dimension_numbers<[1], [0], [0], [1], [0, 0, 1, 1], [], []>} : vector<256x4xbf16>, vector<4x8xbf16>, vector<256x8xf32> -> vector<256x8xf32>
    %c0_95 = arith.constant 0 : index
    %c0_96 = arith.constant 0 : index
    %66 = vector.load %arg7[%c0_95, %c0_96] : memref<256x8xf32, #tpu.memory_space<vmem>>, vector<256x8xf32>
    %67 = arith.addf %66, %65 : vector<256x8xf32>
    %c0_97 = arith.constant 0 : index
    %c0_98 = arith.constant 0 : index
    %68 = vector.load %arg7[%c0_97, %c0_98] : memref<256x8xf32, #tpu.memory_space<vmem>>, vector<256x8xf32>
    tpu.vector_store %arg7[%c0_97, %c0_98], %67 {strides = array<i32>} : memref<256x8xf32, #tpu.memory_space<vmem>>, vector<256x8xf32>,
    %c0_99 = arith.constant 0 : index
    %c2_100 = arith.constant 2 : index
    %c1_101 = arith.constant 1 : index
    %c0_102 = arith.constant 0 : index
    %69 = vector.load %arg6[%c0_99, %c2_100, %c1_101, %c0_102] : memref<1x18x24x4xf32, #tpu.memory_space<vmem>>, vector<1x16x16x4xf32>
    %70 = vector.shape_cast %69 : vector<1x16x16x4xf32> to vector<256x4xf32>
    %71 = arith.truncf %70 : vector<256x4xf32> to vector<256x4xbf16>
    %c7 = arith.constant 7 : index
    %c0_103 = arith.constant 0 : index
    %c0_104 = arith.constant 0 : index
    %72 = vector.load %arg3[%c7, %c0_103, %c0_104] : memref<9x4x8xbf16, #tpu.memory_space<vmem>>, vector<1x4x8xbf16>
    %73 = vector.shape_cast %72 : vector<1x4x8xbf16> to vector<4x8xbf16>
    %cst_105 = arith.constant dense<0.000000e+00> : vector<256x8xf32>
    %74 = tpu.matmul %71, %73, %cst_105 {dimension_numbers = #tpu.dot_dimension_numbers<[1], [0], [0], [1], [0, 0, 1, 1], [], []>} : vector<256x4xbf16>, vector<4x8xbf16>, vector<256x8xf32> -> vector<256x8xf32>
    %c0_106 = arith.constant 0 : index
    %c0_107 = arith.constant 0 : index
    %75 = vector.load %arg7[%c0_106, %c0_107] : memref<256x8xf32, #tpu.memory_space<vmem>>, vector<256x8xf32>
    %76 = arith.addf %75, %74 : vector<256x8xf32>
    %c0_108 = arith.constant 0 : index
    %c0_109 = arith.constant 0 : index
    %77 = vector.load %arg7[%c0_108, %c0_109] : memref<256x8xf32, #tpu.memory_space<vmem>>, vector<256x8xf32>
    tpu.vector_store %arg7[%c0_108, %c0_109], %76 {strides = array<i32>} : memref<256x8xf32, #tpu.memory_space<vmem>>, vector<256x8xf32>,
    %c0_110 = arith.constant 0 : index
    %c2_111 = arith.constant 2 : index
    %c2_112 = arith.constant 2 : index
    %c0_113 = arith.constant 0 : index
    %78 = vector.load %arg6[%c0_110, %c2_111, %c2_112, %c0_113] : memref<1x18x24x4xf32, #tpu.memory_space<vmem>>, vector<1x16x16x4xf32>
    %79 = vector.shape_cast %78 : vector<1x16x16x4xf32> to vector<256x4xf32>
    %80 = arith.truncf %79 : vector<256x4xf32> to vector<256x4xbf16>
    %c8 = arith.constant 8 : index
    %c0_114 = arith.constant 0 : index
    %c0_115 = arith.constant 0 : index
    %81 = vector.load %arg3[%c8, %c0_114, %c0_115] : memref<9x4x8xbf16, #tpu.memory_space<vmem>>, vector<1x4x8xbf16>
    %82 = vector.shape_cast %81 : vector<1x4x8xbf16> to vector<4x8xbf16>
    %cst_116 = arith.constant dense<0.000000e+00> : vector<256x8xf32>
    %83 = tpu.matmul %80, %82, %cst_116 {dimension_numbers = #tpu.dot_dimension_numbers<[1], [0], [0], [1], [0, 0, 1, 1], [], []>} : vector<256x4xbf16>, vector<4x8xbf16>, vector<256x8xf32> -> vector<256x8xf32>
    %c0_117 = arith.constant 0 : index
    %c0_118 = arith.constant 0 : index
    %84 = vector.load %arg7[%c0_117, %c0_118] : memref<256x8xf32, #tpu.memory_space<vmem>>, vector<256x8xf32>
    %85 = arith.addf %84, %83 : vector<256x8xf32>
    %c0_119 = arith.constant 0 : index
    %c0_120 = arith.constant 0 : index
    %86 = vector.load %arg7[%c0_119, %c0_120] : memref<256x8xf32, #tpu.memory_space<vmem>>, vector<256x8xf32>
    tpu.vector_store %arg7[%c0_119, %c0_120], %85 {strides = array<i32>} : memref<256x8xf32, #tpu.memory_space<vmem>>, vector<256x8xf32>,
    %c0_121 = arith.constant 0 : index
    %c0_122 = arith.constant 0 : index
    %87 = vector.load %arg7[%c0_121, %c0_122] : memref<256x8xf32, #tpu.memory_space<vmem>>, vector<256x8xf32>
    %88 = arith.truncf %87 : vector<256x8xf32> to vector<256x8xbf16>
    %89 = arith.extf %88 : vector<256x8xbf16> to vector<256x8xf32>
    %cst_123 = arith.constant dense<0.000000e+00> : vector<8xf32>
    %90 = vector.multi_reduction <add>, %89, %cst_123 [0] : vector<256x8xf32> to vector<8xf32>
    %91 = vector.shape_cast %90 : vector<8xf32> to vector<1x8xf32>
    %92 = arith.mulf %89, %89 : vector<256x8xf32>
    %cst_124 = arith.constant dense<0.000000e+00> : vector<8xf32>
    %93 = vector.multi_reduction <add>, %92, %cst_124 [0] : vector<256x8xf32> to vector<8xf32>
    %94 = vector.shape_cast %93 : vector<8xf32> to vector<1x8xf32>
    %95 = tpu.iota {dimensions = array<i32: 0>} : vector<8x8xi32>
    %c0_i32 = arith.constant 0 : i32
    %96 = vector.broadcast %c0_i32 : i32 to vector<8x8xi32>
    %97 = arith.cmpi eq, %95, %96 : vector<8x8xi32>
    %c1_i32 = arith.constant 1 : i32
    %98 = vector.broadcast %c1_i32 : i32 to vector<8x8xi32>
    %99 = arith.cmpi eq, %95, %98 : vector<8x8xi32>
    %cst_125 = arith.constant 0.000000e+00 : f32
    %100 = vector.shape_cast %94 : vector<1x8xf32> to vector<1x8xf32>
    %101 = vector.broadcast %100 : vector<1x8xf32> to vector<8x8xf32>
    %102 = vector.broadcast %cst_125 : f32 to vector<8x8xf32>
    %103 = arith.select %99, %101, %102 : vector<8x8xi1>, vector<8x8xf32>
    %104 = vector.shape_cast %91 : vector<1x8xf32> to vector<1x8xf32>
    %105 = vector.broadcast %104 : vector<1x8xf32> to vector<8x8xf32>
    %106 = arith.select %97, %105, %103 : vector<8x8xi1>, vector<8x8xf32>
    %c0_126 = arith.constant 0 : index
    %c0_127 = arith.constant 0 : index
    %c0_128 = arith.constant 0 : index
    %107 = vector.load %arg5[%c0_126, %c0_127, %c0_128] : memref<1x8x8xf32, #tpu.memory_space<vmem>>, vector<1x8x8xf32>
    %108 = vector.shape_cast %107 : vector<1x8x8xf32> to vector<8x8xf32>
    %109 = vector.shape_cast %106 : vector<8x8xf32> to vector<1x8x8xf32>
    tpu.vector_store %arg5[%c0_126, %c0_127, %c0_128], %109 {strides = array<i32>} : memref<1x8x8xf32, #tpu.memory_space<vmem>>, vector<1x8x8xf32>,
    %110 = vector.shape_cast %88 : vector<256x8xbf16> to vector<1x16x16x8xbf16>
    %c0_129 = arith.constant 0 : index
    %c0_130 = arith.constant 0 : index
    %c0_131 = arith.constant 0 : index
    %c0_132 = arith.constant 0 : index
    %111 = vector.load %arg4[%c0_129, %c0_130, %c0_131, %c0_132] : memref<1x16x16x8xbf16, #tpu.memory_space<vmem>>, vector<1x16x16x8xbf16>
    tpu.vector_store %arg4[%c0_129, %c0_130, %c0_131, %c0_132], %110 {strides = array<i32>} : memref<1x16x16x8xbf16, #tpu.memory_space<vmem>>, vector<1x16x16x8xbf16>,
    return
  }
  func.func @transform_0(%arg0: i32) -> (i32, i32) {
    %c0_i32 = arith.constant 0 : i32
    %c0_i32_0 = arith.constant 0 : i32
    %c0_i32_1 = arith.constant 0 : i32
    return %c0_i32, %c0_i32_0 : i32, i32
  }
  func.func @transform_1(%arg0: i32) -> (i32, i32, i32, i32) {
    %c0_i32 = arith.constant 0 : i32
    %c0_i32_0 = arith.constant 0 : i32
    %c0_i32_1 = arith.constant 0 : i32
    %c0_i32_2 = arith.constant 0 : i32
    return %arg0, %c0_i32, %c0_i32_0, %c0_i32_1 : i32, i32, i32, i32
  }
  func.func @transform_2(%arg0: i32) -> (i32, i32, i32) {
    %c0_i32 = arith.constant 0 : i32
    %c0_i32_0 = arith.constant 0 : i32
    %c0_i32_1 = arith.constant 0 : i32
    %c0_i32_2 = arith.constant 0 : i32
    return %c0_i32, %c0_i32_0, %c0_i32_1 : i32, i32, i32
  }
  func.func @transform_3(%arg0: i32) -> (i32, i32, i32, i32) {
    %c0_i32 = arith.constant 0 : i32
    %c0_i32_0 = arith.constant 0 : i32
    %c0_i32_1 = arith.constant 0 : i32
    %c0_i32_2 = arith.constant 0 : i32
    return %arg0, %c0_i32, %c0_i32_0, %c0_i32_1 : i32, i32, i32, i32
  }
  func.func @transform_4(%arg0: i32) -> (i32, i32, i32) {
    %c0_i32 = arith.constant 0 : i32
    %c0_i32_0 = arith.constant 0 : i32
    %c0_i32_1 = arith.constant 0 : i32
    return %arg0, %c0_i32, %c0_i32_0 : i32, i32, i32
  }
}

module attributes {stable_mosaic.version = 11 : i64} {
  func.func @_bn_relu_kernel(%arg0: i32, %arg1: memref<8x8xf32, #tpu.memory_space<vmem>>, %arg2: memref<1x16x16x8xbf16, #tpu.memory_space<vmem>>, %arg3: memref<1x16x16x8xf32, #tpu.memory_space<vmem>>) attributes {dimension_semantics = [#tpu.dimension_semantics<parallel>], iteration_bounds = array<i64: 2>, scalar_prefetch = 0 : i64, scratch_operands = 0 : i64, tpu.core_type = #tpu.core_type<tc>, window_params = [{pipeline_mode = #tpu.pipeline_mode<synchronous>, transform_indices = @transform_0, window_bounds = array<i64: 8, 8>}, {transform_indices = @transform_1, window_bounds = array<i64: 1, 16, 16, 8>}, {transform_indices = @transform_2, window_bounds = array<i64: 1, 16, 16, 8>}]} {
    %c0 = arith.constant 0 : index
    %c0_0 = arith.constant 0 : index
    %0 = vector.load %arg1[%c0, %c0_0] : memref<8x8xf32, #tpu.memory_space<vmem>>, vector<1x8xf32>
    %c1 = arith.constant 1 : index
    %c0_1 = arith.constant 0 : index
    %1 = vector.load %arg1[%c1, %c0_1] : memref<8x8xf32, #tpu.memory_space<vmem>>, vector<1x8xf32>
    %c0_2 = arith.constant 0 : index
    %c0_3 = arith.constant 0 : index
    %c0_4 = arith.constant 0 : index
    %c0_5 = arith.constant 0 : index
    %2 = vector.load %arg2[%c0_2, %c0_3, %c0_4, %c0_5] : memref<1x16x16x8xbf16, #tpu.memory_space<vmem>>, vector<1x16x16x8xbf16>
    %3 = arith.extf %2 : vector<1x16x16x8xbf16> to vector<1x16x16x8xf32>
    %4 = vector.shape_cast %0 : vector<1x8xf32> to vector<1x1x1x8xf32>
    %5 = vector.broadcast %4 : vector<1x1x1x8xf32> to vector<1x16x16x8xf32>
    %6 = arith.mulf %3, %5 : vector<1x16x16x8xf32>
    %7 = vector.shape_cast %1 : vector<1x8xf32> to vector<1x1x1x8xf32>
    %8 = vector.broadcast %7 : vector<1x1x1x8xf32> to vector<1x16x16x8xf32>
    %9 = arith.addf %6, %8 : vector<1x16x16x8xf32>
    %cst = arith.constant 0.000000e+00 : f32
    %10 = vector.broadcast %cst : f32 to vector<1x16x16x8xf32>
    %11 = arith.maximumf %9, %10 : vector<1x16x16x8xf32>
    %c0_6 = arith.constant 0 : index
    %c0_7 = arith.constant 0 : index
    %c0_8 = arith.constant 0 : index
    %c0_9 = arith.constant 0 : index
    %12 = vector.load %arg3[%c0_6, %c0_7, %c0_8, %c0_9] : memref<1x16x16x8xf32, #tpu.memory_space<vmem>>, vector<1x16x16x8xf32>
    tpu.vector_store %arg3[%c0_6, %c0_7, %c0_8, %c0_9], %11 {strides = array<i32>} : memref<1x16x16x8xf32, #tpu.memory_space<vmem>>, vector<1x16x16x8xf32>,
    return
  }
  func.func @transform_0(%arg0: i32) -> (i32, i32) {
    %c0_i32 = arith.constant 0 : i32
    %c0_i32_0 = arith.constant 0 : i32
    %c0_i32_1 = arith.constant 0 : i32
    return %c0_i32, %c0_i32_0 : i32, i32
  }
  func.func @transform_1(%arg0: i32) -> (i32, i32, i32, i32) {
    %c0_i32 = arith.constant 0 : i32
    %c0_i32_0 = arith.constant 0 : i32
    %c0_i32_1 = arith.constant 0 : i32
    %c0_i32_2 = arith.constant 0 : i32
    return %arg0, %c0_i32, %c0_i32_0, %c0_i32_1 : i32, i32, i32, i32
  }
  func.func @transform_2(%arg0: i32) -> (i32, i32, i32, i32) {
    %c0_i32 = arith.constant 0 : i32
    %c0_i32_0 = arith.constant 0 : i32
    %c0_i32_1 = arith.constant 0 : i32
    %c0_i32_2 = arith.constant 0 : i32
    return %arg0, %c0_i32, %c0_i32_0, %c0_i32_1 : i32, i32, i32, i32
  }
}

module attributes {stable_mosaic.version = 11 : i64} {
  func.func @kernel(%arg0: i32, %arg1: memref<8x8xf32, #tpu.memory_space<vmem>>, %arg2: memref<1x16x16x8xbf16, #tpu.memory_space<vmem>>, %arg3: memref<9x8x8xbf16, #tpu.memory_space<vmem>>, %arg4: memref<1x16x16x8xbf16, #tpu.memory_space<vmem>>, %arg5: memref<1x8x8xf32, #tpu.memory_space<vmem>>, %arg6: memref<1x18x24x8xf32, #tpu.memory_space<vmem>>, %arg7: memref<256x8xf32, #tpu.memory_space<vmem>>) attributes {dimension_semantics = [#tpu.dimension_semantics<parallel>], iteration_bounds = array<i64: 2>, scalar_prefetch = 0 : i64, scratch_operands = 2 : i64, tpu.core_type = #tpu.core_type<tc>, window_params = [{pipeline_mode = #tpu.pipeline_mode<synchronous>, transform_indices = @transform_0, window_bounds = array<i64: 8, 8>}, {transform_indices = @transform_1, window_bounds = array<i64: 1, 16, 16, 8>}, {pipeline_mode = #tpu.pipeline_mode<synchronous>, transform_indices = @transform_2, window_bounds = array<i64: 9, 8, 8>}, {transform_indices = @transform_3, window_bounds = array<i64: 1, 16, 16, 8>}, {transform_indices = @transform_4, window_bounds = array<i64: 1, 8, 8>}]} {
    %c0 = arith.constant 0 : index
    %c0_0 = arith.constant 0 : index
    %c0_1 = arith.constant 0 : index
    %c0_2 = arith.constant 0 : index
    %0 = vector.load %arg2[%c0, %c0_0, %c0_1, %c0_2] : memref<1x16x16x8xbf16, #tpu.memory_space<vmem>>, vector<1x16x16x8xbf16>
    %1 = arith.extf %0 : vector<1x16x16x8xbf16> to vector<1x16x16x8xf32>
    %c0_3 = arith.constant 0 : index
    %c0_4 = arith.constant 0 : index
    %2 = vector.load %arg1[%c0_3, %c0_4] : memref<8x8xf32, #tpu.memory_space<vmem>>, vector<1x8xf32>
    %c1 = arith.constant 1 : index
    %c0_5 = arith.constant 0 : index
    %3 = vector.load %arg1[%c1, %c0_5] : memref<8x8xf32, #tpu.memory_space<vmem>>, vector<1x8xf32>
    %4 = vector.shape_cast %2 : vector<1x8xf32> to vector<1x1x1x8xf32>
    %5 = vector.broadcast %4 : vector<1x1x1x8xf32> to vector<1x16x16x8xf32>
    %6 = arith.mulf %1, %5 : vector<1x16x16x8xf32>
    %7 = vector.shape_cast %3 : vector<1x8xf32> to vector<1x1x1x8xf32>
    %8 = vector.broadcast %7 : vector<1x1x1x8xf32> to vector<1x16x16x8xf32>
    %9 = arith.addf %6, %8 : vector<1x16x16x8xf32>
    %cst = arith.constant 0.000000e+00 : f32
    %10 = vector.broadcast %cst : f32 to vector<1x16x16x8xf32>
    %11 = arith.maximumf %9, %10 : vector<1x16x16x8xf32>
    %cst_6 = arith.constant 0.000000e+00 : f32
    %12 = vector.broadcast %cst_6 : f32 to vector<1x1x18x8xf32>
    %cst_7 = arith.constant 0.000000e+00 : f32
    %13 = vector.broadcast %cst_7 : f32 to vector<1x18x1x8xf32>
    %c0_8 = arith.constant 0 : index
    %c0_9 = arith.constant 0 : index
    %c0_10 = arith.constant 0 : index
    %c0_11 = arith.constant 0 : index
    %14 = vector.load %arg6[%c0_8, %c0_9, %c0_10, %c0_11] : memref<1x18x24x8xf32, #tpu.memory_space<vmem>>, vector<1x1x18x8xf32>
    tpu.vector_store %arg6[%c0_8, %c0_9, %c0_10, %c0_11], %12 {strides = array<i32>} : memref<1x18x24x8xf32, #tpu.memory_space<vmem>>, vector<1x1x18x8xf32>,
    %c0_12 = arith.constant 0 : index
    %c17 = arith.constant 17 : index
    %c0_13 = arith.constant 0 : index
    %c0_14 = arith.constant 0 : index
    %15 = vector.load %arg6[%c0_12, %c17, %c0_13, %c0_14] : memref<1x18x24x8xf32, #tpu.memory_space<vmem>>, vector<1x1x18x8xf32>
    tpu.vector_store %arg6[%c0_12, %c17, %c0_13, %c0_14], %12 {strides = array<i32>} : memref<1x18x24x8xf32, #tpu.memory_space<vmem>>, vector<1x1x18x8xf32>,
    %c0_15 = arith.constant 0 : index
    %c0_16 = arith.constant 0 : index
    %c0_17 = arith.constant 0 : index
    %c0_18 = arith.constant 0 : index
    %16 = vector.load %arg6[%c0_15, %c0_16, %c0_17, %c0_18] : memref<1x18x24x8xf32, #tpu.memory_space<vmem>>, vector<1x18x1x8xf32>
    tpu.vector_store %arg6[%c0_15, %c0_16, %c0_17, %c0_18], %13 {strides = array<i32>} : memref<1x18x24x8xf32, #tpu.memory_space<vmem>>, vector<1x18x1x8xf32>,
    %c0_19 = arith.constant 0 : index
    %c0_20 = arith.constant 0 : index
    %c17_21 = arith.constant 17 : index
    %c0_22 = arith.constant 0 : index
    %17 = vector.load %arg6[%c0_19, %c0_20, %c17_21, %c0_22] : memref<1x18x24x8xf32, #tpu.memory_space<vmem>>, vector<1x18x1x8xf32>
    tpu.vector_store %arg6[%c0_19, %c0_20, %c17_21, %c0_22], %13 {strides = array<i32>} : memref<1x18x24x8xf32, #tpu.memory_space<vmem>>, vector<1x18x1x8xf32>,
    %c0_23 = arith.constant 0 : index
    %c1_24 = arith.constant 1 : index
    %c1_25 = arith.constant 1 : index
    %c0_26 = arith.constant 0 : index
    %18 = vector.load %arg6[%c0_23, %c1_24, %c1_25, %c0_26] : memref<1x18x24x8xf32, #tpu.memory_space<vmem>>, vector<1x16x16x8xf32>
    tpu.vector_store %arg6[%c0_23, %c1_24, %c1_25, %c0_26], %11 {strides = array<i32>} : memref<1x18x24x8xf32, #tpu.memory_space<vmem>>, vector<1x16x16x8xf32>,
    %c0_27 = arith.constant 0 : index
    %c0_28 = arith.constant 0 : index
    %c0_29 = arith.constant 0 : index
    %c0_30 = arith.constant 0 : index
    %19 = vector.load %arg6[%c0_27, %c0_28, %c0_29, %c0_30] : memref<1x18x24x8xf32, #tpu.memory_space<vmem>>, vector<1x16x16x8xf32>
    %20 = vector.shape_cast %19 : vector<1x16x16x8xf32> to vector<256x8xf32>
    %21 = arith.truncf %20 : vector<256x8xf32> to vector<256x8xbf16>
    %c0_31 = arith.constant 0 : index
    %c0_32 = arith.constant 0 : index
    %c0_33 = arith.constant 0 : index
    %22 = vector.load %arg3[%c0_31, %c0_32, %c0_33] : memref<9x8x8xbf16, #tpu.memory_space<vmem>>, vector<1x8x8xbf16>
    %23 = vector.shape_cast %22 : vector<1x8x8xbf16> to vector<8x8xbf16>
    %cst_34 = arith.constant dense<0.000000e+00> : vector<256x8xf32>
    %24 = tpu.matmul %21, %23, %cst_34 {dimension_numbers = #tpu.dot_dimension_numbers<[1], [0], [0], [1], [0, 0, 1, 1], [], []>} : vector<256x8xbf16>, vector<8x8xbf16>, vector<256x8xf32> -> vector<256x8xf32>
    %c0_35 = arith.constant 0 : index
    %c0_36 = arith.constant 0 : index
    %25 = vector.load %arg7[%c0_35, %c0_36] : memref<256x8xf32, #tpu.memory_space<vmem>>, vector<256x8xf32>
    tpu.vector_store %arg7[%c0_35, %c0_36], %24 {strides = array<i32>} : memref<256x8xf32, #tpu.memory_space<vmem>>, vector<256x8xf32>,
    %c0_37 = arith.constant 0 : index
    %c0_38 = arith.constant 0 : index
    %c1_39 = arith.constant 1 : index
    %c0_40 = arith.constant 0 : index
    %26 = vector.load %arg6[%c0_37, %c0_38, %c1_39, %c0_40] : memref<1x18x24x8xf32, #tpu.memory_space<vmem>>, vector<1x16x16x8xf32>
    %27 = vector.shape_cast %26 : vector<1x16x16x8xf32> to vector<256x8xf32>
    %28 = arith.truncf %27 : vector<256x8xf32> to vector<256x8xbf16>
    %c1_41 = arith.constant 1 : index
    %c0_42 = arith.constant 0 : index
    %c0_43 = arith.constant 0 : index
    %29 = vector.load %arg3[%c1_41, %c0_42, %c0_43] : memref<9x8x8xbf16, #tpu.memory_space<vmem>>, vector<1x8x8xbf16>
    %30 = vector.shape_cast %29 : vector<1x8x8xbf16> to vector<8x8xbf16>
    %cst_44 = arith.constant dense<0.000000e+00> : vector<256x8xf32>
    %31 = tpu.matmul %28, %30, %cst_44 {dimension_numbers = #tpu.dot_dimension_numbers<[1], [0], [0], [1], [0, 0, 1, 1], [], []>} : vector<256x8xbf16>, vector<8x8xbf16>, vector<256x8xf32> -> vector<256x8xf32>
    %c0_45 = arith.constant 0 : index
    %c0_46 = arith.constant 0 : index
    %32 = vector.load %arg7[%c0_45, %c0_46] : memref<256x8xf32, #tpu.memory_space<vmem>>, vector<256x8xf32>
    %33 = arith.addf %32, %31 : vector<256x8xf32>
    %c0_47 = arith.constant 0 : index
    %c0_48 = arith.constant 0 : index
    %34 = vector.load %arg7[%c0_47, %c0_48] : memref<256x8xf32, #tpu.memory_space<vmem>>, vector<256x8xf32>
    tpu.vector_store %arg7[%c0_47, %c0_48], %33 {strides = array<i32>} : memref<256x8xf32, #tpu.memory_space<vmem>>, vector<256x8xf32>,
    %c0_49 = arith.constant 0 : index
    %c0_50 = arith.constant 0 : index
    %c2 = arith.constant 2 : index
    %c0_51 = arith.constant 0 : index
    %35 = vector.load %arg6[%c0_49, %c0_50, %c2, %c0_51] : memref<1x18x24x8xf32, #tpu.memory_space<vmem>>, vector<1x16x16x8xf32>
    %36 = vector.shape_cast %35 : vector<1x16x16x8xf32> to vector<256x8xf32>
    %37 = arith.truncf %36 : vector<256x8xf32> to vector<256x8xbf16>
    %c2_52 = arith.constant 2 : index
    %c0_53 = arith.constant 0 : index
    %c0_54 = arith.constant 0 : index
    %38 = vector.load %arg3[%c2_52, %c0_53, %c0_54] : memref<9x8x8xbf16, #tpu.memory_space<vmem>>, vector<1x8x8xbf16>
    %39 = vector.shape_cast %38 : vector<1x8x8xbf16> to vector<8x8xbf16>
    %cst_55 = arith.constant dense<0.000000e+00> : vector<256x8xf32>
    %40 = tpu.matmul %37, %39, %cst_55 {dimension_numbers = #tpu.dot_dimension_numbers<[1], [0], [0], [1], [0, 0, 1, 1], [], []>} : vector<256x8xbf16>, vector<8x8xbf16>, vector<256x8xf32> -> vector<256x8xf32>
    %c0_56 = arith.constant 0 : index
    %c0_57 = arith.constant 0 : index
    %41 = vector.load %arg7[%c0_56, %c0_57] : memref<256x8xf32, #tpu.memory_space<vmem>>, vector<256x8xf32>
    %42 = arith.addf %41, %40 : vector<256x8xf32>
    %c0_58 = arith.constant 0 : index
    %c0_59 = arith.constant 0 : index
    %43 = vector.load %arg7[%c0_58, %c0_59] : memref<256x8xf32, #tpu.memory_space<vmem>>, vector<256x8xf32>
    tpu.vector_store %arg7[%c0_58, %c0_59], %42 {strides = array<i32>} : memref<256x8xf32, #tpu.memory_space<vmem>>, vector<256x8xf32>,
    %c0_60 = arith.constant 0 : index
    %c1_61 = arith.constant 1 : index
    %c0_62 = arith.constant 0 : index
    %c0_63 = arith.constant 0 : index
    %44 = vector.load %arg6[%c0_60, %c1_61, %c0_62, %c0_63] : memref<1x18x24x8xf32, #tpu.memory_space<vmem>>, vector<1x16x16x8xf32>
    %45 = vector.shape_cast %44 : vector<1x16x16x8xf32> to vector<256x8xf32>
    %46 = arith.truncf %45 : vector<256x8xf32> to vector<256x8xbf16>
    %c3 = arith.constant 3 : index
    %c0_64 = arith.constant 0 : index
    %c0_65 = arith.constant 0 : index
    %47 = vector.load %arg3[%c3, %c0_64, %c0_65] : memref<9x8x8xbf16, #tpu.memory_space<vmem>>, vector<1x8x8xbf16>
    %48 = vector.shape_cast %47 : vector<1x8x8xbf16> to vector<8x8xbf16>
    %cst_66 = arith.constant dense<0.000000e+00> : vector<256x8xf32>
    %49 = tpu.matmul %46, %48, %cst_66 {dimension_numbers = #tpu.dot_dimension_numbers<[1], [0], [0], [1], [0, 0, 1, 1], [], []>} : vector<256x8xbf16>, vector<8x8xbf16>, vector<256x8xf32> -> vector<256x8xf32>
    %c0_67 = arith.constant 0 : index
    %c0_68 = arith.constant 0 : index
    %50 = vector.load %arg7[%c0_67, %c0_68] : memref<256x8xf32, #tpu.memory_space<vmem>>, vector<256x8xf32>
    %51 = arith.addf %50, %49 : vector<256x8xf32>
    %c0_69 = arith.constant 0 : index
    %c0_70 = arith.constant 0 : index
    %52 = vector.load %arg7[%c0_69, %c0_70] : memref<256x8xf32, #tpu.memory_space<vmem>>, vector<256x8xf32>
    tpu.vector_store %arg7[%c0_69, %c0_70], %51 {strides = array<i32>} : memref<256x8xf32, #tpu.memory_space<vmem>>, vector<256x8xf32>,
    %c0_71 = arith.constant 0 : index
    %c1_72 = arith.constant 1 : index
    %c1_73 = arith.constant 1 : index
    %c0_74 = arith.constant 0 : index
    %53 = vector.load %arg6[%c0_71, %c1_72, %c1_73, %c0_74] : memref<1x18x24x8xf32, #tpu.memory_space<vmem>>, vector<1x16x16x8xf32>
    %54 = vector.shape_cast %53 : vector<1x16x16x8xf32> to vector<256x8xf32>
    %55 = arith.truncf %54 : vector<256x8xf32> to vector<256x8xbf16>
    %c4 = arith.constant 4 : index
    %c0_75 = arith.constant 0 : index
    %c0_76 = arith.constant 0 : index
    %56 = vector.load %arg3[%c4, %c0_75, %c0_76] : memref<9x8x8xbf16, #tpu.memory_space<vmem>>, vector<1x8x8xbf16>
    %57 = vector.shape_cast %56 : vector<1x8x8xbf16> to vector<8x8xbf16>
    %cst_77 = arith.constant dense<0.000000e+00> : vector<256x8xf32>
    %58 = tpu.matmul %55, %57, %cst_77 {dimension_numbers = #tpu.dot_dimension_numbers<[1], [0], [0], [1], [0, 0, 1, 1], [], []>} : vector<256x8xbf16>, vector<8x8xbf16>, vector<256x8xf32> -> vector<256x8xf32>
    %c0_78 = arith.constant 0 : index
    %c0_79 = arith.constant 0 : index
    %59 = vector.load %arg7[%c0_78, %c0_79] : memref<256x8xf32, #tpu.memory_space<vmem>>, vector<256x8xf32>
    %60 = arith.addf %59, %58 : vector<256x8xf32>
    %c0_80 = arith.constant 0 : index
    %c0_81 = arith.constant 0 : index
    %61 = vector.load %arg7[%c0_80, %c0_81] : memref<256x8xf32, #tpu.memory_space<vmem>>, vector<256x8xf32>
    tpu.vector_store %arg7[%c0_80, %c0_81], %60 {strides = array<i32>} : memref<256x8xf32, #tpu.memory_space<vmem>>, vector<256x8xf32>,
    %c0_82 = arith.constant 0 : index
    %c1_83 = arith.constant 1 : index
    %c2_84 = arith.constant 2 : index
    %c0_85 = arith.constant 0 : index
    %62 = vector.load %arg6[%c0_82, %c1_83, %c2_84, %c0_85] : memref<1x18x24x8xf32, #tpu.memory_space<vmem>>, vector<1x16x16x8xf32>
    %63 = vector.shape_cast %62 : vector<1x16x16x8xf32> to vector<256x8xf32>
    %64 = arith.truncf %63 : vector<256x8xf32> to vector<256x8xbf16>
    %c5 = arith.constant 5 : index
    %c0_86 = arith.constant 0 : index
    %c0_87 = arith.constant 0 : index
    %65 = vector.load %arg3[%c5, %c0_86, %c0_87] : memref<9x8x8xbf16, #tpu.memory_space<vmem>>, vector<1x8x8xbf16>
    %66 = vector.shape_cast %65 : vector<1x8x8xbf16> to vector<8x8xbf16>
    %cst_88 = arith.constant dense<0.000000e+00> : vector<256x8xf32>
    %67 = tpu.matmul %64, %66, %cst_88 {dimension_numbers = #tpu.dot_dimension_numbers<[1], [0], [0], [1], [0, 0, 1, 1], [], []>} : vector<256x8xbf16>, vector<8x8xbf16>, vector<256x8xf32> -> vector<256x8xf32>
    %c0_89 = arith.constant 0 : index
    %c0_90 = arith.constant 0 : index
    %68 = vector.load %arg7[%c0_89, %c0_90] : memref<256x8xf32, #tpu.memory_space<vmem>>, vector<256x8xf32>
    %69 = arith.addf %68, %67 : vector<256x8xf32>
    %c0_91 = arith.constant 0 : index
    %c0_92 = arith.constant 0 : index
    %70 = vector.load %arg7[%c0_91, %c0_92] : memref<256x8xf32, #tpu.memory_space<vmem>>, vector<256x8xf32>
    tpu.vector_store %arg7[%c0_91, %c0_92], %69 {strides = array<i32>} : memref<256x8xf32, #tpu.memory_space<vmem>>, vector<256x8xf32>,
    %c0_93 = arith.constant 0 : index
    %c2_94 = arith.constant 2 : index
    %c0_95 = arith.constant 0 : index
    %c0_96 = arith.constant 0 : index
    %71 = vector.load %arg6[%c0_93, %c2_94, %c0_95, %c0_96] : memref<1x18x24x8xf32, #tpu.memory_space<vmem>>, vector<1x16x16x8xf32>
    %72 = vector.shape_cast %71 : vector<1x16x16x8xf32> to vector<256x8xf32>
    %73 = arith.truncf %72 : vector<256x8xf32> to vector<256x8xbf16>
    %c6 = arith.constant 6 : index
    %c0_97 = arith.constant 0 : index
    %c0_98 = arith.constant 0 : index
    %74 = vector.load %arg3[%c6, %c0_97, %c0_98] : memref<9x8x8xbf16, #tpu.memory_space<vmem>>, vector<1x8x8xbf16>
    %75 = vector.shape_cast %74 : vector<1x8x8xbf16> to vector<8x8xbf16>
    %cst_99 = arith.constant dense<0.000000e+00> : vector<256x8xf32>
    %76 = tpu.matmul %73, %75, %cst_99 {dimension_numbers = #tpu.dot_dimension_numbers<[1], [0], [0], [1], [0, 0, 1, 1], [], []>} : vector<256x8xbf16>, vector<8x8xbf16>, vector<256x8xf32> -> vector<256x8xf32>
    %c0_100 = arith.constant 0 : index
    %c0_101 = arith.constant 0 : index
    %77 = vector.load %arg7[%c0_100, %c0_101] : memref<256x8xf32, #tpu.memory_space<vmem>>, vector<256x8xf32>
    %78 = arith.addf %77, %76 : vector<256x8xf32>
    %c0_102 = arith.constant 0 : index
    %c0_103 = arith.constant 0 : index
    %79 = vector.load %arg7[%c0_102, %c0_103] : memref<256x8xf32, #tpu.memory_space<vmem>>, vector<256x8xf32>
    tpu.vector_store %arg7[%c0_102, %c0_103], %78 {strides = array<i32>} : memref<256x8xf32, #tpu.memory_space<vmem>>, vector<256x8xf32>,
    %c0_104 = arith.constant 0 : index
    %c2_105 = arith.constant 2 : index
    %c1_106 = arith.constant 1 : index
    %c0_107 = arith.constant 0 : index
    %80 = vector.load %arg6[%c0_104, %c2_105, %c1_106, %c0_107] : memref<1x18x24x8xf32, #tpu.memory_space<vmem>>, vector<1x16x16x8xf32>
    %81 = vector.shape_cast %80 : vector<1x16x16x8xf32> to vector<256x8xf32>
    %82 = arith.truncf %81 : vector<256x8xf32> to vector<256x8xbf16>
    %c7 = arith.constant 7 : index
    %c0_108 = arith.constant 0 : index
    %c0_109 = arith.constant 0 : index
    %83 = vector.load %arg3[%c7, %c0_108, %c0_109] : memref<9x8x8xbf16, #tpu.memory_space<vmem>>, vector<1x8x8xbf16>
    %84 = vector.shape_cast %83 : vector<1x8x8xbf16> to vector<8x8xbf16>
    %cst_110 = arith.constant dense<0.000000e+00> : vector<256x8xf32>
    %85 = tpu.matmul %82, %84, %cst_110 {dimension_numbers = #tpu.dot_dimension_numbers<[1], [0], [0], [1], [0, 0, 1, 1], [], []>} : vector<256x8xbf16>, vector<8x8xbf16>, vector<256x8xf32> -> vector<256x8xf32>
    %c0_111 = arith.constant 0 : index
    %c0_112 = arith.constant 0 : index
    %86 = vector.load %arg7[%c0_111, %c0_112] : memref<256x8xf32, #tpu.memory_space<vmem>>, vector<256x8xf32>
    %87 = arith.addf %86, %85 : vector<256x8xf32>
    %c0_113 = arith.constant 0 : index
    %c0_114 = arith.constant 0 : index
    %88 = vector.load %arg7[%c0_113, %c0_114] : memref<256x8xf32, #tpu.memory_space<vmem>>, vector<256x8xf32>
    tpu.vector_store %arg7[%c0_113, %c0_114], %87 {strides = array<i32>} : memref<256x8xf32, #tpu.memory_space<vmem>>, vector<256x8xf32>,
    %c0_115 = arith.constant 0 : index
    %c2_116 = arith.constant 2 : index
    %c2_117 = arith.constant 2 : index
    %c0_118 = arith.constant 0 : index
    %89 = vector.load %arg6[%c0_115, %c2_116, %c2_117, %c0_118] : memref<1x18x24x8xf32, #tpu.memory_space<vmem>>, vector<1x16x16x8xf32>
    %90 = vector.shape_cast %89 : vector<1x16x16x8xf32> to vector<256x8xf32>
    %91 = arith.truncf %90 : vector<256x8xf32> to vector<256x8xbf16>
    %c8 = arith.constant 8 : index
    %c0_119 = arith.constant 0 : index
    %c0_120 = arith.constant 0 : index
    %92 = vector.load %arg3[%c8, %c0_119, %c0_120] : memref<9x8x8xbf16, #tpu.memory_space<vmem>>, vector<1x8x8xbf16>
    %93 = vector.shape_cast %92 : vector<1x8x8xbf16> to vector<8x8xbf16>
    %cst_121 = arith.constant dense<0.000000e+00> : vector<256x8xf32>
    %94 = tpu.matmul %91, %93, %cst_121 {dimension_numbers = #tpu.dot_dimension_numbers<[1], [0], [0], [1], [0, 0, 1, 1], [], []>} : vector<256x8xbf16>, vector<8x8xbf16>, vector<256x8xf32> -> vector<256x8xf32>
    %c0_122 = arith.constant 0 : index
    %c0_123 = arith.constant 0 : index
    %95 = vector.load %arg7[%c0_122, %c0_123] : memref<256x8xf32, #tpu.memory_space<vmem>>, vector<256x8xf32>
    %96 = arith.addf %95, %94 : vector<256x8xf32>
    %c0_124 = arith.constant 0 : index
    %c0_125 = arith.constant 0 : index
    %97 = vector.load %arg7[%c0_124, %c0_125] : memref<256x8xf32, #tpu.memory_space<vmem>>, vector<256x8xf32>
    tpu.vector_store %arg7[%c0_124, %c0_125], %96 {strides = array<i32>} : memref<256x8xf32, #tpu.memory_space<vmem>>, vector<256x8xf32>,
    %c0_126 = arith.constant 0 : index
    %c0_127 = arith.constant 0 : index
    %98 = vector.load %arg7[%c0_126, %c0_127] : memref<256x8xf32, #tpu.memory_space<vmem>>, vector<256x8xf32>
    %99 = arith.truncf %98 : vector<256x8xf32> to vector<256x8xbf16>
    %100 = arith.extf %99 : vector<256x8xbf16> to vector<256x8xf32>
    %cst_128 = arith.constant dense<0.000000e+00> : vector<8xf32>
    %101 = vector.multi_reduction <add>, %100, %cst_128 [0] : vector<256x8xf32> to vector<8xf32>
    %102 = vector.shape_cast %101 : vector<8xf32> to vector<1x8xf32>
    %103 = arith.mulf %100, %100 : vector<256x8xf32>
    %cst_129 = arith.constant dense<0.000000e+00> : vector<8xf32>
    %104 = vector.multi_reduction <add>, %103, %cst_129 [0] : vector<256x8xf32> to vector<8xf32>
    %105 = vector.shape_cast %104 : vector<8xf32> to vector<1x8xf32>
    %106 = tpu.iota {dimensions = array<i32: 0>} : vector<8x8xi32>
    %c0_i32 = arith.constant 0 : i32
    %107 = vector.broadcast %c0_i32 : i32 to vector<8x8xi32>
    %108 = arith.cmpi eq, %106, %107 : vector<8x8xi32>
    %c1_i32 = arith.constant 1 : i32
    %109 = vector.broadcast %c1_i32 : i32 to vector<8x8xi32>
    %110 = arith.cmpi eq, %106, %109 : vector<8x8xi32>
    %cst_130 = arith.constant 0.000000e+00 : f32
    %111 = vector.shape_cast %105 : vector<1x8xf32> to vector<1x8xf32>
    %112 = vector.broadcast %111 : vector<1x8xf32> to vector<8x8xf32>
    %113 = vector.broadcast %cst_130 : f32 to vector<8x8xf32>
    %114 = arith.select %110, %112, %113 : vector<8x8xi1>, vector<8x8xf32>
    %115 = vector.shape_cast %102 : vector<1x8xf32> to vector<1x8xf32>
    %116 = vector.broadcast %115 : vector<1x8xf32> to vector<8x8xf32>
    %117 = arith.select %108, %116, %114 : vector<8x8xi1>, vector<8x8xf32>
    %c0_131 = arith.constant 0 : index
    %c0_132 = arith.constant 0 : index
    %c0_133 = arith.constant 0 : index
    %118 = vector.load %arg5[%c0_131, %c0_132, %c0_133] : memref<1x8x8xf32, #tpu.memory_space<vmem>>, vector<1x8x8xf32>
    %119 = vector.shape_cast %118 : vector<1x8x8xf32> to vector<8x8xf32>
    %120 = vector.shape_cast %117 : vector<8x8xf32> to vector<1x8x8xf32>
    tpu.vector_store %arg5[%c0_131, %c0_132, %c0_133], %120 {strides = array<i32>} : memref<1x8x8xf32, #tpu.memory_space<vmem>>, vector<1x8x8xf32>,
    %121 = vector.shape_cast %99 : vector<256x8xbf16> to vector<1x16x16x8xbf16>
    %c0_134 = arith.constant 0 : index
    %c0_135 = arith.constant 0 : index
    %c0_136 = arith.constant 0 : index
    %c0_137 = arith.constant 0 : index
    %122 = vector.load %arg4[%c0_134, %c0_135, %c0_136, %c0_137] : memref<1x16x16x8xbf16, #tpu.memory_space<vmem>>, vector<1x16x16x8xbf16>
    tpu.vector_store %arg4[%c0_134, %c0_135, %c0_136, %c0_137], %121 {strides = array<i32>} : memref<1x16x16x8xbf16, #tpu.memory_space<vmem>>, vector<1x16x16x8xbf16>,
    return
  }
  func.func @transform_0(%arg0: i32) -> (i32, i32) {
    %c0_i32 = arith.constant 0 : i32
    %c0_i32_0 = arith.constant 0 : i32
    %c0_i32_1 = arith.constant 0 : i32
    return %c0_i32, %c0_i32_0 : i32, i32
  }
  func.func @transform_1(%arg0: i32) -> (i32, i32, i32, i32) {
    %c0_i32 = arith.constant 0 : i32
    %c0_i32_0 = arith.constant 0 : i32
    %c0_i32_1 = arith.constant 0 : i32
    %c0_i32_2 = arith.constant 0 : i32
    return %arg0, %c0_i32, %c0_i32_0, %c0_i32_1 : i32, i32, i32, i32
  }
  func.func @transform_2(%arg0: i32) -> (i32, i32, i32) {
    %c0_i32 = arith.constant 0 : i32
    %c0_i32_0 = arith.constant 0 : i32
    %c0_i32_1 = arith.constant 0 : i32
    %c0_i32_2 = arith.constant 0 : i32
    return %c0_i32, %c0_i32_0, %c0_i32_1 : i32, i32, i32
  }
  func.func @transform_3(%arg0: i32) -> (i32, i32, i32, i32) {
    %c0_i32 = arith.constant 0 : i32
    %c0_i32_0 = arith.constant 0 : i32
    %c0_i32_1 = arith.constant 0 : i32
    %c0_i32_2 = arith.constant 0 : i32
    return %arg0, %c0_i32, %c0_i32_0, %c0_i32_1 : i32, i32, i32, i32
  }
  func.func @transform_4(%arg0: i32) -> (i32, i32, i32) {
    %c0_i32 = arith.constant 0 : i32
    %c0_i32_0 = arith.constant 0 : i32
    %c0_i32_1 = arith.constant 0 : i32
    return %arg0, %c0_i32, %c0_i32_0 : i32, i32, i32
  }
}

</mosaic_0001>

<bundles_post_ra>
// kernel: double_conv.5
= control target key start
LH: loop header
LB: loop body
LE: loop exit
PB: predicated region body
PF: predicated region fallthrough
CT: control target
= control target key end

     0   :  { %s527_s9 = smov 0   ;;  %s706_s0 = inlined_call_operand.vmem [shape: f32[8,8], index: 0, kind: input, shape index: {}]   ;;  %s707_s1 = inlined_call_operand.vmem [shape: bf16[2,16,16,8], index: 1, kind: input, shape index: {}]   ;;  %s708_s2 = inlined_call_operand.vmem [shape: f32[2,16,16,8], index: 2, kind: output, shape index: {}]  }
   0x1 LB: > { %s402_s10 = sadd.s32 4294967295, %s510_s9   ;;  %p406_p0 = scmp.ge.s32.totalorder %s510_s9, 1  ;;  %s510_s9 = sphi %s527_s9, %s12_s9  }
   0x2   : > { %p112_p1 = scmp.lt.s32.totalorder %s510_s9, 3 }
   0x4   : > { %p113_p2 = pnand %p406_p0, %p112_p1 }
   0x5   : > { %p134_p3 = scmp.lt.s32.totalorder (!%p113_p2), %s402_s10, 1 }
   0x6   : > { %116 = sbr.rel (%p113_p2) target bundleno = 51 (0x33), region = 28 }
   0xb   : > { %s710_s10 = smov (!%p134_p3, %s402_s10), 1  ;;  %v546_v0 = vld [vmem:[%s706_s0] ss:$0 sm:$0xff]  ;;  %vm314_vm0 = vcmask 64512   ;;  %v555_v9 = vld [vmem:[%s706_s0 + $0x1] ss:$0 sm:$0xff] }
   0xc   : > { %s415_s11 = sshll.u32 %s710_s10, 7  ;;  %s416_s19 = sshll.u32 %s710_s10, 8 }
   0xd   : > { %s541_s14 = scalar_lea.vmem %s707_s1, %s415_s11  ;;  %s573_s22 = scalar_lea.vmem %s708_s2, %s416_s19 }
   0xe   : > { %v418_v1 = vld [vmem:[%s541_s14] sm:$0xff]   ;;  %v481_v2 = vld [vmem:[%s541_s14 + $0x8] sm:$0xff]   ;;  %v482_v3 = vld [vmem:[%s541_s14 + $0x10] sm:$0xff]  }
   0xf   : > { %v419_v4 = vunpack.c.l.bf16 %v418_v1  ;;  %v420_v5 = vunpack.c.h.bf16 %v418_v1  ;;  %v423_v6 = vunpack.c.l.bf16 %v481_v2  ;;  %v424_v7 = vunpack.c.h.bf16 %v481_v2  ;;  %v483_v8 = vld [vmem:[%s541_s14 + $0x18] sm:$0xff]   ;;  %v484_v30 = vld [vmem:[%s541_s14 + $0x20] sm:$0xff]   ;;  %v485_v31 = vld [vmem:[%s541_s14 + $0x28] sm:$0xff]  }
  0x10   : > { %v427_v10 = vunpack.c.l.bf16 %v482_v3  ;;  %v428_v11 = vunpack.c.h.bf16 %v482_v3  ;;  %v431_v12 = vunpack.c.l.bf16 %v483_v8  ;;  %v432_v13 = vunpack.c.h.bf16 %v483_v8  ;;  %v486_v36 = vld [vmem:[%s541_s14 + $0x30] sm:$0xff]   ;;  %v487_v37 = vld [vmem:[%s541_s14 + $0x38] sm:$0xff]   ;;  %v488_v3 = vld [vmem:[%s541_s14 + $0x40] sm:$0xff]  }
  0x11   : > { %v214_v14 = vmul.f32 %v419_v4, %v546_v0  ;;  %v215_v15 = vmul.f32 %v420_v5, %v546_v0  ;;  %v216_v16 = vmul.f32 %v423_v6, %v546_v0  ;;  %v217_v17 = vmul.f32 %v424_v7, %v546_v0  ;;  %v489_v4 = vld [vmem:[%s541_s14 + $0x48] sm:$0xff]  }
  0x12   : > { %v218_v18 = vmul.f32 %v427_v10, %v546_v0  ;;  %v219_v19 = vmul.f32 %v428_v11, %v546_v0  ;;  %v220_v20 = vmul.f32 %v431_v12, %v546_v0  ;;  %v221_v21 = vmul.f32 %v432_v13, %v546_v0  ;;  %v490_v10 = vld [vmem:[%s541_s14 + $0x50] sm:$0xff]   ;;  %v491_v11 = vld [vmem:[%s541_s14 + $0x58] sm:$0xff]  }
  0x13   : > { %v250_v22 = vadd.f32 %v555_v9, %v214_v14  ;;  %v251_v23 = vadd.f32 %v555_v9, %v215_v15  ;;  %v252_v24 = vadd.f32 %v555_v9, %v216_v16  ;;  %v253_v25 = vadd.f32 %v555_v9, %v217_v17 }
  0x14   : > { %v254_v26 = vadd.f32 %v555_v9, %v218_v18  ;;  %v255_v27 = vadd.f32 %v555_v9, %v219_v19  ;;  %v256_v28 = vadd.f32 %v555_v9, %v220_v20  ;;  %v257_v29 = vadd.f32 %v555_v9, %v221_v21 }
  0x15   : > { %v282_v32 = vmax.f32 %v250_v22, 0.0  ;;  %v283_v33 = vmax.f32 %v251_v23, 0.0  ;;  %v284_v34 = vmax.f32 %v252_v24, 0.0  ;;  %v285_v35 = vmax.f32 %v253_v25, 0.0 }
  0x16   : > { %v286_v38 = vmax.f32 %v254_v26, 0.0  ;;  %v287_v39 = vmax.f32 %v255_v27, 0.0  ;;  %v288_v40 = vmax.f32 %v256_v28, 0.0  ;;  %v289_v41 = vmax.f32 %v257_v29, 0.0 }
  0x17   : > { %315 = vst.msk [vmem:[%s573_s22] sm:$0xff] %vm314_vm0, %v282_v32  ;;  %316 = vst.msk [vmem:[%s573_s22 + $0x8] sm:$0xff] %vm314_vm0, %v283_v33  ;;  %v435_v42 = vunpack.c.l.bf16 %v484_v30  ;;  %v436_v43 = vunpack.c.h.bf16 %v484_v30  ;;  %v439_v44 = vunpack.c.l.bf16 %v485_v31  ;;  %v440_v45 = vunpack.c.h.bf16 %v485_v31 }
  0x18   : > { %317 = vst.msk [vmem:[%s573_s22 + $0x10] sm:$0xff] %vm314_vm0, %v284_v34  ;;  %318 = vst.msk [vmem:[%s573_s22 + $0x18] sm:$0xff] %vm314_vm0, %v285_v35  ;;  %v443_v46 = vunpack.c.l.bf16 %v486_v36  ;;  %v444_v47 = vunpack.c.h.bf16 %v486_v36  ;;  %v447_v48 = vunpack.c.l.bf16 %v487_v37  ;;  %v448_v49 = vunpack.c.h.bf16 %v487_v37 }
  0x19   : > { %319 = vst.msk [vmem:[%s573_s22 + $0x20] sm:$0xff] %vm314_vm0, %v286_v38  ;;  %320 = vst.msk [vmem:[%s573_s22 + $0x28] sm:$0xff] %vm314_vm0, %v287_v39  ;;  %v222_v50 = vmul.f32 %v435_v42, %v546_v0  ;;  %v223_v51 = vmul.f32 %v436_v43, %v546_v0  ;;  %v224_v52 = vmul.f32 %v439_v44, %v546_v0  ;;  %v451_v16 = vunpack.c.l.bf16 %v488_v3 }
  0x1a   : > { %321 = vst.msk [vmem:[%s573_s22 + $0x30] sm:$0xff] %vm314_vm0, %v288_v40  ;;  %322 = vst.msk [vmem:[%s573_s22 + $0x38] sm:$0xff] %vm314_vm0, %v289_v41  ;;  %v225_v53 = vmul.f32 %v440_v45, %v546_v0  ;;  %v226_v54 = vmul.f32 %v443_v46, %v546_v0  ;;  %v227_v55 = vmul.f32 %v444_v47, %v546_v0  ;;  %v452_v17 = vunpack.c.h.bf16 %v488_v3  ;;  %v492_v40 = vld [vmem:[%s541_s14 + $0x60] sm:$0xff]   ;;  %v493_v41 = vld [vmem:[%s541_s14 + $0x68] sm:$0xff]  }
  0x1b   : > { %v228_v56 = vmul.f32 %v447_v48, %v546_v0  ;;  %v229_v57 = vmul.f32 %v448_v49, %v546_v0  ;;  %v258_v58 = vadd.f32 %v555_v9, %v222_v50  ;;  %v259_v59 = vadd.f32 %v555_v9, %v223_v51  ;;  %v494_v46 = vld [vmem:[%s541_s14 + $0x70] sm:$0xff]   ;;  %v495_v47 = vld [vmem:[%s541_s14 + $0x78] sm:$0xff]  }
  0x1c   : > { %v260_v60 = vadd.f32 %v555_v9, %v224_v52  ;;  %v261_v61 = vadd.f32 %v555_v9, %v225_v53  ;;  %v262_v62 = vadd.f32 %v555_v9, %v226_v54  ;;  %v263_v63 = vadd.f32 %v555_v9, %v227_v55 }
  0x1d   : > { %v264_v1 = vadd.f32 %v555_v9, %v228_v56  ;;  %v265_v2 = vadd.f32 %v555_v9, %v229_v57  ;;  %v290_v5 = vmax.f32 %v258_v58, 0.0  ;;  %v291_v6 = vmax.f32 %v259_v59, 0.0 }
  0x1e   : > { %v292_v7 = vmax.f32 %v260_v60, 0.0  ;;  %v293_v8 = vmax.f32 %v261_v61, 0.0  ;;  %v294_v12 = vmax.f32 %v262_v62, 0.0  ;;  %v295_v13 = vmax.f32 %v263_v63, 0.0 }
  0x1f   : > { %v296_v14 = vmax.f32 %v264_v1, 0.0  ;;  %v297_v15 = vmax.f32 %v265_v2, 0.0  ;;  %323 = vst.msk [vmem:[%s573_s22 + $0x40] sm:$0xff] %vm314_vm0, %v290_v5  ;;  %324 = vst.msk [vmem:[%s573_s22 + $0x48] sm:$0xff] %vm314_vm0, %v291_v6  ;;  %v455_v18 = vunpack.c.l.bf16 %v489_v4  ;;  %v456_v19 = vunpack.c.h.bf16 %v489_v4 }
  0x20   : > { %325 = vst.msk [vmem:[%s573_s22 + $0x50] sm:$0xff] %vm314_vm0, %v292_v7  ;;  %326 = vst.msk [vmem:[%s573_s22 + $0x58] sm:$0xff] %vm314_vm0, %v293_v8  ;;  %v459_v20 = vunpack.c.l.bf16 %v490_v10  ;;  %v460_v21 = vunpack.c.h.bf16 %v490_v10  ;;  %v463_v22 = vunpack.c.l.bf16 %v491_v11  ;;  %v464_v23 = vunpack.c.h.bf16 %v491_v11 }
  0x21   : > { %327 = vst.msk [vmem:[%s573_s22 + $0x60] sm:$0xff] %vm314_vm0, %v294_v12  ;;  %328 = vst.msk [vmem:[%s573_s22 + $0x68] sm:$0xff] %vm314_vm0, %v295_v13  ;;  %v230_v24 = vmul.f32 %v451_v16, %v546_v0  ;;  %v231_v25 = vmul.f32 %v452_v17, %v546_v0  ;;  %v232_v26 = vmul.f32 %v455_v18, %v546_v0  ;;  %v467_v52 = vunpack.c.l.bf16 %v492_v40 }
  0x22   : > { %329 = vst.msk [vmem:[%s573_s22 + $0x70] sm:$0xff] %vm314_vm0, %v296_v14  ;;  %330 = vst.msk [vmem:[%s573_s22 + $0x78] sm:$0xff] %vm314_vm0, %v297_v15  ;;  %v233_v27 = vmul.f32 %v456_v19, %v546_v0  ;;  %v234_v28 = vmul.f32 %v459_v20, %v546_v0  ;;  %v235_v29 = vmul.f32 %v460_v21, %v546_v0  ;;  %v468_v53 = vunpack.c.h.bf16 %v492_v40 }
  0x23   : > { %v236_v30 = vmul.f32 %v463_v22, %v546_v0  ;;  %v237_v31 = vmul.f32 %v464_v23, %v546_v0  ;;  %v266_v32 = vadd.f32 %v555_v9, %v230_v24  ;;  %v267_v33 = vadd.f32 %v555_v9, %v231_v25 }
  0x24   : > { %v268_v34 = vadd.f32 %v555_v9, %v232_v26  ;;  %v269_v35 = vadd.f32 %v555_v9, %v233_v27  ;;  %v270_v36 = vadd.f32 %v555_v9, %v234_v28  ;;  %v271_v37 = vadd.f32 %v555_v9, %v235_v29 }
  0x25   : > { %v272_v38 = vadd.f32 %v555_v9, %v236_v30  ;;  %v273_v39 = vadd.f32 %v555_v9, %v237_v31  ;;  %v298_v42 = vmax.f32 %v266_v32, 0.0  ;;  %v299_v43 = vmax.f32 %v267_v33, 0.0 }
  0x26   : > { %v300_v44 = vmax.f32 %v268_v34, 0.0  ;;  %v301_v45 = vmax.f32 %v269_v35, 0.0  ;;  %v302_v48 = vmax.f32 %v270_v36, 0.0  ;;  %v303_v49 = vmax.f32 %v271_v37, 0.0 }
  0x27   : > { %v304_v50 = vmax.f32 %v272_v38, 0.0  ;;  %v305_v51 = vmax.f32 %v273_v39, 0.0  ;;  %331 = vst.msk [vmem:[%s573_s22 + $0x80] sm:$0xff] %vm314_vm0, %v298_v42  ;;  %332 = vst.msk [vmem:[%s573_s22 + $0x88] sm:$0xff] %vm314_vm0, %v299_v43  ;;  %v471_v54 = vunpack.c.l.bf16 %v493_v41  ;;  %v472_v55 = vunpack.c.h.bf16 %v493_v41 }
  0x28   : > { %333 = vst.msk [vmem:[%s573_s22 + $0x90] sm:$0xff] %vm314_vm0, %v300_v44  ;;  %334 = vst.msk [vmem:[%s573_s22 + $0x98] sm:$0xff] %vm314_vm0, %v301_v45  ;;  %v475_v56 = vunpack.c.l.bf16 %v494_v46  ;;  %v476_v57 = vunpack.c.h.bf16 %v494_v46  ;;  %v479_v58 = vunpack.c.l.bf16 %v495_v47  ;;  %v480_v59 = vunpack.c.h.bf16 %v495_v47 }
  0x29   : > { %335 = vst.msk [vmem:[%s573_s22 + $0xa0] sm:$0xff] %vm314_vm0, %v302_v48  ;;  %336 = vst.msk [vmem:[%s573_s22 + $0xa8] sm:$0xff] %vm314_vm0, %v303_v49  ;;  %v238_v60 = vmul.f32 %v467_v52, %v546_v0  ;;  %v239_v61 = vmul.f32 %v468_v53, %v546_v0  ;;  %v240_v62 = vmul.f32 %v471_v54, %v546_v0 }
  0x2a   : > { %337 = vst.msk [vmem:[%s573_s22 + $0xb0] sm:$0xff] %vm314_vm0, %v304_v50  ;;  %338 = vst.msk [vmem:[%s573_s22 + $0xb8] sm:$0xff] %vm314_vm0, %v305_v51  ;;  %v241_v63 = vmul.f32 %v472_v55, %v546_v0  ;;  %v242_v1 = vmul.f32 %v475_v56, %v546_v0  ;;  %v243_v2 = vmul.f32 %v476_v57, %v546_v0 }
  0x2b   : > { %v244_v3 = vmul.f32 %v479_v58, %v546_v0  ;;  %v245_v4 = vmul.f32 %v480_v59, %v546_v0  ;;  %v274_v5 = vadd.f32 %v555_v9, %v238_v60  ;;  %v275_v6 = vadd.f32 %v555_v9, %v239_v61 }
  0x2c   : > { %v276_v7 = vadd.f32 %v555_v9, %v240_v62  ;;  %v277_v8 = vadd.f32 %v555_v9, %v241_v63  ;;  %v278_v10 = vadd.f32 %v555_v9, %v242_v1  ;;  %v279_v11 = vadd.f32 %v555_v9, %v243_v2 }
  0x2d   : > { %v280_v0 = vadd.f32 %v555_v9, %v244_v3  ;;  %v281_v12 = vadd.f32 %v555_v9, %v245_v4  ;;  %v306_v13 = vmax.f32 %v274_v5, 0.0  ;;  %v307_v14 = vmax.f32 %v275_v6, 0.0 }
  0x2e   : > { %v308_v15 = vmax.f32 %v276_v7, 0.0  ;;  %v309_v16 = vmax.f32 %v277_v8, 0.0  ;;  %v310_v17 = vmax.f32 %v278_v10, 0.0  ;;  %v311_v18 = vmax.f32 %v279_v11, 0.0 }
  0x2f   : > { %v312_v19 = vmax.f32 %v280_v0, 0.0  ;;  %v313_v20 = vmax.f32 %v281_v12, 0.0  ;;  %339 = vst.msk [vmem:[%s573_s22 + $0xc0] sm:$0xff] %vm314_vm0, %v306_v13  ;;  %340 = vst.msk [vmem:[%s573_s22 + $0xc8] sm:$0xff] %vm314_vm0, %v307_v14 }
  0x30   : > { %341 = vst.msk [vmem:[%s573_s22 + $0xd0] sm:$0xff] %vm314_vm0, %v308_v15  ;;  %342 = vst.msk [vmem:[%s573_s22 + $0xd8] sm:$0xff] %vm314_vm0, %v309_v16 }
  0x31   : > { %343 = vst.msk [vmem:[%s573_s22 + $0xe0] sm:$0xff] %vm314_vm0, %v310_v17  ;;  %344 = vst.msk [vmem:[%s573_s22 + $0xe8] sm:$0xff] %vm314_vm0, %v311_v18 }
  0x32   : > { %345 = vst.msk [vmem:[%s573_s22 + $0xf0] sm:$0xff] %vm314_vm0, %v312_v19  ;;  %346 = vst.msk [vmem:[%s573_s22 + $0xf8] sm:$0xff] %vm314_vm0, %v313_v20 }
  0x33 PF: > { %s12_s9 = sadd.s32 1, %s510_s9  }
  0x34   : > { %p9_p4 = scmp.ge.s32.totalorder %s12_s9, 4  }
  0x36   :  { %11 = sbr.rel (!%p9_p4) target bundleno = 1 (0x1), region = 58 }

// kernel: double_conv.3
= control target key start
LH: loop header
LB: loop body
LE: loop exit
PB: predicated region body
PF: predicated region fallthrough
CT: control target
= control target key end

     0   :  { %s4713_s15 = smov 0   ;;  %s5798_s0 = inlined_call_operand.vmem [shape: f32[8,4], index: 0, kind: input, shape index: {}]   ;;  %s5799_s1 = inlined_call_operand.vmem [shape: f32[2,16,16,4], index: 1, kind: input, shape index: {}]   ;;  %s5800_s2 = inlined_call_operand.vmem [shape: bf16[9,4,8], index: 2, kind: input, shape index: {}]   ;;  %s5801_s3 = inlined_call_operand.vmem [shape: bf16[2,16,16,8], index: 3, kind: output, shape index: {0}]   ;;  %s5802_s4 = inlined_call_operand.vmem [shape: f32[2,8,8], index: 4, kind: output, shape index: {1}]  }
   0x1 LB: > { %s3969_s0 = sadd.s32 4294967295, %s4685_s15   ;;  %p3973_p0 = scmp.ge.s32.totalorder %s4685_s15, 1  ;;  %s4685_s15 = sphi %s4713_s15, %s15_s15  }
   0x2   : > { %p165_p1 = scmp.lt.s32.totalorder %s4685_s15, 3 }
   0x4   : > { %p166_p2 = pnand %p3973_p0, %p165_p1 }
   0x5   : > { %p4724_p3 = scmp.lt.s32.totalorder (!%p166_p2), %s3969_s0, 1 }
   0x6   : > { %169 = sbr.rel (%p166_p2) target bundleno = 586 (0x24a), region = 32 }
   0xb   : > { %v369_v0 = vld [vmem:[%s5800_s2] sm:$0x3]  ;;  %vm418_vm0 = vcmask 1041408   ;;  %vm242_vm1 = vcmask 31744   ;;  %vm251_vm2 = vcmask 24576   ;;  %v4687_v2 = vmov 0.0  }
   0xc   : > { %4661 = vmatprep.subr.msk.bf16.mxu1 %vm418_vm0, %v369_v0  ;;  %v420_v1 = vsel %vm418_vm0, %v369_v0, 0  ;;  %243 = vst.msk [vmem:[#allocation2] sm:$0xff] %vm242_vm1, %v4687_v2  ;;  %244 = vst.msk [vmem:[#allocation2 + $0x8] sm:$0xff] %vm242_vm1, %v4687_v2  ;;  %v4737_v3 = vld [vmem:[%s5800_s2 + $0x2] sm:$0x3]  ;;  %4660 = vmatprep.subr.msk.bf16.mxu0 %vm418_vm0, %v369_v0  ;;  %s5805_s0 = smov (!%p4724_p3, %s3969_s0), 1 }
   0xd   : > { %248 = vst.msk [vmem:[#allocation2 + $0x198] sm:$0xff] %vm242_vm1, %v4687_v2  ;;  %249 = vst.msk [vmem:[#allocation2 + $0x1a0] sm:$0xff] %vm242_vm1, %v4687_v2  ;;  %v4743_v4 = vld [vmem:[%s5800_s2 + $0x4] sm:$0x3]  ;;  %4659 = vmatpush3.bf16.msra.mxu1 %v420_v1  ;;  %4353 = vmatpush3.bf16.msra.mxu0 %v420_v1  ;;  %vm245_vm3 = vcmask 25600   ;;  %s4165_s23 = sshll.u32 %s5805_s0, 8 }
   0xe   : > { %260 = vst.msk [vmem:[#allocation2 + $0xc0] sm:$0x1] %vm251_vm2, %v4687_v2  ;;  %253 = vst.msk [vmem:[#allocation2 + $0x18] sm:$0x1] %vm251_vm2, %v4687_v2  ;;  %4662 = vmatprep.subr.msk.bf16.mxu1 %vm418_vm0, %v4737_v3  ;;  %4663 = vmatprep.subr.msk.bf16.mxu0 %vm418_vm0, %v4743_v4  ;;  %s4793_s26 = scalar_lea.vmem %s5799_s1, %s4165_s23  ;;  %v715_v38 = vsel %vm418_vm0, %v4737_v3, 0  ;;  %v1073_v44 = vsel %vm418_vm0, %v4743_v4, 0 }
   0xf   : > { %254 = vst.msk [vmem:[#allocation2 + $0x30] sm:$0x1] %vm251_vm2, %v4687_v2  ;;  %255 = vst.msk [vmem:[#allocation2 + $0x48] sm:$0x1] %vm251_vm2, %v4687_v2  ;;  %v224_v5 = vld [vmem:[%s4793_s26 + $0x70] sm:$0xff]  ;;  %v225_v6 = vld [vmem:[%s4793_s26 + $0x78] sm:$0xff] }
  0x10   : > { %256 = vst.msk [vmem:[#allocation2 + $0x60] sm:$0x1] %vm251_vm2, %v4687_v2  ;;  %257 = vst.msk [vmem:[#allocation2 + $0x78] sm:$0x1] %vm251_vm2, %v4687_v2  ;;  %v226_v7 = vld [vmem:[%s4793_s26 + $0x80] sm:$0xff]  ;;  %v227_v8 = vld [vmem:[%s4793_s26 + $0x88] sm:$0xff] }
  0x11   : > { %258 = vst.msk [vmem:[#allocation2 + $0x90] sm:$0x1] %vm251_vm2, %v4687_v2  ;;  %259 = vst.msk [vmem:[#allocation2 + $0xa8] sm:$0x1] %vm251_vm2, %v4687_v2  ;;  %v210_v9 = vld [vmem:[%s4793_s26] sm:$0xff]  ;;  %v211_v10 = vld [vmem:[%s4793_s26 + $0x8] sm:$0xff] }
  0x12   : > { %261 = vst.msk [vmem:[#allocation2 + $0xd8] sm:$0x1] %vm251_vm2, %v4687_v2  ;;  %262 = vst.msk [vmem:[#allocation2 + $0xf0] sm:$0x1] %vm251_vm2, %v4687_v2  ;;  %v228_v12 = vld [vmem:[%s4793_s26 + $0x90] sm:$0xff]  ;;  %v229_v13 = vld [vmem:[%s4793_s26 + $0x98] sm:$0xff] }
  0x13   : > { %263 = vst.msk [vmem:[#allocation2 + $0x108] sm:$0x1] %vm251_vm2, %v4687_v2  ;;  %264 = vst.msk [vmem:[#allocation2 + $0x120] sm:$0x1] %vm251_vm2, %v4687_v2  ;;  %v322_v11 = vld [vmem:[#allocation2 + $0x8] sm:$0xff]  ;;  %v230_v15 = vld [vmem:[%s4793_s26 + $0xa0] sm:$0xff] }
  0x14   : > { %265 = vst.msk [vmem:[#allocation2 + $0x138] sm:$0x1] %vm251_vm2, %v4687_v2  ;;  %266 = vst.msk [vmem:[#allocation2 + $0x150] sm:$0x1] %vm251_vm2, %v4687_v2  ;;  %v231_v16 = vld [vmem:[%s4793_s26 + $0xa8] sm:$0xff]  ;;  %v212_v18 = vld [vmem:[%s4793_s26 + $0x10] sm:$0xff] }
  0x15   : > { %267 = vst.msk [vmem:[#allocation2 + $0x168] sm:$0x1] %vm251_vm2, %v4687_v2  ;;  %268 = vst.msk [vmem:[#allocation2 + $0x180] sm:$0x1] %vm251_vm2, %v4687_v2  ;;  %v213_v19 = vld [vmem:[%s4793_s26 + $0x18] sm:$0xff]  ;;  %v214_v20 = vld [vmem:[%s4793_s26 + $0x20] sm:$0xff] }
  0x16   : > { %271 = vst.msk [vmem:[#allocation2 + $0x29] sm:$0x1] %vm251_vm2, %v4687_v2  ;;  %272 = vst.msk [vmem:[#allocation2 + $0x41] sm:$0x1] %vm251_vm2, %v4687_v2  ;;  %v215_v21 = vld [vmem:[%s4793_s26 + $0x28] sm:$0xff]  ;;  %v232_v22 = vld [vmem:[%s4793_s26 + $0xb0] sm:$0xff] }
  0x17   : > { %273 = vst.msk [vmem:[#allocation2 + $0x59] sm:$0x1] %vm251_vm2, %v4687_v2  ;;  %274 = vst.msk [vmem:[#allocation2 + $0x71] sm:$0x1] %vm251_vm2, %v4687_v2  ;;  %v233_v23 = vld [vmem:[%s4793_s26 + $0xb8] sm:$0xff]  ;;  %v234_v24 = vld [vmem:[%s4793_s26 + $0xc0] sm:$0xff] }
  0x18   : > { %275 = vst.msk [vmem:[#allocation2 + $0x89] sm:$0x1] %vm251_vm2, %v4687_v2  ;;  %276 = vst.msk [vmem:[#allocation2 + $0xa1] sm:$0x1] %vm251_vm2, %v4687_v2  ;;  %v235_v25 = vld [vmem:[%s4793_s26 + $0xc8] sm:$0xff]  ;;  %v216_v26 = vld [vmem:[%s4793_s26 + $0x30] sm:$0xff] }
  0x19   : > { %277 = vst.msk [vmem:[#allocation2 + $0xb9] sm:$0x1] %vm251_vm2, %v4687_v2  ;;  %278 = vst.msk [vmem:[#allocation2 + $0xd1] sm:$0x1] %vm251_vm2, %v4687_v2  ;;  %v217_v27 = vld [vmem:[%s4793_s26 + $0x38] sm:$0xff]  ;;  %v218_v28 = vld [vmem:[%s4793_s26 + $0x40] sm:$0xff] }
  0x1a   : > { %279 = vst.msk [vmem:[#allocation2 + $0xe9] sm:$0x1] %vm251_vm2, %v4687_v2  ;;  %280 = vst.msk [vmem:[#allocation2 + $0x101] sm:$0x1] %vm251_vm2, %v4687_v2  ;;  %v219_v29 = vld [vmem:[%s4793_s26 + $0x48] sm:$0xff]  ;;  %v236_v42 = vld [vmem:[%s4793_s26 + $0xd0] sm:$0xff] }
  0x1b   : > { %281 = vst.msk [vmem:[#allocation2 + $0x119] sm:$0x1] %vm251_vm2, %v4687_v2  ;;  %282 = vst.msk [vmem:[#allocation2 + $0x131] sm:$0x1] %vm251_vm2, %v4687_v2  ;;  %v237_v45 = vld [vmem:[%s4793_s26 + $0xd8] sm:$0xff]  ;;  %v238_v61 = vld [vmem:[%s4793_s26 + $0xe0] sm:$0xff] }
  0x1c   : > { %283 = vst.msk [vmem:[#allocation2 + $0x149] sm:$0x1] %vm251_vm2, %v4687_v2  ;;  %284 = vst.msk [vmem:[#allocation2 + $0x161] sm:$0x1] %vm251_vm2, %v4687_v2  ;;  %v4860_v46 = vld [vmem:[%s5800_s2 + $0x6] sm:$0x3] }
  0x1d   : > { %285 = vst.msk [vmem:[#allocation2 + $0x179] sm:$0x1] %vm251_vm2, %v4687_v2  ;;  %286 = vst.msk [vmem:[#allocation2 + $0x191] sm:$0x1] %vm251_vm2, %v4687_v2  ;;  %v4865_v47 = vld [vmem:[%s5800_s2 + $0x8] sm:$0x3] }
  0x1e   : > { %252 = vst.msk [vmem:[#allocation2] sm:$0x1] %vm251_vm2, %v4687_v2  ;;  %269 = vst.msk [vmem:[#allocation2 + $0x198] sm:$0x1] %vm251_vm2, %v4687_v2  ;;  %v239_v62 = vld [vmem:[%s4793_s26 + $0xe8] sm:$0xff]  ;;  %v220_v63 = vld [vmem:[%s4793_s26 + $0x50] sm:$0xff] }
  0x1f   : > { %246 = vst.msk [vmem:[#allocation2 + $0x10] sm:$0x3] %vm245_vm3, %v4687_v2  ;;  %250 = vst.msk [vmem:[#allocation2 + $0x1a8] sm:$0x3] %vm245_vm3, %v4687_v2  ;;  %v222_v3 = vld [vmem:[%s4793_s26 + $0x60] sm:$0xff]  ;;  %v223_v4 = vld [vmem:[%s4793_s26 + $0x68] sm:$0xff] }
  0x20   : > { %287 = vst.msk [vmem:[#allocation2 + $0x1a9] sm:$0x1] %vm251_vm2, %v4687_v2  ;;  %270 = vst.msk [vmem:[#allocation2 + $0x11] sm:$0x1] %vm251_vm2, %v4687_v2  ;;  %v221_v2 = vld [vmem:[%s4793_s26 + $0x58] sm:$0xff]  ;;  %vm583_vm4 = vcmask 64512  }
  0x21   : > { %303 = vst.msk [vmem:[#allocation2 + $0xc1] sm:$0xff] %vm242_vm1, %v224_v5  ;;  %304 = vst.msk [vmem:[#allocation2 + $0xc9] sm:$0xff] %vm242_vm1, %v225_v6  ;;  %s4166_s13 = sshll.u32 %s5805_s0, 7  ;;  %vm3850_vm5 = vcmask 60416   ;;  %s3978_s18 = sshll.u32 %s5805_s0, 3 }
  0x22   : > { %305 = vst.msk [vmem:[#allocation2 + $0xd9] sm:$0xff] %vm242_vm1, %v226_v7  ;;  %306 = vst.msk [vmem:[#allocation2 + $0xe1] sm:$0xff] %vm242_vm1, %v227_v8  ;;  %s5505_s17 = scalar_lea.vmem %s5801_s3, %s4166_s13  ;;  %s208_s21 = scalar_lea.vmem %s5802_s4, %s3978_s18 }
  0x23   : > { %289 = vst.msk [vmem:[#allocation2 + $0x19] sm:$0xff] %vm242_vm1, %v210_v9  ;;  %290 = vst.msk [vmem:[#allocation2 + $0x21] sm:$0xff] %vm242_vm1, %v211_v10 }
  0x24   : > { %307 = vst.msk [vmem:[#allocation2 + $0xf1] sm:$0xff] %vm242_vm1, %v228_v12  ;;  %308 = vst.msk [vmem:[#allocation2 + $0xf9] sm:$0xff] %vm242_vm1, %v229_v13 }
  0x25   : > { %v321_v14 = vld [vmem:[#allocation2] sm:$0xff]  ;;  %309 = vst.msk [vmem:[#allocation2 + $0x109] sm:$0xff] %vm242_vm1, %v230_v15  ;;  %310 = vst.msk [vmem:[#allocation2 + $0x111] sm:$0xff] %vm242_vm1, %v231_v16 }
  0x26   : > { %v353_v17 = vpack.c.bf16 %v322_v11, %v321_v14  ;;  %291 = vst.msk [vmem:[#allocation2 + $0x31] sm:$0xff] %vm242_vm1, %v212_v18  ;;  %292 = vst.msk [vmem:[#allocation2 + $0x39] sm:$0xff] %vm242_vm1, %v213_v19  ;;  %v616_v18 = vld [vmem:[#allocation2 + $0x1] sm:$0xff] }
  0x27   : > { %293 = vst.msk [vmem:[#allocation2 + $0x49] sm:$0xff] %vm242_vm1, %v214_v20  ;;  %294 = vst.msk [vmem:[#allocation2 + $0x51] sm:$0xff] %vm242_vm1, %v215_v21 }
  0x28   : > { %4354 = vmatprep.mubr.msk.bf16.mxu0 %vm242_vm1, %v353_v17  ;;  %311 = vst.msk [vmem:[#allocation2 + $0x121] sm:$0xff] %vm242_vm1, %v232_v22  ;;  %312 = vst.msk [vmem:[#allocation2 + $0x129] sm:$0xff] %vm242_vm1, %v233_v23  ;;  %v337_v30 = vld [vmem:[#allocation2 + $0xc0] sm:$0xff]  ;;  %v338_v31 = vld [vmem:[#allocation2 + $0xc8] sm:$0xff] }
  0x29   : > { %313 = vst.msk [vmem:[#allocation2 + $0x139] sm:$0xff] %vm242_vm1, %v234_v24  ;;  %314 = vst.msk [vmem:[#allocation2 + $0x141] sm:$0xff] %vm242_vm1, %v235_v25  ;;  %v339_v32 = vld [vmem:[#allocation2 + $0xd8] sm:$0xff]  ;;  %v4840_v33 = vpack.c.bf16 %v338_v31, %v337_v30  ;;  %v340_v34 = vld [vmem:[#allocation2 + $0xe0] sm:$0xff] }
  0x2a   : > { %295 = vst.msk [vmem:[#allocation2 + $0x61] sm:$0xff] %vm242_vm1, %v216_v26  ;;  %296 = vst.msk [vmem:[#allocation2 + $0x69] sm:$0xff] %vm242_vm1, %v217_v27  ;;  %v323_v35 = vld [vmem:[#allocation2 + $0x18] sm:$0xff]  ;;  %v324_v36 = vld [vmem:[#allocation2 + $0x20] sm:$0xff]  ;;  %v4842_v37 = vpack.c.bf16 %v340_v34, %v339_v32 }
  0x2b   : > { %297 = vst.msk [vmem:[#allocation2 + $0x79] sm:$0xff] %vm242_vm1, %v218_v28  ;;  %298 = vst.msk [vmem:[#allocation2 + $0x81] sm:$0xff] %vm242_vm1, %v219_v29  ;;  %v4846_v39 = vpack.c.bf16 %v324_v36, %v323_v35  ;;  %v341_v40 = vld [vmem:[#allocation2 + $0xf0] sm:$0xff]  ;;  %v342_v41 = vld [vmem:[#allocation2 + $0xf8] sm:$0xff]  ;;  %4370 = vmatprep.mubr.msk.bf16.mxu1 %vm242_vm1, %v4840_v33 }
  0x2c   : > { %v4851_v43 = vpack.c.bf16 %v342_v41, %v341_v40  ;;  %315 = vst.msk [vmem:[#allocation2 + $0x151] sm:$0xff] %vm242_vm1, %v236_v42  ;;  %4371 = vmatmul.mubr.msk.bf16.vlgmr.msra.gmra.mxu1 %vm242_vm1, %v4842_v37  ;;  %v343_v48 = vld [vmem:[#allocation2 + $0x108] sm:$0xff]  ;;  %316 = vst.msk [vmem:[#allocation2 + $0x159] sm:$0xff] %vm242_vm1, %v237_v45  ;;  %v344_v51 = vld [vmem:[#allocation2 + $0x110] sm:$0xff] }
  0x2d   : > { %4355 = vmatmul.mubr.msk.bf16.vlgmr.msra.gmra.mxu0 %vm242_vm1, %v4846_v39  ;;  %v325_v49 = vld [vmem:[#allocation2 + $0x30] sm:$0xff]  ;;  %v326_v50 = vld [vmem:[#allocation2 + $0x38] sm:$0xff]  ;;  %4387 = vmatpush3.bf16.msra.mxu1 %v715_v38  ;;  %v4882_v59 = vpack.c.bf16 %v344_v51, %v343_v48  ;;  %317 = vst.msk [vmem:[#allocation2 + $0x169] sm:$0xff] %vm242_vm1, %v238_v61  ;;  %318 = vst.msk [vmem:[#allocation2 + $0x171] sm:$0xff] %vm242_vm1, %v239_v62 }
  0x2e   : > { %4374 = vmatprep.mubr.msk.bf16.mxu1 %vm242_vm1, %v4851_v43  ;;  %v4874_v52 = vpack.c.bf16 %v326_v50, %v325_v49  ;;  %v327_v53 = vld [vmem:[#allocation2 + $0x48] sm:$0xff]  ;;  %v328_v54 = vld [vmem:[#allocation2 + $0x50] sm:$0xff]  ;;  %4421 = vmatpush3.bf16.msra.mxu0 %v1073_v44  ;;  %299 = vst.msk [vmem:[#allocation2 + $0x91] sm:$0xff] %vm242_vm1, %v220_v63  ;;  %300 = vst.msk [vmem:[#allocation2 + $0x99] sm:$0xff] %vm242_vm1, %v221_v2  ;;  %v1431_v44 = vsel %vm418_vm0, %v4860_v46, 0  ;;  %v1789_v50 = vsel %vm418_vm0, %v4865_v47, 0 }
  0x2f   : > { %v345_v55 = vld [vmem:[#allocation2 + $0x120] sm:$0xff]  ;;  %v346_v56 = vld [vmem:[#allocation2 + $0x128] sm:$0xff]  ;;  %4664 = vmatprep.subr.msk.bf16.mxu1 %vm418_vm0, %v4860_v46  ;;  %4665 = vmatprep.subr.msk.bf16.mxu0 %vm418_vm0, %v4865_v47  ;;  %v4884_v60 = vpack.c.bf16 %v328_v54, %v327_v53  ;;  %301 = vst.msk [vmem:[#allocation2 + $0xa9] sm:$0xff] %vm242_vm1, %v222_v3  ;;  %302 = vst.msk [vmem:[#allocation2 + $0xb1] sm:$0xff] %vm242_vm1, %v223_v4 }
  0x30   : > { %4358 = vmatprep.mubr.msk.bf16.mxu0 %vm242_vm1, %v4874_v52  ;;  %v4889_v0 = vpack.c.bf16 %v346_v56, %v345_v55  ;;  %v347_v5 = vld [vmem:[#allocation2 + $0x138] sm:$0xff]  ;;  %v348_v6 = vld [vmem:[#allocation2 + $0x140] sm:$0xff]  ;;  %v617_v22 = vld [vmem:[#allocation2 + $0x9] sm:$0xff] }
  0x31   : > { %v329_v57 = vld [vmem:[#allocation2 + $0x60] sm:$0xff]  ;;  %v330_v58 = vld [vmem:[#allocation2 + $0x68] sm:$0xff]  ;;  %v4910_v11 = vpack.c.bf16 %v348_v6, %v347_v5  ;;  %v648_v27 = vpack.c.bf16 %v617_v22, %v616_v18  ;;  %v620_v34 = vld [vmem:[#allocation2 + $0x31] sm:$0xff] }
  0x32   : > { %v4891_v1 = vpack.c.bf16 %v330_v58, %v329_v57  ;;  %v331_v7 = vld [vmem:[#allocation2 + $0x78] sm:$0xff]  ;;  %v332_v8 = vld [vmem:[#allocation2 + $0x80] sm:$0xff]  ;;  %v975_v24 = vld [vmem:[#allocation2 + $0xa] sm:$0xff] }
  0x33   : > { %v349_v9 = vld [vmem:[#allocation2 + $0x150] sm:$0xff]  ;;  %v350_v10 = vld [vmem:[#allocation2 + $0x158] sm:$0xff]  ;;  %v4912_v12 = vpack.c.bf16 %v332_v8, %v331_v7  ;;  %v974_v23 = vld [vmem:[#allocation2 + $0x2] sm:$0xff] }
  0x34   : > { %4375 = vmatmul.mubr.msk.bf16.gmra.mxu1 %vm242_vm1, %v4882_v59  ;;  %v4914_v14 = vpack.c.bf16 %v350_v10, %v349_v9  ;;  %v351_v17 = vld [vmem:[#allocation2 + $0x168] sm:$0xff]  ;;  %v352_v19 = vld [vmem:[#allocation2 + $0x170] sm:$0xff]  ;;  %v1006_v28 = vpack.c.bf16 %v975_v24, %v974_v23  ;;  %v618_v29 = vld [vmem:[#allocation2 + $0x19] sm:$0xff] }
  0x35   : > { %4359 = vmatmul.mubr.msk.bf16.gmra.mxu0 %vm242_vm1, %v4884_v60  ;;  %4378 = vmatprep.mubr.msk.bf16.mxu1 %vm242_vm1, %v4889_v0  ;;  %v333_v13 = vld [vmem:[#allocation2 + $0x90] sm:$0xff]  ;;  %v334_v15 = vld [vmem:[#allocation2 + $0x98] sm:$0xff]  ;;  %v4926_v25 = vpack.c.bf16 %v352_v19, %v351_v17  ;;  %v619_v30 = vld [vmem:[#allocation2 + $0x21] sm:$0xff] }
  0x36   : > { %4362 = vmatprep.mubr.msk.bf16.mxu0 %vm242_vm1, %v4891_v1  ;;  %v4916_v16 = vpack.c.bf16 %v334_v15, %v333_v13  ;;  %v335_v20 = vld [vmem:[#allocation2 + $0xa8] sm:$0xff]  ;;  %v336_v21 = vld [vmem:[#allocation2 + $0xb0] sm:$0xff]  ;;  %v976_v31 = vld [vmem:[#allocation2 + $0x1a] sm:$0xff]  ;;  %v4936_v40 = vpack.c.bf16 %v619_v30, %v618_v29 }
  0x37   : > { %v4928_v26 = vpack.c.bf16 %v336_v21, %v335_v20  ;;  %v977_v32 = vld [vmem:[#allocation2 + $0x22] sm:$0xff]  ;;  %v621_v35 = vld [vmem:[#allocation2 + $0x39] sm:$0xff]  ;;  %v240_v48 = vld [vmem:[%s4793_s26 + $0xf0] sm:$0xff] }
  0x38   : > { %v978_v36 = vld [vmem:[#allocation2 + $0x32] sm:$0xff]  ;;  %v979_v38 = vld [vmem:[#allocation2 + $0x3a] sm:$0xff]  ;;  %v4938_v41 = vpack.c.bf16 %v977_v32, %v976_v31  ;;  %v4940_v42 = vpack.c.bf16 %v621_v35, %v620_v34  ;;  %v4953_v51 = vld [vmem:[%s5800_s2 + $0xa] sm:$0x3]  ;;  %319 = vst.msk [vmem:[#allocation2 + $0x181] sm:$0xff] %vm242_vm1, %v240_v48 }
  0x39   : > { %v4944_v45 = vpack.c.bf16 %v979_v38, %v978_v36  ;;  %v241_v49 = vld [vmem:[%s4793_s26 + $0xf8] sm:$0xff]  ;;  %v622_v46 = vld [vmem:[#allocation2 + $0x49] sm:$0xff]  ;;  %v624_v56 = vld [vmem:[#allocation2 + $0x61] sm:$0xff] }
  0x3a   : > { %320 = vst.msk [vmem:[#allocation2 + $0x189] sm:$0xff] %vm242_vm1, %v241_v49  ;;  %v623_v53 = vld [vmem:[#allocation2 + $0x51] sm:$0xff]  ;;  %v4964_v47 = vld [vmem:[%s5800_s2 + $0xc] sm:$0x3]  ;;  %v982_v58 = vld [vmem:[#allocation2 + $0x62] sm:$0xff] }
  0x3b   : > { %v980_v54 = vld [vmem:[#allocation2 + $0x4a] sm:$0xff]  ;;  %v981_v55 = vld [vmem:[#allocation2 + $0x52] sm:$0xff]  ;;  %v4974_v62 = vpack.c.bf16 %v623_v53, %v622_v46  ;;  %v627_v5 = vld [vmem:[#allocation2 + $0x81] sm:$0xff] }
  0x3c   : > { %4379 = vmatmul.mubr.msk.bf16.gmra.mxu1 %vm242_vm1, %v4910_v11  ;;  %v625_v57 = vld [vmem:[#allocation2 + $0x69] sm:$0xff]  ;;  %v4976_v63 = vpack.c.bf16 %v981_v55, %v980_v54  ;;  %v626_v4 = vld [vmem:[#allocation2 + $0x79] sm:$0xff]  ;;  %v628_v8 = vld [vmem:[#allocation2 + $0x91] sm:$0xff] }
  0x3d   : > { %4363 = vmatmul.mubr.msk.bf16.gmra.mxu0 %vm242_vm1, %v4912_v12  ;;  %4382 = vmatprep.mubr.msk.bf16.mxu1 %vm242_vm1, %v4914_v14  ;;  %v983_v61 = vld [vmem:[#allocation2 + $0x6a] sm:$0xff]  ;;  %v4978_v2 = vpack.c.bf16 %v625_v57, %v624_v56  ;;  %v984_v6 = vld [vmem:[#allocation2 + $0x7a] sm:$0xff]  ;;  %v985_v7 = vld [vmem:[#allocation2 + $0x82] sm:$0xff]  ;;  %v4990_v15 = vpack.c.bf16 %v627_v5, %v626_v4 }
  0x3e   : > { %4366 = vmatprep.mubr.msk.bf16.mxu0 %vm242_vm1, %v4916_v16  ;;  %v4980_v3 = vpack.c.bf16 %v983_v61, %v982_v58  ;;  %v629_v9 = vld [vmem:[#allocation2 + $0x99] sm:$0xff]  ;;  %v4992_v17 = vpack.c.bf16 %v985_v7, %v984_v6  ;;  %v630_v20 = vld [vmem:[#allocation2 + $0xa9] sm:$0xff]  ;;  %v631_v21 = vld [vmem:[#allocation2 + $0xb1] sm:$0xff] }
  0x3f   : > { %v986_v10 = vld [vmem:[#allocation2 + $0x92] sm:$0xff]  ;;  %v987_v13 = vld [vmem:[#allocation2 + $0x9a] sm:$0xff]  ;;  %v4994_v18 = vpack.c.bf16 %v629_v9, %v628_v8  ;;  %v988_v22 = vld [vmem:[#allocation2 + $0xaa] sm:$0xff]  ;;  %v5006_v30 = vpack.c.bf16 %v631_v21, %v630_v20 }
  0x40   : > { %v4996_v19 = vpack.c.bf16 %v987_v13, %v986_v10  ;;  %v989_v23 = vld [vmem:[#allocation2 + $0xb2] sm:$0xff]  ;;  %v632_v24 = vld [vmem:[#allocation2 + $0xc1] sm:$0xff]  ;;  %v991_v29 = vld [vmem:[#allocation2 + $0xca] sm:$0xff] }
  0x41   : > { %v5008_v31 = vpack.c.bf16 %v989_v23, %v988_v22  ;;  %v634_v35 = vld [vmem:[#allocation2 + $0xd9] sm:$0xff]  ;;  %v635_v36 = vld [vmem:[#allocation2 + $0xe1] sm:$0xff]  ;;  %v636_v48 = vld [vmem:[#allocation2 + $0xf1] sm:$0xff] }
  0x42   : > { %v992_v38 = vld [vmem:[#allocation2 + $0xda] sm:$0xff]  ;;  %v5022_v53 = vpack.c.bf16 %v635_v36, %v634_v35  ;;  %v638_v57 = vld [vmem:[#allocation2 + $0x109] sm:$0xff]  ;;  %v639_v58 = vld [vmem:[#allocation2 + $0x111] sm:$0xff] }
  0x43   : > { %v637_v49 = vld [vmem:[#allocation2 + $0xf9] sm:$0xff]  ;;  %v996_v61 = vld [vmem:[#allocation2 + $0x10a] sm:$0xff]  ;;  %v640_v5 = vld [vmem:[#allocation2 + $0x121] sm:$0xff]  ;;  %v659_v9 = vpack.c.bf16 %v639_v58, %v638_v57 }
  0x44   : > { %4383 = vmatmul.mubr.msk.bf16.gmra.mxu1 %vm242_vm1, %v4926_v25  ;;  %v995_v46 = vld [vmem:[#allocation2 + $0xfa] sm:$0xff]  ;;  %v5026_v55 = vpack.c.bf16 %v637_v49, %v636_v48  ;;  %v997_v4 = vld [vmem:[#allocation2 + $0x112] sm:$0xff]  ;;  %v641_v6 = vld [vmem:[#allocation2 + $0x129] sm:$0xff] }
  0x45   : > { %4367 = vmatmul.mubr.msk.bf16.gmra.mxu0 %vm242_vm1, %v4928_v26  ;;  %4388 = vmatprep.mubr.msk.bf16.mxu1 %vm242_vm1, %v648_v27  ;;  %v633_v27 = vld [vmem:[#allocation2 + $0xc9] sm:$0xff]  ;;  %v5038_v10 = vpack.c.bf16 %v997_v4, %v996_v61  ;;  %v660_v13 = vpack.c.bf16 %v641_v6, %v640_v5  ;;  %v642_v21 = vld [vmem:[#allocation2 + $0x139] sm:$0xff]  ;;  %v643_v22 = vld [vmem:[#allocation2 + $0x141] sm:$0xff]  ;;  %v2147_v4 = vsel %vm418_vm0, %v4953_v51, 0  ;;  %v2506_v5 = vsel %vm418_vm0, %v4964_v47, 0 }
  0x46   : > { %4422 = vmatprep.mubr.msk.bf16.mxu0 %vm242_vm1, %v1006_v28  ;;  %v990_v28 = vld [vmem:[#allocation2 + $0xc2] sm:$0xff]  ;;  %v5010_v32 = vpack.c.bf16 %v633_v27, %v632_v24  ;;  %v999_v8 = vld [vmem:[#allocation2 + $0x12a] sm:$0xff]  ;;  %v1000_v23 = vld [vmem:[#allocation2 + $0x13a] sm:$0xff]  ;;  %v661_v36 = vpack.c.bf16 %v643_v22, %v642_v21 }
  0x47   : > { %v5012_v34 = vpack.c.bf16 %v991_v29, %v990_v28  ;;  %v998_v7 = vld [vmem:[#allocation2 + $0x122] sm:$0xff]  ;;  %v644_v27 = vld [vmem:[#allocation2 + $0x151] sm:$0xff]  ;;  %v645_v28 = vld [vmem:[#allocation2 + $0x159] sm:$0xff] }
  0x48   : > { %v5040_v20 = vpack.c.bf16 %v999_v8, %v998_v7  ;;  %v1001_v24 = vld [vmem:[#allocation2 + $0x142] sm:$0xff]  ;;  %v1002_v29 = vld [vmem:[#allocation2 + $0x152] sm:$0xff]  ;;  %v1003_v35 = vld [vmem:[#allocation2 + $0x15a] sm:$0xff] }
  0x49   : > { %v5050_v48 = vpack.c.bf16 %v1003_v35, %v1002_v29  ;;  %v646_v49 = vld [vmem:[#allocation2 + $0x169] sm:$0xff]  ;;  %v1005_v57 = vld [vmem:[#allocation2 + $0x172] sm:$0xff] }
  0x4a   : > { %v4097_v6 = vld [vmem:[%s5800_s2 + $0xe] sm:$0x3] }
  0x4b   : > { %v2079_v8 = vld [vmem:[#allocation2 + $0x18a] sm:$0xff] }
  0x4c   : > { %4389 = vmatmul.mubr.msk.bf16.vlgmr.msra.gmra.mxu1 %vm242_vm1, %v4936_v40 }
  0x4d   : > { %4423 = vmatmul.mubr.msk.bf16.vlgmr.msra.gmra.mxu0 %vm242_vm1, %v4938_v41  ;;  %4455 = vmatpush3.bf16.msra.mxu1 %v1431_v44  ;;  %v993_v44 = vld [vmem:[#allocation2 + $0xe2] sm:$0xff] }
  0x4e   : > { %4392 = vmatprep.mubr.msk.bf16.mxu1 %vm242_vm1, %v4940_v42  ;;  %4489 = vmatpush3.bf16.msra.mxu0 %v1789_v50  ;;  %v994_v50 = vld [vmem:[#allocation2 + $0xf2] sm:$0xff]  ;;  %v5024_v54 = vpack.c.bf16 %v993_v44, %v992_v38  ;;  %v5048_v38 = vpack.c.bf16 %v1001_v24, %v1000_v23  ;;  %v662_v44 = vpack.c.bf16 %v645_v28, %v644_v27 }
  0x4f   : > { %4426 = vmatprep.mubr.msk.bf16.mxu0 %vm242_vm1, %v4944_v45  ;;  %4666 = vmatprep.subr.msk.bf16.mxu1 %vm418_vm0, %v4953_v51  ;;  %v5028_v56 = vpack.c.bf16 %v995_v46, %v994_v50  ;;  %v647_v50 = vld [vmem:[#allocation2 + $0x171] sm:$0xff]  ;;  %v1363_v51 = vld [vmem:[#allocation2 + $0x188] sm:$0xff] }
  0x50   : > { %4667 = vmatprep.subr.msk.bf16.mxu0 %vm418_vm0, %v4964_v47  ;;  %v1004_v46 = vld [vmem:[#allocation2 + $0x16a] sm:$0xff]  ;;  %v663_v58 = vpack.c.bf16 %v647_v50, %v646_v49  ;;  %v1720_v47 = vld [vmem:[#allocation2 + $0x181] sm:$0xff] }
  0x51   : > { %v5058_v61 = vpack.c.bf16 %v1005_v57, %v1004_v46 }
  0x54   : > { %4393 = vmatmul.mubr.msk.bf16.gmra.mxu1 %vm242_vm1, %v4974_v62 }
  0x55   : > { %4427 = vmatmul.mubr.msk.bf16.gmra.mxu0 %vm242_vm1, %v4976_v63  ;;  %4396 = vmatprep.mubr.msk.bf16.mxu1 %vm242_vm1, %v4978_v2 }
  0x56   : > { %4430 = vmatprep.mubr.msk.bf16.mxu0 %vm242_vm1, %v4980_v3 }
  0x5c   : > { %4397 = vmatmul.mubr.msk.bf16.gmra.mxu1 %vm242_vm1, %v4990_v15 }
  0x5d   : > { %4431 = vmatmul.mubr.msk.bf16.gmra.mxu0 %vm242_vm1, %v4992_v17  ;;  %4400 = vmatprep.mubr.msk.bf16.mxu1 %vm242_vm1, %v4994_v18 }
  0x5e   : > { %4434 = vmatprep.mubr.msk.bf16.mxu0 %vm242_vm1, %v4996_v19 }
  0x64   : > { %4401 = vmatmul.mubr.msk.bf16.gmra.mxu1 %vm242_vm1, %v5006_v30 }
  0x65   : > { %4435 = vmatmul.mubr.msk.bf16.gmra.mxu0 %vm242_vm1, %v5008_v31  ;;  %4404 = vmatprep.mubr.msk.bf16.mxu1 %vm242_vm1, %v5010_v32 }
  0x66   : > { %4438 = vmatprep.mubr.msk.bf16.mxu0 %vm242_vm1, %v5012_v34 }
  0x6c   : > { %4405 = vmatmul.mubr.msk.bf16.gmra.mxu1 %vm242_vm1, %v5022_v53 }
  0x6d   : > { %4439 = vmatmul.mubr.msk.bf16.gmra.mxu0 %vm242_vm1, %v5024_v54  ;;  %4408 = vmatprep.mubr.msk.bf16.mxu1 %vm242_vm1, %v5026_v55 }
  0x6e   : > { %4442 = vmatprep.mubr.msk.bf16.mxu0 %vm242_vm1, %v5028_v56 }
  0x74   : > { %4409 = vmatmul.mubr.msk.bf16.gmra.mxu1 %vm242_vm1, %v659_v9 }
  0x75   : > { %4443 = vmatmul.mubr.msk.bf16.gmra.mxu0 %vm242_vm1, %v5038_v10  ;;  %4412 = vmatprep.mubr.msk.bf16.mxu1 %vm242_vm1, %v660_v13 }
  0x76   : > { %4446 = vmatprep.mubr.msk.bf16.mxu0 %vm242_vm1, %v5040_v20 }
  0x7c   : > { %4413 = vmatmul.mubr.msk.bf16.gmra.mxu1 %vm242_vm1, %v661_v36 }
  0x7d   : > { %4447 = vmatmul.mubr.msk.bf16.gmra.mxu0 %vm242_vm1, %v5048_v38  ;;  %4416 = vmatprep.mubr.msk.bf16.mxu1 %vm242_vm1, %v662_v44 }
  0x7e   : > { %4450 = vmatprep.mubr.msk.bf16.mxu0 %vm242_vm1, %v5050_v48 }
  0x84   : > { %4417 = vmatmul.mubr.msk.bf16.gmra.mxu1 %vm242_vm1, %v663_v58 }
  0x85   : > { %4451 = vmatmul.mubr.msk.bf16.gmra.mxu0 %vm242_vm1, %v5058_v61  ;;  %4456 = vmatprep.mubr.msk.bf16.mxu1 %vm242_vm1, %v4846_v39  ;;  %v4114_v39 = vld [vmem:[%s5800_s2 + $0x10] sm:$0x3] }
  0x86   : > { %4490 = vmatprep.mubr.msk.bf16.mxu0 %vm242_vm1, %v4936_v40  ;;  %v1362_v40 = vld [vmem:[#allocation2 + $0x180] sm:$0xff]  ;;  %v3222_v7 = vsel %vm418_vm0, %v4114_v39, 0 }
  0x8c   : > { %4457 = vmatmul.mubr.msk.bf16.vlgmr.msra.gmra.mxu1 %vm242_vm1, %v4874_v52 }
  0x8d   : > { %4491 = vmatmul.mubr.msk.bf16.vlgmr.msra.gmra.mxu0 %vm242_vm1, %v4940_v42  ;;  %4523 = vmatpush3.bf16.msra.mxu1 %v2147_v4  ;;  %v3131_v4 = vld [vmem:[#allocation2 + $0x92] sm:$0xff] }
  0x8e   : > { %4460 = vmatprep.mubr.msk.bf16.mxu1 %vm242_vm1, %v4884_v60  ;;  %4557 = vmatpush3.bf16.msra.mxu0 %v2506_v5  ;;  %v3132_v5 = vld [vmem:[#allocation2 + $0x9a] sm:$0xff] }
  0x8f   : > { %4494 = vmatprep.mubr.msk.bf16.mxu0 %vm242_vm1, %v4974_v62  ;;  %4668 = vmatprep.subr.msk.bf16.mxu1 %vm418_vm0, %v4097_v6 }
  0x90   : > { %4669 = vmatprep.subr.msk.bf16.mxu0 %vm418_vm0, %v4114_v39 }
  0x94   : > { %4461 = vmatmul.mubr.msk.bf16.gmra.mxu1 %vm242_vm1, %v4891_v1 }
  0x95   : > { %4495 = vmatmul.mubr.msk.bf16.gmra.mxu0 %vm242_vm1, %v4978_v2  ;;  %4464 = vmatprep.mubr.msk.bf16.mxu1 %vm242_vm1, %v4912_v12 }
  0x96   : > { %4498 = vmatprep.mubr.msk.bf16.mxu0 %vm242_vm1, %v4990_v15 }
  0x9c   : > { %4465 = vmatmul.mubr.msk.bf16.gmra.mxu1 %vm242_vm1, %v4916_v16 }
  0x9d   : > { %4499 = vmatmul.mubr.msk.bf16.gmra.mxu0 %vm242_vm1, %v4994_v18  ;;  %4468 = vmatprep.mubr.msk.bf16.mxu1 %vm242_vm1, %v4928_v26 }
  0x9e   : > { %4502 = vmatprep.mubr.msk.bf16.mxu0 %vm242_vm1, %v5006_v30  ;;  %v1721_v30 = vld [vmem:[#allocation2 + $0x189] sm:$0xff] }
  0xa4   : > { %4469 = vmatmul.mubr.msk.bf16.gmra.mxu1 %vm242_vm1, %v4840_v33 }
  0xa5   : > { %4503 = vmatmul.mubr.msk.bf16.gmra.mxu0 %vm242_vm1, %v5010_v32  ;;  %4472 = vmatprep.mubr.msk.bf16.mxu1 %vm242_vm1, %v4842_v37  ;;  %v5130_v32 = vpack.c.bf16 %v1363_v51, %v1362_v40  ;;  %v3159_v51 = vpack.c.bf16 %v3132_v5, %v3131_v4  ;;  %v3140_v4 = vld [vmem:[#allocation2 + $0xfa] sm:$0xff] }
  0xa6   : > { %4506 = vmatprep.mubr.msk.bf16.mxu0 %vm242_vm1, %v5022_v53  ;;  %v1737_v53 = vpack.c.bf16 %v1721_v30, %v1720_v47 }
  0xac   : > { %4473 = vmatmul.mubr.msk.bf16.gmra.mxu1 %vm242_vm1, %v4851_v43 }
  0xad   : > { %4507 = vmatmul.mubr.msk.bf16.gmra.mxu0 %vm242_vm1, %v5026_v55  ;;  %4476 = vmatprep.mubr.msk.bf16.mxu1 %vm242_vm1, %v4882_v59  ;;  %v2864_v55 = vsel %vm418_vm0, %v4097_v6, 0 }
  0xae   : > { %4510 = vmatprep.mubr.msk.bf16.mxu0 %vm242_vm1, %v659_v9  ;;  %v2437_v9 = vld [vmem:[#allocation2 + $0x198] sm:$0xff] }
  0xb4   : > { %4477 = vmatmul.mubr.msk.bf16.gmra.mxu1 %vm242_vm1, %v4889_v0 }
  0xb5   : > { %4511 = vmatmul.mubr.msk.bf16.gmra.mxu0 %vm242_vm1, %v660_v13  ;;  %4480 = vmatprep.mubr.msk.bf16.mxu1 %vm242_vm1, %v4910_v11 }
  0xb6   : > { %4514 = vmatprep.mubr.msk.bf16.mxu0 %vm242_vm1, %v661_v36 }
  0xbc   : > { %4481 = vmatmul.mubr.msk.bf16.gmra.mxu1 %vm242_vm1, %v4914_v14 }
  0xbd   : > { %4515 = vmatmul.mubr.msk.bf16.gmra.mxu0 %vm242_vm1, %v662_v44  ;;  %4484 = vmatprep.mubr.msk.bf16.mxu1 %vm242_vm1, %v4926_v25 }
  0xbe   : > { %4518 = vmatprep.mubr.msk.bf16.mxu0 %vm242_vm1, %v663_v58 }
  0xc4   : > { %4485 = vmatmul.mubr.msk.bf16.gmra.mxu1 %vm242_vm1, %v5130_v32 }
  0xc5   : > { %4519 = vmatmul.mubr.msk.bf16.gmra.mxu0 %vm242_vm1, %v1737_v53  ;;  %4524 = vmatprep.mubr.msk.bf16.mxu1 %vm242_vm1, %v4938_v41  ;;  %v2776_v53 = vld [vmem:[#allocation2 + $0xb1] sm:$0xff] }
  0xc6   : > { %4558 = vmatprep.mubr.msk.bf16.mxu0 %vm242_vm1, %v4874_v52 }
  0xcc   : > { %4525 = vmatmul.mubr.msk.bf16.vlgmr.msra.gmra.mxu1 %vm242_vm1, %v4944_v45 }
  0xcd   : > { %4559 = vmatmul.mubr.msk.bf16.vlgmr.msra.gmra.mxu0 %vm242_vm1, %v4884_v60  ;;  %4591 = vmatpush3.bf16.msra.mxu1 %v2864_v55 }
  0xce   : > { %4528 = vmatprep.mubr.msk.bf16.mxu1 %vm242_vm1, %v4976_v63  ;;  %4625 = vmatpush3.bf16.msra.mxu0 %v3222_v7 }
  0xcf   : > { %4562 = vmatprep.mubr.msk.bf16.mxu0 %vm242_vm1, %v4891_v1 }
  0xd4   : > { %4529 = vmatmul.mubr.msk.bf16.gmra.mxu1 %vm242_vm1, %v4980_v3 }
  0xd5   : > { %4563 = vmatmul.mubr.msk.bf16.gmra.mxu0 %vm242_vm1, %v4912_v12  ;;  %4532 = vmatprep.mubr.msk.bf16.mxu1 %vm242_vm1, %v4992_v17 }
  0xd6   : > { %4566 = vmatprep.mubr.msk.bf16.mxu0 %vm242_vm1, %v4916_v16 }
  0xdc   : > { %4533 = vmatmul.mubr.msk.bf16.gmra.mxu1 %vm242_vm1, %v4996_v19 }
  0xdd   : > { %4567 = vmatmul.mubr.msk.bf16.gmra.mxu0 %vm242_vm1, %v4928_v26  ;;  %4536 = vmatprep.mubr.msk.bf16.mxu1 %vm242_vm1, %v5008_v31 }
  0xde   : > { %4570 = vmatprep.mubr.msk.bf16.mxu0 %vm242_vm1, %v4840_v33 }
  0xe4   : > { %4537 = vmatmul.mubr.msk.bf16.gmra.mxu1 %vm242_vm1, %v5012_v34 }
  0xe5   : > { %4571 = vmatmul.mubr.msk.bf16.gmra.mxu0 %vm242_vm1, %v4842_v37  ;;  %4540 = vmatprep.mubr.msk.bf16.mxu1 %vm242_vm1, %v5024_v54 }
  0xe6   : > { %4574 = vmatprep.mubr.msk.bf16.mxu0 %vm242_vm1, %v4851_v43 }
  0xec   : > { %v4372_v52 = vpop.f32.mrf.mxu1  ;;  %4541 = vmatmul.mubr.msk.bf16.gmra.mxu1 %vm242_vm1, %v5028_v56  ;;  %v2078_v56 = vld [vmem:[#allocation2 + $0x182] sm:$0xff] }
  0xed   : > { %v4356_v60 = vpop.f32.mrf.mxu0  ;;  %4575 = vmatmul.mubr.msk.bf16.gmra.mxu0 %vm242_vm1, %v4882_v59  ;;  %602 = vst.msk [vmem:[#allocation3 + $0x90] sm:$0xff] %vm583_vm4, %v4372_v52  ;;  %4544 = vmatprep.mubr.msk.bf16.mxu1 %vm242_vm1, %v5038_v10  ;;  %v2438_v10 = vld [vmem:[#allocation2 + $0x1a0] sm:$0xff]  ;;  %v5217_v22 = vpack.c.bf16 %v2079_v8, %v2078_v56 }
  0xee   : > { %586 = vst.msk [vmem:[#allocation3 + $0x10] sm:$0xff] %vm583_vm4, %v4356_v60  ;;  %4578 = vmatprep.mubr.msk.bf16.mxu0 %vm242_vm1, %v4889_v0  ;;  %v520_v33 = vpop.f32.mrf.mxu1  ;;  %v2454_v23 = vpack.c.bf16 %v2438_v10, %v2437_v9  ;;  %v3133_v60 = vld [vmem:[#allocation2 + $0xaa] sm:$0xff] }
  0xef   : > { %v456_v37 = vpop.f32.mrf.mxu0  ;;  %600 = vst.msk [vmem:[#allocation3 + $0x80] sm:$0xff] %vm583_vm4, %v520_v33  ;;  %v3134_v33 = vld [vmem:[#allocation2 + $0xb2] sm:$0xff] }
  0xf0   : > { %584 = vst.msk [vmem:[#allocation3] sm:$0xff] %vm583_vm4, %v456_v37  ;;  %v4373_v43 = vpop.f32.mrf.mxu1 }
  0xf1   : > { %v4357_v1 = vpop.f32.mrf.mxu0  ;;  %603 = vst.msk [vmem:[#allocation3 + $0x98] sm:$0xff] %vm583_vm4, %v4373_v43  ;;  %v2777_v43 = vld [vmem:[#allocation2 + $0xc1] sm:$0xff] }
  0xf2   : > { %587 = vst.msk [vmem:[#allocation3 + $0x18] sm:$0xff] %vm583_vm4, %v4357_v1  ;;  %v523_v59 = vpop.f32.mrf.mxu1  ;;  %v2778_v1 = vld [vmem:[#allocation2 + $0xc9] sm:$0xff] }
  0xf3   : > { %v459_v12 = vpop.f32.mrf.mxu0  ;;  %601 = vst.msk [vmem:[#allocation3 + $0x88] sm:$0xff] %vm583_vm4, %v523_v59  ;;  %v3135_v59 = vld [vmem:[#allocation2 + $0xc2] sm:$0xff]  ;;  %v2803_v8 = vpack.c.bf16 %v2778_v1, %v2777_v43  ;;  %v2784_v43 = vld [vmem:[#allocation2 + $0x111] sm:$0xff] }
  0xf4   : > { %585 = vst.msk [vmem:[#allocation3 + $0x8] sm:$0xff] %vm583_vm4, %v459_v12  ;;  %v4376_v16 = vpop.f32.mrf.mxu1  ;;  %4545 = vmatmul.mubr.msk.bf16.gmra.mxu1 %vm242_vm1, %v5040_v20  ;;  %v3141_v1 = vld [vmem:[#allocation2 + $0x10a] sm:$0xff] }
  0xf5   : > { %v4360_v0 = vpop.f32.mrf.mxu0  ;;  %4579 = vmatmul.mubr.msk.bf16.gmra.mxu0 %vm242_vm1, %v4910_v11  ;;  %606 = vst.msk [vmem:[#allocation3 + $0xb0] sm:$0xff] %vm583_vm4, %v4376_v16  ;;  %4548 = vmatprep.mubr.msk.bf16.mxu1 %vm242_vm1, %v5048_v38 }
  0xf6   : > { %590 = vst.msk [vmem:[#allocation3 + $0x30] sm:$0xff] %vm583_vm4, %v4360_v0  ;;  %4582 = vmatprep.mubr.msk.bf16.mxu0 %vm242_vm1, %v4914_v14  ;;  %v536_v26 = vpop.f32.mrf.mxu1 }
  0xf7   : > { %v472_v41 = vpop.f32.mrf.mxu0  ;;  %604 = vst.msk [vmem:[#allocation3 + $0xa0] sm:$0xff] %vm583_vm4, %v536_v26  ;;  %v878_v58 = vld [vmem:[#allocation3] sm:$0xff] }
  0xf8   : > { %588 = vst.msk [vmem:[#allocation3 + $0x20] sm:$0xff] %vm583_vm4, %v472_v41  ;;  %v4377_v19 = vpop.f32.mrf.mxu1  ;;  %v3136_v26 = vld [vmem:[#allocation2 + $0xca] sm:$0xff] }
  0xf9   : > { %v4361_v31 = vpop.f32.mrf.mxu0  ;;  %607 = vst.msk [vmem:[#allocation3 + $0xb8] sm:$0xff] %vm583_vm4, %v4377_v19  ;;  %v881_v39 = vld [vmem:[#allocation3 + $0x18] sm:$0xff]  ;;  %v3161_v9 = vpack.c.bf16 %v3136_v26, %v3135_v59 }
  0xfa   : > { %591 = vst.msk [vmem:[#allocation3 + $0x38] sm:$0xff] %vm583_vm4, %v4361_v31  ;;  %v539_v11 = vpop.f32.mrf.mxu1 }
  0xfb   : > { %v475_v34 = vpop.f32.mrf.mxu0  ;;  %605 = vst.msk [vmem:[#allocation3 + $0xa8] sm:$0xff] %vm583_vm4, %v539_v11 }
  0xfc   : > { %589 = vst.msk [vmem:[#allocation3 + $0x28] sm:$0xff] %vm583_vm4, %v475_v34  ;;  %v4380_v54 = vpop.f32.mrf.mxu1  ;;  %4549 = vmatmul.mubr.msk.bf16.gmra.mxu1 %vm242_vm1, %v5050_v48 }
  0xfd   : > { %v4364_v14 = vpop.f32.mrf.mxu0  ;;  %4583 = vmatmul.mubr.msk.bf16.gmra.mxu0 %vm242_vm1, %v4926_v25  ;;  %610 = vst.msk [vmem:[#allocation3 + $0xd0] sm:$0xff] %vm583_vm4, %v4380_v54  ;;  %4552 = vmatprep.mubr.msk.bf16.mxu1 %vm242_vm1, %v5058_v61  ;;  %v884_v7 = vld [vmem:[#allocation3 + $0x30] sm:$0xff] }
  0xfe   : > { %594 = vst.msk [vmem:[#allocation3 + $0x50] sm:$0xff] %vm583_vm4, %v4364_v14  ;;  %4586 = vmatprep.mubr.msk.bf16.mxu0 %vm242_vm1, %v5130_v32  ;;  %v552_v13 = vpop.f32.mrf.mxu1  ;;  %v2775_v32 = vld [vmem:[#allocation2 + $0xa9] sm:$0xff] }
  0xff   : > { %v488_v20 = vpop.f32.mrf.mxu0  ;;  %608 = vst.msk [vmem:[#allocation3 + $0xc0] sm:$0xff] %vm583_vm4, %v552_v13  ;;  %v882_v16 = vld [vmem:[#allocation3 + $0x20] sm:$0xff]  ;;  %v2802_v54 = vpack.c.bf16 %v2776_v53, %v2775_v32 }
 0x100   : > { %592 = vst.msk [vmem:[#allocation3 + $0x40] sm:$0xff] %vm583_vm4, %v488_v20  ;;  %v4381_v25 = vpop.f32.mrf.mxu1 }
 0x101   : > { %v4365_v21 = vpop.f32.mrf.mxu0  ;;  %611 = vst.msk [vmem:[#allocation3 + $0xd8] sm:$0xff] %vm583_vm4, %v4381_v25  ;;  %v885_v11 = vld [vmem:[#allocation3 + $0x38] sm:$0xff] }
 0x102   : > { %595 = vst.msk [vmem:[#allocation3 + $0x58] sm:$0xff] %vm583_vm4, %v4365_v21  ;;  %v555_v24 = vpop.f32.mrf.mxu1 }
 0x103   : > { %v491_v27 = vpop.f32.mrf.mxu0  ;;  %609 = vst.msk [vmem:[#allocation3 + $0xc8] sm:$0xff] %vm583_vm4, %v555_v24  ;;  %v883_v20 = vld [vmem:[#allocation3 + $0x28] sm:$0xff] }
 0x104   : > { %593 = vst.msk [vmem:[#allocation3 + $0x48] sm:$0xff] %vm583_vm4, %v491_v27  ;;  %v4384_v28 = vpop.f32.mrf.mxu1  ;;  %4553 = vmatmul.mubr.msk.bf16.gmra.mxu1 %vm242_vm1, %v5217_v22  ;;  %v2779_v24 = vld [vmem:[#allocation2 + $0xd9] sm:$0xff]  ;;  %v2780_v27 = vld [vmem:[#allocation2 + $0xe1] sm:$0xff] }
 0x105   : > { %v4368_v29 = vpop.f32.mrf.mxu0  ;;  %4587 = vmatmul.mubr.msk.bf16.gmra.mxu0 %vm242_vm1, %v2454_v23  ;;  %614 = vst.msk [vmem:[#allocation3 + $0xf0] sm:$0xff] %vm583_vm4, %v4384_v28  ;;  %4592 = vmatprep.mubr.msk.bf16.mxu1 %vm242_vm1, %v4940_v42  ;;  %v3137_v28 = vld [vmem:[#allocation2 + $0xda] sm:$0xff] }
 0x106   : > { %598 = vst.msk [vmem:[#allocation3 + $0x70] sm:$0xff] %vm583_vm4, %v4368_v29  ;;  %4626 = vmatprep.mubr.msk.bf16.mxu0 %vm242_vm1, %v4944_v45  ;;  %v568_v35 = vpop.f32.mrf.mxu1  ;;  %v880_v45 = vld [vmem:[#allocation3 + $0x10] sm:$0xff] }
 0x107   : > { %v504_v36 = vpop.f32.mrf.mxu0  ;;  %612 = vst.msk [vmem:[#allocation3 + $0xe0] sm:$0xff] %vm583_vm4, %v568_v35 }
 0x108   : > { %596 = vst.msk [vmem:[#allocation3 + $0x60] sm:$0xff] %vm583_vm4, %v504_v36  ;;  %v4385_v38 = vpop.f32.mrf.mxu1  ;;  %v888_v36 = vld [vmem:[#allocation3 + $0x50] sm:$0xff] }
 0x109   : > { %v4369_v44 = vpop.f32.mrf.mxu0  ;;  %615 = vst.msk [vmem:[#allocation3 + $0xf8] sm:$0xff] %vm583_vm4, %v4385_v38 }
 0x10a   : > { %599 = vst.msk [vmem:[#allocation3 + $0x78] sm:$0xff] %vm583_vm4, %v4369_v44  ;;  %v571_v48 = vpop.f32.mrf.mxu1  ;;  %v3138_v44 = vld [vmem:[#allocation2 + $0xe2] sm:$0xff] }
 0x10b   : > { %v507_v49 = vpop.f32.mrf.mxu0  ;;  %613 = vst.msk [vmem:[#allocation3 + $0xe8] sm:$0xff] %vm583_vm4, %v571_v48 }
 0x10c   : > { %597 = vst.msk [vmem:[#allocation3 + $0x68] sm:$0xff] %vm583_vm4, %v507_v49  ;;  %v4390_v42 = vpop.f32.mrf.mxu1  ;;  %4593 = vmatmul.mubr.msk.bf16.vlgmr.msra.gmra.mxu1 %vm242_vm1, %v4974_v62 }
 0x10d   : > { %v4424_v50 = vpop.f32.mrf.mxu0  ;;  %4627 = vmatmul.mubr.msk.bf16.vlgmr.msra.gmra.mxu0 %vm242_vm1, %v4976_v63  ;;  %v912_v46 = vadd.f32 %v4390_v42, %v880_v45  ;;  %4596 = vmatprep.mubr.msk.bf16.mxu1 %vm242_vm1, %v4978_v2  ;;  %v879_v2 = vld [vmem:[#allocation3 + $0x8] sm:$0xff] }
 0x10e   : > { %4630 = vmatprep.mubr.msk.bf16.mxu0 %vm242_vm1, %v4980_v3  ;;  %v751_v57 = vpop.f32.mrf.mxu1  ;;  %v2781_v42 = vld [vmem:[#allocation2 + $0xf1] sm:$0xff]  ;;  %v2782_v45 = vld [vmem:[#allocation2 + $0xf9] sm:$0xff] }
 0x10f   : > { %v1109_v61 = vpop.f32.mrf.mxu0  ;;  %944 = vst.msk [vmem:[#allocation3 + $0x10] sm:$0xff] %vm583_vm4, %v912_v46  ;;  %v910_v6 = vadd.f32 %v878_v58, %v751_v57  ;;  %v886_v58 = vld [vmem:[#allocation3 + $0x40] sm:$0xff] }
 0x110   : > { %v4391_v62 = vpop.f32.mrf.mxu1 }
 0x111   : > { %v4425_v40 = vpop.f32.mrf.mxu0  ;;  %942 = vst.msk [vmem:[#allocation3] sm:$0xff] %vm583_vm4, %v910_v6  ;;  %v913_v63 = vadd.f32 %v4391_v62, %v881_v39 }
 0x112   : > { %v754_v47 = vpop.f32.mrf.mxu1 }
 0x113   : > { %v1112_v30 = vpop.f32.mrf.mxu0  ;;  %945 = vst.msk [vmem:[#allocation3 + $0x18] sm:$0xff] %vm583_vm4, %v913_v63  ;;  %v911_v3 = vadd.f32 %v879_v2, %v754_v47  ;;  %v3162_v47 = vpack.c.bf16 %v3138_v44, %v3137_v28 }
 0x114   : > { %v4394_v55 = vpop.f32.mrf.mxu1  ;;  %4597 = vmatmul.mubr.msk.bf16.gmra.mxu1 %vm242_vm1, %v4990_v15 }
 0x115   : > { %v5251_v52 = vpop.f32.mrf.mxu0  ;;  %4631 = vmatmul.mubr.msk.bf16.gmra.mxu0 %vm242_vm1, %v4992_v17  ;;  %943 = vst.msk [vmem:[#allocation3 + $0x8] sm:$0xff] %vm583_vm4, %v911_v3  ;;  %v916_v37 = vadd.f32 %v4394_v55, %v884_v7  ;;  %4600 = vmatprep.mubr.msk.bf16.mxu1 %vm242_vm1, %v4994_v18  ;;  %v3160_v18 = vpack.c.bf16 %v3134_v33, %v3133_v60  ;;  %v887_v7 = vld [vmem:[#allocation3 + $0x48] sm:$0xff] }
 0x116   : > { %4634 = vmatprep.mubr.msk.bf16.mxu0 %vm242_vm1, %v3159_v51  ;;  %v1238_v12 = vld [vmem:[#allocation3 + $0x10] sm:$0xff]  ;;  %v767_v15 = vpop.f32.mrf.mxu1  ;;  %v2804_v51 = vpack.c.bf16 %v2780_v27, %v2779_v24  ;;  %v2805_v3 = vpack.c.bf16 %v2782_v45, %v2781_v42 }
 0x117   : > { %v1125_v0 = vpop.f32.mrf.mxu0  ;;  %v1270_v41 = vadd.f32 %v4424_v50, %v1238_v12  ;;  %948 = vst.msk [vmem:[#allocation3 + $0x30] sm:$0xff] %vm583_vm4, %v916_v37  ;;  %v914_v17 = vadd.f32 %v882_v16, %v767_v15  ;;  %v3139_v50 = vld [vmem:[#allocation2 + $0xf2] sm:$0xff]  ;;  %v2783_v37 = vld [vmem:[#allocation2 + $0x109] sm:$0xff]  ;;  %v892_v15 = vld [vmem:[#allocation3 + $0x70] sm:$0xff] }
 0x118   : > { %v1236_v19 = vld [vmem:[#allocation3] sm:$0xff]  ;;  %v4395_v31 = vpop.f32.mrf.mxu1  ;;  %v3163_v32 = vpack.c.bf16 %v3140_v4, %v3139_v50  ;;  %v2788_v42 = vld [vmem:[#allocation2 + $0x141] sm:$0xff] }
 0x119   : > { %v4429_v34 = vpop.f32.mrf.mxu0  ;;  %1302 = vst.msk [vmem:[#allocation3 + $0x10] sm:$0xff] %vm583_vm4, %v1270_v41  ;;  %v1268_v14 = vadd.f32 %v1236_v19, %v1109_v61  ;;  %946 = vst.msk [vmem:[#allocation3 + $0x20] sm:$0xff] %vm583_vm4, %v914_v17  ;;  %v917_v56 = vadd.f32 %v4395_v31, %v885_v11  ;;  %v2785_v17 = vld [vmem:[#allocation2 + $0x121] sm:$0xff]  ;;  %v2786_v19 = vld [vmem:[#allocation2 + $0x129] sm:$0xff] }
 0x11a   : > { %v1239_v10 = vld [vmem:[#allocation3 + $0x18] sm:$0xff]  ;;  %v770_v13 = vpop.f32.mrf.mxu1  ;;  %v2807_v27 = vpack.c.bf16 %v2786_v19, %v2785_v17  ;;  %v3145_v45 = vld [vmem:[#allocation2 + $0x13a] sm:$0xff] }
 0x11b   : > { %v5262_v25 = vpop.f32.mrf.mxu0  ;;  %1300 = vst.msk [vmem:[#allocation3] sm:$0xff] %vm583_vm4, %v1268_v14  ;;  %v1271_v21 = vadd.f32 %v4425_v40, %v1239_v10  ;;  %949 = vst.msk [vmem:[#allocation3 + $0x38] sm:$0xff] %vm583_vm4, %v917_v56  ;;  %v915_v23 = vadd.f32 %v883_v20, %v770_v13  ;;  %v889_v40 = vld [vmem:[#allocation3 + $0x58] sm:$0xff] }
 0x11c   : > { %v1237_v29 = vld [vmem:[#allocation3 + $0x8] sm:$0xff]  ;;  %v4398_v35 = vpop.f32.mrf.mxu1  ;;  %4601 = vmatmul.mubr.msk.bf16.gmra.mxu1 %vm242_vm1, %v2802_v54  ;;  %v3143_v31 = vld [vmem:[#allocation2 + $0x122] sm:$0xff]  ;;  %v890_v54 = vld [vmem:[#allocation3 + $0x60] sm:$0xff] }
 0x11d   : > { %v5267_v38 = vpop.f32.mrf.mxu0  ;;  %4635 = vmatmul.mubr.msk.bf16.gmra.mxu0 %vm242_vm1, %v3160_v18  ;;  %1303 = vst.msk [vmem:[#allocation3 + $0x18] sm:$0xff] %vm583_vm4, %v1271_v21  ;;  %v1269_v48 = vadd.f32 %v1237_v29, %v1112_v30  ;;  %947 = vst.msk [vmem:[#allocation3 + $0x28] sm:$0xff] %vm583_vm4, %v915_v23  ;;  %v920_v49 = vadd.f32 %v4398_v35, %v888_v36  ;;  %4604 = vmatprep.mubr.msk.bf16.mxu1 %vm242_vm1, %v2803_v8  ;;  %v3144_v14 = vld [vmem:[#allocation2 + $0x12a] sm:$0xff]  ;;  %v891_v36 = vld [vmem:[#allocation3 + $0x68] sm:$0xff] }
 0x11e   : > { %4638 = vmatprep.mubr.msk.bf16.mxu0 %vm242_vm1, %v3161_v9  ;;  %v1242_v46 = vld [vmem:[#allocation3 + $0x30] sm:$0xff]  ;;  %v783_v57 = vpop.f32.mrf.mxu1  ;;  %v893_v13 = vld [vmem:[#allocation3 + $0x78] sm:$0xff]  ;;  %v3165_v28 = vpack.c.bf16 %v3144_v14, %v3143_v31 }
 0x11f   : > { %v1141_v61 = vpop.f32.mrf.mxu0  ;;  %1301 = vst.msk [vmem:[#allocation3 + $0x8] sm:$0xff] %vm583_vm4, %v1269_v48  ;;  %v1274_v5 = vadd.f32 %v5251_v52, %v1242_v46  ;;  %952 = vst.msk [vmem:[#allocation3 + $0x50] sm:$0xff] %vm583_vm4, %v920_v49  ;;  %v918_v6 = vadd.f32 %v886_v58, %v783_v57  ;;  %v2787_v49 = vld [vmem:[#allocation2 + $0x139] sm:$0xff]  ;;  %v3149_v14 = vld [vmem:[#allocation2 + $0x16a] sm:$0xff] }
 0x120   : > { %v1240_v62 = vld [vmem:[#allocation3 + $0x20] sm:$0xff]  ;;  %v4399_v39 = vpop.f32.mrf.mxu1  ;;  %v896_v57 = vld [vmem:[#allocation3 + $0x90] sm:$0xff] }
 0x121   : > { %v4433_v63 = vpop.f32.mrf.mxu0  ;;  %1306 = vst.msk [vmem:[#allocation3 + $0x30] sm:$0xff] %vm583_vm4, %v1274_v5  ;;  %v1272_v2 = vadd.f32 %v1240_v62, %v1125_v0  ;;  %950 = vst.msk [vmem:[#allocation3 + $0x40] sm:$0xff] %vm583_vm4, %v918_v6  ;;  %v921_v30 = vadd.f32 %v4399_v39, %v889_v40  ;;  %v3142_v0 = vld [vmem:[#allocation2 + $0x112] sm:$0xff]  ;;  %v900_v31 = vld [vmem:[#allocation3 + $0xb0] sm:$0xff] }
 0x122   : > { %v1243_v53 = vld [vmem:[#allocation3 + $0x38] sm:$0xff]  ;;  %v786_v55 = vpop.f32.mrf.mxu1  ;;  %v3164_v21 = vpack.c.bf16 %v3142_v0, %v3141_v1  ;;  %v2789_v6 = vld [vmem:[#allocation2 + $0x151] sm:$0xff]  ;;  %v2790_v62 = vld [vmem:[#allocation2 + $0x159] sm:$0xff] }
 0x123   : > { %v5279_v52 = vpop.f32.mrf.mxu0  ;;  %1304 = vst.msk [vmem:[#allocation3 + $0x20] sm:$0xff] %vm583_vm4, %v1272_v2  ;;  %v1275_v60 = vadd.f32 %v4429_v34, %v1243_v53  ;;  %953 = vst.msk [vmem:[#allocation3 + $0x58] sm:$0xff] %vm583_vm4, %v921_v30  ;;  %v919_v33 = vadd.f32 %v887_v7, %v786_v55  ;;  %v3147_v39 = vld [vmem:[#allocation2 + $0x152] sm:$0xff]  ;;  %v3148_v2 = vld [vmem:[#allocation2 + $0x15a] sm:$0xff] }
 0x124   : > { %v1241_v59 = vld [vmem:[#allocation3 + $0x28] sm:$0xff]  ;;  %v4402_v12 = vpop.f32.mrf.mxu1  ;;  %4605 = vmatmul.mubr.msk.bf16.gmra.mxu1 %vm242_vm1, %v2804_v51  ;;  %v894_v51 = vld [vmem:[#allocation3 + $0x80] sm:$0xff]  ;;  %v897_v55 = vld [vmem:[#allocation3 + $0x98] sm:$0xff]  ;;  %v3167_v1 = vpack.c.bf16 %v3148_v2, %v3147_v39 }
 0x125   : > { %v5284_v16 = vpop.f32.mrf.mxu0  ;;  %4639 = vmatmul.mubr.msk.bf16.gmra.mxu0 %vm242_vm1, %v3162_v47  ;;  %1307 = vst.msk [vmem:[#allocation3 + $0x38] sm:$0xff] %vm583_vm4, %v1275_v60  ;;  %v1273_v26 = vadd.f32 %v1241_v59, %v5262_v25  ;;  %951 = vst.msk [vmem:[#allocation3 + $0x48] sm:$0xff] %vm583_vm4, %v919_v33  ;;  %v924_v41 = vadd.f32 %v4402_v12, %v892_v15  ;;  %4608 = vmatprep.mubr.msk.bf16.mxu1 %vm242_vm1, %v2805_v3  ;;  %v895_v15 = vld [vmem:[#allocation3 + $0x88] sm:$0xff] }
 0x126   : > { %4642 = vmatprep.mubr.msk.bf16.mxu0 %vm242_vm1, %v3163_v32  ;;  %v1246_v11 = vld [vmem:[#allocation3 + $0x50] sm:$0xff]  ;;  %v799_v34 = vpop.f32.mrf.mxu1  ;;  %v2806_v25 = vpack.c.bf16 %v2784_v43, %v2783_v37  ;;  %v2809_v43 = vpack.c.bf16 %v2790_v62, %v2789_v6 }
 0x127   : > { %v1157_v18 = vpop.f32.mrf.mxu0  ;;  %1305 = vst.msk [vmem:[#allocation3 + $0x28] sm:$0xff] %vm583_vm4, %v1273_v26  ;;  %v1278_v56 = vadd.f32 %v5267_v38, %v1246_v11  ;;  %956 = vst.msk [vmem:[#allocation3 + $0x70] sm:$0xff] %vm583_vm4, %v924_v41  ;;  %v922_v8 = vadd.f32 %v890_v54, %v799_v34  ;;  %v2791_v41 = vld [vmem:[#allocation2 + $0x169] sm:$0xff]  ;;  %v2792_v34 = vld [vmem:[#allocation2 + $0x171] sm:$0xff] }
 0x128   : > { %v1244_v9 = vld [vmem:[#allocation3 + $0x40] sm:$0xff]  ;;  %v4403_v10 = vpop.f32.mrf.mxu1  ;;  %v2795_v6 = vld [vmem:[#allocation2 + $0x199] sm:$0xff] }
 0x129   : > { %v4437_v20 = vpop.f32.mrf.mxu0  ;;  %1310 = vst.msk [vmem:[#allocation3 + $0x50] sm:$0xff] %vm583_vm4, %v1278_v56  ;;  %v1276_v23 = vadd.f32 %v1244_v9, %v1141_v61  ;;  %954 = vst.msk [vmem:[#allocation3 + $0x60] sm:$0xff] %vm583_vm4, %v922_v8  ;;  %v925_v24 = vadd.f32 %v4403_v10, %v893_v13  ;;  %v3146_v61 = vld [vmem:[#allocation2 + $0x142] sm:$0xff]  ;;  %v3150_v56 = vld [vmem:[#allocation2 + $0x172] sm:$0xff] }
 0x12a   : > { %v1247_v29 = vld [vmem:[#allocation3 + $0x58] sm:$0xff]  ;;  %v802_v35 = vpop.f32.mrf.mxu1  ;;  %v3166_v60 = vpack.c.bf16 %v3146_v61, %v3145_v45  ;;  %v898_v13 = vld [vmem:[#allocation3 + $0xa0] sm:$0xff]  ;;  %v899_v45 = vld [vmem:[#allocation3 + $0xa8] sm:$0xff] }
 0x12b   : > { %v1160_v38 = vpop.f32.mrf.mxu0  ;;  %1308 = vst.msk [vmem:[#allocation3 + $0x40] sm:$0xff] %vm583_vm4, %v1276_v23  ;;  %v1279_v44 = vadd.f32 %v4433_v63, %v1247_v29  ;;  %957 = vst.msk [vmem:[#allocation3 + $0x78] sm:$0xff] %vm583_vm4, %v925_v24  ;;  %v923_v48 = vadd.f32 %v891_v36, %v802_v35  ;;  %v2793_v8 = vld [vmem:[#allocation2 + $0x181] sm:$0xff]  ;;  %v2810_v35 = vpack.c.bf16 %v2792_v34, %v2791_v41 }
 0x12c   : > { %v1245_v50 = vld [vmem:[#allocation3 + $0x48] sm:$0xff]  ;;  %v4406_v46 = vpop.f32.mrf.mxu1  ;;  %4609 = vmatmul.mubr.msk.bf16.gmra.mxu1 %vm242_vm1, %v2806_v25  ;;  %v2794_v25 = vld [vmem:[#allocation2 + $0x189] sm:$0xff]  ;;  %v3168_v36 = vpack.c.bf16 %v3150_v56, %v3149_v14 }
 0x12d   : > { %v5300_v58 = vpop.f32.mrf.mxu0  ;;  %4643 = vmatmul.mubr.msk.bf16.gmra.mxu0 %vm242_vm1, %v3164_v21  ;;  %1311 = vst.msk [vmem:[#allocation3 + $0x58] sm:$0xff] %vm583_vm4, %v1279_v44  ;;  %v1277_v4 = vadd.f32 %v1245_v50, %v5279_v52  ;;  %955 = vst.msk [vmem:[#allocation3 + $0x68] sm:$0xff] %vm583_vm4, %v923_v48  ;;  %v928_v5 = vadd.f32 %v4406_v46, %v896_v57  ;;  %4612 = vmatprep.mubr.msk.bf16.mxu1 %vm242_vm1, %v2807_v27 }
 0x12e   : > { %4646 = vmatprep.mubr.msk.bf16.mxu0 %vm242_vm1, %v3165_v28  ;;  %v1250_v40 = vld [vmem:[#allocation3 + $0x70] sm:$0xff]  ;;  %v815_v63 = vpop.f32.mrf.mxu1  ;;  %v2808_v52 = vpack.c.bf16 %v2788_v42, %v2787_v49  ;;  %v901_v28 = vld [vmem:[#allocation3 + $0xb8] sm:$0xff]  ;;  %v2811_v48 = vpack.c.bf16 %v2794_v25, %v2793_v8 }
 0x12f   : > { %v1173_v47 = vpop.f32.mrf.mxu0  ;;  %1309 = vst.msk [vmem:[#allocation3 + $0x48] sm:$0xff] %vm583_vm4, %v1277_v4  ;;  %v1282_v30 = vadd.f32 %v5284_v16, %v1250_v40  ;;  %960 = vst.msk [vmem:[#allocation3 + $0x90] sm:$0xff] %vm583_vm4, %v928_v5  ;;  %v926_v3 = vadd.f32 %v894_v51, %v815_v63  ;;  %v904_v4 = vld [vmem:[#allocation3 + $0xd0] sm:$0xff] }
 0x130   : > { %v1248_v32 = vld [vmem:[#allocation3 + $0x60] sm:$0xff]  ;;  %v4407_v53 = vpop.f32.mrf.mxu1  ;;  %v2796_v40 = vld [vmem:[#allocation2 + $0x1a1] sm:$0xff] }
 0x131   : > { %v4441_v7 = vpop.f32.mrf.mxu0  ;;  %1314 = vst.msk [vmem:[#allocation3 + $0x70] sm:$0xff] %vm583_vm4, %v1282_v30  ;;  %v1280_v33 = vadd.f32 %v1248_v32, %v1157_v18  ;;  %958 = vst.msk [vmem:[#allocation3 + $0x80] sm:$0xff] %vm583_vm4, %v926_v3  ;;  %v929_v37 = vadd.f32 %v4407_v53, %v897_v55  ;;  %v3153_v63 = vld [vmem:[#allocation2 + $0x19a] sm:$0xff]  ;;  %v3154_v51 = vld [vmem:[#allocation2 + $0x1a2] sm:$0xff] }
 0x132   : > { %v1251_v59 = vld [vmem:[#allocation3 + $0x78] sm:$0xff]  ;;  %v818_v12 = vpop.f32.mrf.mxu1  ;;  %v902_v30 = vld [vmem:[#allocation3 + $0xc0] sm:$0xff] }
 0x133   : > { %v1176_v16 = vpop.f32.mrf.mxu0  ;;  %1312 = vst.msk [vmem:[#allocation3 + $0x60] sm:$0xff] %vm583_vm4, %v1280_v33  ;;  %v1283_v0 = vadd.f32 %v4437_v20, %v1251_v59  ;;  %961 = vst.msk [vmem:[#allocation3 + $0x98] sm:$0xff] %vm583_vm4, %v929_v37  ;;  %v927_v26 = vadd.f32 %v895_v15, %v818_v12  ;;  %v2812_v33 = vpack.c.bf16 %v2796_v40, %v2795_v6  ;;  %v903_v12 = vld [vmem:[#allocation3 + $0xc8] sm:$0xff]  ;;  %v1597_v6 = vld [vmem:[#allocation3 + $0x18] sm:$0xff] }
 0x134   : > { %v1249_v17 = vld [vmem:[#allocation3 + $0x68] sm:$0xff]  ;;  %v4410_v19 = vpop.f32.mrf.mxu1  ;;  %4613 = vmatmul.mubr.msk.bf16.gmra.mxu1 %vm242_vm1, %v2808_v52  ;;  %v905_v52 = vld [vmem:[#allocation3 + $0xd8] sm:$0xff]  ;;  %v3170_v37 = vpack.c.bf16 %v3154_v51, %v3153_v63 }
 0x135   : > { %v4444_v11 = vpop.f32.mrf.mxu0  ;;  %4647 = vmatmul.mubr.msk.bf16.gmra.mxu0 %vm242_vm1, %v3166_v60  ;;  %1315 = vst.msk [vmem:[#allocation3 + $0x78] sm:$0xff] %vm583_vm4, %v1283_v0  ;;  %v1281_v54 = vadd.f32 %v1249_v17, %v1160_v38  ;;  %959 = vst.msk [vmem:[#allocation3 + $0x88] sm:$0xff] %vm583_vm4, %v927_v26  ;;  %v932_v18 = vadd.f32 %v4410_v19, %v900_v31  ;;  %4616 = vmatprep.mubr.msk.bf16.mxu1 %vm242_vm1, %v2809_v43  ;;  %v908_v17 = vld [vmem:[#allocation3 + $0xf0] sm:$0xff] }
 0x136   : > { %4650 = vmatprep.mubr.msk.bf16.mxu0 %vm242_vm1, %v3167_v1  ;;  %v1254_v9 = vld [vmem:[#allocation3 + $0x90] sm:$0xff]  ;;  %v831_v10 = vpop.f32.mrf.mxu1 }
 0x137   : > { %v1189_v20 = vpop.f32.mrf.mxu0  ;;  %1313 = vst.msk [vmem:[#allocation3 + $0x68] sm:$0xff] %vm583_vm4, %v1281_v54  ;;  %v1286_v21 = vadd.f32 %v5300_v58, %v1254_v9  ;;  %964 = vst.msk [vmem:[#allocation3 + $0xb0] sm:$0xff] %vm583_vm4, %v932_v18  ;;  %v930_v23 = vadd.f32 %v898_v13, %v831_v10  ;;  %v906_v18 = vld [vmem:[#allocation3 + $0xe0] sm:$0xff]  ;;  %v909_v13 = vld [vmem:[#allocation3 + $0xf8] sm:$0xff] }
 0x138   : > { %v1252_v24 = vld [vmem:[#allocation3 + $0x80] sm:$0xff]  ;;  %v4411_v27 = vpop.f32.mrf.mxu1 }
 0x139   : > { %v4445_v29 = vpop.f32.mrf.mxu0  ;;  %1318 = vst.msk [vmem:[#allocation3 + $0x90] sm:$0xff] %vm583_vm4, %v1286_v21  ;;  %v1284_v38 = vadd.f32 %v1252_v24, %v1173_v47  ;;  %962 = vst.msk [vmem:[#allocation3 + $0xa0] sm:$0xff] %vm583_vm4, %v930_v23  ;;  %v933_v44 = vadd.f32 %v4411_v27, %v901_v28  ;;  %v907_v27 = vld [vmem:[#allocation3 + $0xe8] sm:$0xff] }
 0x13a   : > { %v1255_v49 = vld [vmem:[#allocation3 + $0x98] sm:$0xff]  ;;  %v834_v42 = vpop.f32.mrf.mxu1 }
 0x13b   : > { %v1192_v50 = vpop.f32.mrf.mxu0  ;;  %1316 = vst.msk [vmem:[#allocation3 + $0x80] sm:$0xff] %vm583_vm4, %v1284_v38  ;;  %v1287_v46 = vadd.f32 %v4441_v7, %v1255_v49  ;;  %965 = vst.msk [vmem:[#allocation3 + $0xb8] sm:$0xff] %vm583_vm4, %v933_v44  ;;  %v931_v57 = vadd.f32 %v899_v45, %v834_v42  ;;  %v1596_v44 = vld [vmem:[#allocation3 + $0x10] sm:$0xff] }
 0x13c   : > { %v1253_v58 = vld [vmem:[#allocation3 + $0x88] sm:$0xff]  ;;  %v4414_v61 = vpop.f32.mrf.mxu1  ;;  %4617 = vmatmul.mubr.msk.bf16.gmra.mxu1 %vm242_vm1, %v2810_v35 }
 0x13d   : > { %v4448_v5 = vpop.f32.mrf.mxu0  ;;  %4651 = vmatmul.mubr.msk.bf16.gmra.mxu0 %vm242_vm1, %v3168_v36  ;;  %1319 = vst.msk [vmem:[#allocation3 + $0x98] sm:$0xff] %vm583_vm4, %v1287_v46  ;;  %v1285_v62 = vadd.f32 %v1253_v58, %v1176_v16  ;;  %963 = vst.msk [vmem:[#allocation3 + $0xa8] sm:$0xff] %vm583_vm4, %v931_v57  ;;  %v936_v39 = vadd.f32 %v4414_v61, %v904_v4  ;;  %4620 = vmatprep.mubr.msk.bf16.mxu1 %vm242_vm1, %v2811_v48  ;;  %v1594_v46 = vld [vmem:[#allocation3] sm:$0xff] }
 0x13e   : > { %4654 = vmatprep.mubr.msk.bf16.mxu0 %vm242_vm1, %v5217_v22  ;;  %v1258_v47 = vld [vmem:[#allocation3 + $0xb0] sm:$0xff]  ;;  %v847_v2 = vpop.f32.mrf.mxu1 }
 0x13f   : > { %v1205_v3 = vpop.f32.mrf.mxu0  ;;  %1317 = vst.msk [vmem:[#allocation3 + $0x88] sm:$0xff] %vm583_vm4, %v1285_v62  ;;  %v1290_v32 = vadd.f32 %v4444_v11, %v1258_v47  ;;  %968 = vst.msk [vmem:[#allocation3 + $0xd0] sm:$0xff] %vm583_vm4, %v936_v39  ;;  %v934_v53 = vadd.f32 %v902_v30, %v847_v2  ;;  %v1595_v47 = vld [vmem:[#allocation3 + $0x8] sm:$0xff] }
 0x140   : > { %v1256_v55 = vld [vmem:[#allocation3 + $0xa0] sm:$0xff]  ;;  %v4415_v7 = vpop.f32.mrf.mxu1 }
 0x141   : > { %v4449_v60 = vpop.f32.mrf.mxu0  ;;  %1322 = vst.msk [vmem:[#allocation3 + $0xb0] sm:$0xff] %vm583_vm4, %v1290_v32  ;;  %v1288_v22 = vadd.f32 %v1256_v55, %v1189_v20  ;;  %966 = vst.msk [vmem:[#allocation3 + $0xc0] sm:$0xff] %vm583_vm4, %v934_v53  ;;  %v937_v43 = vadd.f32 %v4415_v7, %v905_v52  ;;  %v1600_v55 = vld [vmem:[#allocation3 + $0x30] sm:$0xff] }
 0x142   : > { %v1259_v1 = vld [vmem:[#allocation3 + $0xb8] sm:$0xff]  ;;  %v850_v59 = vpop.f32.mrf.mxu1 }
 0x143   : > { %v1208_v15 = vpop.f32.mrf.mxu0  ;;  %1320 = vst.msk [vmem:[#allocation3 + $0xa0] sm:$0xff] %vm583_vm4, %v1288_v22  ;;  %v1291_v16 = vadd.f32 %v4445_v29, %v1259_v1  ;;  %969 = vst.msk [vmem:[#allocation3 + $0xd8] sm:$0xff] %vm583_vm4, %v937_v43  ;;  %v935_v0 = vadd.f32 %v903_v12, %v850_v59  ;;  %v1598_v22 = vld [vmem:[#allocation3 + $0x20] sm:$0xff] }
 0x144   : > { %v1257_v26 = vld [vmem:[#allocation3 + $0xa8] sm:$0xff]  ;;  %v4418_v41 = vpop.f32.mrf.mxu1  ;;  %4621 = vmatmul.mubr.msk.bf16.gmra.mxu1 %vm242_vm1, %v2812_v33 }
 0x145   : > { %v4452_v19 = vpop.f32.mrf.mxu0  ;;  %4655 = vmatmul.mubr.msk.bf16.gmra.mxu0 %vm242_vm1, %v3170_v37  ;;  %1323 = vst.msk [vmem:[#allocation3 + $0xb8] sm:$0xff] %vm583_vm4, %v1291_v16  ;;  %v1289_v31 = vadd.f32 %v1257_v26, %v1192_v50  ;;  %967 = vst.msk [vmem:[#allocation3 + $0xc8] sm:$0xff] %vm583_vm4, %v935_v0  ;;  %v940_v11 = vadd.f32 %v4418_v41, %v908_v17  ;;  %v1601_v16 = vld [vmem:[#allocation3 + $0x38] sm:$0xff] }
 0x146   : > { %v1262_v34 = vld [vmem:[#allocation3 + $0xd0] sm:$0xff]  ;;  %v863_v54 = vpop.f32.mrf.mxu1 }
 0x147   : > { %v1221_v14 = vpop.f32.mrf.mxu0  ;;  %1321 = vst.msk [vmem:[#allocation3 + $0xa8] sm:$0xff] %vm583_vm4, %v1289_v31  ;;  %v1294_v56 = vadd.f32 %v4448_v5, %v1262_v34  ;;  %972 = vst.msk [vmem:[#allocation3 + $0xf0] sm:$0xff] %vm583_vm4, %v940_v11  ;;  %v938_v8 = vadd.f32 %v906_v18, %v863_v54  ;;  %v1599_v31 = vld [vmem:[#allocation3 + $0x28] sm:$0xff] }
 0x148   : > { %v1260_v9 = vld [vmem:[#allocation3 + $0xc0] sm:$0xff]  ;;  %v4419_v10 = vpop.f32.mrf.mxu1 }
 0x149   : > { %v4453_v20 = vpop.f32.mrf.mxu0  ;;  %1326 = vst.msk [vmem:[#allocation3 + $0xd0] sm:$0xff] %vm583_vm4, %v1294_v56  ;;  %v1292_v25 = vadd.f32 %v1260_v9, %v1205_v3  ;;  %970 = vst.msk [vmem:[#allocation3 + $0xe0] sm:$0xff] %vm583_vm4, %v938_v8  ;;  %v941_v21 = vadd.f32 %v4419_v10, %v909_v13  ;;  %v1604_v56 = vld [vmem:[#allocation3 + $0x50] sm:$0xff] }
 0x14a   : > { %v1263_v23 = vld [vmem:[#allocation3 + $0xd8] sm:$0xff]  ;;  %v866_v24 = vpop.f32.mrf.mxu1 }
 0x14b   : > { %v1224_v28 = vpop.f32.mrf.mxu0  ;;  %1324 = vst.msk [vmem:[#allocation3 + $0xc0] sm:$0xff] %vm583_vm4, %v1292_v25  ;;  %v1295_v29 = vadd.f32 %v4449_v60, %v1263_v23  ;;  %973 = vst.msk [vmem:[#allocation3 + $0xf8] sm:$0xff] %vm583_vm4, %v941_v21  ;;  %v939_v35 = vadd.f32 %v907_v27, %v866_v24  ;;  %v1602_v25 = vld [vmem:[#allocation3 + $0x40] sm:$0xff] }
 0x14c   : > { %v1261_v36 = vld [vmem:[#allocation3 + $0xc8] sm:$0xff]  ;;  %v4458_v38 = vpop.f32.mrf.mxu1 }
 0x14d   : > { %v4492_v48 = vpop.f32.mrf.mxu0  ;;  %1327 = vst.msk [vmem:[#allocation3 + $0xd8] sm:$0xff] %vm583_vm4, %v1295_v29  ;;  %v1293_v49 = vadd.f32 %v1261_v36, %v1208_v15  ;;  %971 = vst.msk [vmem:[#allocation3 + $0xe8] sm:$0xff] %vm583_vm4, %v939_v35  ;;  %v1628_v42 = vadd.f32 %v4458_v38, %v1596_v44  ;;  %v1605_v29 = vld [vmem:[#allocation3 + $0x58] sm:$0xff] }
 0x14e   : > { %v1266_v45 = vld [vmem:[#allocation3 + $0xf0] sm:$0xff]  ;;  %v1467_v50 = vpop.f32.mrf.mxu1 }
 0x14f   : > { %v1825_v57 = vpop.f32.mrf.mxu0  ;;  %1325 = vst.msk [vmem:[#allocation3 + $0xc8] sm:$0xff] %vm583_vm4, %v1293_v49  ;;  %v1298_v58 = vadd.f32 %v4452_v19, %v1266_v45  ;;  %1660 = vst.msk [vmem:[#allocation3 + $0x10] sm:$0xff] %vm583_vm4, %v1628_v42  ;;  %v1626_v61 = vadd.f32 %v1594_v46, %v1467_v50  ;;  %v1603_v49 = vld [vmem:[#allocation3 + $0x48] sm:$0xff] }
 0x150   : > { %v1264_v4 = vld [vmem:[#allocation3 + $0xe0] sm:$0xff]  ;;  %v4459_v5 = vpop.f32.mrf.mxu1 }
 0x151   : > { %v4493_v62 = vpop.f32.mrf.mxu0  ;;  %1330 = vst.msk [vmem:[#allocation3 + $0xf0] sm:$0xff] %vm583_vm4, %v1298_v58  ;;  %v1296_v39 = vadd.f32 %v1264_v4, %v1221_v14  ;;  %1658 = vst.msk [vmem:[#allocation3] sm:$0xff] %vm583_vm4, %v1626_v61  ;;  %v1629_v40 = vadd.f32 %v4459_v5, %v1597_v6  ;;  %v1608_v58 = vld [vmem:[#allocation3 + $0x70] sm:$0xff] }
 0x152   : > { %v1267_v63 = vld [vmem:[#allocation3 + $0xf8] sm:$0xff]  ;;  %v1470_v51 = vpop.f32.mrf.mxu1 }
 0x153   : > { %v1828_v2 = vpop.f32.mrf.mxu0  ;;  %1328 = vst.msk [vmem:[#allocation3 + $0xe0] sm:$0xff] %vm583_vm4, %v1296_v39  ;;  %v1299_v30 = vadd.f32 %v4453_v20, %v1267_v63  ;;  %1661 = vst.msk [vmem:[#allocation3 + $0x18] sm:$0xff] %vm583_vm4, %v1629_v40  ;;  %v1627_v3 = vadd.f32 %v1595_v47, %v1470_v51  ;;  %v1606_v39 = vld [vmem:[#allocation3 + $0x60] sm:$0xff] }
 0x154   : > { %v1265_v32 = vld [vmem:[#allocation3 + $0xe8] sm:$0xff]  ;;  %v4462_v53 = vpop.f32.mrf.mxu1 }
 0x155   : > { %v4496_v7 = vpop.f32.mrf.mxu0  ;;  %1331 = vst.msk [vmem:[#allocation3 + $0xf8] sm:$0xff] %vm583_vm4, %v1299_v30  ;;  %v1297_v52 = vadd.f32 %v1265_v32, %v1224_v28  ;;  %1659 = vst.msk [vmem:[#allocation3 + $0x8] sm:$0xff] %vm583_vm4, %v1627_v3  ;;  %v1632_v60 = vadd.f32 %v4462_v53, %v1600_v55  ;;  %v1609_v30 = vld [vmem:[#allocation3 + $0x78] sm:$0xff] }
 0x156   : > { %v1954_v33 = vld [vmem:[#allocation3 + $0x10] sm:$0xff]  ;;  %v1483_v37 = vpop.f32.mrf.mxu1 }
 0x157   : > { %v1841_v43 = vpop.f32.mrf.mxu0  ;;  %1329 = vst.msk [vmem:[#allocation3 + $0xe8] sm:$0xff] %vm583_vm4, %v1297_v52  ;;  %v1986_v1 = vadd.f32 %v4492_v48, %v1954_v33  ;;  %1664 = vst.msk [vmem:[#allocation3 + $0x30] sm:$0xff] %vm583_vm4, %v1632_v60  ;;  %v1630_v59 = vadd.f32 %v1598_v22, %v1483_v37  ;;  %v1607_v52 = vld [vmem:[#allocation3 + $0x68] sm:$0xff] }
 0x158   : > { %v1952_v12 = vld [vmem:[#allocation3] sm:$0xff]  ;;  %v4463_v15 = vpop.f32.mrf.mxu1 }
 0x159   : > { %v4497_v0 = vpop.f32.mrf.mxu0  ;;  %2018 = vst.msk [vmem:[#allocation3 + $0x10] sm:$0xff] %vm583_vm4, %v1986_v1  ;;  %v1984_v26 = vadd.f32 %v1952_v12, %v1825_v57  ;;  %1662 = vst.msk [vmem:[#allocation3 + $0x20] sm:$0xff] %vm583_vm4, %v1630_v59  ;;  %v1633_v41 = vadd.f32 %v4463_v15, %v1601_v16  ;;  %v1612_v1 = vld [vmem:[#allocation3 + $0x90] sm:$0xff] }
 0x15a   : > { %v1955_v17 = vld [vmem:[#allocation3 + $0x18] sm:$0xff]  ;;  %v1486_v19 = vpop.f32.mrf.mxu1 }
 0x15b   : > { %v1844_v11 = vpop.f32.mrf.mxu0  ;;  %2016 = vst.msk [vmem:[#allocation3] sm:$0xff] %vm583_vm4, %v1984_v26  ;;  %v1987_v34 = vadd.f32 %v4493_v62, %v1955_v17  ;;  %1665 = vst.msk [vmem:[#allocation3 + $0x38] sm:$0xff] %vm583_vm4, %v1633_v41  ;;  %v1631_v54 = vadd.f32 %v1599_v31, %v1486_v19  ;;  %v1610_v26 = vld [vmem:[#allocation3 + $0x80] sm:$0xff] }
 0x15c   : > { %v1953_v18 = vld [vmem:[#allocation3 + $0x8] sm:$0xff]  ;;  %v4466_v14 = vpop.f32.mrf.mxu1 }
 0x15d   : > { %v4500_v8 = vpop.f32.mrf.mxu0  ;;  %2019 = vst.msk [vmem:[#allocation3 + $0x18] sm:$0xff] %vm583_vm4, %v1987_v34  ;;  %v1985_v9 = vadd.f32 %v1953_v18, %v1828_v2  ;;  %1663 = vst.msk [vmem:[#allocation3 + $0x28] sm:$0xff] %vm583_vm4, %v1631_v54  ;;  %v1636_v10 = vadd.f32 %v4466_v14, %v1604_v56  ;;  %v1613_v34 = vld [vmem:[#allocation3 + $0x98] sm:$0xff] }
 0x15e   : > { %v1958_v13 = vld [vmem:[#allocation3 + $0x30] sm:$0xff]  ;;  %v1499_v20 = vpop.f32.mrf.mxu1 }
 0x15f   : > { %v1857_v21 = vpop.f32.mrf.mxu0  ;;  %2017 = vst.msk [vmem:[#allocation3 + $0x8] sm:$0xff] %vm583_vm4, %v1985_v9  ;;  %v1990_v23 = vadd.f32 %v4496_v7, %v1958_v13  ;;  %1668 = vst.msk [vmem:[#allocation3 + $0x50] sm:$0xff] %vm583_vm4, %v1636_v10  ;;  %v1634_v24 = vadd.f32 %v1602_v25, %v1499_v20  ;;  %v1611_v9 = vld [vmem:[#allocation3 + $0x88] sm:$0xff] }
 0x160   : > { %v1956_v27 = vld [vmem:[#allocation3 + $0x20] sm:$0xff]  ;;  %v4467_v28 = vpop.f32.mrf.mxu1 }
 0x161   : > { %v4501_v35 = vpop.f32.mrf.mxu0  ;;  %2022 = vst.msk [vmem:[#allocation3 + $0x30] sm:$0xff] %vm583_vm4, %v1990_v23  ;;  %v1988_v36 = vadd.f32 %v1956_v27, %v1841_v43  ;;  %1666 = vst.msk [vmem:[#allocation3 + $0x40] sm:$0xff] %vm583_vm4, %v1634_v24  ;;  %v1637_v38 = vadd.f32 %v4467_v28, %v1605_v29  ;;  %v1616_v23 = vld [vmem:[#allocation3 + $0xb0] sm:$0xff] }
 0x162   : > { %v1959_v44 = vld [vmem:[#allocation3 + $0x38] sm:$0xff]  ;;  %v1502_v48 = vpop.f32.mrf.mxu1 }
 0x163   : > { %v1860_v42 = vpop.f32.mrf.mxu0  ;;  %2020 = vst.msk [vmem:[#allocation3 + $0x20] sm:$0xff] %vm583_vm4, %v1988_v36  ;;  %v1991_v45 = vadd.f32 %v4497_v0, %v1959_v44  ;;  %1669 = vst.msk [vmem:[#allocation3 + $0x58] sm:$0xff] %vm583_vm4, %v1637_v38  ;;  %v1635_v50 = vadd.f32 %v1603_v49, %v1502_v48  ;;  %v1614_v36 = vld [vmem:[#allocation3 + $0xa0] sm:$0xff] }
 0x164   : > { %v1957_v46 = vld [vmem:[#allocation3 + $0x28] sm:$0xff]  ;;  %v4470_v57 = vpop.f32.mrf.mxu1 }
 0x165   : > { %v4504_v61 = vpop.f32.mrf.mxu0  ;;  %2023 = vst.msk [vmem:[#allocation3 + $0x38] sm:$0xff] %vm583_vm4, %v1991_v45  ;;  %v1989_v4 = vadd.f32 %v1957_v46, %v1844_v11  ;;  %1667 = vst.msk [vmem:[#allocation3 + $0x48] sm:$0xff] %vm583_vm4, %v1635_v50  ;;  %v1640_v5 = vadd.f32 %v4470_v57, %v1608_v58  ;;  %v1617_v45 = vld [vmem:[#allocation3 + $0xb8] sm:$0xff] }
 0x166   : > { %v1962_v6 = vld [vmem:[#allocation3 + $0x50] sm:$0xff]  ;;  %v1515_v62 = vpop.f32.mrf.mxu1 }
 0x167   : > { %v1873_v40 = vpop.f32.mrf.mxu0  ;;  %2021 = vst.msk [vmem:[#allocation3 + $0x28] sm:$0xff] %vm583_vm4, %v1989_v4  ;;  %v1994_v63 = vadd.f32 %v4500_v8, %v1962_v6  ;;  %1672 = vst.msk [vmem:[#allocation3 + $0x70] sm:$0xff] %vm583_vm4, %v1640_v5  ;;  %v1638_v51 = vadd.f32 %v1606_v39, %v1515_v62  ;;  %v1615_v4 = vld [vmem:[#allocation3 + $0xa8] sm:$0xff] }
 0x168   : > { %v1960_v47 = vld [vmem:[#allocation3 + $0x40] sm:$0xff]  ;;  %v4471_v2 = vpop.f32.mrf.mxu1 }
 0x169   : > { %v4505_v3 = vpop.f32.mrf.mxu0  ;;  %2026 = vst.msk [vmem:[#allocation3 + $0x50] sm:$0xff] %vm583_vm4, %v1994_v63  ;;  %v1992_v32 = vadd.f32 %v1960_v47, %v1857_v21  ;;  %1670 = vst.msk [vmem:[#allocation3 + $0x60] sm:$0xff] %vm583_vm4, %v1638_v51  ;;  %v1641_v53 = vadd.f32 %v4471_v2, %v1609_v30  ;;  %v1620_v63 = vld [vmem:[#allocation3 + $0xd0] sm:$0xff] }
 0x16a   : > { %v1963_v55 = vld [vmem:[#allocation3 + $0x58] sm:$0xff]  ;;  %v1518_v7 = vpop.f32.mrf.mxu1 }
 0x16b   : > { %v1876_v60 = vpop.f32.mrf.mxu0  ;;  %2024 = vst.msk [vmem:[#allocation3 + $0x40] sm:$0xff] %vm583_vm4, %v1992_v32  ;;  %v1995_v33 = vadd.f32 %v4501_v35, %v1963_v55  ;;  %1673 = vst.msk [vmem:[#allocation3 + $0x78] sm:$0xff] %vm583_vm4, %v1641_v53  ;;  %v1639_v37 = vadd.f32 %v1607_v52, %v1518_v7  ;;  %v1618_v32 = vld [vmem:[#allocation3 + $0xc0] sm:$0xff] }
 0x16c   : > { %v1961_v22 = vld [vmem:[#allocation3 + $0x48] sm:$0xff]  ;;  %v4474_v43 = vpop.f32.mrf.mxu1 }
 0x16d   : > { %v4508_v59 = vpop.f32.mrf.mxu0  ;;  %2027 = vst.msk [vmem:[#allocation3 + $0x58] sm:$0xff] %vm583_vm4, %v1995_v33  ;;  %v1993_v12 = vadd.f32 %v1961_v22, %v1860_v42  ;;  %1671 = vst.msk [vmem:[#allocation3 + $0x68] sm:$0xff] %vm583_vm4, %v1639_v37  ;;  %v1644_v15 = vadd.f32 %v4474_v43, %v1612_v1  ;;  %v1621_v33 = vld [vmem:[#allocation3 + $0xd8] sm:$0xff] }
 0x16e   : > { %v1966_v16 = vld [vmem:[#allocation3 + $0x70] sm:$0xff]  ;;  %v1531_v0 = vpop.f32.mrf.mxu1 }
 0x16f   : > { %v1889_v41 = vpop.f32.mrf.mxu0  ;;  %2025 = vst.msk [vmem:[#allocation3 + $0x48] sm:$0xff] %vm583_vm4, %v1993_v12  ;;  %v1998_v17 = vadd.f32 %v4504_v61, %v1966_v16  ;;  %1676 = vst.msk [vmem:[#allocation3 + $0x90] sm:$0xff] %vm583_vm4, %v1644_v15  ;;  %v1642_v19 = vadd.f32 %v1610_v26, %v1531_v0  ;;  %v1619_v12 = vld [vmem:[#allocation3 + $0xc8] sm:$0xff] }
 0x170   : > { %v1964_v31 = vld [vmem:[#allocation3 + $0x60] sm:$0xff]  ;;  %v4475_v11 = vpop.f32.mrf.mxu1 }
 0x171   : > { %v4509_v54 = vpop.f32.mrf.mxu0  ;;  %2030 = vst.msk [vmem:[#allocation3 + $0x70] sm:$0xff] %vm583_vm4, %v1998_v17  ;;  %v1996_v18 = vadd.f32 %v1964_v31, %v1873_v40  ;;  %1674 = vst.msk [vmem:[#allocation3 + $0x80] sm:$0xff] %vm583_vm4, %v1642_v19  ;;  %v1645_v14 = vadd.f32 %v4475_v11, %v1613_v34  ;;  %v1624_v17 = vld [vmem:[#allocation3 + $0xf0] sm:$0xff] }
 0x172   : > { %v1967_v56 = vld [vmem:[#allocation3 + $0x78] sm:$0xff]  ;;  %v1534_v8 = vpop.f32.mrf.mxu1 }
 0x173   : > { %v1892_v10 = vpop.f32.mrf.mxu0  ;;  %2028 = vst.msk [vmem:[#allocation3 + $0x60] sm:$0xff] %vm583_vm4, %v1996_v18  ;;  %v1999_v13 = vadd.f32 %v4505_v3, %v1967_v56  ;;  %1677 = vst.msk [vmem:[#allocation3 + $0x98] sm:$0xff] %vm583_vm4, %v1645_v14  ;;  %v1643_v20 = vadd.f32 %v1611_v9, %v1534_v8  ;;  %v1622_v18 = vld [vmem:[#allocation3 + $0xe0] sm:$0xff] }
 0x174   : > { %v1965_v25 = vld [vmem:[#allocation3 + $0x68] sm:$0xff]  ;;  %v4478_v21 = vpop.f32.mrf.mxu1 }
 0x175   : > { %v4512_v24 = vpop.f32.mrf.mxu0  ;;  %2031 = vst.msk [vmem:[#allocation3 + $0x78] sm:$0xff] %vm583_vm4, %v1999_v13  ;;  %v1997_v27 = vadd.f32 %v1965_v25, %v1876_v60  ;;  %1675 = vst.msk [vmem:[#allocation3 + $0x88] sm:$0xff] %vm583_vm4, %v1643_v20  ;;  %v1648_v28 = vadd.f32 %v4478_v21, %v1616_v23  ;;  %v1625_v13 = vld [vmem:[#allocation3 + $0xf8] sm:$0xff] }
 0x176   : > { %v1970_v29 = vld [vmem:[#allocation3 + $0x90] sm:$0xff]  ;;  %v1547_v35 = vpop.f32.mrf.mxu1 }
 0x177   : > { %v1905_v38 = vpop.f32.mrf.mxu0  ;;  %2029 = vst.msk [vmem:[#allocation3 + $0x68] sm:$0xff] %vm583_vm4, %v1997_v27  ;;  %v2002_v44 = vadd.f32 %v4508_v59, %v1970_v29  ;;  %1680 = vst.msk [vmem:[#allocation3 + $0xb0] sm:$0xff] %vm583_vm4, %v1648_v28  ;;  %v1646_v48 = vadd.f32 %v1614_v36, %v1547_v35  ;;  %v1623_v27 = vld [vmem:[#allocation3 + $0xe8] sm:$0xff] }
 0x178   : > { %v1968_v49 = vld [vmem:[#allocation3 + $0x80] sm:$0xff]  ;;  %v4479_v42 = vpop.f32.mrf.mxu1 }
 0x179   : > { %v4513_v50 = vpop.f32.mrf.mxu0  ;;  %2034 = vst.msk [vmem:[#allocation3 + $0x90] sm:$0xff] %vm583_vm4, %v2002_v44  ;;  %v2000_v46 = vadd.f32 %v1968_v49, %v1889_v41  ;;  %1678 = vst.msk [vmem:[#allocation3 + $0xa0] sm:$0xff] %vm583_vm4, %v1646_v48  ;;  %v1649_v57 = vadd.f32 %v4479_v42, %v1617_v45  ;;  %v2312_v44 = vld [vmem:[#allocation3 + $0x10] sm:$0xff] }
 0x17a   : > { %v1971_v58 = vld [vmem:[#allocation3 + $0x98] sm:$0xff]  ;;  %v1550_v61 = vpop.f32.mrf.mxu1 }
 0x17b   : > { %v1908_v5 = vpop.f32.mrf.mxu0  ;;  %2032 = vst.msk [vmem:[#allocation3 + $0x80] sm:$0xff] %vm583_vm4, %v2000_v46  ;;  %v2003_v6 = vadd.f32 %v4509_v54, %v1971_v58  ;;  %1681 = vst.msk [vmem:[#allocation3 + $0xb8] sm:$0xff] %vm583_vm4, %v1649_v57  ;;  %v1647_v62 = vadd.f32 %v1615_v4, %v1550_v61  ;;  %v2310_v46 = vld [vmem:[#allocation3] sm:$0xff] }
 0x17c   : > { %v1969_v39 = vld [vmem:[#allocation3 + $0x88] sm:$0xff]  ;;  %v4482_v40 = vpop.f32.mrf.mxu1 }
 0x17d   : > { %v4516_v51 = vpop.f32.mrf.mxu0  ;;  %2035 = vst.msk [vmem:[#allocation3 + $0x98] sm:$0xff] %vm583_vm4, %v2003_v6  ;;  %v2001_v47 = vadd.f32 %v1969_v39, %v1892_v10  ;;  %1679 = vst.msk [vmem:[#allocation3 + $0xa8] sm:$0xff] %vm583_vm4, %v1647_v62  ;;  %v1652_v2 = vadd.f32 %v4482_v40, %v1620_v63  ;;  %v2313_v6 = vld [vmem:[#allocation3 + $0x18] sm:$0xff] }
 0x17e   : > { %v1974_v30 = vld [vmem:[#allocation3 + $0xb0] sm:$0xff]  ;;  %v1563_v3 = vpop.f32.mrf.mxu1 }
 0x17f   : > { %v1921_v53 = vpop.f32.mrf.mxu0  ;;  %2033 = vst.msk [vmem:[#allocation3 + $0x88] sm:$0xff] %vm583_vm4, %v2001_v47  ;;  %v2006_v55 = vadd.f32 %v4512_v24, %v1974_v30  ;;  %1684 = vst.msk [vmem:[#allocation3 + $0xd0] sm:$0xff] %vm583_vm4, %v1652_v2  ;;  %v1650_v7 = vadd.f32 %v1618_v32, %v1563_v3  ;;  %v2311_v47 = vld [vmem:[#allocation3 + $0x8] sm:$0xff] }
 0x180   : > { %v1972_v52 = vld [vmem:[#allocation3 + $0xa0] sm:$0xff]  ;;  %v4483_v60 = vpop.f32.mrf.mxu1 }
 0x181   : > { %v4517_v37 = vpop.f32.mrf.mxu0  ;;  %2038 = vst.msk [vmem:[#allocation3 + $0xb0] sm:$0xff] %vm583_vm4, %v2006_v55  ;;  %v2004_v22 = vadd.f32 %v1972_v52, %v1905_v38  ;;  %1682 = vst.msk [vmem:[#allocation3 + $0xc0] sm:$0xff] %vm583_vm4, %v1650_v7  ;;  %v1653_v43 = vadd.f32 %v4483_v60, %v1621_v33  ;;  %v2316_v55 = vld [vmem:[#allocation3 + $0x30] sm:$0xff] }
 0x182   : > { %v1975_v1 = vld [vmem:[#allocation3 + $0xb8] sm:$0xff]  ;;  %v1566_v59 = vpop.f32.mrf.mxu1 }
 0x183   : > { %v1924_v15 = vpop.f32.mrf.mxu0  ;;  %2036 = vst.msk [vmem:[#allocation3 + $0xa0] sm:$0xff] %vm583_vm4, %v2004_v22  ;;  %v2007_v16 = vadd.f32 %v4513_v50, %v1975_v1  ;;  %1685 = vst.msk [vmem:[#allocation3 + $0xd8] sm:$0xff] %vm583_vm4, %v1653_v43  ;;  %v1651_v0 = vadd.f32 %v1619_v12, %v1566_v59  ;;  %v2314_v22 = vld [vmem:[#allocation3 + $0x20] sm:$0xff] }
 0x184   : > { %v1973_v26 = vld [vmem:[#allocation3 + $0xa8] sm:$0xff]  ;;  %v4486_v41 = vpop.f32.mrf.mxu1 }
 0x185   : > { %v4520_v19 = vpop.f32.mrf.mxu0  ;;  %2039 = vst.msk [vmem:[#allocation3 + $0xb8] sm:$0xff] %vm583_vm4, %v2007_v16  ;;  %v2005_v31 = vadd.f32 %v1973_v26, %v1908_v5  ;;  %1683 = vst.msk [vmem:[#allocation3 + $0xc8] sm:$0xff] %vm583_vm4, %v1651_v0  ;;  %v1656_v11 = vadd.f32 %v4486_v41, %v1624_v17  ;;  %v2317_v16 = vld [vmem:[#allocation3 + $0x38] sm:$0xff] }
 0x186   : > { %v1978_v34 = vld [vmem:[#allocation3 + $0xd0] sm:$0xff]  ;;  %v1579_v54 = vpop.f32.mrf.mxu1 }
 0x187   : > { %v1937_v14 = vpop.f32.mrf.mxu0  ;;  %2037 = vst.msk [vmem:[#allocation3 + $0xa8] sm:$0xff] %vm583_vm4, %v2005_v31  ;;  %v2010_v56 = vadd.f32 %v4516_v51, %v1978_v34  ;;  %1688 = vst.msk [vmem:[#allocation3 + $0xf0] sm:$0xff] %vm583_vm4, %v1656_v11  ;;  %v1654_v8 = vadd.f32 %v1622_v18, %v1579_v54  ;;  %v2315_v31 = vld [vmem:[#allocation3 + $0x28] sm:$0xff] }
 0x188   : > { %v1976_v9 = vld [vmem:[#allocation3 + $0xc0] sm:$0xff]  ;;  %v4487_v10 = vpop.f32.mrf.mxu1 }
 0x189   : > { %v4521_v20 = vpop.f32.mrf.mxu0  ;;  %2042 = vst.msk [vmem:[#allocation3 + $0xd0] sm:$0xff] %vm583_vm4, %v2010_v56  ;;  %v2008_v25 = vadd.f32 %v1976_v9, %v1921_v53  ;;  %1686 = vst.msk [vmem:[#allocation3 + $0xe0] sm:$0xff] %vm583_vm4, %v1654_v8  ;;  %v1657_v21 = vadd.f32 %v4487_v10, %v1625_v13  ;;  %v2320_v56 = vld [vmem:[#allocation3 + $0x50] sm:$0xff] }
 0x18a   : > { %v1979_v23 = vld [vmem:[#allocation3 + $0xd8] sm:$0xff]  ;;  %v1582_v24 = vpop.f32.mrf.mxu1 }
 0x18b   : > { %v1940_v28 = vpop.f32.mrf.mxu0  ;;  %2040 = vst.msk [vmem:[#allocation3 + $0xc0] sm:$0xff] %vm583_vm4, %v2008_v25  ;;  %v2011_v29 = vadd.f32 %v4517_v37, %v1979_v23  ;;  %1689 = vst.msk [vmem:[#allocation3 + $0xf8] sm:$0xff] %vm583_vm4, %v1657_v21  ;;  %v1655_v35 = vadd.f32 %v1623_v27, %v1582_v24  ;;  %v2318_v25 = vld [vmem:[#allocation3 + $0x40] sm:$0xff] }
 0x18c   : > { %v1977_v36 = vld [vmem:[#allocation3 + $0xc8] sm:$0xff]  ;;  %v4526_v38 = vpop.f32.mrf.mxu1 }
 0x18d   : > { %v4560_v48 = vpop.f32.mrf.mxu0  ;;  %2043 = vst.msk [vmem:[#allocation3 + $0xd8] sm:$0xff] %vm583_vm4, %v2011_v29  ;;  %v2009_v49 = vadd.f32 %v1977_v36, %v1924_v15  ;;  %1687 = vst.msk [vmem:[#allocation3 + $0xe8] sm:$0xff] %vm583_vm4, %v1655_v35  ;;  %v2344_v42 = vadd.f32 %v4526_v38, %v2312_v44  ;;  %v2321_v29 = vld [vmem:[#allocation3 + $0x58] sm:$0xff] }
 0x18e   : > { %v1982_v45 = vld [vmem:[#allocation3 + $0xf0] sm:$0xff]  ;;  %v2183_v50 = vpop.f32.mrf.mxu1 }
 0x18f   : > { %v2542_v57 = vpop.f32.mrf.mxu0  ;;  %2041 = vst.msk [vmem:[#allocation3 + $0xc8] sm:$0xff] %vm583_vm4, %v2009_v49  ;;  %v2014_v58 = vadd.f32 %v4520_v19, %v1982_v45  ;;  %2376 = vst.msk [vmem:[#allocation3 + $0x10] sm:$0xff] %vm583_vm4, %v2344_v42  ;;  %v2342_v61 = vadd.f32 %v2310_v46, %v2183_v50  ;;  %v2319_v49 = vld [vmem:[#allocation3 + $0x48] sm:$0xff] }
 0x190   : > { %v1980_v4 = vld [vmem:[#allocation3 + $0xe0] sm:$0xff]  ;;  %v4527_v5 = vpop.f32.mrf.mxu1 }
 0x191   : > { %v4561_v62 = vpop.f32.mrf.mxu0  ;;  %2046 = vst.msk [vmem:[#allocation3 + $0xf0] sm:$0xff] %vm583_vm4, %v2014_v58  ;;  %v2012_v39 = vadd.f32 %v1980_v4, %v1937_v14  ;;  %2374 = vst.msk [vmem:[#allocation3] sm:$0xff] %vm583_vm4, %v2342_v61  ;;  %v2345_v40 = vadd.f32 %v4527_v5, %v2313_v6  ;;  %v2324_v58 = vld [vmem:[#allocation3 + $0x70] sm:$0xff] }
 0x192   : > { %v1983_v63 = vld [vmem:[#allocation3 + $0xf8] sm:$0xff]  ;;  %v2186_v51 = vpop.f32.mrf.mxu1 }
 0x193   : > { %v2545_v2 = vpop.f32.mrf.mxu0  ;;  %2044 = vst.msk [vmem:[#allocation3 + $0xe0] sm:$0xff] %vm583_vm4, %v2012_v39  ;;  %v2015_v30 = vadd.f32 %v4521_v20, %v1983_v63  ;;  %2377 = vst.msk [vmem:[#allocation3 + $0x18] sm:$0xff] %vm583_vm4, %v2345_v40  ;;  %v2343_v3 = vadd.f32 %v2311_v47, %v2186_v51  ;;  %v2322_v39 = vld [vmem:[#allocation3 + $0x60] sm:$0xff] }
 0x194   : > { %v1981_v32 = vld [vmem:[#allocation3 + $0xe8] sm:$0xff]  ;;  %v4530_v53 = vpop.f32.mrf.mxu1 }
 0x195   : > { %v4564_v7 = vpop.f32.mrf.mxu0  ;;  %2047 = vst.msk [vmem:[#allocation3 + $0xf8] sm:$0xff] %vm583_vm4, %v2015_v30  ;;  %v2013_v52 = vadd.f32 %v1981_v32, %v1940_v28  ;;  %2375 = vst.msk [vmem:[#allocation3 + $0x8] sm:$0xff] %vm583_vm4, %v2343_v3  ;;  %v2348_v60 = vadd.f32 %v4530_v53, %v2316_v55  ;;  %v2325_v30 = vld [vmem:[#allocation3 + $0x78] sm:$0xff] }
 0x196   : > { %v2671_v33 = vld [vmem:[#allocation3 + $0x10] sm:$0xff]  ;;  %v2199_v37 = vpop.f32.mrf.mxu1 }
 0x197   : > { %v2558_v43 = vpop.f32.mrf.mxu0  ;;  %2045 = vst.msk [vmem:[#allocation3 + $0xe8] sm:$0xff] %vm583_vm4, %v2013_v52  ;;  %v2703_v1 = vadd.f32 %v4560_v48, %v2671_v33  ;;  %2380 = vst.msk [vmem:[#allocation3 + $0x30] sm:$0xff] %vm583_vm4, %v2348_v60  ;;  %v2346_v59 = vadd.f32 %v2314_v22, %v2199_v37  ;;  %v2323_v52 = vld [vmem:[#allocation3 + $0x68] sm:$0xff] }
 0x198   : > { %v2669_v12 = vld [vmem:[#allocation3] sm:$0xff]  ;;  %v4531_v15 = vpop.f32.mrf.mxu1 }
 0x199   : > { %v4565_v0 = vpop.f32.mrf.mxu0  ;;  %2735 = vst.msk [vmem:[#allocation3 + $0x10] sm:$0xff] %vm583_vm4, %v2703_v1  ;;  %v2701_v26 = vadd.f32 %v2669_v12, %v2542_v57  ;;  %2378 = vst.msk [vmem:[#allocation3 + $0x20] sm:$0xff] %vm583_vm4, %v2346_v59  ;;  %v2349_v41 = vadd.f32 %v4531_v15, %v2317_v16  ;;  %v2328_v1 = vld [vmem:[#allocation3 + $0x90] sm:$0xff] }
 0x19a   : > { %v2672_v17 = vld [vmem:[#allocation3 + $0x18] sm:$0xff]  ;;  %v2202_v19 = vpop.f32.mrf.mxu1 }
 0x19b   : > { %v2561_v11 = vpop.f32.mrf.mxu0  ;;  %2733 = vst.msk [vmem:[#allocation3] sm:$0xff] %vm583_vm4, %v2701_v26  ;;  %v2704_v34 = vadd.f32 %v4561_v62, %v2672_v17  ;;  %2381 = vst.msk [vmem:[#allocation3 + $0x38] sm:$0xff] %vm583_vm4, %v2349_v41  ;;  %v2347_v54 = vadd.f32 %v2315_v31, %v2202_v19  ;;  %v2326_v26 = vld [vmem:[#allocation3 + $0x80] sm:$0xff] }
 0x19c   : > { %v2670_v18 = vld [vmem:[#allocation3 + $0x8] sm:$0xff]  ;;  %v4534_v14 = vpop.f32.mrf.mxu1 }
 0x19d   : > { %v4568_v8 = vpop.f32.mrf.mxu0  ;;  %2736 = vst.msk [vmem:[#allocation3 + $0x18] sm:$0xff] %vm583_vm4, %v2704_v34  ;;  %v2702_v9 = vadd.f32 %v2670_v18, %v2545_v2  ;;  %2379 = vst.msk [vmem:[#allocation3 + $0x28] sm:$0xff] %vm583_vm4, %v2347_v54  ;;  %v2352_v10 = vadd.f32 %v4534_v14, %v2320_v56  ;;  %v2329_v34 = vld [vmem:[#allocation3 + $0x98] sm:$0xff] }
 0x19e   : > { %v2675_v13 = vld [vmem:[#allocation3 + $0x30] sm:$0xff]  ;;  %v2215_v20 = vpop.f32.mrf.mxu1 }
 0x19f   : > { %v2574_v21 = vpop.f32.mrf.mxu0  ;;  %2734 = vst.msk [vmem:[#allocation3 + $0x8] sm:$0xff] %vm583_vm4, %v2702_v9  ;;  %v2707_v23 = vadd.f32 %v4564_v7, %v2675_v13  ;;  %2384 = vst.msk [vmem:[#allocation3 + $0x50] sm:$0xff] %vm583_vm4, %v2352_v10  ;;  %v2350_v24 = vadd.f32 %v2318_v25, %v2215_v20  ;;  %v2327_v9 = vld [vmem:[#allocation3 + $0x88] sm:$0xff] }
 0x1a0   : > { %v2673_v27 = vld [vmem:[#allocation3 + $0x20] sm:$0xff]  ;;  %v4535_v28 = vpop.f32.mrf.mxu1 }
 0x1a1   : > { %v4569_v35 = vpop.f32.mrf.mxu0  ;;  %2739 = vst.msk [vmem:[#allocation3 + $0x30] sm:$0xff] %vm583_vm4, %v2707_v23  ;;  %v2705_v36 = vadd.f32 %v2673_v27, %v2558_v43  ;;  %2382 = vst.msk [vmem:[#allocation3 + $0x40] sm:$0xff] %vm583_vm4, %v2350_v24  ;;  %v2353_v38 = vadd.f32 %v4535_v28, %v2321_v29  ;;  %v2332_v23 = vld [vmem:[#allocation3 + $0xb0] sm:$0xff] }
 0x1a2   : > { %v2676_v44 = vld [vmem:[#allocation3 + $0x38] sm:$0xff]  ;;  %v2218_v48 = vpop.f32.mrf.mxu1 }
 0x1a3   : > { %v2577_v42 = vpop.f32.mrf.mxu0  ;;  %2737 = vst.msk [vmem:[#allocation3 + $0x20] sm:$0xff] %vm583_vm4, %v2705_v36  ;;  %v2708_v45 = vadd.f32 %v4565_v0, %v2676_v44  ;;  %2385 = vst.msk [vmem:[#allocation3 + $0x58] sm:$0xff] %vm583_vm4, %v2353_v38  ;;  %v2351_v50 = vadd.f32 %v2319_v49, %v2218_v48  ;;  %v2330_v36 = vld [vmem:[#allocation3 + $0xa0] sm:$0xff] }
 0x1a4   : > { %v2674_v46 = vld [vmem:[#allocation3 + $0x28] sm:$0xff]  ;;  %v4538_v57 = vpop.f32.mrf.mxu1 }
 0x1a5   : > { %v4572_v61 = vpop.f32.mrf.mxu0  ;;  %2740 = vst.msk [vmem:[#allocation3 + $0x38] sm:$0xff] %vm583_vm4, %v2708_v45  ;;  %v2706_v4 = vadd.f32 %v2674_v46, %v2561_v11  ;;  %2383 = vst.msk [vmem:[#allocation3 + $0x48] sm:$0xff] %vm583_vm4, %v2351_v50  ;;  %v2356_v5 = vadd.f32 %v4538_v57, %v2324_v58  ;;  %v2333_v45 = vld [vmem:[#allocation3 + $0xb8] sm:$0xff] }
 0x1a6   : > { %v2679_v6 = vld [vmem:[#allocation3 + $0x50] sm:$0xff]  ;;  %v2231_v62 = vpop.f32.mrf.mxu1 }
 0x1a7   : > { %v2590_v40 = vpop.f32.mrf.mxu0  ;;  %2738 = vst.msk [vmem:[#allocation3 + $0x28] sm:$0xff] %vm583_vm4, %v2706_v4  ;;  %v2711_v63 = vadd.f32 %v4568_v8, %v2679_v6  ;;  %2388 = vst.msk [vmem:[#allocation3 + $0x70] sm:$0xff] %vm583_vm4, %v2356_v5  ;;  %v2354_v51 = vadd.f32 %v2322_v39, %v2231_v62  ;;  %v2331_v4 = vld [vmem:[#allocation3 + $0xa8] sm:$0xff] }
 0x1a8   : > { %v2677_v47 = vld [vmem:[#allocation3 + $0x40] sm:$0xff]  ;;  %v4539_v2 = vpop.f32.mrf.mxu1 }
 0x1a9   : > { %v4573_v3 = vpop.f32.mrf.mxu0  ;;  %2743 = vst.msk [vmem:[#allocation3 + $0x50] sm:$0xff] %vm583_vm4, %v2711_v63  ;;  %v2709_v32 = vadd.f32 %v2677_v47, %v2574_v21  ;;  %2386 = vst.msk [vmem:[#allocation3 + $0x60] sm:$0xff] %vm583_vm4, %v2354_v51  ;;  %v2357_v53 = vadd.f32 %v4539_v2, %v2325_v30  ;;  %v2336_v63 = vld [vmem:[#allocation3 + $0xd0] sm:$0xff] }
 0x1aa   : > { %v2680_v55 = vld [vmem:[#allocation3 + $0x58] sm:$0xff]  ;;  %v2234_v7 = vpop.f32.mrf.mxu1 }
 0x1ab   : > { %v2593_v60 = vpop.f32.mrf.mxu0  ;;  %2741 = vst.msk [vmem:[#allocation3 + $0x40] sm:$0xff] %vm583_vm4, %v2709_v32  ;;  %v2712_v33 = vadd.f32 %v4569_v35, %v2680_v55  ;;  %2389 = vst.msk [vmem:[#allocation3 + $0x78] sm:$0xff] %vm583_vm4, %v2357_v53  ;;  %v2355_v37 = vadd.f32 %v2323_v52, %v2234_v7  ;;  %v2334_v32 = vld [vmem:[#allocation3 + $0xc0] sm:$0xff] }
 0x1ac   : > { %v2678_v22 = vld [vmem:[#allocation3 + $0x48] sm:$0xff]  ;;  %v4542_v43 = vpop.f32.mrf.mxu1 }
 0x1ad   : > { %v4576_v59 = vpop.f32.mrf.mxu0  ;;  %2744 = vst.msk [vmem:[#allocation3 + $0x58] sm:$0xff] %vm583_vm4, %v2712_v33  ;;  %v2710_v12 = vadd.f32 %v2678_v22, %v2577_v42  ;;  %2387 = vst.msk [vmem:[#allocation3 + $0x68] sm:$0xff] %vm583_vm4, %v2355_v37  ;;  %v2360_v15 = vadd.f32 %v4542_v43, %v2328_v1  ;;  %v2337_v33 = vld [vmem:[#allocation3 + $0xd8] sm:$0xff] }
 0x1ae   : > { %v2683_v16 = vld [vmem:[#allocation3 + $0x70] sm:$0xff]  ;;  %v2247_v0 = vpop.f32.mrf.mxu1 }
 0x1af   : > { %v2606_v41 = vpop.f32.mrf.mxu0  ;;  %2742 = vst.msk [vmem:[#allocation3 + $0x48] sm:$0xff] %vm583_vm4, %v2710_v12  ;;  %v2715_v17 = vadd.f32 %v4572_v61, %v2683_v16  ;;  %2392 = vst.msk [vmem:[#allocation3 + $0x90] sm:$0xff] %vm583_vm4, %v2360_v15  ;;  %v2358_v19 = vadd.f32 %v2326_v26, %v2247_v0  ;;  %v2335_v12 = vld [vmem:[#allocation3 + $0xc8] sm:$0xff] }
 0x1b0   : > { %v2681_v31 = vld [vmem:[#allocation3 + $0x60] sm:$0xff]  ;;  %v4543_v11 = vpop.f32.mrf.mxu1 }
 0x1b1   : > { %v4577_v54 = vpop.f32.mrf.mxu0  ;;  %2747 = vst.msk [vmem:[#allocation3 + $0x70] sm:$0xff] %vm583_vm4, %v2715_v17  ;;  %v2713_v18 = vadd.f32 %v2681_v31, %v2590_v40  ;;  %2390 = vst.msk [vmem:[#allocation3 + $0x80] sm:$0xff] %vm583_vm4, %v2358_v19  ;;  %v2361_v14 = vadd.f32 %v4543_v11, %v2329_v34  ;;  %v2340_v17 = vld [vmem:[#allocation3 + $0xf0] sm:$0xff] }
 0x1b2   : > { %v2684_v56 = vld [vmem:[#allocation3 + $0x78] sm:$0xff]  ;;  %v2250_v8 = vpop.f32.mrf.mxu1 }
 0x1b3   : > { %v2609_v10 = vpop.f32.mrf.mxu0  ;;  %2745 = vst.msk [vmem:[#allocation3 + $0x60] sm:$0xff] %vm583_vm4, %v2713_v18  ;;  %v2716_v13 = vadd.f32 %v4573_v3, %v2684_v56  ;;  %2393 = vst.msk [vmem:[#allocation3 + $0x98] sm:$0xff] %vm583_vm4, %v2361_v14  ;;  %v2359_v20 = vadd.f32 %v2327_v9, %v2250_v8  ;;  %v2338_v18 = vld [vmem:[#allocation3 + $0xe0] sm:$0xff] }
 0x1b4   : > { %v2682_v25 = vld [vmem:[#allocation3 + $0x68] sm:$0xff]  ;;  %v4546_v21 = vpop.f32.mrf.mxu1 }
 0x1b5   : > { %v4580_v24 = vpop.f32.mrf.mxu0  ;;  %2748 = vst.msk [vmem:[#allocation3 + $0x78] sm:$0xff] %vm583_vm4, %v2716_v13  ;;  %v2714_v27 = vadd.f32 %v2682_v25, %v2593_v60  ;;  %2391 = vst.msk [vmem:[#allocation3 + $0x88] sm:$0xff] %vm583_vm4, %v2359_v20  ;;  %v2364_v28 = vadd.f32 %v4546_v21, %v2332_v23  ;;  %v2341_v13 = vld [vmem:[#allocation3 + $0xf8] sm:$0xff] }
 0x1b6   : > { %v2687_v29 = vld [vmem:[#allocation3 + $0x90] sm:$0xff]  ;;  %v2263_v35 = vpop.f32.mrf.mxu1 }
 0x1b7   : > { %v2622_v38 = vpop.f32.mrf.mxu0  ;;  %2746 = vst.msk [vmem:[#allocation3 + $0x68] sm:$0xff] %vm583_vm4, %v2714_v27  ;;  %v2719_v44 = vadd.f32 %v4576_v59, %v2687_v29  ;;  %2396 = vst.msk [vmem:[#allocation3 + $0xb0] sm:$0xff] %vm583_vm4, %v2364_v28  ;;  %v2362_v48 = vadd.f32 %v2330_v36, %v2263_v35  ;;  %v2339_v27 = vld [vmem:[#allocation3 + $0xe8] sm:$0xff] }
 0x1b8   : > { %v2685_v49 = vld [vmem:[#allocation3 + $0x80] sm:$0xff]  ;;  %v4547_v42 = vpop.f32.mrf.mxu1 }
 0x1b9   : > { %v4581_v50 = vpop.f32.mrf.mxu0  ;;  %2751 = vst.msk [vmem:[#allocation3 + $0x90] sm:$0xff] %vm583_vm4, %v2719_v44  ;;  %v2717_v46 = vadd.f32 %v2685_v49, %v2606_v41  ;;  %2394 = vst.msk [vmem:[#allocation3 + $0xa0] sm:$0xff] %vm583_vm4, %v2362_v48  ;;  %v2365_v57 = vadd.f32 %v4547_v42, %v2333_v45  ;;  %v3029_v44 = vld [vmem:[#allocation3 + $0x10] sm:$0xff] }
 0x1ba   : > { %v2688_v58 = vld [vmem:[#allocation3 + $0x98] sm:$0xff]  ;;  %v2266_v61 = vpop.f32.mrf.mxu1 }
 0x1bb   : > { %v2625_v5 = vpop.f32.mrf.mxu0  ;;  %2749 = vst.msk [vmem:[#allocation3 + $0x80] sm:$0xff] %vm583_vm4, %v2717_v46  ;;  %v2720_v6 = vadd.f32 %v4577_v54, %v2688_v58  ;;  %2397 = vst.msk [vmem:[#allocation3 + $0xb8] sm:$0xff] %vm583_vm4, %v2365_v57  ;;  %v2363_v62 = vadd.f32 %v2331_v4, %v2266_v61  ;;  %v3027_v46 = vld [vmem:[#allocation3] sm:$0xff] }
 0x1bc   : > { %v2686_v39 = vld [vmem:[#allocation3 + $0x88] sm:$0xff]  ;;  %v4550_v40 = vpop.f32.mrf.mxu1 }
 0x1bd   : > { %v4584_v51 = vpop.f32.mrf.mxu0  ;;  %2752 = vst.msk [vmem:[#allocation3 + $0x98] sm:$0xff] %vm583_vm4, %v2720_v6  ;;  %v2718_v47 = vadd.f32 %v2686_v39, %v2609_v10  ;;  %2395 = vst.msk [vmem:[#allocation3 + $0xa8] sm:$0xff] %vm583_vm4, %v2363_v62  ;;  %v2368_v2 = vadd.f32 %v4550_v40, %v2336_v63  ;;  %v3030_v6 = vld [vmem:[#allocation3 + $0x18] sm:$0xff] }
 0x1be   : > { %v2691_v30 = vld [vmem:[#allocation3 + $0xb0] sm:$0xff]  ;;  %v2279_v3 = vpop.f32.mrf.mxu1 }
 0x1bf   : > { %v2638_v53 = vpop.f32.mrf.mxu0  ;;  %2750 = vst.msk [vmem:[#allocation3 + $0x88] sm:$0xff] %vm583_vm4, %v2718_v47  ;;  %v2723_v55 = vadd.f32 %v4580_v24, %v2691_v30  ;;  %2400 = vst.msk [vmem:[#allocation3 + $0xd0] sm:$0xff] %vm583_vm4, %v2368_v2  ;;  %v2366_v7 = vadd.f32 %v2334_v32, %v2279_v3  ;;  %v3028_v47 = vld [vmem:[#allocation3 + $0x8] sm:$0xff] }
 0x1c0   : > { %v2689_v52 = vld [vmem:[#allocation3 + $0xa0] sm:$0xff]  ;;  %v4551_v60 = vpop.f32.mrf.mxu1 }
 0x1c1   : > { %v4585_v37 = vpop.f32.mrf.mxu0  ;;  %2755 = vst.msk [vmem:[#allocation3 + $0xb0] sm:$0xff] %vm583_vm4, %v2723_v55  ;;  %v2721_v22 = vadd.f32 %v2689_v52, %v2622_v38  ;;  %2398 = vst.msk [vmem:[#allocation3 + $0xc0] sm:$0xff] %vm583_vm4, %v2366_v7  ;;  %v2369_v43 = vadd.f32 %v4551_v60, %v2337_v33  ;;  %v3033_v55 = vld [vmem:[#allocation3 + $0x30] sm:$0xff] }
 0x1c2   : > { %v2692_v1 = vld [vmem:[#allocation3 + $0xb8] sm:$0xff]  ;;  %v2282_v59 = vpop.f32.mrf.mxu1 }
 0x1c3   : > { %v2641_v15 = vpop.f32.mrf.mxu0  ;;  %2753 = vst.msk [vmem:[#allocation3 + $0xa0] sm:$0xff] %vm583_vm4, %v2721_v22  ;;  %v2724_v16 = vadd.f32 %v4581_v50, %v2692_v1  ;;  %2401 = vst.msk [vmem:[#allocation3 + $0xd8] sm:$0xff] %vm583_vm4, %v2369_v43  ;;  %v2367_v0 = vadd.f32 %v2335_v12, %v2282_v59  ;;  %v3031_v22 = vld [vmem:[#allocation3 + $0x20] sm:$0xff] }
 0x1c4   : > { %v2690_v26 = vld [vmem:[#allocation3 + $0xa8] sm:$0xff]  ;;  %v4554_v41 = vpop.f32.mrf.mxu1 }
 0x1c5   : > { %v4588_v19 = vpop.f32.mrf.mxu0  ;;  %2756 = vst.msk [vmem:[#allocation3 + $0xb8] sm:$0xff] %vm583_vm4, %v2724_v16  ;;  %v2722_v31 = vadd.f32 %v2690_v26, %v2625_v5  ;;  %2399 = vst.msk [vmem:[#allocation3 + $0xc8] sm:$0xff] %vm583_vm4, %v2367_v0  ;;  %v2372_v11 = vadd.f32 %v4554_v41, %v2340_v17  ;;  %v3034_v16 = vld [vmem:[#allocation3 + $0x38] sm:$0xff] }
 0x1c6   : > { %v2695_v34 = vld [vmem:[#allocation3 + $0xd0] sm:$0xff]  ;;  %v2295_v54 = vpop.f32.mrf.mxu1 }
 0x1c7   : > { %v2654_v14 = vpop.f32.mrf.mxu0  ;;  %2754 = vst.msk [vmem:[#allocation3 + $0xa8] sm:$0xff] %vm583_vm4, %v2722_v31  ;;  %v2727_v56 = vadd.f32 %v4584_v51, %v2695_v34  ;;  %2404 = vst.msk [vmem:[#allocation3 + $0xf0] sm:$0xff] %vm583_vm4, %v2372_v11  ;;  %v2370_v8 = vadd.f32 %v2338_v18, %v2295_v54  ;;  %v3032_v31 = vld [vmem:[#allocation3 + $0x28] sm:$0xff] }
 0x1c8   : > { %v2693_v9 = vld [vmem:[#allocation3 + $0xc0] sm:$0xff]  ;;  %v4555_v10 = vpop.f32.mrf.mxu1 }
 0x1c9   : > { %v4589_v20 = vpop.f32.mrf.mxu0  ;;  %2759 = vst.msk [vmem:[#allocation3 + $0xd0] sm:$0xff] %vm583_vm4, %v2727_v56  ;;  %v2725_v25 = vadd.f32 %v2693_v9, %v2638_v53  ;;  %2402 = vst.msk [vmem:[#allocation3 + $0xe0] sm:$0xff] %vm583_vm4, %v2370_v8  ;;  %v2373_v21 = vadd.f32 %v4555_v10, %v2341_v13  ;;  %v3037_v56 = vld [vmem:[#allocation3 + $0x50] sm:$0xff] }
 0x1ca   : > { %v2696_v23 = vld [vmem:[#allocation3 + $0xd8] sm:$0xff]  ;;  %v2298_v24 = vpop.f32.mrf.mxu1 }
 0x1cb   : > { %v2657_v28 = vpop.f32.mrf.mxu0  ;;  %2757 = vst.msk [vmem:[#allocation3 + $0xc0] sm:$0xff] %vm583_vm4, %v2725_v25  ;;  %v2728_v29 = vadd.f32 %v4585_v37, %v2696_v23  ;;  %2405 = vst.msk [vmem:[#allocation3 + $0xf8] sm:$0xff] %vm583_vm4, %v2373_v21  ;;  %v2371_v35 = vadd.f32 %v2339_v27, %v2298_v24  ;;  %v3035_v25 = vld [vmem:[#allocation3 + $0x40] sm:$0xff] }
 0x1cc   : > { %v2694_v36 = vld [vmem:[#allocation3 + $0xc8] sm:$0xff]  ;;  %v4594_v38 = vpop.f32.mrf.mxu1 }
 0x1cd   : > { %v4628_v48 = vpop.f32.mrf.mxu0  ;;  %2760 = vst.msk [vmem:[#allocation3 + $0xd8] sm:$0xff] %vm583_vm4, %v2728_v29  ;;  %v2726_v49 = vadd.f32 %v2694_v36, %v2641_v15  ;;  %2403 = vst.msk [vmem:[#allocation3 + $0xe8] sm:$0xff] %vm583_vm4, %v2371_v35  ;;  %v3061_v42 = vadd.f32 %v4594_v38, %v3029_v44  ;;  %v3038_v35 = vld [vmem:[#allocation3 + $0x58] sm:$0xff] }
 0x1ce   : > { %v2699_v45 = vld [vmem:[#allocation3 + $0xf0] sm:$0xff]  ;;  %v2900_v50 = vpop.f32.mrf.mxu1 }
 0x1cf   : > { %v3258_v57 = vpop.f32.mrf.mxu0  ;;  %2758 = vst.msk [vmem:[#allocation3 + $0xc8] sm:$0xff] %vm583_vm4, %v2726_v49  ;;  %v2731_v58 = vadd.f32 %v4588_v19, %v2699_v45  ;;  %3093 = vst.msk [vmem:[#allocation3 + $0x10] sm:$0xff] %vm583_vm4, %v3061_v42  ;;  %v3059_v61 = vadd.f32 %v3027_v46, %v2900_v50  ;;  %v3036_v50 = vld [vmem:[#allocation3 + $0x48] sm:$0xff] }
 0x1d0   : > { %v2697_v4 = vld [vmem:[#allocation3 + $0xe0] sm:$0xff]  ;;  %v4595_v5 = vpop.f32.mrf.mxu1 }
 0x1d1   : > { %v4629_v62 = vpop.f32.mrf.mxu0  ;;  %2763 = vst.msk [vmem:[#allocation3 + $0xf0] sm:$0xff] %vm583_vm4, %v2731_v58  ;;  %v2729_v39 = vadd.f32 %v2697_v4, %v2654_v14  ;;  %3091 = vst.msk [vmem:[#allocation3] sm:$0xff] %vm583_vm4, %v3059_v61  ;;  %v3062_v40 = vadd.f32 %v4595_v5, %v3030_v6 }
 0x1d2   : > { %v2700_v63 = vld [vmem:[#allocation3 + $0xf8] sm:$0xff]  ;;  %v2903_v51 = vpop.f32.mrf.mxu1 }
 0x1d3   : > { %v3261_v2 = vpop.f32.mrf.mxu0  ;;  %2761 = vst.msk [vmem:[#allocation3 + $0xe0] sm:$0xff] %vm583_vm4, %v2729_v39  ;;  %v2732_v30 = vadd.f32 %v4589_v20, %v2700_v63  ;;  %3094 = vst.msk [vmem:[#allocation3 + $0x18] sm:$0xff] %vm583_vm4, %v3062_v40  ;;  %v3060_v3 = vadd.f32 %v3028_v47, %v2903_v51 }
 0x1d4   : > { %v2698_v32 = vld [vmem:[#allocation3 + $0xe8] sm:$0xff]  ;;  %v4598_v53 = vpop.f32.mrf.mxu1 }
 0x1d5   : > { %v4632_v7 = vpop.f32.mrf.mxu0  ;;  %2764 = vst.msk [vmem:[#allocation3 + $0xf8] sm:$0xff] %vm583_vm4, %v2732_v30  ;;  %v2730_v52 = vadd.f32 %v2698_v32, %v2657_v28  ;;  %3092 = vst.msk [vmem:[#allocation3 + $0x8] sm:$0xff] %vm583_vm4, %v3060_v3  ;;  %v3065_v60 = vadd.f32 %v4598_v53, %v3033_v55 }
 0x1d6   : > { %v3387_v33 = vld [vmem:[#allocation3 + $0x10] sm:$0xff]  ;;  %v2916_v37 = vpop.f32.mrf.mxu1 }
 0x1d7   : > { %v3274_v43 = vpop.f32.mrf.mxu0  ;;  %2762 = vst.msk [vmem:[#allocation3 + $0xe8] sm:$0xff] %vm583_vm4, %v2730_v52  ;;  %v3419_v1 = vadd.f32 %v4628_v48, %v3387_v33  ;;  %3097 = vst.msk [vmem:[#allocation3 + $0x30] sm:$0xff] %vm583_vm4, %v3065_v60  ;;  %v3063_v59 = vadd.f32 %v3031_v22, %v2916_v37  ;;  %v3039_v60 = vld [vmem:[#allocation3 + $0x60] sm:$0xff] }
 0x1d8   : > { %v3385_v12 = vld [vmem:[#allocation3] sm:$0xff]  ;;  %v4599_v15 = vpop.f32.mrf.mxu1 }
 0x1d9   : > { %v4633_v0 = vpop.f32.mrf.mxu0  ;;  %3451 = vst.msk [vmem:[#allocation3 + $0x10] sm:$0xff] %vm583_vm4, %v3419_v1  ;;  %v3417_v26 = vadd.f32 %v3385_v12, %v3258_v57  ;;  %3095 = vst.msk [vmem:[#allocation3 + $0x20] sm:$0xff] %vm583_vm4, %v3063_v59  ;;  %v3066_v41 = vadd.f32 %v4599_v15, %v3034_v16 }
 0x1da   : > { %v3388_v17 = vld [vmem:[#allocation3 + $0x18] sm:$0xff]  ;;  %v2919_v19 = vpop.f32.mrf.mxu1 }
 0x1db   : > { %v3277_v11 = vpop.f32.mrf.mxu0  ;;  %3449 = vst.msk [vmem:[#allocation3] sm:$0xff] %vm583_vm4, %v3417_v26  ;;  %v3420_v34 = vadd.f32 %v4629_v62, %v3388_v17  ;;  %3098 = vst.msk [vmem:[#allocation3 + $0x38] sm:$0xff] %vm583_vm4, %v3066_v41  ;;  %v3064_v54 = vadd.f32 %v3032_v31, %v2919_v19  ;;  %v3041_v62 = vld [vmem:[#allocation3 + $0x70] sm:$0xff] }
 0x1dc   : > { %v3386_v18 = vld [vmem:[#allocation3 + $0x8] sm:$0xff]  ;;  %v4602_v14 = vpop.f32.mrf.mxu1 }
 0x1dd   : > { %v4636_v8 = vpop.f32.mrf.mxu0  ;;  %3452 = vst.msk [vmem:[#allocation3 + $0x18] sm:$0xff] %vm583_vm4, %v3420_v34  ;;  %v3418_v9 = vadd.f32 %v3386_v18, %v3261_v2  ;;  %3096 = vst.msk [vmem:[#allocation3 + $0x28] sm:$0xff] %vm583_vm4, %v3064_v54  ;;  %v3069_v10 = vadd.f32 %v4602_v14, %v3037_v56 }
 0x1de   : > { %v3391_v13 = vld [vmem:[#allocation3 + $0x30] sm:$0xff]  ;;  %v2932_v20 = vpop.f32.mrf.mxu1 }
 0x1df   : > { %v5498_v21 = vpop.f32.mrf.mxu0  ;;  %3450 = vst.msk [vmem:[#allocation3 + $0x8] sm:$0xff] %vm583_vm4, %v3418_v9  ;;  %v3423_v23 = vadd.f32 %v4632_v7, %v3391_v13  ;;  %3101 = vst.msk [vmem:[#allocation3 + $0x50] sm:$0xff] %vm583_vm4, %v3069_v10  ;;  %v3067_v24 = vadd.f32 %v3035_v25, %v2932_v20 }
 0x1e0   : > { %v3483_v27 = vld [vmem:[#allocation3 + $0x10] sm:$0xff]  ;;  %v3389_v28 = vld [vmem:[#allocation3 + $0x20] sm:$0xff]  ;;  %v4603_v29 = vpop.f32.mrf.mxu1 }
 0x1e1   : > { %v5507_v36 = vpop.f32.mrf.mxu0  ;;  %v4169_v38 = vpack.c.bf16 %v3483_v27, %v3483_v27  ;;  %3455 = vst.msk [vmem:[#allocation3 + $0x30] sm:$0xff] %vm583_vm4, %v3423_v23  ;;  %v3421_v44 = vadd.f32 %v3389_v28, %v3274_v43  ;;  %3099 = vst.msk [vmem:[#allocation3 + $0x40] sm:$0xff] %vm583_vm4, %v3067_v24  ;;  %v3070_v48 = vadd.f32 %v4603_v29, %v3038_v35  ;;  %v3042_v29 = vld [vmem:[#allocation3 + $0x78] sm:$0xff]  ;;  %v3040_v35 = vld [vmem:[#allocation3 + $0x68] sm:$0xff] }
 0x1e2   : > { %v3481_v49 = vld [vmem:[#allocation3] sm:$0xff]  ;;  %v3392_v42 = vld [vmem:[#allocation3 + $0x38] sm:$0xff]  ;;  %v2935_v45 = vpop.f32.mrf.mxu1 }
 0x1e3   : > { %v5511_v46 = vpop.f32.mrf.mxu0  ;;  %3853 = vst.msk [vmem:[%s5505_s17 + $0x8] sm:$0xf] %vm3850_vm5, %v4169_v38  ;;  %v4167_v57 = vpack.c.bf16 %v3481_v49, %v3481_v49  ;;  %v3424_v58 = vadd.f32 %v4633_v0, %v3392_v42  ;;  %v3068_v61 = vadd.f32 %v3036_v50, %v2935_v45 }
 0x1e4   : > { %3453 = vst.msk [vmem:[#allocation3 + $0x20] sm:$0xff] %vm583_vm4, %v3421_v44  ;;  %3102 = vst.msk [vmem:[#allocation3 + $0x58] sm:$0xff] %vm583_vm4, %v3070_v48  ;;  %v3484_v4 = vld [vmem:[#allocation3 + $0x18] sm:$0xff]  ;;  %v3390_v5 = vld [vmem:[#allocation3 + $0x28] sm:$0xff]  ;;  %v4606_v6 = vpop.f32.mrf.mxu1 }
 0x1e5   : > { %v5517_v39 = vpop.f32.mrf.mxu0  ;;  %3851 = vst.msk [vmem:[%s5505_s17] sm:$0xf] %vm3850_vm5, %v4167_v57  ;;  %v3514_v40 = vpack.c.bf16 %v3484_v4, %v3483_v27  ;;  %v4170_v63 = vpack.c.bf16 %v3484_v4, %v3484_v4  ;;  %v3422_v51 = vadd.f32 %v3390_v5, %v3277_v11  ;;  %v3073_v47 = vadd.f32 %v4606_v6, %v3041_v62 }
 0x1e6   : > { %3456 = vst.msk [vmem:[#allocation3 + $0x38] sm:$0xff] %vm583_vm4, %v3424_v58  ;;  %3100 = vst.msk [vmem:[#allocation3 + $0x48] sm:$0xff] %vm583_vm4, %v3068_v61  ;;  %v3482_v2 = vld [vmem:[#allocation3 + $0x8] sm:$0xff]  ;;  %v3395_v30 = vld [vmem:[#allocation3 + $0x50] sm:$0xff]  ;;  %v2948_v3 = vpop.f32.mrf.mxu1 }
 0x1e7   : > { %v5523_v32 = vpop.f32.mrf.mxu0  ;;  %v3531_v53 = vunpack.c.l.bf16 %v3514_v40  ;;  %v5525_v55 = vunpack.c.h.bf16 %v3514_v40  ;;  %3854 = vst.msk [vmem:[%s5505_s17 + $0xc] sm:$0xf] %vm3850_vm5, %v4170_v63  ;;  %v3513_v7 = vpack.c.bf16 %v3482_v2, %v3481_v49  ;;  %v4168_v52 = vpack.c.bf16 %v3482_v2, %v3482_v2 }
 0x1e8   : > { %3454 = vst.msk [vmem:[#allocation3 + $0x28] sm:$0xff] %vm583_vm4, %v3422_v51  ;;  %3105 = vst.msk [vmem:[#allocation3 + $0x70] sm:$0xff] %vm583_vm4, %v3073_v47  ;;  %v3487_v33 = vld [vmem:[#allocation3 + $0x30] sm:$0xff]  ;;  %v3427_v37 = vadd.f32 %v4636_v8, %v3395_v30  ;;  %v3393_v22 = vld [vmem:[#allocation3 + $0x40] sm:$0xff]  ;;  %v3071_v43 = vadd.f32 %v3039_v60, %v2948_v3  ;;  %v4607_v1 = vpop.f32.mrf.mxu1 }
 0x1e9   : > { %v5531_v59 = vpop.f32.mrf.mxu0  ;;  %v3564_v12 = vsel %vm583_vm4, %v3531_v53, 0.0  ;;  %v3632_v15 = vmul.f32 %v3531_v53, %v3531_v53  ;;  %3852 = vst.msk [vmem:[%s5505_s17 + $0x4] sm:$0xf] %vm3850_vm5, %v4168_v52  ;;  %v3529_v16 = vunpack.c.l.bf16 %v3513_v7  ;;  %v3530_v0 = vunpack.c.h.bf16 %v3513_v7 }
 0x1ea   : > { %v4173_v26 = vpack.c.bf16 %v3487_v33, %v3487_v33  ;;  %3459 = vst.msk [vmem:[#allocation3 + $0x50] sm:$0xff] %vm583_vm4, %v3427_v37  ;;  %v3425_v17 = vadd.f32 %v3393_v22, %v5498_v21  ;;  %3103 = vst.msk [vmem:[#allocation3 + $0x60] sm:$0xff] %vm583_vm4, %v3071_v43  ;;  %v2951_v31 = vpop.f32.mrf.mxu1  ;;  %v3633_v34 = vmul.f32 %v5525_v55, %v5525_v55  ;;  %v3566_v3 = vsel %vm583_vm4, %v5525_v55, 0.0 }
 0x1eb   : > { %v3485_v41 = vld [vmem:[#allocation3 + $0x20] sm:$0xff]  ;;  %v3396_v19 = vld [vmem:[#allocation3 + $0x58] sm:$0xff]  ;;  %v5539_v11 = vpop.f32.mrf.mxu0  ;;  %v3665_v54 = vsel %vm583_vm4, %v3632_v15, 0.0  ;;  %v3561_v56 = vsel %vm583_vm4, %v3529_v16, 0.0  ;;  %v3562_v8 = vsel %vm583_vm4, %v3530_v0, 0.0  ;;  %v3630_v9 = vmul.f32 %v3529_v16, %v3529_v16 }
 0x1ec   : > { %v4171_v18 = vpack.c.bf16 %v3485_v41, %v3485_v41  ;;  %v3428_v14 = vadd.f32 %v5507_v36, %v3396_v19  ;;  %v3631_v10 = vmul.f32 %v3530_v0, %v3530_v0  ;;  %3857 = vst.msk [vmem:[%s5505_s17 + $0x18] sm:$0xf] %vm3850_vm5, %v4173_v26  ;;  %v4610_v25 = vpop.f32.mrf.mxu1  ;;  %v3563_v23 = vadd.f32 %v3562_v8, %v3561_v56 }
 0x1ed   : > { %v3488_v13 = vld [vmem:[#allocation3 + $0x38] sm:$0xff]  ;;  %3457 = vst.msk [vmem:[#allocation3 + $0x40] sm:$0xff] %vm583_vm4, %v3425_v17  ;;  %v3394_v20 = vld [vmem:[#allocation3 + $0x48] sm:$0xff]  ;;  %v5550_v21 = vpop.f32.mrf.mxu0  ;;  %v3662_v36 = vsel %vm583_vm4, %v3630_v9, 0.0  ;;  %v3074_v48 = vadd.f32 %v4607_v1, %v3042_v29  ;;  %v3072_v42 = vadd.f32 %v3040_v35, %v2951_v31  ;;  %v3667_v53 = vsel %vm583_vm4, %v3633_v34, 0.0  ;;  %v3043_v34 = vld [vmem:[#allocation3 + $0x80] sm:$0xff] }
 0x1ee   : > { %3855 = vst.msk [vmem:[%s5505_s17 + $0x10] sm:$0xf] %vm3850_vm5, %v4171_v18  ;;  %v3516_v24 = vpack.c.bf16 %v3488_v13, %v3487_v33  ;;  %v4174_v27 = vpack.c.bf16 %v3488_v13, %v3488_v13  ;;  %v3426_v28 = vadd.f32 %v3394_v20, %v5511_v46  ;;  %v3663_v38 = vsel %vm583_vm4, %v3631_v10, 0.0  ;;  %v2964_v45 = vpop.f32.mrf.mxu1  ;;  %v3045_v46 = vld [vmem:[#allocation3 + $0x90] sm:$0xff] }
 0x1ef   : > { %3460 = vst.msk [vmem:[#allocation3 + $0x58] sm:$0xff] %vm583_vm4, %v3428_v14  ;;  %v3486_v44 = vld [vmem:[#allocation3 + $0x28] sm:$0xff]  ;;  %v3399_v49 = vld [vmem:[#allocation3 + $0x70] sm:$0xff]  ;;  %v5558_v50 = vpop.f32.mrf.mxu0  ;;  %v3565_v57 = vadd.f32 %v3564_v12, %v3563_v23  ;;  %v3664_v58 = vadd.f32 %v3663_v38, %v3662_v36  ;;  %3106 = vst.msk [vmem:[#allocation3 + $0x78] sm:$0xff] %vm583_vm4, %v3074_v48  ;;  %v3077_v40 = vadd.f32 %v4610_v25, %v3045_v46 }
 0x1f0   : > { %v3535_v61 = vunpack.c.l.bf16 %v3516_v24  ;;  %v5560_v4 = vunpack.c.h.bf16 %v3516_v24  ;;  %3858 = vst.msk [vmem:[%s5505_s17 + $0x1c] sm:$0xf] %vm3850_vm5, %v4174_v27  ;;  %v3515_v5 = vpack.c.bf16 %v3486_v44, %v3485_v41  ;;  %v4172_v6 = vpack.c.bf16 %v3486_v44, %v3486_v44  ;;  %v4611_v63 = vpop.f32.mrf.mxu1 }
 0x1f1   : > { %3458 = vst.msk [vmem:[#allocation3 + $0x48] sm:$0xff] %vm583_vm4, %v3426_v28  ;;  %v3431_v62 = vadd.f32 %v5517_v39, %v3399_v49  ;;  %3104 = vst.msk [vmem:[#allocation3 + $0x68] sm:$0xff] %vm583_vm4, %v3072_v42  ;;  %v5568_v51 = vpop.f32.mrf.mxu0  ;;  %v3666_v47 = vadd.f32 %v3665_v54, %v3664_v58  ;;  %v3491_v2 = vld [vmem:[#allocation3 + $0x50] sm:$0xff]  ;;  %v3397_v30 = vld [vmem:[#allocation3 + $0x60] sm:$0xff]  ;;  %v3567_v37 = vadd.f32 %v3566_v3, %v3565_v57 }
 0x1f2   : > { %v3533_v7 = vunpack.c.l.bf16 %v3515_v5  ;;  %v3534_v52 = vunpack.c.h.bf16 %v3515_v5  ;;  %3856 = vst.msk [vmem:[%s5505_s17 + $0x14] sm:$0xf] %vm3850_vm5, %v4172_v6  ;;  %v5577_v39 = vpop.f32.mrf.mxu1  ;;  %v3636_v33 = vmul.f32 %v3535_v61, %v3535_v61  ;;  %v4177_v22 = vpack.c.bf16 %v3491_v2, %v3491_v2  ;;  %v3046_v54 = vld [vmem:[#allocation3 + $0x98] sm:$0xff] }
 0x1f3   : > { %3463 = vst.msk [vmem:[#allocation3 + $0x70] sm:$0xff] %vm583_vm4, %v3431_v62  ;;  %3109 = vst.msk [vmem:[#allocation3 + $0x90] sm:$0xff] %vm583_vm4, %v3077_v40  ;;  %v5579_v60 = vpop.f32.mrf.mxu0  ;;  %v3429_v55 = vadd.f32 %v3397_v30, %v5523_v32  ;;  %v3637_v1 = vmul.f32 %v5560_v4, %v5560_v4  ;;  %v3668_v16 = vadd.f32 %v3667_v53, %v3666_v47  ;;  %v3572_v20 = vsel %vm583_vm4, %v3535_v61, 0.0 }
 0x1f4   : > { %v3489_v43 = vld [vmem:[#allocation3 + $0x40] sm:$0xff]  ;;  %v3568_v12 = vsel %vm583_vm4, %v3533_v7, 0.0  ;;  %v3634_v15 = vmul.f32 %v3533_v7, %v3533_v7  ;;  %v5585_v26 = vpop.f32.mrf.mxu1  ;;  %v3570_v19 = vsel %vm583_vm4, %v3534_v52, 0.0  ;;  %v3635_v31 = vmul.f32 %v3534_v52, %v3534_v52  ;;  %3861 = vst.msk [vmem:[%s5505_s17 + $0x28] sm:$0xf] %vm3850_vm5, %v4177_v22 }
 0x1f5   : > { %v5587_v41 = vpop.f32.mrf.mxu0  ;;  %v3569_v17 = vadd.f32 %v3568_v12, %v3567_v37  ;;  %v4175_v32 = vpack.c.bf16 %v3489_v43, %v3489_v43  ;;  %3461 = vst.msk [vmem:[#allocation3 + $0x60] sm:$0xff] %vm583_vm4, %v3429_v55  ;;  %v3075_v8 = vadd.f32 %v3043_v34, %v2964_v45  ;;  %v3078_v9 = vadd.f32 %v4611_v63, %v3046_v54 }
 0x1f6   : > { %v3492_v0 = vld [vmem:[#allocation3 + $0x58] sm:$0xff]  ;;  %v3669_v18 = vsel %vm583_vm4, %v3634_v15, 0.0  ;;  %v5594_v10 = vpop.f32.mrf.mxu1  ;;  %v3671_v28 = vsel %vm583_vm4, %v3635_v31, 0.0  ;;  %v3574_v48 = vsel %vm583_vm4, %v5560_v4, 0.0  ;;  %v3673_v57 = vsel %vm583_vm4, %v3636_v33, 0.0 }
 0x1f7   : > { %v4178_v14 = vpack.c.bf16 %v3492_v0, %v3492_v0  ;;  %v5596_v13 = vpop.f32.mrf.mxu0  ;;  %v3571_v25 = vadd.f32 %v3570_v19, %v3569_v17  ;;  %v3670_v23 = vadd.f32 %v3669_v18, %v3668_v16  ;;  %3859 = vst.msk [vmem:[%s5505_s17 + $0x20] sm:$0xf] %vm3850_vm5, %v4175_v32  ;;  %v3518_v24 = vpack.c.bf16 %v3492_v0, %v3491_v2  ;;  %v3400_v27 = vld [vmem:[#allocation3 + $0x78] sm:$0xff]  ;;  %v3049_v17 = vld [vmem:[#allocation3 + $0xb0] sm:$0xff]  ;;  %v3047_v19 = vld [vmem:[#allocation3 + $0xa0] sm:$0xff] }
 0x1f8   : > { %v3490_v56 = vld [vmem:[#allocation3 + $0x48] sm:$0xff]  ;;  %v3432_v36 = vadd.f32 %v5531_v59, %v3400_v27  ;;  %3107 = vst.msk [vmem:[#allocation3 + $0x80] sm:$0xff] %vm583_vm4, %v3075_v8  ;;  %3110 = vst.msk [vmem:[#allocation3 + $0x98] sm:$0xff] %vm583_vm4, %v3078_v9  ;;  %v4615_v38 = vpop.f32.mrf.mxu1  ;;  %v3675_v58 = vsel %vm583_vm4, %v3637_v1, 0.0  ;;  %v3050_v8 = vld [vmem:[#allocation3 + $0xb8] sm:$0xff] }
 0x1f9   : > { %3862 = vst.msk [vmem:[%s5505_s17 + $0x2c] sm:$0xf] %vm3850_vm5, %v4178_v14  ;;  %v3517_v29 = vpack.c.bf16 %v3490_v56, %v3489_v43  ;;  %v4176_v35 = vpack.c.bf16 %v3490_v56, %v3490_v56  ;;  %v5607_v44 = vpop.f32.mrf.mxu0  ;;  %v3573_v49 = vadd.f32 %v3572_v20, %v3571_v25  ;;  %v3672_v42 = vadd.f32 %v3671_v28, %v3670_v23  ;;  %v3398_v63 = vld [vmem:[#allocation3 + $0x68] sm:$0xff]  ;;  %v3053_v23 = vld [vmem:[#allocation3 + $0xd0] sm:$0xff] }
 0x1fa   : > { %v5611_v45 = vld [vmem:[#allocation3 + $0x70] sm:$0xff]  ;;  %3464 = vst.msk [vmem:[#allocation3 + $0x78] sm:$0xff] %vm583_vm4, %v3432_v36  ;;  %v2983_v46 = vpop.f32.mrf.mxu1  ;;  %v3539_v4 = vunpack.c.l.bf16 %v3518_v24  ;;  %v5622_v2 = vunpack.c.h.bf16 %v3518_v24  ;;  %v3044_v1 = vld [vmem:[#allocation3 + $0x88] sm:$0xff]  ;;  %v3430_v15 = vadd.f32 %v3398_v63, %v5539_v11  ;;  %v3081_v14 = vadd.f32 %v5585_v26, %v3049_v17  ;;  %v3051_v36 = vld [vmem:[#allocation3 + $0xc0] sm:$0xff] }
 0x1fb   : > { %v3537_v61 = vunpack.c.l.bf16 %v3517_v29  ;;  %v3538_v59 = vunpack.c.h.bf16 %v3517_v29  ;;  %3860 = vst.msk [vmem:[%s5505_s17 + $0x24] sm:$0xf] %vm3850_vm5, %v4176_v35  ;;  %v5618_v5 = vpop.f32.mrf.mxu0  ;;  %v3674_v6 = vadd.f32 %v3673_v57, %v3672_v42  ;;  %v3575_v62 = vadd.f32 %v3574_v48, %v3573_v49  ;;  %v3403_v47 = vld [vmem:[#allocation3 + $0x90] sm:$0xff]  ;;  %v3048_v25 = vld [vmem:[#allocation3 + $0xa8] sm:$0xff]  ;;  %v3054_v48 = vld [vmem:[#allocation3 + $0xd8] sm:$0xff] }
 0x1fc   : > { %v4181_v40 = vpack.c.bf16 %v5611_v45, %v5611_v45  ;;  %v5626_v7 = vld [vmem:[#allocation3 + $0x60] sm:$0xff]  ;;  %v4618_v52 = vpop.f32.mrf.mxu1  ;;  %v3435_v16 = vadd.f32 %v5550_v21, %v3403_v47  ;;  %v3076_v0 = vadd.f32 %v3044_v1, %v5577_v39  ;;  %v3580_v32 = vsel %vm583_vm4, %v3539_v4, 0.0  ;;  %3462 = vst.msk [vmem:[#allocation3 + $0x68] sm:$0xff] %vm583_vm4, %v3430_v15  ;;  %3113 = vst.msk [vmem:[#allocation3 + $0xb0] sm:$0xff] %vm583_vm4, %v3081_v14  ;;  %v3052_v42 = vld [vmem:[#allocation3 + $0xc8] sm:$0xff] }
 0x1fd   : > { %v3576_v30 = vsel %vm583_vm4, %v3537_v61, 0.0  ;;  %v3578_v3 = vsel %vm583_vm4, %v3538_v59, 0.0  ;;  %v3638_v53 = vmul.f32 %v3537_v61, %v3537_v61  ;;  %v5628_v33 = vpop.f32.mrf.mxu0  ;;  %v3639_v22 = vmul.f32 %v3538_v59, %v3538_v59  ;;  %v3058_v17 = vld [vmem:[#allocation3 + $0xf8] sm:$0xff] }
 0x1fe   : > { %v3577_v37 = vadd.f32 %v3576_v30, %v3575_v62  ;;  %v3676_v43 = vadd.f32 %v3675_v58, %v3674_v6  ;;  %3865 = vst.msk [vmem:[%s5505_s17 + $0x38] sm:$0xf] %vm3850_vm5, %v4181_v40  ;;  %v4179_v55 = vpack.c.bf16 %v5626_v7, %v5626_v7  ;;  %v2996_v31 = vpop.f32.mrf.mxu1  ;;  %v3079_v39 = vadd.f32 %v3047_v19, %v5594_v10 }
 0x1ff   : > { %v3677_v12 = vsel %vm583_vm4, %v3638_v53, 0.0  ;;  %v3401_v18 = vld [vmem:[#allocation3 + $0x80] sm:$0xff]  ;;  %v3404_v56 = vld [vmem:[#allocation3 + $0x98] sm:$0xff]  ;;  %v5642_v9 = vpop.f32.mrf.mxu0  ;;  %3467 = vst.msk [vmem:[#allocation3 + $0x90] sm:$0xff] %vm583_vm4, %v3435_v16  ;;  %3108 = vst.msk [vmem:[#allocation3 + $0x88] sm:$0xff] %vm583_vm4, %v3076_v0  ;;  %v3082_v20 = vadd.f32 %v4615_v38, %v3050_v8  ;;  %v3640_v24 = vmul.f32 %v3539_v4, %v3539_v4  ;;  %v3679_v27 = vsel %vm583_vm4, %v3639_v22, 0.0 }
 0x200   : > { %v3579_v34 = vadd.f32 %v3578_v3, %v3577_v37  ;;  %v3678_v54 = vadd.f32 %v3677_v12, %v3676_v43  ;;  %3863 = vst.msk [vmem:[%s5505_s17 + $0x30] sm:$0xf] %vm3850_vm5, %v4179_v55  ;;  %v3433_v11 = vadd.f32 %v3401_v18, %v5558_v50  ;;  %v3436_v21 = vadd.f32 %v5568_v51, %v3404_v56  ;;  %v4619_v26 = vpop.f32.mrf.mxu1  ;;  %v3057_v4 = vld [vmem:[#allocation3 + $0xf0] sm:$0xff]  ;;  %v3055_v3 = vld [vmem:[#allocation3 + $0xe0] sm:$0xff] }
 0x201   : > { %v3496_v28 = vld [vmem:[#allocation3 + $0x78] sm:$0xff]  ;;  %v3080_v29 = vadd.f32 %v3048_v25, %v2983_v46  ;;  %v3085_v35 = vadd.f32 %v4618_v52, %v3053_v23  ;;  %3111 = vst.msk [vmem:[#allocation3 + $0xa0] sm:$0xff] %vm583_vm4, %v3079_v39  ;;  %3114 = vst.msk [vmem:[#allocation3 + $0xb8] sm:$0xff] %vm583_vm4, %v3082_v20  ;;  %v3083_v51 = vadd.f32 %v3051_v36, %v2996_v31  ;;  %v5660_v59 = vpop.f32.mrf.mxu0  ;;  %v3681_v62 = vsel %vm583_vm4, %v3640_v24, 0.0 }
 0x202   : > { %v3680_v49 = vadd.f32 %v3679_v27, %v3678_v54  ;;  %v4182_v50 = vpack.c.bf16 %v3496_v28, %v3496_v28  ;;  %3465 = vst.msk [vmem:[#allocation3 + $0x80] sm:$0xff] %vm583_vm4, %v3433_v11  ;;  %3468 = vst.msk [vmem:[#allocation3 + $0x98] sm:$0xff] %vm583_vm4, %v3436_v21  ;;  %v3086_v10 = vadd.f32 %v4619_v26, %v3054_v48  ;;  %v2999_v38 = vpop.f32.mrf.mxu1  ;;  %v3582_v63 = vsel %vm583_vm4, %v5622_v2, 0.0 }
 0x203   : > { %v3641_v57 = vmul.f32 %v5622_v2, %v5622_v2  ;;  %v3581_v58 = vadd.f32 %v3580_v32, %v3579_v34  ;;  %3112 = vst.msk [vmem:[#allocation3 + $0xa8] sm:$0xff] %vm583_vm4, %v3080_v29  ;;  %3117 = vst.msk [vmem:[#allocation3 + $0xd0] sm:$0xff] %vm583_vm4, %v3085_v35  ;;  %v3084_v61 = vadd.f32 %v3052_v42, %v2999_v38  ;;  %v3494_v53 = vld [vmem:[#allocation3 + $0x68] sm:$0xff]  ;;  %v5675_v55 = vpop.f32.mrf.mxu0  ;;  %v3407_v16 = vld [vmem:[#allocation3 + $0xb0] sm:$0xff] }
 0x204   : > { %v3520_v46 = vpack.c.bf16 %v3496_v28, %v5611_v45  ;;  %3866 = vst.msk [vmem:[%s5505_s17 + $0x3c] sm:$0xf] %vm3850_vm5, %v4182_v50  ;;  %v4622_v6 = vpop.f32.mrf.mxu1  ;;  %v3682_v47 = vadd.f32 %v3681_v62, %v3680_v49  ;;  %v3519_v2 = vpack.c.bf16 %v3494_v53, %v5626_v7  ;;  %v4180_v15 = vpack.c.bf16 %v3494_v53, %v3494_v53 }
 0x205   : > { %3115 = vst.msk [vmem:[#allocation3 + $0xc0] sm:$0xff] %vm583_vm4, %v3083_v51  ;;  %3118 = vst.msk [vmem:[#allocation3 + $0xd8] sm:$0xff] %vm583_vm4, %v3086_v10  ;;  %v3089_v40 = vadd.f32 %v4622_v6, %v3057_v4  ;;  %v3683_v45 = vsel %vm583_vm4, %v3641_v57, 0.0  ;;  %v3583_v52 = vadd.f32 %v3582_v63, %v3581_v58  ;;  %v3439_v54 = vadd.f32 %v5587_v41, %v3407_v16  ;;  %v4656_v27 = vpop.f32.mrf.mxu0  ;;  %v3056_v4 = vld [vmem:[#allocation3 + $0xe8] sm:$0xff] }
 0x206   : > { %3116 = vst.msk [vmem:[#allocation3 + $0xc8] sm:$0xff] %vm583_vm4, %v3084_v61  ;;  %v3012_v30 = vpop.f32.mrf.mxu1  ;;  %v5672_v37 = vld [vmem:[#allocation3 + $0x90] sm:$0xff]  ;;  %v3402_v22 = vld [vmem:[#allocation3 + $0x88] sm:$0xff]  ;;  %v3543_v1 = vunpack.c.l.bf16 %v3520_v46  ;;  %v5677_v12 = vunpack.c.h.bf16 %v3520_v46  ;;  %v3541_v14 = vunpack.c.l.bf16 %v3519_v2  ;;  %v3542_v56 = vunpack.c.h.bf16 %v3519_v2 }
 0x207   : > { %3121 = vst.msk [vmem:[#allocation3 + $0xf0] sm:$0xff] %vm583_vm4, %v3089_v40  ;;  %v3087_v43 = vadd.f32 %v3055_v3, %v3012_v30  ;;  %v4185_v19 = vpack.c.bf16 %v5672_v37, %v5672_v37  ;;  %v3434_v34 = vadd.f32 %v3402_v22, %v5579_v60  ;;  %v3684_v8 = vadd.f32 %v3683_v45, %v3682_v47 }
 0x208   : > { %v4623_v0 = vpop.f32.mrf.mxu1  ;;  %v3405_v18 = vld [vmem:[#allocation3 + $0xa0] sm:$0xff]  ;;  %3864 = vst.msk [vmem:[%s5505_s17 + $0x34] sm:$0xf] %vm3850_vm5, %v4180_v15  ;;  %v3408_v21 = vld [vmem:[#allocation3 + $0xb8] sm:$0xff]  ;;  %v3584_v28 = vsel %vm583_vm4, %v3541_v14, 0.0  ;;  %v3642_v29 = vmul.f32 %v3541_v14, %v3541_v14  ;;  %v3643_v35 = vmul.f32 %v3542_v56, %v3542_v56  ;;  %v3644_v36 = vmul.f32 %v3543_v1, %v3543_v1 }
 0x209   : > { %v5682_v31 = vld [vmem:[#allocation3 + $0x80] sm:$0xff]  ;;  %v3500_v32 = vld [vmem:[#allocation3 + $0x98] sm:$0xff]  ;;  %3119 = vst.msk [vmem:[#allocation3 + $0xe0] sm:$0xff] %vm583_vm4, %v3087_v43  ;;  %v3090_v7 = vadd.f32 %v4623_v0, %v3058_v17  ;;  %3466 = vst.msk [vmem:[#allocation3 + $0x88] sm:$0xff] %vm583_vm4, %v3434_v34  ;;  %v3437_v41 = vadd.f32 %v3405_v18, %v5596_v13  ;;  %v3440_v25 = vadd.f32 %v5607_v44, %v3408_v21  ;;  %v3588_v42 = vsel %vm583_vm4, %v3543_v1, 0.0 }
 0x20a   : > { %v4183_v11 = vpack.c.bf16 %v5682_v31, %v5682_v31  ;;  %v3406_v39 = vld [vmem:[#allocation3 + $0xa8] sm:$0xff]  ;;  %v3411_v20 = vld [vmem:[#allocation3 + $0xd0] sm:$0xff]  ;;  %3869 = vst.msk [vmem:[%s5505_s17 + $0x48] sm:$0xf] %vm3850_vm5, %v4185_v19  ;;  %v4186_v60 = vpack.c.bf16 %v3500_v32, %v3500_v32  ;;  %v3585_v48 = vadd.f32 %v3584_v28, %v3583_v52  ;;  %v3685_v49 = vsel %vm583_vm4, %v3642_v29, 0.0  ;;  %v3015_v38 = vpop.f32.mrf.mxu1 }
 0x20b   : > { %3471 = vst.msk [vmem:[#allocation3 + $0xb0] sm:$0xff] %vm583_vm4, %v3439_v54  ;;  %v3438_v23 = vadd.f32 %v3406_v39, %v5618_v5  ;;  %3122 = vst.msk [vmem:[#allocation3 + $0xf8] sm:$0xff] %vm583_vm4, %v3090_v7  ;;  %v3443_v13 = vadd.f32 %v5628_v33, %v3411_v20  ;;  %v3586_v5 = vsel %vm583_vm4, %v3542_v56, 0.0  ;;  %v3645_v57 = vmul.f32 %v5677_v12, %v5677_v12  ;;  %v3370_v33 = vpop.f32.mrf.mxu0 }
 0x20c   : > { %v3409_v26 = vld [vmem:[#allocation3 + $0xc0] sm:$0xff]  ;;  %v3412_v24 = vld [vmem:[#allocation3 + $0xd8] sm:$0xff]  ;;  %3867 = vst.msk [vmem:[%s5505_s17 + $0x40] sm:$0xf] %vm3850_vm5, %v4183_v11  ;;  %3870 = vst.msk [vmem:[%s5505_s17 + $0x4c] sm:$0xf] %vm3850_vm5, %v4186_v60  ;;  %v3587_v58 = vadd.f32 %v3586_v5, %v3585_v48  ;;  %v3686_v61 = vadd.f32 %v3685_v49, %v3684_v8  ;;  %v3522_v6 = vpack.c.bf16 %v3500_v32, %v5672_v37 }
 0x20d   : > { %3469 = vst.msk [vmem:[#allocation3 + $0xa0] sm:$0xff] %vm583_vm4, %v3437_v41  ;;  %3472 = vst.msk [vmem:[#allocation3 + $0xb8] sm:$0xff] %vm583_vm4, %v3440_v25  ;;  %v3410_v44 = vld [vmem:[#allocation3 + $0xc8] sm:$0xff]  ;;  %v3441_v50 = vadd.f32 %v3409_v26, %v5642_v9  ;;  %v3444_v51 = vadd.f32 %v5660_v59, %v3412_v24  ;;  %v3687_v46 = vsel %vm583_vm4, %v3643_v35, 0.0  ;;  %v3088_v47 = vadd.f32 %v3056_v4, %v3015_v38 }
 0x20e   : > { %3470 = vst.msk [vmem:[#allocation3 + $0xa8] sm:$0xff] %vm583_vm4, %v3438_v23  ;;  %v3415_v10 = vld [vmem:[#allocation3 + $0xf0] sm:$0xff]  ;;  %3475 = vst.msk [vmem:[#allocation3 + $0xd0] sm:$0xff] %vm583_vm4, %v3443_v13  ;;  %v3442_v9 = vadd.f32 %v3410_v44, %v5675_v55  ;;  %v3589_v40 = vadd.f32 %v3588_v42, %v3587_v58  ;;  %v3688_v63 = vadd.f32 %v3687_v46, %v3686_v61  ;;  %v3590_v3 = vsel %vm583_vm4, %v5677_v12, 0.0  ;;  %v4657_v12 = vpop.f32.mrf.mxu0 }
 0x20f   : > { %3473 = vst.msk [vmem:[#allocation3 + $0xc0] sm:$0xff] %vm583_vm4, %v3441_v50  ;;  %3476 = vst.msk [vmem:[#allocation3 + $0xd8] sm:$0xff] %vm583_vm4, %v3444_v51  ;;  %v3447_v59 = vadd.f32 %v4656_v27, %v3415_v10  ;;  %v3689_v45 = vsel %vm583_vm4, %v3644_v36, 0.0  ;;  %v3691_v22 = vsel %vm583_vm4, %v3645_v57, 0.0  ;;  %v3547_v2 = vunpack.c.l.bf16 %v3522_v6 }
 0x210   : > { %v3413_v62 = vld [vmem:[#allocation3 + $0xe0] sm:$0xff]  ;;  %v3498_v53 = vld [vmem:[#allocation3 + $0x88] sm:$0xff]  ;;  %3474 = vst.msk [vmem:[#allocation3 + $0xc8] sm:$0xff] %vm583_vm4, %v3442_v9  ;;  %v3690_v43 = vadd.f32 %v3689_v45, %v3688_v63  ;;  %3120 = vst.msk [vmem:[#allocation3 + $0xe8] sm:$0xff] %vm583_vm4, %v3088_v47  ;;  %v3591_v15 = vadd.f32 %v3590_v3, %v3589_v40  ;;  %v3548_v34 = vunpack.c.h.bf16 %v3522_v6 }
 0x211   : > { %v3445_v30 = vadd.f32 %v3413_v62, %v3370_v33  ;;  %3479 = vst.msk [vmem:[#allocation3 + $0xf0] sm:$0xff] %vm583_vm4, %v3447_v59  ;;  %v3521_v55 = vpack.c.bf16 %v3498_v53, %v5682_v31  ;;  %v4184_v1 = vpack.c.bf16 %v3498_v53, %v3498_v53  ;;  %v3648_v60 = vmul.f32 %v3547_v2, %v3547_v2 }
 0x212   : > { %v3503_v52 = vld [vmem:[#allocation3 + $0xb0] sm:$0xff]  ;;  %v3416_v37 = vld [vmem:[#allocation3 + $0xf8] sm:$0xff]  ;;  %v3692_v7 = vadd.f32 %v3691_v22, %v3690_v43  ;;  %v3649_v28 = vmul.f32 %v3548_v34, %v3548_v34  ;;  %v3596_v48 = vsel %vm583_vm4, %v3547_v2, 0.0  ;;  %v3598_v5 = vsel %vm583_vm4, %v3548_v34, 0.0 }
 0x213   : > { %3477 = vst.msk [vmem:[#allocation3 + $0xe0] sm:$0xff] %vm583_vm4, %v3445_v30  ;;  %v4189_v16 = vpack.c.bf16 %v3503_v52, %v3503_v52  ;;  %v3448_v32 = vadd.f32 %v4657_v12, %v3416_v37  ;;  %v3545_v54 = vunpack.c.l.bf16 %v3521_v55  ;;  %v3546_v18 = vunpack.c.h.bf16 %v3521_v55 }
 0x214   : > { %v3501_v0 = vld [vmem:[#allocation3 + $0xa0] sm:$0xff]  ;;  %v3504_v17 = vld [vmem:[#allocation3 + $0xb8] sm:$0xff]  ;;  %3868 = vst.msk [vmem:[%s5505_s17 + $0x44] sm:$0xf] %vm3850_vm5, %v4184_v1  ;;  %v3697_v42 = vsel %vm583_vm4, %v3648_v60, 0.0  ;;  %v3699_v46 = vsel %vm583_vm4, %v3649_v28, 0.0 }
 0x215   : > { %v3502_v19 = vld [vmem:[#allocation3 + $0xa8] sm:$0xff]  ;;  %v4187_v31 = vpack.c.bf16 %v3501_v0, %v3501_v0  ;;  %3873 = vst.msk [vmem:[%s5505_s17 + $0x58] sm:$0xf] %vm3850_vm5, %v4189_v16  ;;  %v4190_v14 = vpack.c.bf16 %v3504_v17, %v3504_v17  ;;  %v3507_v11 = vld [vmem:[#allocation3 + $0xd0] sm:$0xff]  ;;  %v3592_v21 = vsel %vm583_vm4, %v3545_v54, 0.0  ;;  %v3646_v39 = vmul.f32 %v3545_v54, %v3545_v54 }
 0x216   : > { %v3523_v56 = vpack.c.bf16 %v3502_v19, %v3501_v0  ;;  %v4188_v8 = vpack.c.bf16 %v3502_v19, %v3502_v19  ;;  %3480 = vst.msk [vmem:[#allocation3 + $0xf8] sm:$0xff] %vm583_vm4, %v3448_v32  ;;  %v3647_v20 = vmul.f32 %v3546_v18, %v3546_v18  ;;  %v3593_v41 = vadd.f32 %v3592_v21, %v3591_v15  ;;  %v3505_v36 = vld [vmem:[#allocation3 + $0xc0] sm:$0xff]  ;;  %v3508_v10 = vld [vmem:[#allocation3 + $0xd8] sm:$0xff] }
 0x217   : > { %3871 = vst.msk [vmem:[%s5505_s17 + $0x50] sm:$0xf] %vm3850_vm5, %v4187_v31  ;;  %3874 = vst.msk [vmem:[%s5505_s17 + $0x5c] sm:$0xf] %vm3850_vm5, %v4190_v14  ;;  %v3594_v23 = vsel %vm583_vm4, %v3546_v18, 0.0  ;;  %v3693_v26 = vsel %vm583_vm4, %v3646_v39, 0.0  ;;  %v3524_v24 = vpack.c.bf16 %v3504_v17, %v3503_v52  ;;  %v4193_v27 = vpack.c.bf16 %v3507_v11, %v3507_v11 }
 0x218   : > { %v3549_v25 = vunpack.c.l.bf16 %v3523_v56  ;;  %3872 = vst.msk [vmem:[%s5505_s17 + $0x54] sm:$0xf] %vm3850_vm5, %v4188_v8  ;;  %v3595_v29 = vadd.f32 %v3594_v23, %v3593_v41  ;;  %v3694_v35 = vadd.f32 %v3693_v26, %v3692_v7  ;;  %v3695_v13 = vsel %vm583_vm4, %v3647_v20, 0.0  ;;  %v3506_v38 = vld [vmem:[#allocation3 + $0xc8] sm:$0xff]  ;;  %v3511_v33 = vld [vmem:[#allocation3 + $0xf0] sm:$0xff] }
 0x219   : > { %v3550_v44 = vunpack.c.h.bf16 %v3523_v56  ;;  %3877 = vst.msk [vmem:[%s5505_s17 + $0x68] sm:$0xf] %vm3850_vm5, %v4193_v27  ;;  %v3551_v57 = vunpack.c.l.bf16 %v3524_v24  ;;  %v4191_v61 = vpack.c.bf16 %v3505_v36, %v3505_v36  ;;  %v3552_v9 = vunpack.c.h.bf16 %v3524_v24  ;;  %v3414_v19 = vld [vmem:[#allocation3 + $0xe8] sm:$0xff]  ;;  %v3373_v56 = vpop.f32.mrf.mxu0 }
 0x21a   : > { %v3597_v49 = vadd.f32 %v3596_v48, %v3595_v29  ;;  %v3696_v50 = vadd.f32 %v3695_v13, %v3694_v35  ;;  %v3650_v51 = vmul.f32 %v3549_v25, %v3549_v25  ;;  %v3600_v58 = vsel %vm583_vm4, %v3549_v25, 0.0  ;;  %v3509_v53 = vld [vmem:[#allocation3 + $0xe0] sm:$0xff] }
 0x21b   : > { %v3651_v4 = vmul.f32 %v3550_v44, %v3550_v44  ;;  %3875 = vst.msk [vmem:[%s5505_s17 + $0x60] sm:$0xf] %vm3850_vm5, %v4191_v61  ;;  %v4194_v40 = vpack.c.bf16 %v3508_v10, %v3508_v10  ;;  %v3525_v63 = vpack.c.bf16 %v3506_v38, %v3505_v36  ;;  %v4192_v3 = vpack.c.bf16 %v3506_v38, %v3506_v38 }
 0x21c   : > { %v3698_v6 = vadd.f32 %v3697_v42, %v3696_v50  ;;  %v3599_v59 = vadd.f32 %v3598_v5, %v3597_v49  ;;  %v3701_v62 = vsel %vm583_vm4, %v3650_v51, 0.0  ;;  %v4197_v45 = vpack.c.bf16 %v3511_v33, %v3511_v33 }
 0x21d   : > { %v3652_v52 = vmul.f32 %v3551_v57, %v3551_v57  ;;  %v3602_v37 = vsel %vm583_vm4, %v3550_v44, 0.0  ;;  %v3526_v22 = vpack.c.bf16 %v3508_v10, %v3507_v11  ;;  %3878 = vst.msk [vmem:[%s5505_s17 + $0x6c] sm:$0xf] %vm3850_vm5, %v4194_v40  ;;  %v3604_v43 = vsel %vm583_vm4, %v3551_v57, 0.0  ;;  %3876 = vst.msk [vmem:[%s5505_s17 + $0x64] sm:$0xf] %vm3850_vm5, %v4192_v3 }
 0x21e   : > { %v3601_v47 = vadd.f32 %v3600_v58, %v3599_v59  ;;  %v3700_v30 = vadd.f32 %v3699_v46, %v3698_v6  ;;  %v3553_v12 = vunpack.c.l.bf16 %v3525_v63  ;;  %3881 = vst.msk [vmem:[%s5505_s17 + $0x78] sm:$0xf] %vm3850_vm5, %v4197_v45  ;;  %v3653_v2 = vmul.f32 %v3552_v9, %v3552_v9  ;;  %v3512_v17 = vld [vmem:[#allocation3 + $0xf8] sm:$0xff] }
 0x21f   : > { %v3703_v15 = vsel %vm583_vm4, %v3651_v4, 0.0  ;;  %v3554_v16 = vunpack.c.h.bf16 %v3525_v63  ;;  %v4195_v0 = vpack.c.bf16 %v3509_v53, %v3509_v53  ;;  %v3606_v32 = vsel %vm583_vm4, %v3552_v9, 0.0 }
 0x220   : > { %v3603_v55 = vadd.f32 %v3602_v37, %v3601_v47  ;;  %v3702_v1 = vadd.f32 %v3701_v62, %v3700_v30  ;;  %v3705_v18 = vsel %vm583_vm4, %v3652_v52, 0.0  ;;  %v3555_v31 = vunpack.c.l.bf16 %v3526_v22 }
 0x221   : > { %v3608_v7 = vsel %vm583_vm4, %v3553_v12, 0.0  ;;  %v3654_v14 = vmul.f32 %v3553_v12, %v3553_v12  ;;  %3879 = vst.msk [vmem:[%s5505_s17 + $0x70] sm:$0xf] %vm3850_vm5, %v4195_v0  ;;  %v4198_v21 = vpack.c.bf16 %v3512_v17, %v3512_v17  ;;  %v3446_v39 = vadd.f32 %v3414_v19, %v3373_v56 }
 0x222   : > { %v3605_v34 = vadd.f32 %v3604_v43, %v3603_v55  ;;  %v3704_v54 = vadd.f32 %v3703_v15, %v3702_v1  ;;  %v3707_v20 = vsel %vm583_vm4, %v3653_v2, 0.0  ;;  %v3655_v60 = vmul.f32 %v3554_v16, %v3554_v16 }
 0x223   : > { %v3709_v41 = vsel %vm583_vm4, %v3654_v14, 0.0  ;;  %3882 = vst.msk [vmem:[%s5505_s17 + $0x7c] sm:$0xf] %vm3850_vm5, %v4198_v21  ;;  %v3610_v26 = vsel %vm583_vm4, %v3554_v16, 0.0  ;;  %v3556_v24 = vunpack.c.h.bf16 %v3526_v22  ;;  %v3656_v27 = vmul.f32 %v3555_v31, %v3555_v31 }
 0x224   : > { %v3706_v8 = vadd.f32 %v3705_v18, %v3704_v54  ;;  %v3607_v11 = vadd.f32 %v3606_v32, %v3605_v34  ;;  %3478 = vst.msk [vmem:[#allocation3 + $0xe8] sm:$0xff] %vm583_vm4, %v3446_v39  ;;  %v3711_v35 = vsel %vm583_vm4, %v3655_v60, 0.0  ;;  %v3612_v36 = vsel %vm583_vm4, %v3555_v31, 0.0 }
 0x225   : > { %v3657_v44 = vmul.f32 %v3556_v24, %v3556_v24  ;;  %v3713_v5 = vsel %vm583_vm4, %v3656_v27, 0.0  ;;  %v3528_v49 = vpack.c.bf16 %v3512_v17, %v3511_v33  ;;  %v3614_v10 = vsel %vm583_vm4, %v3556_v24, 0.0 }
 0x226   : > { %v3609_v25 = vadd.f32 %v3608_v7, %v3607_v11  ;;  %v3708_v23 = vadd.f32 %v3707_v20, %v3706_v8  ;;  %v3731_v32 = vlaneseq }
 0x227   : > { %v3715_v58 = vsel %vm583_vm4, %v3657_v44, 0.0  ;;  %v3559_v61 = vunpack.c.l.bf16 %v3528_v49  ;;  %v3560_v59 = vunpack.c.h.bf16 %v3528_v49 }
 0x228   : > { %v3611_v28 = vadd.f32 %v3610_v26, %v3609_v25  ;;  %v3710_v29 = vadd.f32 %v3709_v41, %v3708_v23  ;;  %v3732_v7 = vshrl.u32 %v3731_v32, 7 }
 0x229   : > { %v3660_v63 = vmul.f32 %v3559_v61, %v3559_v61  ;;  %v3661_v52 = vmul.f32 %v3560_v59, %v3560_v59  ;;  %v3622_v55 = vsel %vm583_vm4, %v3560_v59, 0.0 }
 0x22a   : > { %v3712_v48 = vadd.f32 %v3711_v35, %v3710_v29  ;;  %v3613_v13 = vadd.f32 %v3612_v36, %v3611_v28  ;;  %vm3734_vm6 = vcmp.eq.s32.totalorder %v3732_v7, 1  ;;  %vm3733_vm7 = vcmp.eq.s32.totalorder %v3732_v7, 0 }
 0x22b   : > { %v3510_v51 = vld [vmem:[#allocation3 + $0xe8] sm:$0xff]  ;;  %v3721_v1 = vsel %vm583_vm4, %v3660_v63, 0.0  ;;  %v3723_v15 = vsel %vm583_vm4, %v3661_v52, 0.0 }
 0x22c   : > { %v3714_v50 = vadd.f32 %v3713_v5, %v3712_v48  ;;  %v3527_v38 = vpack.c.bf16 %v3510_v51, %v3509_v53  ;;  %v4196_v42 = vpack.c.bf16 %v3510_v51, %v3510_v51  ;;  %v3615_v57 = vadd.f32 %v3614_v10, %v3613_v13 }
 0x22d   : > { %v3620_v53 = vsel %vm583_vm4, %v3559_v61, 0.0 }
 0x22e   : > { %v3557_v46 = vunpack.c.l.bf16 %v3527_v38  ;;  %v3558_v6 = vunpack.c.h.bf16 %v3527_v38  ;;  %3880 = vst.msk [vmem:[%s5505_s17 + $0x74] sm:$0xf] %vm3850_vm5, %v4196_v42  ;;  %v3716_v9 = vadd.f32 %v3715_v58, %v3714_v50 }
 0x230   : > { %v3616_v4 = vsel %vm583_vm4, %v3557_v46, 0.0  ;;  %v3658_v62 = vmul.f32 %v3557_v46, %v3557_v46  ;;  %v3659_v33 = vmul.f32 %v3558_v6, %v3558_v6  ;;  %v3618_v47 = vsel %vm583_vm4, %v3558_v6, 0.0 }
 0x231   : > { %v3617_v40 = vadd.f32 %v3616_v4, %v3615_v57 }
 0x232   : > { %v3717_v30 = vsel %vm583_vm4, %v3658_v62, 0.0  ;;  %v3719_v37 = vsel %vm583_vm4, %v3659_v33, 0.0 }
 0x233   : > { %v3619_v3 = vadd.f32 %v3618_v47, %v3617_v40  ;;  %v3718_v45 = vadd.f32 %v3717_v30, %v3716_v9 }
 0x235   : > { %v3621_v22 = vadd.f32 %v3620_v53, %v3619_v3  ;;  %v3720_v43 = vadd.f32 %v3719_v37, %v3718_v45 }
 0x237   : > { %v3623_v12 = vadd.f32 %v3622_v55, %v3621_v22  ;;  %v3722_v2 = vadd.f32 %v3721_v1, %v3720_v43 }
 0x239   : > { %v3624_v16 = vrot.slane %v3623_v12, 4  ;;  %v3724_v0 = vadd.f32 %v3723_v15, %v3722_v2 }
 0x23b   : > { %v3625_v17 = vadd.f32 %v3624_v16, %v3623_v12  ;;  %v3725_v19 = vrot.slane %v3724_v0, 4 }
 0x23d   : > { %v3626_v34 = vrot.slane %v3625_v17, 2  ;;  %v3726_v54 = vadd.f32 %v3725_v19, %v3724_v0 }
 0x23f   : > { %v3627_v18 = vadd.f32 %v3626_v34, %v3625_v17  ;;  %v3727_v31 = vrot.slane %v3726_v54, 2 }
 0x241   : > { %v3728_v14 = vadd.f32 %v3727_v31, %v3726_v54  ;;  %v3628_v56 = vrot.slane %v3627_v18, 1 }
 0x243   : > { %v3729_v8 = vrot.slane %v3728_v14, 1  ;;  %v3629_v21 = vadd.f32 %v3628_v56, %v3627_v18 }
 0x245   : > { %v3730_v11 = vadd.f32 %v3729_v8, %v3728_v14 }
 0x247   : > { %v3735_v39 = vsel %vm3734_vm6, %v3730_v11, 0.0 }
 0x248   : > { %v3736_v20 = vsel %vm3733_vm7, %v3629_v21, %v3735_v39 }
 0x249   : > { %3737 = vst.msk [vmem:[%s208_s21] sm:$0xff] %vm583_vm4, %v3736_v20 }
 0x24a PF: > { %s15_s15 = sadd.s32 1, %s4685_s15  }
 0x24b   : > { %p12_p4 = scmp.ge.s32.totalorder %s15_s15, 4  }
 0x24d   :  { %14 = sbr.rel (!%p12_p4) target bundleno = 1 (0x1), region = 85 }

// kernel: double_conv.4
= control target key start
LH: loop header
LB: loop body
LE: loop exit
PB: predicated region body
PF: predicated region fallthrough
CT: control target
= control target key end

     0   :  { %s4931_s15 = smov 0   ;;  %s6041_s0 = inlined_call_operand.vmem [shape: f32[8,8], index: 0, kind: input, shape index: {}]   ;;  %s6042_s1 = inlined_call_operand.vmem [shape: bf16[2,16,16,8], index: 1, kind: input, shape index: {}]   ;;  %s6043_s2 = inlined_call_operand.vmem [shape: bf16[9,8,8], index: 2, kind: input, shape index: {}]   ;;  %s6044_s3 = inlined_call_operand.vmem [shape: bf16[2,16,16,8], index: 3, kind: output, shape index: {0}]   ;;  %s6045_s4 = inlined_call_operand.vmem [shape: f32[2,8,8], index: 4, kind: output, shape index: {1}]  }
   0x1 LB: > { %s4106_s16 = sadd.s32 4294967295, %s4903_s15   ;;  %p4110_p0 = scmp.ge.s32.totalorder %s4903_s15, 1  ;;  %s4903_s15 = sphi %s4931_s15, %s15_s15  }
   0x2   : > { %p165_p1 = scmp.lt.s32.totalorder %s4903_s15, 3 }
   0x4   : > { %p166_p2 = pnand %p4110_p0, %p165_p1 }
   0x5   : > { %p195_p3 = scmp.lt.s32.totalorder (!%p166_p2), %s4106_s16, 1 }
   0x6   : > { %169 = sbr.rel (%p166_p2) target bundleno = 586 (0x24a), region = 32 }
   0xb   : > { %v507_v0 = vld [vmem:[%s6043_s2] sm:$0xf]  ;;  %vm556_vm0 = vcmask 1043456   ;;  %vm380_vm1 = vcmask 64512   ;;  %vm389_vm2 = vcmask 57344   ;;  %s6047_s16 = smov (!%p195_p3, %s4106_s16), 1 }
   0xc   : > { %4879 = vmatprep.subr.msk.bf16.mxu1 %vm556_vm0, %v507_v0  ;;  %v558_v1 = vsel %vm556_vm0, %v507_v0, 0  ;;  %4878 = vmatprep.subr.msk.bf16.mxu0 %vm556_vm0, %v507_v0  ;;  %v4905_v2 = vmov 0.0   ;;  %v4134_v3 = vld [vmem:[%s6043_s2 + $0x4] sm:$0xf]  ;;  %v4151_v4 = vld [vmem:[%s6043_s2 + $0x8] sm:$0xf] }
   0xd   : > { %4877 = vmatpush3.bf16.msra.mxu1 %v558_v1  ;;  %398 = vst.msk [vmem:[#allocation2 + $0xc0] sm:$0x1] %vm389_vm2, %v4905_v2  ;;  %391 = vst.msk [vmem:[#allocation2 + $0x18] sm:$0x1] %vm389_vm2, %v4905_v2  ;;  %4571 = vmatpush3.bf16.msra.mxu0 %v558_v1  ;;  %vm383_vm3 = vcmask 58368   ;;  %s4304_s23 = sshll.u32 %s6047_s16, 7 }
   0xe   : > { %381 = vst.msk [vmem:[#allocation2] sm:$0xff] %vm380_vm1, %v4905_v2  ;;  %382 = vst.msk [vmem:[#allocation2 + $0x8] sm:$0xff] %vm380_vm1, %v4905_v2  ;;  %4880 = vmatprep.subr.msk.bf16.mxu1 %vm556_vm0, %v4134_v3  ;;  %4881 = vmatprep.subr.msk.bf16.mxu0 %vm556_vm0, %v4151_v4  ;;  %s5001_s26 = scalar_lea.vmem %s6042_s1, %s4304_s23  ;;  %v5006_v5 = vld [vmem:[%s6041_s0] ss:$0 sm:$0xff]  ;;  %v5011_v8 = vsel %vm556_vm0, %v4134_v3, 0  ;;  %v5015_v10 = vsel %vm556_vm0, %v4151_v4, 0  ;;  %s5758_s21 = scalar_lea.vmem %s6044_s3, %s4304_s23 }
   0xf   : > { %386 = vst.msk [vmem:[#allocation2 + $0x198] sm:$0xff] %vm380_vm1, %v4905_v2  ;;  %387 = vst.msk [vmem:[#allocation2 + $0x1a0] sm:$0xff] %vm380_vm1, %v4905_v2  ;;  %v4408_v6 = vld [vmem:[%s5001_s26 + $0x38] sm:$0xff]   ;;  %v4409_v7 = vld [vmem:[%s5001_s26 + $0x40] sm:$0xff]   ;;  %vm3987_vm4 = vcmask 60416   ;;  %s4115_s22 = sshll.u32 %s6047_s16, 3 }
  0x10   : > { %392 = vst.msk [vmem:[#allocation2 + $0x30] sm:$0x1] %vm389_vm2, %v4905_v2  ;;  %393 = vst.msk [vmem:[#allocation2 + $0x48] sm:$0x1] %vm389_vm2, %v4905_v2  ;;  %v4339_v9 = vld [vmem:[%s5001_s26] sm:$0xff]   ;;  %v4368_v11 = vunpack.c.l.bf16 %v4408_v6  ;;  %v4369_v12 = vunpack.c.h.bf16 %v4408_v6  ;;  %v4372_v13 = vunpack.c.l.bf16 %v4409_v7  ;;  %v4373_v14 = vunpack.c.h.bf16 %v4409_v7  ;;  %v4410_v15 = vld [vmem:[%s5001_s26 + $0x48] sm:$0xff]   ;;  %s208_s25 = scalar_lea.vmem %s6045_s4, %s4115_s22 }
  0x11   : > { %394 = vst.msk [vmem:[#allocation2 + $0x60] sm:$0x1] %vm389_vm2, %v4905_v2  ;;  %395 = vst.msk [vmem:[#allocation2 + $0x78] sm:$0x1] %vm389_vm2, %v4905_v2  ;;  %v5021_v16 = vld [vmem:[%s6041_s0 + $0x1] ss:$0 sm:$0xff]  ;;  %v4340_v17 = vunpack.c.l.bf16 %v4339_v9  ;;  %v4341_v18 = vunpack.c.h.bf16 %v4339_v9  ;;  %v4376_v19 = vunpack.c.l.bf16 %v4410_v15  ;;  %v4377_v20 = vunpack.c.h.bf16 %v4410_v15 }
  0x12   : > { %396 = vst.msk [vmem:[#allocation2 + $0x90] sm:$0x1] %vm389_vm2, %v4905_v2  ;;  %397 = vst.msk [vmem:[#allocation2 + $0xa8] sm:$0x1] %vm389_vm2, %v4905_v2  ;;  %v294_v21 = vmul.f32 %v4368_v11, %v5006_v5  ;;  %v295_v22 = vmul.f32 %v4369_v12, %v5006_v5  ;;  %v296_v23 = vmul.f32 %v4372_v13, %v5006_v5  ;;  %v4411_v39 = vld [vmem:[%s5001_s26 + $0x50] sm:$0xff]   ;;  %v4402_v40 = vld [vmem:[%s5001_s26 + $0x8] sm:$0xff]  }
  0x13   : > { %399 = vst.msk [vmem:[#allocation2 + $0xd8] sm:$0x1] %vm389_vm2, %v4905_v2  ;;  %400 = vst.msk [vmem:[#allocation2 + $0xf0] sm:$0x1] %vm389_vm2, %v4905_v2  ;;  %v297_v24 = vmul.f32 %v4373_v14, %v5006_v5  ;;  %v280_v27 = vmul.f32 %v4340_v17, %v5006_v5  ;;  %v281_v28 = vmul.f32 %v4341_v18, %v5006_v5  ;;  %v4403_v45 = vld [vmem:[%s5001_s26 + $0x10] sm:$0xff]   ;;  %v4412_v46 = vld [vmem:[%s5001_s26 + $0x58] sm:$0xff]   ;;  %v4380_v51 = vunpack.c.l.bf16 %v4411_v39 }
  0x14   : > { %401 = vst.msk [vmem:[#allocation2 + $0x108] sm:$0x1] %vm389_vm2, %v4905_v2  ;;  %402 = vst.msk [vmem:[#allocation2 + $0x120] sm:$0x1] %vm389_vm2, %v4905_v2  ;;  %v298_v29 = vmul.f32 %v4376_v19, %v5006_v5  ;;  %v299_v30 = vmul.f32 %v4377_v20, %v5006_v5  ;;  %v330_v31 = vadd.f32 %v5021_v16, %v294_v21  ;;  %v4381_v52 = vunpack.c.h.bf16 %v4411_v39  ;;  %v4413_v14 = vld [vmem:[%s5001_s26 + $0x60] sm:$0xff]   ;;  %v4404_v15 = vld [vmem:[%s5001_s26 + $0x18] sm:$0xff]  }
  0x15   : > { %403 = vst.msk [vmem:[#allocation2 + $0x138] sm:$0x1] %vm389_vm2, %v4905_v2  ;;  %404 = vst.msk [vmem:[#allocation2 + $0x150] sm:$0x1] %vm389_vm2, %v4905_v2  ;;  %v460_v25 = vld [vmem:[#allocation2 + $0x8] sm:$0xff]  ;;  %v331_v32 = vadd.f32 %v5021_v16, %v295_v22  ;;  %v332_v33 = vadd.f32 %v5021_v16, %v296_v23  ;;  %v333_v34 = vadd.f32 %v5021_v16, %v297_v24  ;;  %v4344_v53 = vunpack.c.l.bf16 %v4402_v40  ;;  %v4405_v21 = vld [vmem:[%s5001_s26 + $0x20] sm:$0xff]  }
  0x16   : > { %405 = vst.msk [vmem:[#allocation2 + $0x168] sm:$0x1] %vm389_vm2, %v4905_v2  ;;  %406 = vst.msk [vmem:[#allocation2 + $0x180] sm:$0x1] %vm389_vm2, %v4905_v2  ;;  %v316_v36 = vadd.f32 %v5021_v16, %v280_v27  ;;  %v317_v37 = vadd.f32 %v5021_v16, %v281_v28  ;;  %v334_v38 = vadd.f32 %v5021_v16, %v298_v29  ;;  %v362_v41 = vmax.f32 %v330_v31, 0.0  ;;  %v4414_v22 = vld [vmem:[%s5001_s26 + $0x68] sm:$0xff]  }
  0x17   : > { %409 = vst.msk [vmem:[#allocation2 + $0x29] sm:$0x1] %vm389_vm2, %v4905_v2  ;;  %410 = vst.msk [vmem:[#allocation2 + $0x41] sm:$0x1] %vm389_vm2, %v4905_v2  ;;  %v363_v42 = vmax.f32 %v331_v32, 0.0  ;;  %v364_v43 = vmax.f32 %v332_v33, 0.0  ;;  %v335_v49 = vadd.f32 %v5021_v16, %v299_v30  ;;  %v4345_v54 = vunpack.c.h.bf16 %v4402_v40 }
  0x18   : > { %411 = vst.msk [vmem:[#allocation2 + $0x59] sm:$0x1] %vm389_vm2, %v4905_v2  ;;  %412 = vst.msk [vmem:[#allocation2 + $0x71] sm:$0x1] %vm389_vm2, %v4905_v2  ;;  %v365_v44 = vmax.f32 %v333_v34, 0.0  ;;  %v348_v47 = vmax.f32 %v316_v36, 0.0  ;;  %v4348_v56 = vunpack.c.l.bf16 %v4403_v45  ;;  %v4349_v57 = vunpack.c.h.bf16 %v4403_v45 }
  0x19   : > { %413 = vst.msk [vmem:[#allocation2 + $0x89] sm:$0x1] %vm389_vm2, %v4905_v2  ;;  %414 = vst.msk [vmem:[#allocation2 + $0xa1] sm:$0x1] %vm389_vm2, %v4905_v2  ;;  %v349_v48 = vmax.f32 %v317_v37, 0.0  ;;  %v366_v50 = vmax.f32 %v334_v38, 0.0  ;;  %v4384_v58 = vunpack.c.l.bf16 %v4412_v46  ;;  %v300_v59 = vmul.f32 %v4380_v51, %v5006_v5 }
  0x1a   : > { %415 = vst.msk [vmem:[#allocation2 + $0xb9] sm:$0x1] %vm389_vm2, %v4905_v2  ;;  %416 = vst.msk [vmem:[#allocation2 + $0xd1] sm:$0x1] %vm389_vm2, %v4905_v2  ;;  %v367_v55 = vmax.f32 %v335_v49, 0.0  ;;  %v301_v60 = vmul.f32 %v4381_v52, %v5006_v5  ;;  %v282_v61 = vmul.f32 %v4344_v53, %v5006_v5  ;;  %v283_v62 = vmul.f32 %v4345_v54, %v5006_v5 }
  0x1b   : > { %417 = vst.msk [vmem:[#allocation2 + $0xe9] sm:$0x1] %vm389_vm2, %v4905_v2  ;;  %418 = vst.msk [vmem:[#allocation2 + $0x101] sm:$0x1] %vm389_vm2, %v4905_v2  ;;  %v284_v63 = vmul.f32 %v4348_v56, %v5006_v5  ;;  %v285_v0 = vmul.f32 %v4349_v57, %v5006_v5  ;;  %v4385_v1 = vunpack.c.h.bf16 %v4412_v46  ;;  %v336_v3 = vadd.f32 %v5021_v16, %v300_v59  ;;  %v5101_v51 = vld [vmem:[%s6043_s2 + $0xc] sm:$0xf] }
  0x1c   : > { %419 = vst.msk [vmem:[#allocation2 + $0x119] sm:$0x1] %vm389_vm2, %v4905_v2  ;;  %420 = vst.msk [vmem:[#allocation2 + $0x131] sm:$0x1] %vm389_vm2, %v4905_v2  ;;  %v337_v4 = vadd.f32 %v5021_v16, %v301_v60  ;;  %v318_v6 = vadd.f32 %v5021_v16, %v282_v61  ;;  %v319_v7 = vadd.f32 %v5021_v16, %v283_v62  ;;  %v4388_v34 = vunpack.c.l.bf16 %v4413_v14  ;;  %v5106_v52 = vld [vmem:[%s6043_s2 + $0x10] sm:$0xf] }
  0x1d   : > { %421 = vst.msk [vmem:[#allocation2 + $0x149] sm:$0x1] %vm389_vm2, %v4905_v2  ;;  %422 = vst.msk [vmem:[#allocation2 + $0x161] sm:$0x1] %vm389_vm2, %v4905_v2  ;;  %v320_v9 = vadd.f32 %v5021_v16, %v284_v63  ;;  %v321_v11 = vadd.f32 %v5021_v16, %v285_v0  ;;  %v303_v12 = vmul.f32 %v4385_v1, %v5006_v5  ;;  %v368_v17 = vmax.f32 %v336_v3, 0.0  ;;  %v4406_v0 = vld [vmem:[%s5001_s26 + $0x28] sm:$0xff]  }
  0x1e   : > { %423 = vst.msk [vmem:[#allocation2 + $0x179] sm:$0x1] %vm389_vm2, %v4905_v2  ;;  %424 = vst.msk [vmem:[#allocation2 + $0x191] sm:$0x1] %vm389_vm2, %v4905_v2  ;;  %v369_v18 = vmax.f32 %v337_v4, 0.0  ;;  %v350_v19 = vmax.f32 %v318_v6, 0.0  ;;  %v4352_v36 = vunpack.c.l.bf16 %v4404_v15  ;;  %v4356_v46 = vunpack.c.l.bf16 %v4405_v21 }
  0x1f   : > { %390 = vst.msk [vmem:[#allocation2] sm:$0x1] %vm389_vm2, %v4905_v2  ;;  %407 = vst.msk [vmem:[#allocation2 + $0x198] sm:$0x1] %vm389_vm2, %v4905_v2  ;;  %v351_v20 = vmax.f32 %v319_v7, 0.0  ;;  %v353_v27 = vmax.f32 %v321_v11, 0.0  ;;  %v339_v28 = vadd.f32 %v5021_v16, %v303_v12  ;;  %v4357_v49 = vunpack.c.h.bf16 %v4405_v21 }
  0x20   : > { %384 = vst.msk [vmem:[#allocation2 + $0x10] sm:$0x3] %vm383_vm3, %v4905_v2  ;;  %388 = vst.msk [vmem:[#allocation2 + $0x1a8] sm:$0x3] %vm383_vm3, %v4905_v2  ;;  %v286_v45 = vmul.f32 %v4352_v36, %v5006_v5  ;;  %v4393_v56 = vunpack.c.h.bf16 %v4414_v22  ;;  %v4407_v1 = vld [vmem:[%s5001_s26 + $0x30] sm:$0xff]  }
  0x21   : > { %425 = vst.msk [vmem:[#allocation2 + $0x1a9] sm:$0x1] %vm389_vm2, %v4905_v2  ;;  %408 = vst.msk [vmem:[#allocation2 + $0x11] sm:$0x1] %vm389_vm2, %v4905_v2  ;;  %v302_v2 = vmul.f32 %v4384_v58, %v5006_v5  ;;  %v371_v40 = vmax.f32 %v339_v28, 0.0  ;;  %v288_v58 = vmul.f32 %v4356_v46, %v5006_v5 }
  0x22   : > { %441 = vst.msk [vmem:[#allocation2 + $0xc1] sm:$0xff] %vm380_vm1, %v362_v41  ;;  %442 = vst.msk [vmem:[#allocation2 + $0xc9] sm:$0xff] %vm380_vm1, %v363_v42  ;;  %v4353_v41 = vunpack.c.h.bf16 %v4404_v15  ;;  %v307_v63 = vmul.f32 %v4393_v56, %v5006_v5 }
  0x23   : > { %443 = vst.msk [vmem:[#allocation2 + $0xd9] sm:$0xff] %vm380_vm1, %v364_v43  ;;  %444 = vst.msk [vmem:[#allocation2 + $0xe1] sm:$0xff] %vm380_vm1, %v365_v44  ;;  %v338_v13 = vadd.f32 %v5021_v16, %v302_v2  ;;  %v304_v43 = vmul.f32 %v4388_v34, %v5006_v5  ;;  %v324_v7 = vadd.f32 %v5021_v16, %v288_v58  ;;  %v4364_v34 = vunpack.c.l.bf16 %v4407_v1 }
  0x24   : > { %427 = vst.msk [vmem:[#allocation2 + $0x19] sm:$0xff] %vm380_vm1, %v348_v47  ;;  %428 = vst.msk [vmem:[#allocation2 + $0x21] sm:$0xff] %vm380_vm1, %v349_v48  ;;  %v287_v48 = vmul.f32 %v4353_v41, %v5006_v5 }
  0x25   : > { %445 = vst.msk [vmem:[#allocation2 + $0xf1] sm:$0xff] %vm380_vm1, %v366_v50  ;;  %446 = vst.msk [vmem:[#allocation2 + $0xf9] sm:$0xff] %vm380_vm1, %v367_v55  ;;  %v370_v29 = vmax.f32 %v338_v13, 0.0  ;;  %v4392_v50 = vunpack.c.l.bf16 %v4414_v22  ;;  %v340_v53 = vadd.f32 %v5021_v16, %v304_v43  ;;  %v322_v55 = vadd.f32 %v5021_v16, %v286_v45 }
  0x26   : > { %v459_v26 = vld [vmem:[#allocation2] sm:$0xff]  ;;  %447 = vst.msk [vmem:[#allocation2 + $0x109] sm:$0xff] %vm380_vm1, %v368_v17  ;;  %448 = vst.msk [vmem:[#allocation2 + $0x111] sm:$0xff] %vm380_vm1, %v369_v18  ;;  %v323_v57 = vadd.f32 %v5021_v16, %v287_v48  ;;  %v343_v17 = vadd.f32 %v5021_v16, %v307_v63 }
  0x27   : > { %v491_v35 = vpack.c.bf16 %v460_v25, %v459_v26  ;;  %v352_v26 = vmax.f32 %v320_v9, 0.0  ;;  %429 = vst.msk [vmem:[#allocation2 + $0x31] sm:$0xff] %vm380_vm1, %v350_v19  ;;  %430 = vst.msk [vmem:[#allocation2 + $0x39] sm:$0xff] %vm380_vm1, %v351_v20  ;;  %v306_v59 = vmul.f32 %v4392_v50, %v5006_v5  ;;  %v372_v60 = vmax.f32 %v340_v53, 0.0 }
  0x28   : > { %432 = vst.msk [vmem:[#allocation2 + $0x51] sm:$0xff] %vm380_vm1, %v353_v27  ;;  %449 = vst.msk [vmem:[#allocation2 + $0x121] sm:$0xff] %vm380_vm1, %v370_v29  ;;  %v354_v62 = vmax.f32 %v322_v55, 0.0  ;;  %v355_v6 = vmax.f32 %v323_v57, 0.0  ;;  %v375_v27 = vmax.f32 %v343_v17, 0.0 }
  0x29   : > { %4572 = vmatprep.mubr.msk.bf16.mxu0 %vm380_vm1, %v491_v35  ;;  %v475_v23 = vld [vmem:[#allocation2 + $0xc0] sm:$0xff]  ;;  %v476_v24 = vld [vmem:[#allocation2 + $0xc8] sm:$0xff]  ;;  %v4389_v35 = vunpack.c.h.bf16 %v4413_v14  ;;  %431 = vst.msk [vmem:[#allocation2 + $0x49] sm:$0xff] %vm380_vm1, %v352_v26  ;;  %450 = vst.msk [vmem:[#allocation2 + $0x129] sm:$0xff] %vm380_vm1, %v371_v40  ;;  %v342_v11 = vadd.f32 %v5021_v16, %v306_v59 }
  0x2a   : > { %v477_v25 = vld [vmem:[#allocation2 + $0xd8] sm:$0xff]  ;;  %v5072_v30 = vpack.c.bf16 %v476_v24, %v475_v23  ;;  %v478_v31 = vld [vmem:[#allocation2 + $0xe0] sm:$0xff]  ;;  %451 = vst.msk [vmem:[#allocation2 + $0x139] sm:$0xff] %vm380_vm1, %v372_v60  ;;  %433 = vst.msk [vmem:[#allocation2 + $0x61] sm:$0xff] %vm380_vm1, %v354_v62  ;;  %v356_v23 = vmax.f32 %v324_v7, 0.0 }
  0x2b   : > { %v461_v32 = vld [vmem:[#allocation2 + $0x18] sm:$0xff]  ;;  %v462_v33 = vld [vmem:[#allocation2 + $0x20] sm:$0xff]  ;;  %v5078_v37 = vpack.c.bf16 %v478_v31, %v477_v25  ;;  %v305_v44 = vmul.f32 %v4389_v35, %v5006_v5  ;;  %434 = vst.msk [vmem:[#allocation2 + $0x69] sm:$0xff] %vm380_vm1, %v355_v6  ;;  %v374_v26 = vmax.f32 %v342_v11, 0.0  ;;  %454 = vst.msk [vmem:[#allocation2 + $0x159] sm:$0xff] %vm380_vm1, %v375_v27 }
  0x2c   : > { %v5080_v38 = vpack.c.bf16 %v462_v33, %v461_v32  ;;  %v479_v39 = vld [vmem:[#allocation2 + $0xf0] sm:$0xff]  ;;  %4588 = vmatprep.mubr.msk.bf16.mxu1 %vm380_vm1, %v5072_v30  ;;  %v480_v42 = vld [vmem:[#allocation2 + $0xf8] sm:$0xff]  ;;  %435 = vst.msk [vmem:[#allocation2 + $0x79] sm:$0xff] %vm380_vm1, %v356_v23  ;;  %v4360_v32 = vunpack.c.l.bf16 %v4406_v0  ;;  %v4361_v33 = vunpack.c.h.bf16 %v4406_v0 }
  0x2d   : > { %4589 = vmatmul.mubr.msk.bf16.vlgmr.msra.gmra.mxu1 %vm380_vm1, %v5078_v37  ;;  %v5094_v47 = vpack.c.bf16 %v480_v42, %v479_v39  ;;  %v341_v54 = vadd.f32 %v5021_v16, %v305_v44  ;;  %v481_v2 = vld [vmem:[#allocation2 + $0x108] sm:$0xff]  ;;  %v482_v3 = vld [vmem:[#allocation2 + $0x110] sm:$0xff]  ;;  %453 = vst.msk [vmem:[#allocation2 + $0x151] sm:$0xff] %vm380_vm1, %v374_v26  ;;  %v4365_v39 = vunpack.c.h.bf16 %v4407_v1  ;;  %v292_v42 = vmul.f32 %v4364_v34, %v5006_v5 }
  0x2e   : > { %4573 = vmatmul.mubr.msk.bf16.vlgmr.msra.gmra.mxu0 %vm380_vm1, %v5080_v38  ;;  %4605 = vmatpush3.bf16.msra.mxu1 %v5011_v8  ;;  %v289_v8 = vmul.f32 %v4357_v49, %v5006_v5  ;;  %v463_v4 = vld [vmem:[#allocation2 + $0x30] sm:$0xff]  ;;  %v5130_v12 = vpack.c.bf16 %v482_v3, %v481_v2  ;;  %v464_v13 = vld [vmem:[#allocation2 + $0x38] sm:$0xff]  ;;  %v290_v40 = vmul.f32 %v4360_v32, %v5006_v5  ;;  %v753_v3 = vld [vmem:[#allocation2 + $0x1] sm:$0xff] }
  0x2f   : > { %4639 = vmatpush3.bf16.msra.mxu0 %v5015_v10  ;;  %4592 = vmatprep.mubr.msk.bf16.mxu1 %vm380_vm1, %v5094_v47  ;;  %v4415_v10 = vld [vmem:[%s5001_s26 + $0x70] sm:$0xff]   ;;  %v373_v61 = vmax.f32 %v341_v54, 0.0  ;;  %v5136_v20 = vpack.c.bf16 %v464_v13, %v463_v4  ;;  %v483_v22 = vld [vmem:[#allocation2 + $0x120] sm:$0xff]  ;;  %v291_v41 = vmul.f32 %v4361_v33, %v5006_v5  ;;  %v293_v45 = vmul.f32 %v4365_v39, %v5006_v5 }
  0x30   : > { %4882 = vmatprep.subr.msk.bf16.mxu1 %vm556_vm0, %v5101_v51  ;;  %4883 = vmatprep.subr.msk.bf16.mxu0 %vm556_vm0, %v5106_v52  ;;  %v325_v9 = vadd.f32 %v5021_v16, %v289_v8  ;;  %v465_v14 = vld [vmem:[#allocation2 + $0x48] sm:$0xff]  ;;  %v466_v15 = vld [vmem:[#allocation2 + $0x50] sm:$0xff]  ;;  %v4396_v18 = vunpack.c.l.bf16 %v4415_v10  ;;  %v4397_v19 = vunpack.c.h.bf16 %v4415_v10  ;;  %v326_v50 = vadd.f32 %v5021_v16, %v290_v40 }
  0x31   : > { %452 = vst.msk [vmem:[#allocation2 + $0x141] sm:$0xff] %vm380_vm1, %v373_v61  ;;  %v5138_v21 = vpack.c.bf16 %v466_v15, %v465_v14  ;;  %v484_v25 = vld [vmem:[#allocation2 + $0x128] sm:$0xff]  ;;  %4576 = vmatprep.mubr.msk.bf16.mxu0 %vm380_vm1, %v5136_v20  ;;  %v485_v46 = vld [vmem:[#allocation2 + $0x138] sm:$0xff]  ;;  %v467_v49 = vld [vmem:[#allocation2 + $0x60] sm:$0xff]  ;;  %v327_v53 = vadd.f32 %v5021_v16, %v291_v41  ;;  %v328_v54 = vadd.f32 %v5021_v16, %v292_v42 }
  0x32   : > { %v357_v24 = vmax.f32 %v325_v9, 0.0  ;;  %v308_v28 = vmul.f32 %v4396_v18, %v5006_v5  ;;  %v309_v29 = vmul.f32 %v4397_v19, %v5006_v5  ;;  %v5147_v31 = vpack.c.bf16 %v484_v25, %v483_v22  ;;  %v468_v56 = vld [vmem:[#allocation2 + $0x68] sm:$0xff]  ;;  %v4416_v15 = vld [vmem:[%s5001_s26 + $0x78] sm:$0xff]  }
  0x33   : > { %v329_v57 = vadd.f32 %v5021_v16, %v293_v45  ;;  %v5171_v58 = vpack.c.bf16 %v468_v56, %v467_v49  ;;  %v358_v8 = vmax.f32 %v326_v50, 0.0  ;;  %v359_v59 = vmax.f32 %v327_v53, 0.0  ;;  %v469_v60 = vld [vmem:[#allocation2 + $0x78] sm:$0xff]  ;;  %v754_v4 = vld [vmem:[#allocation2 + $0x9] sm:$0xff]  ;;  %v761_v56 = vld [vmem:[#allocation2 + $0x61] sm:$0xff] }
  0x34   : > { %436 = vst.msk [vmem:[#allocation2 + $0x81] sm:$0xff] %vm380_vm1, %v357_v24  ;;  %v344_v35 = vadd.f32 %v5021_v16, %v308_v28  ;;  %v345_v36 = vadd.f32 %v5021_v16, %v309_v29  ;;  %v360_v10 = vmax.f32 %v328_v54, 0.0  ;;  %v487_v0 = vld [vmem:[#allocation2 + $0x150] sm:$0xff]  ;;  %v488_v1 = vld [vmem:[#allocation2 + $0x158] sm:$0xff]  ;;  %v785_v11 = vpack.c.bf16 %v754_v4, %v753_v3  ;;  %v1111_v13 = vld [vmem:[#allocation2 + $0x2] sm:$0xff] }
  0x35   : > { %4593 = vmatmul.mubr.msk.bf16.gmra.mxu1 %vm380_vm1, %v5130_v12  ;;  %v361_v62 = vmax.f32 %v329_v57, 0.0  ;;  %437 = vst.msk [vmem:[#allocation2 + $0x91] sm:$0xff] %vm380_vm1, %v358_v8  ;;  %438 = vst.msk [vmem:[#allocation2 + $0x99] sm:$0xff] %vm380_vm1, %v359_v59  ;;  %v5182_v2 = vpack.c.bf16 %v488_v1, %v487_v0  ;;  %v1112_v14 = vld [vmem:[#allocation2 + $0xa] sm:$0xff]  ;;  %v4400_v22 = vunpack.c.l.bf16 %v4416_v15  ;;  %v4401_v23 = vunpack.c.h.bf16 %v4416_v15  ;;  %v755_v28 = vld [vmem:[#allocation2 + $0x19] sm:$0xff] }
  0x36   : > { %4577 = vmatmul.mubr.msk.bf16.gmra.mxu0 %vm380_vm1, %v5138_v21  ;;  %4596 = vmatprep.mubr.msk.bf16.mxu1 %vm380_vm1, %v5147_v31  ;;  %v376_v43 = vmax.f32 %v344_v35, 0.0  ;;  %v377_v44 = vmax.f32 %v345_v36, 0.0  ;;  %439 = vst.msk [vmem:[#allocation2 + $0xa9] sm:$0xff] %vm380_vm1, %v360_v10  ;;  %v1143_v26 = vpack.c.bf16 %v1112_v14, %v1111_v13  ;;  %v756_v29 = vld [vmem:[#allocation2 + $0x21] sm:$0xff]  ;;  %v757_v34 = vld [vmem:[#allocation2 + $0x31] sm:$0xff]  ;;  %v758_v35 = vld [vmem:[#allocation2 + $0x39] sm:$0xff] }
  0x37   : > { %4580 = vmatprep.mubr.msk.bf16.mxu0 %vm380_vm1, %v5171_v58  ;;  %440 = vst.msk [vmem:[#allocation2 + $0xb1] sm:$0xff] %vm380_vm1, %v361_v62  ;;  %v310_v32 = vmul.f32 %v4400_v22, %v5006_v5  ;;  %v311_v33 = vmul.f32 %v4401_v23, %v5006_v5  ;;  %v5207_v40 = vpack.c.bf16 %v756_v29, %v755_v28  ;;  %v1113_v41 = vld [vmem:[#allocation2 + $0x1a] sm:$0xff]  ;;  %v1114_v42 = vld [vmem:[#allocation2 + $0x22] sm:$0xff]  ;;  %v1115_v5 = vld [vmem:[#allocation2 + $0x32] sm:$0xff]  ;;  %v1926_v54 = vsel %vm556_vm0, %v5106_v52, 0 }
  0x38   : > { %v486_v48 = vld [vmem:[#allocation2 + $0x140] sm:$0xff]  ;;  %455 = vst.msk [vmem:[#allocation2 + $0x169] sm:$0xff] %vm380_vm1, %v376_v43  ;;  %456 = vst.msk [vmem:[#allocation2 + $0x171] sm:$0xff] %vm380_vm1, %v377_v44  ;;  %v5210_v43 = vpack.c.bf16 %v758_v35, %v757_v34  ;;  %v5214_v49 = vpack.c.bf16 %v1114_v42, %v1113_v41  ;;  %v760_v53 = vld [vmem:[#allocation2 + $0x51] sm:$0xff] }
  0x39   : > { %v5166_v55 = vpack.c.bf16 %v486_v48, %v485_v46  ;;  %v346_v36 = vadd.f32 %v5021_v16, %v310_v32  ;;  %v347_v39 = vadd.f32 %v5021_v16, %v311_v33  ;;  %v1116_v44 = vld [vmem:[#allocation2 + $0x3a] sm:$0xff]  ;;  %v1568_v48 = vsel %vm556_vm0, %v5101_v51, 0  ;;  %v5219_v16 = vld [vmem:[%s6043_s2 + $0x14] sm:$0xf]  ;;  %v759_v51 = vld [vmem:[#allocation2 + $0x49] sm:$0xff] }
  0x3a   : > { %v5225_v50 = vpack.c.bf16 %v1116_v44, %v1115_v5  ;;  %v762_v57 = vld [vmem:[#allocation2 + $0x69] sm:$0xff]  ;;  %v5236_v8 = vld [vmem:[%s6043_s2 + $0x18] sm:$0xf]  ;;  %v5240_v59 = vpack.c.bf16 %v760_v53, %v759_v51  ;;  %v772_v5 = vld [vmem:[#allocation2 + $0xe1] sm:$0xff] }
  0x3b   : > { %v470_v61 = vld [vmem:[#allocation2 + $0x80] sm:$0xff]  ;;  %v378_v45 = vmax.f32 %v346_v36, 0.0  ;;  %v379_v46 = vmax.f32 %v347_v39, 0.0  ;;  %v1117_v52 = vld [vmem:[#allocation2 + $0x4a] sm:$0xff]  ;;  %v1118_v10 = vld [vmem:[#allocation2 + $0x52] sm:$0xff] }
  0x3c   : > { %v5177_v63 = vpack.c.bf16 %v470_v61, %v469_v60  ;;  %v471_v17 = vld [vmem:[#allocation2 + $0x90] sm:$0xff]  ;;  %v472_v18 = vld [vmem:[#allocation2 + $0x98] sm:$0xff]  ;;  %v5244_v60 = vpack.c.bf16 %v762_v57, %v761_v56  ;;  %v1119_v61 = vld [vmem:[#allocation2 + $0x62] sm:$0xff]  ;;  %v5248_v0 = vpack.c.bf16 %v1118_v10, %v1117_v52 }
  0x3d   : > { %4597 = vmatmul.mubr.msk.bf16.gmra.mxu1 %vm380_vm1, %v5166_v55  ;;  %v473_v19 = vld [vmem:[#allocation2 + $0xa8] sm:$0xff]  ;;  %v5194_v24 = vpack.c.bf16 %v472_v18, %v471_v17  ;;  %457 = vst.msk [vmem:[#allocation2 + $0x181] sm:$0xff] %vm380_vm1, %v378_v45  ;;  %458 = vst.msk [vmem:[#allocation2 + $0x189] sm:$0xff] %vm380_vm1, %v379_v46  ;;  %v763_v3 = vld [vmem:[#allocation2 + $0x79] sm:$0xff] }
  0x3e   : > { %4581 = vmatmul.mubr.msk.bf16.gmra.mxu0 %vm380_vm1, %v5177_v63  ;;  %4600 = vmatprep.mubr.msk.bf16.mxu1 %vm380_vm1, %v5182_v2  ;;  %v474_v25 = vld [vmem:[#allocation2 + $0xb0] sm:$0xff]  ;;  %v764_v4 = vld [vmem:[#allocation2 + $0x81] sm:$0xff]  ;;  %v771_v42 = vld [vmem:[#allocation2 + $0xd9] sm:$0xff] }
  0x3f   : > { %v489_v6 = vld [vmem:[#allocation2 + $0x168] sm:$0xff]  ;;  %v490_v7 = vld [vmem:[#allocation2 + $0x170] sm:$0xff]  ;;  %v5196_v27 = vpack.c.bf16 %v474_v25, %v473_v19  ;;  %4584 = vmatprep.mubr.msk.bf16.mxu0 %vm380_vm1, %v5194_v24  ;;  %v1121_v13 = vld [vmem:[#allocation2 + $0x7a] sm:$0xff]  ;;  %v5290_v46 = vpack.c.bf16 %v772_v5, %v771_v42 }
  0x40   : > { %v5189_v9 = vpack.c.bf16 %v490_v7, %v489_v6  ;;  %v1120_v62 = vld [vmem:[#allocation2 + $0x6a] sm:$0xff]  ;;  %v766_v7 = vld [vmem:[#allocation2 + $0x99] sm:$0xff]  ;;  %v1122_v14 = vld [vmem:[#allocation2 + $0x82] sm:$0xff] }
  0x41   : > { %v5252_v1 = vpack.c.bf16 %v1120_v62, %v1119_v61  ;;  %v765_v6 = vld [vmem:[#allocation2 + $0x91] sm:$0xff]  ;;  %v1124_v18 = vld [vmem:[#allocation2 + $0x9a] sm:$0xff]  ;;  %v5264_v19 = vpack.c.bf16 %v1122_v14, %v1121_v13  ;;  %v767_v23 = vld [vmem:[#allocation2 + $0xa9] sm:$0xff] }
  0x42   : > { %v5262_v15 = vpack.c.bf16 %v766_v7, %v765_v6  ;;  %v1123_v17 = vld [vmem:[#allocation2 + $0x92] sm:$0xff]  ;;  %v770_v28 = vld [vmem:[#allocation2 + $0xc9] sm:$0xff]  ;;  %v1132_v56 = vld [vmem:[#allocation2 + $0xfa] sm:$0xff] }
  0x43   : > { %v5268_v22 = vpack.c.bf16 %v1124_v18, %v1123_v17  ;;  %v768_v25 = vld [vmem:[#allocation2 + $0xb1] sm:$0xff]  ;;  %v1127_v35 = vld [vmem:[#allocation2 + $0xc2] sm:$0xff]  ;;  %v774_v45 = vld [vmem:[#allocation2 + $0xf9] sm:$0xff] }
  0x44   : > { %v5274_v29 = vpack.c.bf16 %v768_v25, %v767_v23  ;;  %v1125_v32 = vld [vmem:[#allocation2 + $0xaa] sm:$0xff]  ;;  %v1126_v33 = vld [vmem:[#allocation2 + $0xb2] sm:$0xff]  ;;  %v1130_v51 = vld [vmem:[#allocation2 + $0xe2] sm:$0xff] }
  0x45   : > { %4601 = vmatmul.mubr.msk.bf16.gmra.mxu1 %vm380_vm1, %v5189_v9  ;;  %v1128_v36 = vld [vmem:[#allocation2 + $0xca] sm:$0xff]  ;;  %v5280_v39 = vpack.c.bf16 %v1126_v33, %v1125_v32  ;;  %v777_v62 = vld [vmem:[#allocation2 + $0x121] sm:$0xff]  ;;  %v1134_v7 = vld [vmem:[#allocation2 + $0x112] sm:$0xff] }
  0x46   : > { %4606 = vmatprep.mubr.msk.bf16.mxu1 %vm380_vm1, %v785_v11  ;;  %4585 = vmatmul.mubr.msk.bf16.gmra.mxu0 %vm380_vm1, %v5196_v27  ;;  %v5258_v11 = vpack.c.bf16 %v764_v4, %v763_v3  ;;  %v5284_v41 = vpack.c.bf16 %v1128_v36, %v1127_v35  ;;  %v773_v44 = vld [vmem:[#allocation2 + $0xf1] sm:$0xff]  ;;  %v775_v10 = vld [vmem:[#allocation2 + $0x109] sm:$0xff]  ;;  %v779_v25 = vld [vmem:[#allocation2 + $0x139] sm:$0xff] }
  0x47   : > { %4640 = vmatprep.mubr.msk.bf16.mxu0 %vm380_vm1, %v1143_v26  ;;  %v769_v26 = vld [vmem:[#allocation2 + $0xc1] sm:$0xff]  ;;  %v5294_v53 = vpack.c.bf16 %v774_v45, %v773_v44  ;;  %v776_v61 = vld [vmem:[#allocation2 + $0x111] sm:$0xff]  ;;  %v778_v3 = vld [vmem:[#allocation2 + $0x129] sm:$0xff] }
  0x48   : > { %v5278_v34 = vpack.c.bf16 %v770_v28, %v769_v26  ;;  %v5306_v4 = vpack.c.bf16 %v776_v61, %v775_v10  ;;  %v1133_v6 = vld [vmem:[#allocation2 + $0x10a] sm:$0xff]  ;;  %v5310_v13 = vpack.c.bf16 %v778_v3, %v777_v62  ;;  %v1135_v14 = vld [vmem:[#allocation2 + $0x122] sm:$0xff]  ;;  %v782_v32 = vld [vmem:[#allocation2 + $0x159] sm:$0xff]  ;;  %v2284_v3 = vsel %vm556_vm0, %v5219_v16, 0 }
  0x49   : > { %v1136_v17 = vld [vmem:[#allocation2 + $0x12a] sm:$0xff]  ;;  %v5312_v18 = vpack.c.bf16 %v1134_v7, %v1133_v6  ;;  %v780_v26 = vld [vmem:[#allocation2 + $0x141] sm:$0xff]  ;;  %v1139_v5 = vld [vmem:[#allocation2 + $0x152] sm:$0xff] }
  0x4a   : > { %v5316_v23 = vpack.c.bf16 %v1136_v17, %v1135_v14  ;;  %v781_v28 = vld [vmem:[#allocation2 + $0x151] sm:$0xff]  ;;  %v798_v33 = vpack.c.bf16 %v780_v26, %v779_v25  ;;  %v1137_v35 = vld [vmem:[#allocation2 + $0x13a] sm:$0xff]  ;;  %v1138_v36 = vld [vmem:[#allocation2 + $0x142] sm:$0xff] }
  0x4b   : > { %v799_v42 = vpack.c.bf16 %v782_v32, %v781_v28  ;;  %v1140_v44 = vld [vmem:[#allocation2 + $0x15a] sm:$0xff]  ;;  %v5324_v45 = vpack.c.bf16 %v1138_v36, %v1137_v35  ;;  %v1141_v10 = vld [vmem:[#allocation2 + $0x16a] sm:$0xff]  ;;  %v1142_v61 = vld [vmem:[#allocation2 + $0x172] sm:$0xff] }
  0x4c   : > { %v5334_v62 = vpack.c.bf16 %v1142_v61, %v1141_v10  ;;  %v4236_v6 = vld [vmem:[%s6043_s2 + $0x1c] sm:$0xf]  ;;  %v2575_v10 = vld [vmem:[#allocation2 + $0x1a0] sm:$0xff] }
  0x4d   : > { %4607 = vmatmul.mubr.msk.bf16.vlgmr.msra.gmra.mxu1 %vm380_vm1, %v5207_v40 }
  0x4e   : > { %4673 = vmatpush3.bf16.msra.mxu1 %v1568_v48  ;;  %4610 = vmatprep.mubr.msk.bf16.mxu1 %vm380_vm1, %v5210_v43  ;;  %v1129_v48 = vld [vmem:[#allocation2 + $0xda] sm:$0xff] }
  0x4f   : > { %4884 = vmatprep.subr.msk.bf16.mxu1 %vm556_vm0, %v5219_v16  ;;  %4641 = vmatmul.mubr.msk.bf16.vlgmr.msra.gmra.mxu0 %vm380_vm1, %v5214_v49  ;;  %v5296_v57 = vpack.c.bf16 %v1130_v51, %v1129_v48  ;;  %v5327_v48 = vpack.c.bf16 %v1140_v44, %v1139_v5  ;;  %v783_v51 = vld [vmem:[#allocation2 + $0x169] sm:$0xff] }
  0x50   : > { %4707 = vmatpush3.bf16.msra.mxu0 %v1926_v54  ;;  %4644 = vmatprep.mubr.msk.bf16.mxu0 %vm380_vm1, %v5225_v50  ;;  %v1131_v54 = vld [vmem:[#allocation2 + $0xf2] sm:$0xff] }
  0x51   : > { %4885 = vmatprep.subr.msk.bf16.mxu0 %vm556_vm0, %v5236_v8  ;;  %v5300_v52 = vpack.c.bf16 %v1132_v56, %v1131_v54  ;;  %v784_v54 = vld [vmem:[#allocation2 + $0x171] sm:$0xff] }
  0x52   : > { %v800_v56 = vpack.c.bf16 %v784_v54, %v783_v51 }
  0x55   : > { %4611 = vmatmul.mubr.msk.bf16.gmra.mxu1 %vm380_vm1, %v5240_v59 }
  0x56   : > { %4614 = vmatprep.mubr.msk.bf16.mxu1 %vm380_vm1, %v5244_v60 }
  0x57   : > { %4645 = vmatmul.mubr.msk.bf16.gmra.mxu0 %vm380_vm1, %v5248_v0 }
  0x58   : > { %4648 = vmatprep.mubr.msk.bf16.mxu0 %vm380_vm1, %v5252_v1 }
  0x5d   : > { %4615 = vmatmul.mubr.msk.bf16.gmra.mxu1 %vm380_vm1, %v5258_v11 }
  0x5e   : > { %4618 = vmatprep.mubr.msk.bf16.mxu1 %vm380_vm1, %v5262_v15 }
  0x5f   : > { %4649 = vmatmul.mubr.msk.bf16.gmra.mxu0 %vm380_vm1, %v5264_v19 }
  0x60   : > { %4652 = vmatprep.mubr.msk.bf16.mxu0 %vm380_vm1, %v5268_v22 }
  0x65   : > { %4619 = vmatmul.mubr.msk.bf16.gmra.mxu1 %vm380_vm1, %v5274_v29 }
  0x66   : > { %4622 = vmatprep.mubr.msk.bf16.mxu1 %vm380_vm1, %v5278_v34 }
  0x67   : > { %4653 = vmatmul.mubr.msk.bf16.gmra.mxu0 %vm380_vm1, %v5280_v39 }
  0x68   : > { %4656 = vmatprep.mubr.msk.bf16.mxu0 %vm380_vm1, %v5284_v41 }
  0x6d   : > { %4623 = vmatmul.mubr.msk.bf16.gmra.mxu1 %vm380_vm1, %v5290_v46 }
  0x6e   : > { %4626 = vmatprep.mubr.msk.bf16.mxu1 %vm380_vm1, %v5294_v53 }
  0x6f   : > { %4657 = vmatmul.mubr.msk.bf16.gmra.mxu0 %vm380_vm1, %v5296_v57 }
  0x70   : > { %4660 = vmatprep.mubr.msk.bf16.mxu0 %vm380_vm1, %v5300_v52 }
  0x75   : > { %4627 = vmatmul.mubr.msk.bf16.gmra.mxu1 %vm380_vm1, %v5306_v4 }
  0x76   : > { %4630 = vmatprep.mubr.msk.bf16.mxu1 %vm380_vm1, %v5310_v13 }
  0x77   : > { %4661 = vmatmul.mubr.msk.bf16.gmra.mxu0 %vm380_vm1, %v5312_v18 }
  0x78   : > { %4664 = vmatprep.mubr.msk.bf16.mxu0 %vm380_vm1, %v5316_v23 }
  0x7d   : > { %4631 = vmatmul.mubr.msk.bf16.gmra.mxu1 %vm380_vm1, %v798_v33 }
  0x7e   : > { %4634 = vmatprep.mubr.msk.bf16.mxu1 %vm380_vm1, %v799_v42 }
  0x7f   : > { %4665 = vmatmul.mubr.msk.bf16.gmra.mxu0 %vm380_vm1, %v5324_v45 }
  0x80   : > { %4668 = vmatprep.mubr.msk.bf16.mxu0 %vm380_vm1, %v5327_v48 }
  0x85   : > { %4635 = vmatmul.mubr.msk.bf16.gmra.mxu1 %vm380_vm1, %v800_v56 }
  0x86   : > { %4674 = vmatprep.mubr.msk.bf16.mxu1 %vm380_vm1, %v5080_v38  ;;  %v2643_v38 = vsel %vm556_vm0, %v5236_v8, 0  ;;  %v3001_v8 = vsel %vm556_vm0, %v4236_v6, 0 }
  0x87   : > { %4669 = vmatmul.mubr.msk.bf16.gmra.mxu0 %vm380_vm1, %v5334_v62 }
  0x88   : > { %4708 = vmatprep.mubr.msk.bf16.mxu0 %vm380_vm1, %v5207_v40  ;;  %v4253_v40 = vld [vmem:[%s6043_s2 + $0x20] sm:$0xf] }
  0x8d   : > { %4675 = vmatmul.mubr.msk.bf16.vlgmr.msra.gmra.mxu1 %vm380_vm1, %v5136_v20 }
  0x8e   : > { %4741 = vmatpush3.bf16.msra.mxu1 %v2284_v3  ;;  %4678 = vmatprep.mubr.msk.bf16.mxu1 %vm380_vm1, %v5138_v21 }
  0x8f   : > { %4886 = vmatprep.subr.msk.bf16.mxu1 %vm556_vm0, %v4236_v6  ;;  %4709 = vmatmul.mubr.msk.bf16.vlgmr.msra.gmra.mxu0 %vm380_vm1, %v5210_v43 }
  0x90   : > { %4775 = vmatpush3.bf16.msra.mxu0 %v2643_v38  ;;  %4712 = vmatprep.mubr.msk.bf16.mxu0 %vm380_vm1, %v5240_v59 }
  0x91   : > { %4887 = vmatprep.subr.msk.bf16.mxu0 %vm556_vm0, %v4253_v40 }
  0x95   : > { %4679 = vmatmul.mubr.msk.bf16.gmra.mxu1 %vm380_vm1, %v5171_v58 }
  0x96   : > { %4682 = vmatprep.mubr.msk.bf16.mxu1 %vm380_vm1, %v5177_v63 }
  0x97   : > { %4713 = vmatmul.mubr.msk.bf16.gmra.mxu0 %vm380_vm1, %v5244_v60 }
  0x98   : > { %4716 = vmatprep.mubr.msk.bf16.mxu0 %vm380_vm1, %v5258_v11 }
  0x9d   : > { %4683 = vmatmul.mubr.msk.bf16.gmra.mxu1 %vm380_vm1, %v5194_v24 }
  0x9e   : > { %4686 = vmatprep.mubr.msk.bf16.mxu1 %vm380_vm1, %v5196_v27 }
  0x9f   : > { %4717 = vmatmul.mubr.msk.bf16.gmra.mxu0 %vm380_vm1, %v5262_v15  ;;  %v3359_v15 = vsel %vm556_vm0, %v4253_v40, 0 }
  0xa0   : > { %4720 = vmatprep.mubr.msk.bf16.mxu0 %vm380_vm1, %v5274_v29  ;;  %v2559_v29 = vld [vmem:[#allocation2 + $0xe0] sm:$0xff] }
  0xa5   : > { %4687 = vmatmul.mubr.msk.bf16.gmra.mxu1 %vm380_vm1, %v5072_v30  ;;  %v1499_v30 = vld [vmem:[#allocation2 + $0x180] sm:$0xff] }
  0xa6   : > { %4690 = vmatprep.mubr.msk.bf16.mxu1 %vm380_vm1, %v5078_v37  ;;  %v1500_v37 = vld [vmem:[#allocation2 + $0x188] sm:$0xff] }
  0xa7   : > { %4721 = vmatmul.mubr.msk.bf16.gmra.mxu0 %vm380_vm1, %v5278_v34  ;;  %v2561_v34 = vld [vmem:[#allocation2 + $0xf8] sm:$0xff] }
  0xa8   : > { %4724 = vmatprep.mubr.msk.bf16.mxu0 %vm380_vm1, %v5290_v46 }
  0xad   : > { %4691 = vmatmul.mubr.msk.bf16.gmra.mxu1 %vm380_vm1, %v5094_v47  ;;  %v5407_v47 = vpack.c.bf16 %v1500_v37, %v1499_v30 }
  0xae   : > { %4694 = vmatprep.mubr.msk.bf16.mxu1 %vm380_vm1, %v5130_v12  ;;  %v1857_v12 = vld [vmem:[#allocation2 + $0x181] sm:$0xff] }
  0xaf   : > { %4725 = vmatmul.mubr.msk.bf16.gmra.mxu0 %vm380_vm1, %v5294_v53  ;;  %v2565_v53 = vld [vmem:[#allocation2 + $0x128] sm:$0xff] }
  0xb0   : > { %4728 = vmatprep.mubr.msk.bf16.mxu0 %vm380_vm1, %v5306_v4 }
  0xb5   : > { %4695 = vmatmul.mubr.msk.bf16.gmra.mxu1 %vm380_vm1, %v5147_v31  ;;  %v1858_v31 = vld [vmem:[#allocation2 + $0x189] sm:$0xff] }
  0xb6   : > { %4698 = vmatprep.mubr.msk.bf16.mxu1 %vm380_vm1, %v5166_v55  ;;  %v1874_v16 = vpack.c.bf16 %v1858_v31, %v1857_v12 }
  0xb7   : > { %4729 = vmatmul.mubr.msk.bf16.gmra.mxu0 %vm380_vm1, %v5310_v13 }
  0xb8   : > { %4732 = vmatprep.mubr.msk.bf16.mxu0 %vm380_vm1, %v798_v33 }
  0xbd   : > { %4699 = vmatmul.mubr.msk.bf16.gmra.mxu1 %vm380_vm1, %v5182_v2 }
  0xbe   : > { %4702 = vmatprep.mubr.msk.bf16.mxu1 %vm380_vm1, %v5189_v9 }
  0xbf   : > { %4733 = vmatmul.mubr.msk.bf16.gmra.mxu0 %vm380_vm1, %v799_v42 }
  0xc0   : > { %4736 = vmatprep.mubr.msk.bf16.mxu0 %vm380_vm1, %v800_v56  ;;  %v2574_v56 = vld [vmem:[#allocation2 + $0x198] sm:$0xff] }
  0xc5   : > { %4703 = vmatmul.mubr.msk.bf16.gmra.mxu1 %vm380_vm1, %v5407_v47 }
  0xc6   : > { %4742 = vmatprep.mubr.msk.bf16.mxu1 %vm380_vm1, %v5214_v49  ;;  %v2557_v49 = vld [vmem:[#allocation2 + $0xc8] sm:$0xff] }
  0xc7   : > { %4737 = vmatmul.mubr.msk.bf16.gmra.mxu0 %vm380_vm1, %v1874_v16 }
  0xc8   : > { %4776 = vmatprep.mubr.msk.bf16.mxu0 %vm380_vm1, %v5136_v20  ;;  %v2556_v20 = vld [vmem:[#allocation2 + $0xc0] sm:$0xff] }
  0xcd   : > { %4743 = vmatmul.mubr.msk.bf16.vlgmr.msra.gmra.mxu1 %vm380_vm1, %v5225_v50 }
  0xce   : > { %4809 = vmatpush3.bf16.msra.mxu1 %v3001_v8  ;;  %4746 = vmatprep.mubr.msk.bf16.mxu1 %vm380_vm1, %v5248_v0 }
  0xcf   : > { %4777 = vmatmul.mubr.msk.bf16.vlgmr.msra.gmra.mxu0 %vm380_vm1, %v5138_v21  ;;  %v2582_v21 = vpack.c.bf16 %v2557_v49, %v2556_v20  ;;  %v2910_v20 = vld [vmem:[#allocation2 + $0x91] sm:$0xff]  ;;  %v2911_v49 = vld [vmem:[#allocation2 + $0x99] sm:$0xff] }
  0xd0   : > { %4843 = vmatpush3.bf16.msra.mxu0 %v3359_v15  ;;  %4780 = vmatprep.mubr.msk.bf16.mxu0 %vm380_vm1, %v5171_v58  ;;  %v2558_v58 = vld [vmem:[#allocation2 + $0xd8] sm:$0xff] }
  0xd1   : > { %v2583_v46 = vpack.c.bf16 %v2559_v29, %v2558_v58 }
  0xd5   : > { %4747 = vmatmul.mubr.msk.bf16.gmra.mxu1 %vm380_vm1, %v5252_v1 }
  0xd6   : > { %4750 = vmatprep.mubr.msk.bf16.mxu1 %vm380_vm1, %v5264_v19 }
  0xd7   : > { %4781 = vmatmul.mubr.msk.bf16.gmra.mxu0 %vm380_vm1, %v5177_v63  ;;  %v2560_v63 = vld [vmem:[#allocation2 + $0xf0] sm:$0xff] }
  0xd8   : > { %4784 = vmatprep.mubr.msk.bf16.mxu0 %vm380_vm1, %v5194_v24  ;;  %v2584_v24 = vpack.c.bf16 %v2561_v34, %v2560_v63  ;;  %v2938_v34 = vpack.c.bf16 %v2911_v49, %v2910_v20 }
  0xdd   : > { %4751 = vmatmul.mubr.msk.bf16.gmra.mxu1 %vm380_vm1, %v5268_v22  ;;  %v2562_v22 = vld [vmem:[#allocation2 + $0x108] sm:$0xff] }
  0xde   : > { %4754 = vmatprep.mubr.msk.bf16.mxu1 %vm380_vm1, %v5280_v39  ;;  %v2564_v39 = vld [vmem:[#allocation2 + $0x120] sm:$0xff] }
  0xdf   : > { %4785 = vmatmul.mubr.msk.bf16.gmra.mxu0 %vm380_vm1, %v5196_v27  ;;  %v2563_v27 = vld [vmem:[#allocation2 + $0x110] sm:$0xff]  ;;  %v2586_v14 = vpack.c.bf16 %v2565_v53, %v2564_v39 }
  0xe0   : > { %4788 = vmatprep.mubr.msk.bf16.mxu0 %vm380_vm1, %v2582_v21  ;;  %v2585_v4 = vpack.c.bf16 %v2563_v27, %v2562_v22 }
  0xe5   : > { %4755 = vmatmul.mubr.msk.bf16.gmra.mxu1 %vm380_vm1, %v5284_v41 }
  0xe6   : > { %4758 = vmatprep.mubr.msk.bf16.mxu1 %vm380_vm1, %v5296_v57 }
  0xe7   : > { %4789 = vmatmul.mubr.msk.bf16.gmra.mxu0 %vm380_vm1, %v2583_v46  ;;  %v3268_v46 = vld [vmem:[#allocation2 + $0x92] sm:$0xff] }
  0xe8   : > { %4792 = vmatprep.mubr.msk.bf16.mxu0 %vm380_vm1, %v2584_v24  ;;  %v3269_v24 = vld [vmem:[#allocation2 + $0x9a] sm:$0xff] }
  0xed   : > { %v4590_v7 = vpop.f32.mrf.mxu1  ;;  %4759 = vmatmul.mubr.msk.bf16.gmra.mxu1 %vm380_vm1, %v5300_v52 }
  0xee   : > { %v4574_v13 = vpop.f32.mrf.mxu0  ;;  %739 = vst.msk [vmem:[#allocation3 + $0x90] sm:$0xff] %vm380_vm1, %v4590_v7  ;;  %4762 = vmatprep.mubr.msk.bf16.mxu1 %vm380_vm1, %v5312_v18  ;;  %v3296_v7 = vpack.c.bf16 %v3269_v24, %v3268_v46 }
  0xef   : > { %723 = vst.msk [vmem:[#allocation3 + $0x10] sm:$0xff] %vm380_vm1, %v4574_v13  ;;  %v658_v41 = vpop.f32.mrf.mxu1  ;;  %4793 = vmatmul.mubr.msk.bf16.gmra.mxu0 %vm380_vm1, %v2585_v4 }
  0xf0   : > { %v594_v57 = vpop.f32.mrf.mxu0  ;;  %737 = vst.msk [vmem:[#allocation3 + $0x80] sm:$0xff] %vm380_vm1, %v658_v41  ;;  %4796 = vmatprep.mubr.msk.bf16.mxu0 %vm380_vm1, %v2586_v14  ;;  %v2912_v14 = vld [vmem:[#allocation2 + $0xa9] sm:$0xff]  ;;  %v2913_v41 = vld [vmem:[#allocation2 + $0xb1] sm:$0xff] }
  0xf1   : > { %721 = vst.msk [vmem:[#allocation3] sm:$0xff] %vm380_vm1, %v594_v57  ;;  %v4591_v17 = vpop.f32.mrf.mxu1  ;;  %v2914_v57 = vld [vmem:[#allocation2 + $0xc1] sm:$0xff] }
  0xf2   : > { %v4575_v25 = vpop.f32.mrf.mxu0  ;;  %740 = vst.msk [vmem:[#allocation3 + $0x98] sm:$0xff] %vm380_vm1, %v4591_v17 }
  0xf3   : > { %724 = vst.msk [vmem:[#allocation3 + $0x18] sm:$0xff] %vm380_vm1, %v4575_v25  ;;  %v661_v52 = vpop.f32.mrf.mxu1 }
  0xf4   : > { %v597_v26 = vpop.f32.mrf.mxu0  ;;  %738 = vst.msk [vmem:[#allocation3 + $0x88] sm:$0xff] %vm380_vm1, %v661_v52 }
  0xf5   : > { %722 = vst.msk [vmem:[#allocation3 + $0x8] sm:$0xff] %vm380_vm1, %v597_v26  ;;  %v4594_v18 = vpop.f32.mrf.mxu1  ;;  %4763 = vmatmul.mubr.msk.bf16.gmra.mxu1 %vm380_vm1, %v5316_v23  ;;  %v2915_v26 = vld [vmem:[#allocation2 + $0xc9] sm:$0xff] }
  0xf6   : > { %743 = vst.msk [vmem:[#allocation3 + $0xb0] sm:$0xff] %vm380_vm1, %v4594_v18  ;;  %v4578_v28 = vpop.f32.mrf.mxu0  ;;  %4766 = vmatprep.mubr.msk.bf16.mxu1 %vm380_vm1, %v5324_v45  ;;  %v1017_v31 = vld [vmem:[#allocation3 + $0x10] sm:$0xff] }
  0xf7   : > { %v674_v32 = vpop.f32.mrf.mxu1  ;;  %727 = vst.msk [vmem:[#allocation3 + $0x30] sm:$0xff] %vm380_vm1, %v4578_v28  ;;  %4797 = vmatmul.mubr.msk.bf16.gmra.mxu0 %vm380_vm1, %v5166_v55  ;;  %v2215_v55 = vld [vmem:[#allocation2 + $0x182] sm:$0xff] }
  0xf8   : > { %741 = vst.msk [vmem:[#allocation3 + $0xa0] sm:$0xff] %vm380_vm1, %v674_v32  ;;  %v610_v33 = vpop.f32.mrf.mxu0  ;;  %4800 = vmatprep.mubr.msk.bf16.mxu0 %vm380_vm1, %v5182_v2  ;;  %v2216_v2 = vld [vmem:[#allocation2 + $0x18a] sm:$0xff] }
  0xf9   : > { %v4595_v35 = vpop.f32.mrf.mxu1  ;;  %725 = vst.msk [vmem:[#allocation3 + $0x20] sm:$0xff] %vm380_vm1, %v610_v33  ;;  %v5487_v54 = vpack.c.bf16 %v2216_v2, %v2215_v55  ;;  %v1015_v15 = vld [vmem:[#allocation3] sm:$0xff] }
  0xfa   : > { %744 = vst.msk [vmem:[#allocation3 + $0xb8] sm:$0xff] %vm380_vm1, %v4595_v35  ;;  %v4579_v23 = vpop.f32.mrf.mxu0 }
  0xfb   : > { %v677_v36 = vpop.f32.mrf.mxu1  ;;  %728 = vst.msk [vmem:[#allocation3 + $0x38] sm:$0xff] %vm380_vm1, %v4579_v23 }
  0xfc   : > { %742 = vst.msk [vmem:[#allocation3 + $0xa8] sm:$0xff] %vm380_vm1, %v677_v36  ;;  %v613_v42 = vpop.f32.mrf.mxu0  ;;  %v1016_v27 = vld [vmem:[#allocation3 + $0x8] sm:$0xff]  ;;  %v2939_v36 = vpack.c.bf16 %v2913_v41, %v2912_v14 }
  0xfd   : > { %v4598_v5 = vpop.f32.mrf.mxu1  ;;  %4767 = vmatmul.mubr.msk.bf16.gmra.mxu1 %vm380_vm1, %v5327_v48  ;;  %726 = vst.msk [vmem:[#allocation3 + $0x28] sm:$0xff] %vm380_vm1, %v613_v42  ;;  %v3271_v42 = vld [vmem:[#allocation2 + $0xb2] sm:$0xff] }
  0xfe   : > { %747 = vst.msk [vmem:[#allocation3 + $0xd0] sm:$0xff] %vm380_vm1, %v4598_v5  ;;  %4770 = vmatprep.mubr.msk.bf16.mxu1 %vm380_vm1, %v5334_v62  ;;  %v4582_v45 = vpop.f32.mrf.mxu0 }
  0xff   : > { %v690_v44 = vpop.f32.mrf.mxu1  ;;  %731 = vst.msk [vmem:[#allocation3 + $0x50] sm:$0xff] %vm380_vm1, %v4582_v45  ;;  %4801 = vmatmul.mubr.msk.bf16.gmra.mxu0 %vm380_vm1, %v5189_v9  ;;  %v2591_v9 = vpack.c.bf16 %v2575_v10, %v2574_v56  ;;  %v3272_v45 = vld [vmem:[#allocation2 + $0xc2] sm:$0xff] }
 0x100   : > { %745 = vst.msk [vmem:[#allocation3 + $0xc0] sm:$0xff] %vm380_vm1, %v690_v44  ;;  %v626_v48 = vpop.f32.mrf.mxu0  ;;  %4804 = vmatprep.mubr.msk.bf16.mxu0 %vm380_vm1, %v5407_v47  ;;  %v1019_v52 = vld [vmem:[#allocation3 + $0x20] sm:$0xff]  ;;  %v2940_v44 = vpack.c.bf16 %v2915_v26, %v2914_v57 }
 0x101   : > { %v4599_v51 = vpop.f32.mrf.mxu1  ;;  %729 = vst.msk [vmem:[#allocation3 + $0x40] sm:$0xff] %vm380_vm1, %v626_v48 }
 0x102   : > { %748 = vst.msk [vmem:[#allocation3 + $0xd8] sm:$0xff] %vm380_vm1, %v4599_v51  ;;  %v4583_v62 = vpop.f32.mrf.mxu0  ;;  %v1022_v23 = vld [vmem:[#allocation3 + $0x38] sm:$0xff] }
 0x103   : > { %v693_v61 = vpop.f32.mrf.mxu1  ;;  %732 = vst.msk [vmem:[#allocation3 + $0x58] sm:$0xff] %vm380_vm1, %v4583_v62  ;;  %v3273_v51 = vld [vmem:[#allocation2 + $0xca] sm:$0xff] }
 0x104   : > { %746 = vst.msk [vmem:[#allocation3 + $0xc8] sm:$0xff] %vm380_vm1, %v693_v61  ;;  %v629_v6 = vpop.f32.mrf.mxu0  ;;  %v1020_v56 = vld [vmem:[#allocation3 + $0x28] sm:$0xff] }
 0x105   : > { %v4602_v3 = vpop.f32.mrf.mxu1  ;;  %4771 = vmatmul.mubr.msk.bf16.gmra.mxu1 %vm380_vm1, %v5487_v54  ;;  %730 = vst.msk [vmem:[#allocation3 + $0x48] sm:$0xff] %vm380_vm1, %v629_v6 }
 0x106   : > { %751 = vst.msk [vmem:[#allocation3 + $0xf0] sm:$0xff] %vm380_vm1, %v4602_v3  ;;  %4810 = vmatprep.mubr.msk.bf16.mxu1 %vm380_vm1, %v5210_v43  ;;  %v4586_v40 = vpop.f32.mrf.mxu0 }
 0x107   : > { %v706_v38 = vpop.f32.mrf.mxu1  ;;  %4805 = vmatmul.mubr.msk.bf16.gmra.mxu0 %vm380_vm1, %v2591_v9  ;;  %735 = vst.msk [vmem:[#allocation3 + $0x70] sm:$0xff] %vm380_vm1, %v4586_v40  ;;  %v3298_v40 = vpack.c.bf16 %v3273_v51, %v3272_v45 }
 0x108   : > { %749 = vst.msk [vmem:[#allocation3 + $0xe0] sm:$0xff] %vm380_vm1, %v706_v38  ;;  %4844 = vmatprep.mubr.msk.bf16.mxu0 %vm380_vm1, %v5225_v50  ;;  %v642_v37 = vpop.f32.mrf.mxu0  ;;  %v1025_v38 = vld [vmem:[#allocation3 + $0x50] sm:$0xff] }
 0x109   : > { %v4603_v30 = vpop.f32.mrf.mxu1  ;;  %733 = vst.msk [vmem:[#allocation3 + $0x60] sm:$0xff] %vm380_vm1, %v642_v37 }
 0x10a   : > { %752 = vst.msk [vmem:[#allocation3 + $0xf8] sm:$0xff] %vm380_vm1, %v4603_v30  ;;  %v4587_v43 = vpop.f32.mrf.mxu0 }
 0x10b   : > { %v709_v47 = vpop.f32.mrf.mxu1  ;;  %736 = vst.msk [vmem:[#allocation3 + $0x78] sm:$0xff] %vm380_vm1, %v4587_v43  ;;  %v2916_v43 = vld [vmem:[#allocation2 + $0xd9] sm:$0xff] }
 0x10c   : > { %750 = vst.msk [vmem:[#allocation3 + $0xe8] sm:$0xff] %vm380_vm1, %v709_v47  ;;  %v645_v8 = vpop.f32.mrf.mxu0 }
 0x10d   : > { %v4608_v12 = vpop.f32.mrf.mxu1  ;;  %4811 = vmatmul.mubr.msk.bf16.vlgmr.msra.gmra.mxu1 %vm380_vm1, %v5240_v59  ;;  %734 = vst.msk [vmem:[#allocation3 + $0x68] sm:$0xff] %vm380_vm1, %v645_v8  ;;  %v1018_v59 = vld [vmem:[#allocation3 + $0x18] sm:$0xff] }
 0x10e   : > { %v1049_v16 = vadd.f32 %v4608_v12, %v1017_v31  ;;  %4814 = vmatprep.mubr.msk.bf16.mxu1 %vm380_vm1, %v5244_v60  ;;  %v2917_v12 = vld [vmem:[#allocation2 + $0xe1] sm:$0xff]  ;;  %v2918_v31 = vld [vmem:[#allocation2 + $0xf1] sm:$0xff] }
 0x10f   : > { %v888_v50 = vpop.f32.mrf.mxu1  ;;  %v4642_v58 = vpop.f32.mrf.mxu0  ;;  %4845 = vmatmul.mubr.msk.bf16.vlgmr.msra.gmra.mxu0 %vm380_vm1, %v5248_v0  ;;  %v1021_v0 = vld [vmem:[#allocation3 + $0x30] sm:$0xff] }
 0x110   : > { %1081 = vst.msk [vmem:[#allocation3 + $0x10] sm:$0xff] %vm380_vm1, %v1049_v16  ;;  %v1047_v21 = vadd.f32 %v1015_v15, %v888_v50  ;;  %4848 = vmatprep.mubr.msk.bf16.mxu0 %vm380_vm1, %v5252_v1  ;;  %v1023_v50 = vld [vmem:[#allocation3 + $0x40] sm:$0xff]  ;;  %v2919_v15 = vld [vmem:[#allocation2 + $0xf9] sm:$0xff] }
 0x111   : > { %v4609_v29 = vpop.f32.mrf.mxu1  ;;  %v1246_v63 = vpop.f32.mrf.mxu0 }
 0x112   : > { %1079 = vst.msk [vmem:[#allocation3] sm:$0xff] %vm380_vm1, %v1047_v21  ;;  %v1050_v60 = vadd.f32 %v4609_v29, %v1018_v59 }
 0x113   : > { %v891_v22 = vpop.f32.mrf.mxu1  ;;  %v4643_v53 = vpop.f32.mrf.mxu0 }
 0x114   : > { %1082 = vst.msk [vmem:[#allocation3 + $0x18] sm:$0xff] %vm380_vm1, %v1050_v60  ;;  %v1048_v39 = vadd.f32 %v1016_v27, %v891_v22  ;;  %v1026_v60 = vld [vmem:[#allocation3 + $0x58] sm:$0xff]  ;;  %v2942_v27 = vpack.c.bf16 %v2919_v15, %v2918_v31 }
 0x115   : > { %v4612_v4 = vpop.f32.mrf.mxu1  ;;  %4815 = vmatmul.mubr.msk.bf16.gmra.mxu1 %vm380_vm1, %v5258_v11  ;;  %v1249_v13 = vpop.f32.mrf.mxu0  ;;  %v3270_v11 = vld [vmem:[#allocation2 + $0xaa] sm:$0xff] }
 0x116   : > { %1080 = vst.msk [vmem:[#allocation3 + $0x8] sm:$0xff] %vm380_vm1, %v1048_v39  ;;  %v1053_v1 = vadd.f32 %v4612_v4, %v1021_v0  ;;  %4818 = vmatprep.mubr.msk.bf16.mxu1 %vm380_vm1, %v2938_v34  ;;  %v3297_v9 = vpack.c.bf16 %v3271_v42, %v3270_v11  ;;  %v3275_v34 = vld [vmem:[#allocation2 + $0xe2] sm:$0xff]  ;;  %v3276_v39 = vld [vmem:[#allocation2 + $0xf2] sm:$0xff] }
 0x117   : > { %v1375_v17 = vld [vmem:[#allocation3 + $0x10] sm:$0xff]  ;;  %v904_v25 = vpop.f32.mrf.mxu1  ;;  %v4646_v32 = vpop.f32.mrf.mxu0  ;;  %4849 = vmatmul.mubr.msk.bf16.gmra.mxu0 %vm380_vm1, %v5264_v19  ;;  %v2921_v11 = vld [vmem:[#allocation2 + $0x111] sm:$0xff]  ;;  %v2923_v42 = vld [vmem:[#allocation2 + $0x129] sm:$0xff] }
 0x118   : > { %v1407_v18 = vadd.f32 %v4642_v58, %v1375_v17  ;;  %1085 = vst.msk [vmem:[#allocation3 + $0x30] sm:$0xff] %vm380_vm1, %v1053_v1  ;;  %v1051_v28 = vadd.f32 %v1019_v52, %v904_v25  ;;  %4852 = vmatprep.mubr.msk.bf16.mxu0 %vm380_vm1, %v3296_v7  ;;  %v3274_v58 = vld [vmem:[#allocation2 + $0xda] sm:$0xff] }
 0x119   : > { %v1373_v33 = vld [vmem:[#allocation3] sm:$0xff]  ;;  %v4613_v35 = vpop.f32.mrf.mxu1  ;;  %v1262_v2 = vpop.f32.mrf.mxu0  ;;  %v1024_v7 = vld [vmem:[#allocation3 + $0x48] sm:$0xff]  ;;  %v3299_v41 = vpack.c.bf16 %v3275_v34, %v3274_v58  ;;  %v1029_v25 = vld [vmem:[#allocation3 + $0x70] sm:$0xff] }
 0x11a   : > { %1439 = vst.msk [vmem:[#allocation3 + $0x10] sm:$0xff] %vm380_vm1, %v1407_v18  ;;  %v1405_v5 = vadd.f32 %v1373_v33, %v1246_v63  ;;  %1083 = vst.msk [vmem:[#allocation3 + $0x20] sm:$0xff] %vm380_vm1, %v1051_v28  ;;  %v1054_v55 = vadd.f32 %v4613_v35, %v1022_v23  ;;  %v2941_v63 = vpack.c.bf16 %v2917_v12, %v2916_v43  ;;  %v2922_v33 = vld [vmem:[#allocation2 + $0x121] sm:$0xff]  ;;  %v2927_v34 = vld [vmem:[#allocation2 + $0x159] sm:$0xff] }
 0x11b   : > { %v1376_v48 = vld [vmem:[#allocation3 + $0x18] sm:$0xff]  ;;  %v907_v19 = vpop.f32.mrf.mxu1  ;;  %v4647_v62 = vpop.f32.mrf.mxu0 }
 0x11c   : > { %1437 = vst.msk [vmem:[#allocation3] sm:$0xff] %vm380_vm1, %v1405_v5  ;;  %v1408_v10 = vadd.f32 %v4643_v53, %v1376_v48  ;;  %1086 = vst.msk [vmem:[#allocation3 + $0x38] sm:$0xff] %vm380_vm1, %v1054_v55  ;;  %v1052_v61 = vadd.f32 %v1020_v56, %v907_v19  ;;  %v3277_v53 = vld [vmem:[#allocation2 + $0xfa] sm:$0xff]  ;;  %v1030_v48 = vld [vmem:[#allocation3 + $0x78] sm:$0xff] }
 0x11d   : > { %v1374_v3 = vld [vmem:[#allocation3 + $0x8] sm:$0xff]  ;;  %v4616_v6 = vpop.f32.mrf.mxu1  ;;  %4819 = vmatmul.mubr.msk.bf16.gmra.mxu1 %vm380_vm1, %v2939_v36  ;;  %v1265_v47 = vpop.f32.mrf.mxu0  ;;  %v3300_v52 = vpack.c.bf16 %v3277_v53, %v3276_v39  ;;  %v1027_v36 = vld [vmem:[#allocation3 + $0x60] sm:$0xff]  ;;  %v2925_v58 = vld [vmem:[#allocation2 + $0x141] sm:$0xff] }
 0x11e   : > { %1440 = vst.msk [vmem:[#allocation3 + $0x18] sm:$0xff] %vm380_vm1, %v1408_v10  ;;  %v1406_v30 = vadd.f32 %v1374_v3, %v1249_v13  ;;  %1084 = vst.msk [vmem:[#allocation3 + $0x28] sm:$0xff] %vm380_vm1, %v1052_v61  ;;  %v1057_v37 = vadd.f32 %v4616_v6, %v1025_v38  ;;  %4822 = vmatprep.mubr.msk.bf16.mxu1 %vm380_vm1, %v2940_v44  ;;  %v3278_v44 = vld [vmem:[#allocation2 + $0x10a] sm:$0xff]  ;;  %v3279_v56 = vld [vmem:[#allocation2 + $0x112] sm:$0xff] }
 0x11f   : > { %v1379_v16 = vld [vmem:[#allocation3 + $0x30] sm:$0xff]  ;;  %v920_v8 = vpop.f32.mrf.mxu1  ;;  %v4650_v21 = vpop.f32.mrf.mxu0  ;;  %4853 = vmatmul.mubr.msk.bf16.gmra.mxu0 %vm380_vm1, %v3297_v9  ;;  %v2944_v9 = vpack.c.bf16 %v2923_v42, %v2922_v33  ;;  %v3281_v6 = vld [vmem:[#allocation2 + $0x12a] sm:$0xff]  ;;  %v3301_v12 = vpack.c.bf16 %v3279_v56, %v3278_v44 }
 0x120   : > { %1438 = vst.msk [vmem:[#allocation3 + $0x8] sm:$0xff] %vm380_vm1, %v1406_v30  ;;  %v1411_v20 = vadd.f32 %v4646_v32, %v1379_v16  ;;  %1089 = vst.msk [vmem:[#allocation3 + $0x50] sm:$0xff] %vm380_vm1, %v1057_v37  ;;  %v1055_v49 = vadd.f32 %v1023_v50, %v920_v8  ;;  %4856 = vmatprep.mubr.msk.bf16.mxu0 %vm380_vm1, %v3298_v40  ;;  %v2920_v32 = vld [vmem:[#allocation2 + $0x109] sm:$0xff]  ;;  %v1028_v30 = vld [vmem:[#allocation3 + $0x68] sm:$0xff] }
 0x121   : > { %v1377_v29 = vld [vmem:[#allocation3 + $0x20] sm:$0xff]  ;;  %v4617_v59 = vpop.f32.mrf.mxu1  ;;  %v1278_v22 = vpop.f32.mrf.mxu0  ;;  %v2943_v19 = vpack.c.bf16 %v2921_v11, %v2920_v32  ;;  %v3280_v3 = vld [vmem:[#allocation2 + $0x122] sm:$0xff] }
 0x122   : > { %1443 = vst.msk [vmem:[#allocation3 + $0x30] sm:$0xff] %vm380_vm1, %v1411_v20  ;;  %v1409_v46 = vadd.f32 %v1377_v29, %v1262_v2  ;;  %1087 = vst.msk [vmem:[#allocation3 + $0x40] sm:$0xff] %vm380_vm1, %v1055_v49  ;;  %v1058_v24 = vadd.f32 %v4617_v59, %v1026_v60  ;;  %v1033_v8 = vld [vmem:[#allocation3 + $0x90] sm:$0xff]  ;;  %v3302_v50 = vpack.c.bf16 %v3281_v6, %v3280_v3  ;;  %v2926_v29 = vld [vmem:[#allocation2 + $0x151] sm:$0xff] }
 0x123   : > { %v1380_v4 = vld [vmem:[#allocation3 + $0x38] sm:$0xff]  ;;  %v923_v0 = vpop.f32.mrf.mxu1  ;;  %v4651_v14 = vpop.f32.mrf.mxu0  ;;  %v2929_v44 = vld [vmem:[#allocation2 + $0x171] sm:$0xff] }
 0x124   : > { %1441 = vst.msk [vmem:[#allocation3 + $0x20] sm:$0xff] %vm380_vm1, %v1409_v46  ;;  %v1412_v1 = vadd.f32 %v4647_v62, %v1380_v4  ;;  %1090 = vst.msk [vmem:[#allocation3 + $0x58] sm:$0xff] %vm380_vm1, %v1058_v24  ;;  %v1056_v13 = vadd.f32 %v1024_v7, %v923_v0  ;;  %v1034_v4 = vld [vmem:[#allocation3 + $0x98] sm:$0xff] }
 0x125   : > { %v1378_v57 = vld [vmem:[#allocation3 + $0x28] sm:$0xff]  ;;  %v4620_v17 = vpop.f32.mrf.mxu1  ;;  %4823 = vmatmul.mubr.msk.bf16.gmra.mxu1 %vm380_vm1, %v2941_v63  ;;  %v1281_v28 = vpop.f32.mrf.mxu0  ;;  %v1031_v63 = vld [vmem:[#allocation3 + $0x80] sm:$0xff]  ;;  %v3283_v7 = vld [vmem:[#allocation2 + $0x142] sm:$0xff] }
 0x126   : > { %1444 = vst.msk [vmem:[#allocation3 + $0x38] sm:$0xff] %vm380_vm1, %v1412_v1  ;;  %v1410_v26 = vadd.f32 %v1378_v57, %v1265_v47  ;;  %1088 = vst.msk [vmem:[#allocation3 + $0x48] sm:$0xff] %vm380_vm1, %v1056_v13  ;;  %v1061_v18 = vadd.f32 %v4620_v17, %v1029_v25  ;;  %4826 = vmatprep.mubr.msk.bf16.mxu1 %vm380_vm1, %v2942_v27  ;;  %v3282_v27 = vld [vmem:[#allocation2 + $0x13a] sm:$0xff]  ;;  %v3284_v57 = vld [vmem:[#allocation2 + $0x152] sm:$0xff] }
 0x127   : > { %v1383_v35 = vld [vmem:[#allocation3 + $0x50] sm:$0xff]  ;;  %v936_v23 = vpop.f32.mrf.mxu1  ;;  %v4654_v2 = vpop.f32.mrf.mxu0  ;;  %4857 = vmatmul.mubr.msk.bf16.gmra.mxu0 %vm380_vm1, %v3299_v41  ;;  %v2946_v41 = vpack.c.bf16 %v2927_v34, %v2926_v29  ;;  %v3303_v11 = vpack.c.bf16 %v3283_v7, %v3282_v27  ;;  %v2931_v56 = vld [vmem:[#allocation2 + $0x189] sm:$0xff] }
 0x128   : > { %1442 = vst.msk [vmem:[#allocation3 + $0x28] sm:$0xff] %vm380_vm1, %v1410_v26  ;;  %v1415_v5 = vadd.f32 %v4650_v21, %v1383_v35  ;;  %1093 = vst.msk [vmem:[#allocation3 + $0x70] sm:$0xff] %vm380_vm1, %v1061_v18  ;;  %v1059_v55 = vadd.f32 %v1027_v36, %v936_v23  ;;  %4860 = vmatprep.mubr.msk.bf16.mxu0 %vm380_vm1, %v3300_v52  ;;  %v2924_v21 = vld [vmem:[#allocation2 + $0x139] sm:$0xff]  ;;  %v1039_v27 = vld [vmem:[#allocation3 + $0xc0] sm:$0xff] }
 0x129   : > { %v1381_v45 = vld [vmem:[#allocation3 + $0x40] sm:$0xff]  ;;  %v4621_v51 = vpop.f32.mrf.mxu1  ;;  %v1294_v62 = vpop.f32.mrf.mxu0  ;;  %v2945_v0 = vpack.c.bf16 %v2925_v58, %v2924_v21  ;;  %v3285_v17 = vld [vmem:[#allocation2 + $0x15a] sm:$0xff] }
 0x12a   : > { %1447 = vst.msk [vmem:[#allocation3 + $0x50] sm:$0xff] %vm380_vm1, %v1415_v5  ;;  %v1413_v10 = vadd.f32 %v1381_v45, %v1278_v22  ;;  %1091 = vst.msk [vmem:[#allocation3 + $0x60] sm:$0xff] %vm380_vm1, %v1059_v55  ;;  %v1062_v61 = vadd.f32 %v4621_v51, %v1030_v48  ;;  %v1032_v26 = vld [vmem:[#allocation3 + $0x88] sm:$0xff]  ;;  %v1037_v23 = vld [vmem:[#allocation3 + $0xb0] sm:$0xff]  ;;  %v3304_v36 = vpack.c.bf16 %v3285_v17, %v3284_v57 }
 0x12b   : > { %v1384_v38 = vld [vmem:[#allocation3 + $0x58] sm:$0xff]  ;;  %v939_v40 = vpop.f32.mrf.mxu1  ;;  %v4655_v43 = vpop.f32.mrf.mxu0  ;;  %v1041_v29 = vld [vmem:[#allocation3 + $0xd0] sm:$0xff] }
 0x12c   : > { %1445 = vst.msk [vmem:[#allocation3 + $0x40] sm:$0xff] %vm380_vm1, %v1413_v10  ;;  %v1416_v37 = vadd.f32 %v4651_v14, %v1384_v38  ;;  %1094 = vst.msk [vmem:[#allocation3 + $0x78] sm:$0xff] %vm380_vm1, %v1062_v61  ;;  %v1060_v47 = vadd.f32 %v1028_v30, %v939_v40  ;;  %v2930_v45 = vld [vmem:[#allocation2 + $0x181] sm:$0xff]  ;;  %v3287_v30 = vld [vmem:[#allocation2 + $0x172] sm:$0xff] }
 0x12d   : > { %v1382_v31 = vld [vmem:[#allocation3 + $0x48] sm:$0xff]  ;;  %v4624_v16 = vpop.f32.mrf.mxu1  ;;  %4827 = vmatmul.mubr.msk.bf16.gmra.mxu1 %vm380_vm1, %v2943_v19  ;;  %v1297_v49 = vpop.f32.mrf.mxu0  ;;  %v1035_v19 = vld [vmem:[#allocation3 + $0xa0] sm:$0xff]  ;;  %v1038_v38 = vld [vmem:[#allocation3 + $0xb8] sm:$0xff] }
 0x12e   : > { %1448 = vst.msk [vmem:[#allocation3 + $0x58] sm:$0xff] %vm380_vm1, %v1416_v37  ;;  %v1414_v15 = vadd.f32 %v1382_v31, %v1281_v28  ;;  %1092 = vst.msk [vmem:[#allocation3 + $0x68] sm:$0xff] %vm380_vm1, %v1060_v47  ;;  %v1065_v20 = vadd.f32 %v4624_v16, %v1033_v8  ;;  %4830 = vmatprep.mubr.msk.bf16.mxu1 %vm380_vm1, %v2944_v9  ;;  %v3286_v9 = vld [vmem:[#allocation2 + $0x16a] sm:$0xff]  ;;  %v1036_v8 = vld [vmem:[#allocation3 + $0xa8] sm:$0xff] }
 0x12f   : > { %v1387_v59 = vld [vmem:[#allocation3 + $0x70] sm:$0xff]  ;;  %v952_v60 = vpop.f32.mrf.mxu1  ;;  %v4658_v22 = vpop.f32.mrf.mxu0  ;;  %4861 = vmatmul.mubr.msk.bf16.gmra.mxu0 %vm380_vm1, %v3301_v12  ;;  %v2948_v12 = vpack.c.bf16 %v2931_v56, %v2930_v45 }
 0x130   : > { %1446 = vst.msk [vmem:[#allocation3 + $0x48] sm:$0xff] %vm380_vm1, %v1414_v15  ;;  %v1419_v46 = vadd.f32 %v4654_v2, %v1387_v59  ;;  %1097 = vst.msk [vmem:[#allocation3 + $0x90] sm:$0xff] %vm380_vm1, %v1065_v20  ;;  %v1063_v24 = vadd.f32 %v1031_v63, %v952_v60  ;;  %4864 = vmatprep.mubr.msk.bf16.mxu0 %vm380_vm1, %v3302_v50  ;;  %v2928_v2 = vld [vmem:[#allocation2 + $0x169] sm:$0xff]  ;;  %v2932_v34 = vld [vmem:[#allocation2 + $0x199] sm:$0xff] }
 0x131   : > { %v1385_v39 = vld [vmem:[#allocation3 + $0x60] sm:$0xff]  ;;  %v4625_v53 = vpop.f32.mrf.mxu1  ;;  %v1310_v14 = vpop.f32.mrf.mxu0  ;;  %v2947_v40 = vpack.c.bf16 %v2929_v44, %v2928_v2 }
 0x132   : > { %1451 = vst.msk [vmem:[#allocation3 + $0x70] sm:$0xff] %vm380_vm1, %v1419_v46  ;;  %v1417_v1 = vadd.f32 %v1385_v39, %v1294_v62  ;;  %1095 = vst.msk [vmem:[#allocation3 + $0x80] sm:$0xff] %vm380_vm1, %v1063_v24  ;;  %v1066_v13 = vadd.f32 %v4625_v53, %v1034_v4  ;;  %v2933_v46 = vld [vmem:[#allocation2 + $0x1a1] sm:$0xff]  ;;  %v1043_v44 = vld [vmem:[#allocation3 + $0xe0] sm:$0xff] }
 0x133   : > { %v1388_v25 = vld [vmem:[#allocation3 + $0x78] sm:$0xff]  ;;  %v955_v52 = vpop.f32.mrf.mxu1  ;;  %v4659_v32 = vpop.f32.mrf.mxu0 }
 0x134   : > { %1449 = vst.msk [vmem:[#allocation3 + $0x60] sm:$0xff] %vm380_vm1, %v1417_v1  ;;  %v1420_v18 = vadd.f32 %v4655_v43, %v1388_v25  ;;  %1098 = vst.msk [vmem:[#allocation3 + $0x98] sm:$0xff] %vm380_vm1, %v1066_v13  ;;  %v1064_v28 = vadd.f32 %v1032_v26, %v955_v52  ;;  %v1042_v13 = vld [vmem:[#allocation3 + $0xd8] sm:$0xff] }
 0x135   : > { %v1386_v33 = vld [vmem:[#allocation3 + $0x68] sm:$0xff]  ;;  %v4628_v35 = vpop.f32.mrf.mxu1  ;;  %4831 = vmatmul.mubr.msk.bf16.gmra.mxu1 %vm380_vm1, %v2945_v0  ;;  %v1313_v55 = vpop.f32.mrf.mxu0 }
 0x136   : > { %1452 = vst.msk [vmem:[#allocation3 + $0x78] sm:$0xff] %vm380_vm1, %v1420_v18  ;;  %v1418_v42 = vadd.f32 %v1386_v33, %v1297_v49  ;;  %1096 = vst.msk [vmem:[#allocation3 + $0x88] sm:$0xff] %vm380_vm1, %v1064_v28  ;;  %v1069_v5 = vadd.f32 %v4628_v35, %v1037_v23  ;;  %4834 = vmatprep.mubr.msk.bf16.mxu1 %vm380_vm1, %v2946_v41  ;;  %v3305_v49 = vpack.c.bf16 %v3287_v30, %v3286_v9  ;;  %v3290_v0 = vld [vmem:[#allocation2 + $0x19a] sm:$0xff]  ;;  %v3291_v41 = vld [vmem:[#allocation2 + $0x1a2] sm:$0xff] }
 0x137   : > { %v1391_v51 = vld [vmem:[#allocation3 + $0x90] sm:$0xff]  ;;  %v968_v48 = vpop.f32.mrf.mxu1  ;;  %v4662_v62 = vpop.f32.mrf.mxu0  ;;  %4865 = vmatmul.mubr.msk.bf16.gmra.mxu0 %vm380_vm1, %v3303_v11  ;;  %v1040_v18 = vld [vmem:[#allocation3 + $0xc8] sm:$0xff]  ;;  %v3307_v33 = vpack.c.bf16 %v3291_v41, %v3290_v0 }
 0x138   : > { %1450 = vst.msk [vmem:[#allocation3 + $0x68] sm:$0xff] %vm380_vm1, %v1418_v42  ;;  %v1423_v10 = vadd.f32 %v4658_v22, %v1391_v51  ;;  %1101 = vst.msk [vmem:[#allocation3 + $0xb0] sm:$0xff] %vm380_vm1, %v1069_v5  ;;  %v1067_v61 = vadd.f32 %v1035_v19, %v968_v48  ;;  %4868 = vmatprep.mubr.msk.bf16.mxu0 %vm380_vm1, %v3304_v36  ;;  %v1045_v23 = vld [vmem:[#allocation3 + $0xf0] sm:$0xff] }
 0x139   : > { %v1389_v3 = vld [vmem:[#allocation3 + $0x80] sm:$0xff]  ;;  %v4629_v6 = vpop.f32.mrf.mxu1  ;;  %v1326_v43 = vpop.f32.mrf.mxu0 }
 0x13a   : > { %1455 = vst.msk [vmem:[#allocation3 + $0x90] sm:$0xff] %vm380_vm1, %v1423_v10  ;;  %v1421_v37 = vadd.f32 %v1389_v3, %v1310_v14  ;;  %1099 = vst.msk [vmem:[#allocation3 + $0xa0] sm:$0xff] %vm380_vm1, %v1067_v61  ;;  %v1070_v47 = vadd.f32 %v4629_v6, %v1038_v38  ;;  %v2949_v14 = vpack.c.bf16 %v2933_v46, %v2932_v34  ;;  %v1046_v10 = vld [vmem:[#allocation3 + $0xf8] sm:$0xff]  ;;  %v1044_v38 = vld [vmem:[#allocation3 + $0xe8] sm:$0xff] }
 0x13b   : > { %v1392_v31 = vld [vmem:[#allocation3 + $0x98] sm:$0xff]  ;;  %v971_v16 = vpop.f32.mrf.mxu1  ;;  %v4663_v20 = vpop.f32.mrf.mxu0 }
 0x13c   : > { %1453 = vst.msk [vmem:[#allocation3 + $0x80] sm:$0xff] %vm380_vm1, %v1421_v37  ;;  %v1424_v50 = vadd.f32 %v4659_v32, %v1392_v31  ;;  %1102 = vst.msk [vmem:[#allocation3 + $0xb8] sm:$0xff] %vm380_vm1, %v1070_v47  ;;  %v1068_v15 = vadd.f32 %v1036_v8, %v971_v16 }
 0x13d   : > { %v1390_v21 = vld [vmem:[#allocation3 + $0x88] sm:$0xff]  ;;  %v4632_v58 = vpop.f32.mrf.mxu1  ;;  %4835 = vmatmul.mubr.msk.bf16.gmra.mxu1 %vm380_vm1, %v2947_v40  ;;  %v1329_v63 = vpop.f32.mrf.mxu0 }
 0x13e   : > { %1456 = vst.msk [vmem:[#allocation3 + $0x98] sm:$0xff] %vm380_vm1, %v1424_v50  ;;  %v1422_v59 = vadd.f32 %v1390_v21, %v1313_v55  ;;  %1100 = vst.msk [vmem:[#allocation3 + $0xa8] sm:$0xff] %vm380_vm1, %v1068_v15  ;;  %v1073_v60 = vadd.f32 %v4632_v58, %v1041_v29  ;;  %4838 = vmatprep.mubr.msk.bf16.mxu1 %vm380_vm1, %v2948_v12  ;;  %v1733_v12 = vld [vmem:[#allocation3 + $0x10] sm:$0xff] }
 0x13f   : > { %v1395_v24 = vld [vmem:[#allocation3 + $0xb0] sm:$0xff]  ;;  %v984_v22 = vpop.f32.mrf.mxu1  ;;  %v4666_v4 = vpop.f32.mrf.mxu0  ;;  %4869 = vmatmul.mubr.msk.bf16.gmra.mxu0 %vm380_vm1, %v3305_v49 }
 0x140   : > { %1454 = vst.msk [vmem:[#allocation3 + $0x88] sm:$0xff] %vm380_vm1, %v1422_v59  ;;  %v1427_v39 = vadd.f32 %v4662_v62, %v1395_v24  ;;  %1105 = vst.msk [vmem:[#allocation3 + $0xd0] sm:$0xff] %vm380_vm1, %v1073_v60  ;;  %v1071_v53 = vadd.f32 %v1039_v27, %v984_v22  ;;  %4872 = vmatprep.mubr.msk.bf16.mxu0 %vm380_vm1, %v5487_v54  ;;  %v1734_v60 = vld [vmem:[#allocation3 + $0x18] sm:$0xff]  ;;  %v1732_v27 = vld [vmem:[#allocation3 + $0x8] sm:$0xff] }
 0x141   : > { %v1393_v7 = vld [vmem:[#allocation3 + $0xa0] sm:$0xff]  ;;  %v4633_v1 = vpop.f32.mrf.mxu1  ;;  %v1342_v25 = vpop.f32.mrf.mxu0 }
 0x142   : > { %1459 = vst.msk [vmem:[#allocation3 + $0xb0] sm:$0xff] %vm380_vm1, %v1427_v39  ;;  %v1425_v57 = vadd.f32 %v1393_v7, %v1326_v43  ;;  %1103 = vst.msk [vmem:[#allocation3 + $0xc0] sm:$0xff] %vm380_vm1, %v1071_v53  ;;  %v1074_v17 = vadd.f32 %v4633_v1, %v1042_v13  ;;  %v1737_v1 = vld [vmem:[#allocation3 + $0x30] sm:$0xff] }
 0x143   : > { %v1396_v52 = vld [vmem:[#allocation3 + $0xb8] sm:$0xff]  ;;  %v987_v26 = vpop.f32.mrf.mxu1  ;;  %v4667_v11 = vpop.f32.mrf.mxu0 }
 0x144   : > { %1457 = vst.msk [vmem:[#allocation3 + $0xa0] sm:$0xff] %vm380_vm1, %v1425_v57  ;;  %v1428_v28 = vadd.f32 %v4663_v20, %v1396_v52  ;;  %1106 = vst.msk [vmem:[#allocation3 + $0xd8] sm:$0xff] %vm380_vm1, %v1074_v17  ;;  %v1072_v32 = vadd.f32 %v1040_v18, %v987_v26  ;;  %v1731_v20 = vld [vmem:[#allocation3] sm:$0xff] }
 0x145   : > { %v1394_v54 = vld [vmem:[#allocation3 + $0xa8] sm:$0xff]  ;;  %v4636_v35 = vpop.f32.mrf.mxu1  ;;  %4839 = vmatmul.mubr.msk.bf16.gmra.mxu1 %vm380_vm1, %v2949_v14  ;;  %v1345_v5 = vpop.f32.mrf.mxu0 }
 0x146   : > { %1460 = vst.msk [vmem:[#allocation3 + $0xb8] sm:$0xff] %vm380_vm1, %v1428_v28  ;;  %v1426_v36 = vadd.f32 %v1394_v54, %v1329_v63  ;;  %1104 = vst.msk [vmem:[#allocation3 + $0xc8] sm:$0xff] %vm380_vm1, %v1072_v32  ;;  %v1077_v42 = vadd.f32 %v4636_v35, %v1045_v23 }
 0x147   : > { %v1399_v55 = vld [vmem:[#allocation3 + $0xd0] sm:$0xff]  ;;  %v1000_v2 = vpop.f32.mrf.mxu1  ;;  %v4670_v48 = vpop.f32.mrf.mxu0  ;;  %4873 = vmatmul.mubr.msk.bf16.gmra.mxu0 %vm380_vm1, %v3307_v33 }
 0x148   : > { %1458 = vst.msk [vmem:[#allocation3 + $0xa8] sm:$0xff] %vm380_vm1, %v1426_v36  ;;  %v1431_v45 = vadd.f32 %v4666_v4, %v1399_v55  ;;  %1109 = vst.msk [vmem:[#allocation3 + $0xf0] sm:$0xff] %vm380_vm1, %v1077_v42  ;;  %v1075_v51 = vadd.f32 %v1043_v44, %v1000_v2  ;;  %v1736_v42 = vld [vmem:[#allocation3 + $0x28] sm:$0xff] }
 0x149   : > { %v1397_v19 = vld [vmem:[#allocation3 + $0xc0] sm:$0xff]  ;;  %v4637_v56 = vpop.f32.mrf.mxu1  ;;  %v1358_v9 = vpop.f32.mrf.mxu0 }
 0x14a   : > { %1463 = vst.msk [vmem:[#allocation3 + $0xd0] sm:$0xff] %vm380_vm1, %v1431_v45  ;;  %v1429_v61 = vadd.f32 %v1397_v19, %v1342_v25  ;;  %1107 = vst.msk [vmem:[#allocation3 + $0xe0] sm:$0xff] %vm380_vm1, %v1075_v51  ;;  %v1078_v62 = vadd.f32 %v4637_v56, %v1046_v10  ;;  %v1735_v25 = vld [vmem:[#allocation3 + $0x20] sm:$0xff]  ;;  %v1741_v51 = vld [vmem:[#allocation3 + $0x50] sm:$0xff] }
 0x14b   : > { %v1400_v3 = vld [vmem:[#allocation3 + $0xd8] sm:$0xff]  ;;  %v1003_v6 = vpop.f32.mrf.mxu1  ;;  %v4671_v37 = vpop.f32.mrf.mxu0 }
 0x14c   : > { %1461 = vst.msk [vmem:[#allocation3 + $0xc0] sm:$0xff] %vm380_vm1, %v1429_v61  ;;  %v1432_v40 = vadd.f32 %v4667_v11, %v1400_v3  ;;  %1110 = vst.msk [vmem:[#allocation3 + $0xf8] sm:$0xff] %vm380_vm1, %v1078_v62  ;;  %v1076_v30 = vadd.f32 %v1044_v38, %v1003_v6  ;;  %v1738_v11 = vld [vmem:[#allocation3 + $0x38] sm:$0xff]  ;;  %v1739_v62 = vld [vmem:[#allocation3 + $0x40] sm:$0xff] }
 0x14d   : > { %v1398_v47 = vld [vmem:[#allocation3 + $0xc8] sm:$0xff]  ;;  %v4676_v43 = vpop.f32.mrf.mxu1  ;;  %v1361_v8 = vpop.f32.mrf.mxu0 }
 0x14e   : > { %1464 = vst.msk [vmem:[#allocation3 + $0xd8] sm:$0xff] %vm380_vm1, %v1432_v40  ;;  %v1430_v31 = vadd.f32 %v1398_v47, %v1345_v5  ;;  %1108 = vst.msk [vmem:[#allocation3 + $0xe8] sm:$0xff] %vm380_vm1, %v1076_v30  ;;  %v1765_v16 = vadd.f32 %v4676_v43, %v1733_v12  ;;  %v1742_v30 = vld [vmem:[#allocation3 + $0x58] sm:$0xff] }
 0x14f   : > { %v1403_v50 = vld [vmem:[#allocation3 + $0xf0] sm:$0xff]  ;;  %v1604_v15 = vpop.f32.mrf.mxu1  ;;  %v4710_v58 = vpop.f32.mrf.mxu0 }
 0x150   : > { %1462 = vst.msk [vmem:[#allocation3 + $0xc8] sm:$0xff] %vm380_vm1, %v1430_v31  ;;  %v1435_v49 = vadd.f32 %v4670_v48, %v1403_v50  ;;  %1797 = vst.msk [vmem:[#allocation3 + $0x10] sm:$0xff] %vm380_vm1, %v1765_v16  ;;  %v1763_v21 = vadd.f32 %v1731_v20, %v1604_v15  ;;  %v1740_v16 = vld [vmem:[#allocation3 + $0x48] sm:$0xff] }
 0x151   : > { %v1401_v29 = vld [vmem:[#allocation3 + $0xe0] sm:$0xff]  ;;  %v4677_v59 = vpop.f32.mrf.mxu1  ;;  %v1962_v46 = vpop.f32.mrf.mxu0 }
 0x152   : > { %1467 = vst.msk [vmem:[#allocation3 + $0xf0] sm:$0xff] %vm380_vm1, %v1435_v49  ;;  %v1433_v63 = vadd.f32 %v1401_v29, %v1358_v9  ;;  %1795 = vst.msk [vmem:[#allocation3] sm:$0xff] %vm380_vm1, %v1763_v21  ;;  %v1766_v34 = vadd.f32 %v4677_v59, %v1734_v60  ;;  %v1745_v21 = vld [vmem:[#allocation3 + $0x70] sm:$0xff] }
 0x153   : > { %v1404_v24 = vld [vmem:[#allocation3 + $0xf8] sm:$0xff]  ;;  %v1607_v22 = vpop.f32.mrf.mxu1  ;;  %v4711_v4 = vpop.f32.mrf.mxu0 }
 0x154   : > { %1465 = vst.msk [vmem:[#allocation3 + $0xe0] sm:$0xff] %vm380_vm1, %v1433_v63  ;;  %v1436_v39 = vadd.f32 %v4671_v37, %v1404_v24  ;;  %1798 = vst.msk [vmem:[#allocation3 + $0x18] sm:$0xff] %vm380_vm1, %v1766_v34  ;;  %v1764_v53 = vadd.f32 %v1732_v27, %v1607_v22  ;;  %v1743_v34 = vld [vmem:[#allocation3 + $0x60] sm:$0xff] }
 0x155   : > { %v1402_v0 = vld [vmem:[#allocation3 + $0xe8] sm:$0xff]  ;;  %v4680_v7 = vpop.f32.mrf.mxu1  ;;  %v1965_v41 = vpop.f32.mrf.mxu0 }
 0x156   : > { %1468 = vst.msk [vmem:[#allocation3 + $0xf8] sm:$0xff] %vm380_vm1, %v1436_v39  ;;  %v1434_v13 = vadd.f32 %v1402_v0, %v1361_v8  ;;  %1796 = vst.msk [vmem:[#allocation3 + $0x8] sm:$0xff] %vm380_vm1, %v1764_v53  ;;  %v1769_v14 = vadd.f32 %v4680_v7, %v1737_v1  ;;  %v1746_v53 = vld [vmem:[#allocation3 + $0x78] sm:$0xff] }
 0x157   : > { %v2091_v57 = vld [vmem:[#allocation3 + $0x10] sm:$0xff]  ;;  %v1620_v17 = vpop.f32.mrf.mxu1  ;;  %v4714_v18 = vpop.f32.mrf.mxu0 }
 0x158   : > { %1466 = vst.msk [vmem:[#allocation3 + $0xe8] sm:$0xff] %vm380_vm1, %v1434_v13  ;;  %v2123_v52 = vadd.f32 %v4710_v58, %v2091_v57  ;;  %1801 = vst.msk [vmem:[#allocation3 + $0x30] sm:$0xff] %vm380_vm1, %v1769_v14  ;;  %v1767_v26 = vadd.f32 %v1735_v25, %v1620_v17  ;;  %v1744_v14 = vld [vmem:[#allocation3 + $0x68] sm:$0xff] }
 0x159   : > { %v2089_v28 = vld [vmem:[#allocation3] sm:$0xff]  ;;  %v4681_v32 = vpop.f32.mrf.mxu1  ;;  %v1978_v35 = vpop.f32.mrf.mxu0 }
 0x15a   : > { %2155 = vst.msk [vmem:[#allocation3 + $0x10] sm:$0xff] %vm380_vm1, %v2123_v52  ;;  %v2121_v33 = vadd.f32 %v2089_v28, %v1962_v46  ;;  %1799 = vst.msk [vmem:[#allocation3 + $0x20] sm:$0xff] %vm380_vm1, %v1767_v26  ;;  %v1770_v54 = vadd.f32 %v4681_v32, %v1738_v11  ;;  %v1749_v26 = vld [vmem:[#allocation3 + $0x90] sm:$0xff] }
 0x15b   : > { %v2092_v23 = vld [vmem:[#allocation3 + $0x18] sm:$0xff]  ;;  %v1623_v36 = vpop.f32.mrf.mxu1  ;;  %v4715_v2 = vpop.f32.mrf.mxu0 }
 0x15c   : > { %2153 = vst.msk [vmem:[#allocation3] sm:$0xff] %vm380_vm1, %v2121_v33  ;;  %v2124_v5 = vadd.f32 %v4711_v4, %v2092_v23  ;;  %1802 = vst.msk [vmem:[#allocation3 + $0x38] sm:$0xff] %vm380_vm1, %v1770_v54  ;;  %v1768_v55 = vadd.f32 %v1736_v42, %v1623_v36  ;;  %v1747_v54 = vld [vmem:[#allocation3 + $0x80] sm:$0xff] }
 0x15d   : > { %v2090_v44 = vld [vmem:[#allocation3 + $0x8] sm:$0xff]  ;;  %v4684_v45 = vpop.f32.mrf.mxu1  ;;  %v1981_v56 = vpop.f32.mrf.mxu0 }
 0x15e   : > { %2156 = vst.msk [vmem:[#allocation3 + $0x18] sm:$0xff] %vm380_vm1, %v2124_v5  ;;  %v2122_v48 = vadd.f32 %v2090_v44, %v1965_v41  ;;  %1800 = vst.msk [vmem:[#allocation3 + $0x28] sm:$0xff] %vm380_vm1, %v1768_v55  ;;  %v1773_v19 = vadd.f32 %v4684_v45, %v1741_v51  ;;  %v1750_v55 = vld [vmem:[#allocation3 + $0x98] sm:$0xff] }
 0x15f   : > { %v2095_v10 = vld [vmem:[#allocation3 + $0x30] sm:$0xff]  ;;  %v1636_v61 = vpop.f32.mrf.mxu1  ;;  %v4718_v6 = vpop.f32.mrf.mxu0 }
 0x160   : > { %2154 = vst.msk [vmem:[#allocation3 + $0x8] sm:$0xff] %vm380_vm1, %v2122_v48  ;;  %v2127_v9 = vadd.f32 %v4714_v18, %v2095_v10  ;;  %1805 = vst.msk [vmem:[#allocation3 + $0x50] sm:$0xff] %vm380_vm1, %v1773_v19  ;;  %v1771_v3 = vadd.f32 %v1739_v62, %v1636_v61  ;;  %v1748_v19 = vld [vmem:[#allocation3 + $0x88] sm:$0xff] }
 0x161   : > { %v2093_v38 = vld [vmem:[#allocation3 + $0x20] sm:$0xff]  ;;  %v4685_v40 = vpop.f32.mrf.mxu1  ;;  %v1994_v43 = vpop.f32.mrf.mxu0 }
 0x162   : > { %2159 = vst.msk [vmem:[#allocation3 + $0x30] sm:$0xff] %vm380_vm1, %v2127_v9  ;;  %v2125_v37 = vadd.f32 %v2093_v38, %v1978_v35  ;;  %1803 = vst.msk [vmem:[#allocation3 + $0x40] sm:$0xff] %vm380_vm1, %v1771_v3  ;;  %v1774_v47 = vadd.f32 %v4685_v40, %v1742_v30  ;;  %v1753_v3 = vld [vmem:[#allocation3 + $0xb0] sm:$0xff] }
 0x163   : > { %v2096_v12 = vld [vmem:[#allocation3 + $0x38] sm:$0xff]  ;;  %v1639_v31 = vpop.f32.mrf.mxu1  ;;  %v4719_v15 = vpop.f32.mrf.mxu0 }
 0x164   : > { %2157 = vst.msk [vmem:[#allocation3 + $0x20] sm:$0xff] %vm380_vm1, %v2125_v37  ;;  %v2128_v8 = vadd.f32 %v4715_v2, %v2096_v12  ;;  %1806 = vst.msk [vmem:[#allocation3 + $0x58] sm:$0xff] %vm380_vm1, %v1774_v47  ;;  %v1772_v50 = vadd.f32 %v1740_v16, %v1639_v31  ;;  %v1751_v47 = vld [vmem:[#allocation3 + $0xa0] sm:$0xff] }
 0x165   : > { %v2094_v20 = vld [vmem:[#allocation3 + $0x28] sm:$0xff]  ;;  %v4688_v49 = vpop.f32.mrf.mxu1  ;;  %v1997_v59 = vpop.f32.mrf.mxu0 }
 0x166   : > { %2160 = vst.msk [vmem:[#allocation3 + $0x38] sm:$0xff] %vm380_vm1, %v2128_v8  ;;  %v2126_v58 = vadd.f32 %v2094_v20, %v1981_v56  ;;  %1804 = vst.msk [vmem:[#allocation3 + $0x48] sm:$0xff] %vm380_vm1, %v1772_v50  ;;  %v1777_v29 = vadd.f32 %v4688_v49, %v1745_v21  ;;  %v1754_v50 = vld [vmem:[#allocation3 + $0xb8] sm:$0xff] }
 0x167   : > { %v2099_v60 = vld [vmem:[#allocation3 + $0x50] sm:$0xff]  ;;  %v1652_v63 = vpop.f32.mrf.mxu1  ;;  %v4722_v22 = vpop.f32.mrf.mxu0 }
 0x168   : > { %2158 = vst.msk [vmem:[#allocation3 + $0x28] sm:$0xff] %vm380_vm1, %v2126_v58  ;;  %v2131_v46 = vadd.f32 %v4718_v6, %v2099_v60  ;;  %1809 = vst.msk [vmem:[#allocation3 + $0x70] sm:$0xff] %vm380_vm1, %v1777_v29  ;;  %v1775_v24 = vadd.f32 %v1743_v34, %v1652_v63  ;;  %v1752_v29 = vld [vmem:[#allocation3 + $0xa8] sm:$0xff] }
 0x169   : > { %v2097_v27 = vld [vmem:[#allocation3 + $0x40] sm:$0xff]  ;;  %v4689_v39 = vpop.f32.mrf.mxu1  ;;  %v2010_v7 = vpop.f32.mrf.mxu0 }
 0x16a   : > { %2163 = vst.msk [vmem:[#allocation3 + $0x50] sm:$0xff] %vm380_vm1, %v2131_v46  ;;  %v2129_v4 = vadd.f32 %v2097_v27, %v1994_v43  ;;  %1807 = vst.msk [vmem:[#allocation3 + $0x60] sm:$0xff] %vm380_vm1, %v1775_v24  ;;  %v1778_v0 = vadd.f32 %v4689_v39, %v1746_v53  ;;  %v1757_v24 = vld [vmem:[#allocation3 + $0xd0] sm:$0xff] }
 0x16b   : > { %v2100_v1 = vld [vmem:[#allocation3 + $0x58] sm:$0xff]  ;;  %v1655_v13 = vpop.f32.mrf.mxu1  ;;  %v4723_v17 = vpop.f32.mrf.mxu0 }
 0x16c   : > { %2161 = vst.msk [vmem:[#allocation3 + $0x40] sm:$0xff] %vm380_vm1, %v2129_v4  ;;  %v2132_v41 = vadd.f32 %v4719_v15, %v2100_v1  ;;  %1810 = vst.msk [vmem:[#allocation3 + $0x78] sm:$0xff] %vm380_vm1, %v1778_v0  ;;  %v1776_v57 = vadd.f32 %v1744_v14, %v1655_v13  ;;  %v1755_v0 = vld [vmem:[#allocation3 + $0xc0] sm:$0xff] }
 0x16d   : > { %v2098_v25 = vld [vmem:[#allocation3 + $0x48] sm:$0xff]  ;;  %v4692_v52 = vpop.f32.mrf.mxu1  ;;  %v2013_v32 = vpop.f32.mrf.mxu0 }
 0x16e   : > { %2164 = vst.msk [vmem:[#allocation3 + $0x58] sm:$0xff] %vm380_vm1, %v2132_v41  ;;  %v2130_v18 = vadd.f32 %v2098_v25, %v1997_v59  ;;  %1808 = vst.msk [vmem:[#allocation3 + $0x68] sm:$0xff] %vm380_vm1, %v1776_v57  ;;  %v1781_v28 = vadd.f32 %v4692_v52, %v1749_v26  ;;  %v1758_v57 = vld [vmem:[#allocation3 + $0xd8] sm:$0xff] }
 0x16f   : > { %v2103_v11 = vld [vmem:[#allocation3 + $0x70] sm:$0xff]  ;;  %v1668_v33 = vpop.f32.mrf.mxu1  ;;  %v4726_v36 = vpop.f32.mrf.mxu0 }
 0x170   : > { %2162 = vst.msk [vmem:[#allocation3 + $0x48] sm:$0xff] %vm380_vm1, %v2130_v18  ;;  %v2135_v35 = vadd.f32 %v4722_v22, %v2103_v11  ;;  %1813 = vst.msk [vmem:[#allocation3 + $0x90] sm:$0xff] %vm380_vm1, %v1781_v28  ;;  %v1779_v23 = vadd.f32 %v1747_v54, %v1668_v33  ;;  %v1756_v28 = vld [vmem:[#allocation3 + $0xc8] sm:$0xff] }
 0x171   : > { %v2101_v42 = vld [vmem:[#allocation3 + $0x60] sm:$0xff]  ;;  %v4693_v5 = vpop.f32.mrf.mxu1  ;;  %v2026_v45 = vpop.f32.mrf.mxu0 }
 0x172   : > { %2167 = vst.msk [vmem:[#allocation3 + $0x70] sm:$0xff] %vm380_vm1, %v2135_v35  ;;  %v2133_v2 = vadd.f32 %v2101_v42, %v2010_v7  ;;  %1811 = vst.msk [vmem:[#allocation3 + $0x80] sm:$0xff] %vm380_vm1, %v1779_v23  ;;  %v1782_v44 = vadd.f32 %v4693_v5, %v1750_v55  ;;  %v1761_v23 = vld [vmem:[#allocation3 + $0xf0] sm:$0xff] }
 0x173   : > { %v2104_v51 = vld [vmem:[#allocation3 + $0x78] sm:$0xff]  ;;  %v1671_v48 = vpop.f32.mrf.mxu1  ;;  %v4727_v61 = vpop.f32.mrf.mxu0 }
 0x174   : > { %2165 = vst.msk [vmem:[#allocation3 + $0x60] sm:$0xff] %vm380_vm1, %v2133_v2  ;;  %v2136_v56 = vadd.f32 %v4723_v17, %v2104_v51  ;;  %1814 = vst.msk [vmem:[#allocation3 + $0x98] sm:$0xff] %vm380_vm1, %v1782_v44  ;;  %v1780_v10 = vadd.f32 %v1748_v19, %v1671_v48  ;;  %v1759_v44 = vld [vmem:[#allocation3 + $0xe0] sm:$0xff] }
 0x175   : > { %v2102_v62 = vld [vmem:[#allocation3 + $0x68] sm:$0xff]  ;;  %v4696_v9 = vpop.f32.mrf.mxu1  ;;  %v2029_v40 = vpop.f32.mrf.mxu0 }
 0x176   : > { %2168 = vst.msk [vmem:[#allocation3 + $0x78] sm:$0xff] %vm380_vm1, %v2136_v56  ;;  %v2134_v6 = vadd.f32 %v2102_v62, %v2013_v32  ;;  %1812 = vst.msk [vmem:[#allocation3 + $0x88] sm:$0xff] %vm380_vm1, %v1780_v10  ;;  %v1785_v38 = vadd.f32 %v4696_v9, %v1753_v3  ;;  %v1762_v10 = vld [vmem:[#allocation3 + $0xf8] sm:$0xff] }
 0x177   : > { %v2107_v30 = vld [vmem:[#allocation3 + $0x90] sm:$0xff]  ;;  %v1684_v37 = vpop.f32.mrf.mxu1  ;;  %v4730_v31 = vpop.f32.mrf.mxu0 }
 0x178   : > { %2166 = vst.msk [vmem:[#allocation3 + $0x68] sm:$0xff] %vm380_vm1, %v2134_v6  ;;  %v2139_v43 = vadd.f32 %v4726_v36, %v2107_v30  ;;  %1817 = vst.msk [vmem:[#allocation3 + $0xb0] sm:$0xff] %vm380_vm1, %v1785_v38  ;;  %v1783_v12 = vadd.f32 %v1751_v47, %v1684_v37  ;;  %v1760_v38 = vld [vmem:[#allocation3 + $0xe8] sm:$0xff] }
 0x179   : > { %v2105_v16 = vld [vmem:[#allocation3 + $0x80] sm:$0xff]  ;;  %v4697_v8 = vpop.f32.mrf.mxu1  ;;  %v2042_v49 = vpop.f32.mrf.mxu0 }
 0x17a   : > { %2171 = vst.msk [vmem:[#allocation3 + $0x90] sm:$0xff] %vm380_vm1, %v2139_v43  ;;  %v2137_v15 = vadd.f32 %v2105_v16, %v2026_v45  ;;  %1815 = vst.msk [vmem:[#allocation3 + $0xa0] sm:$0xff] %vm380_vm1, %v1783_v12  ;;  %v1786_v20 = vadd.f32 %v4697_v8, %v1754_v50  ;;  %v2449_v12 = vld [vmem:[#allocation3 + $0x10] sm:$0xff] }
 0x17b   : > { %v2108_v21 = vld [vmem:[#allocation3 + $0x98] sm:$0xff]  ;;  %v1687_v58 = vpop.f32.mrf.mxu1  ;;  %v4731_v63 = vpop.f32.mrf.mxu0 }
 0x17c   : > { %2169 = vst.msk [vmem:[#allocation3 + $0x80] sm:$0xff] %vm380_vm1, %v2137_v15  ;;  %v2140_v59 = vadd.f32 %v4727_v61, %v2108_v21  ;;  %1818 = vst.msk [vmem:[#allocation3 + $0xb8] sm:$0xff] %vm380_vm1, %v1786_v20  ;;  %v1784_v60 = vadd.f32 %v1752_v29, %v1687_v58  ;;  %v2447_v20 = vld [vmem:[#allocation3] sm:$0xff] }
 0x17d   : > { %v2106_v34 = vld [vmem:[#allocation3 + $0x88] sm:$0xff]  ;;  %v4700_v46 = vpop.f32.mrf.mxu1  ;;  %v2045_v39 = vpop.f32.mrf.mxu0 }
 0x17e   : > { %2172 = vst.msk [vmem:[#allocation3 + $0x98] sm:$0xff] %vm380_vm1, %v2140_v59  ;;  %v2138_v22 = vadd.f32 %v2106_v34, %v2029_v40  ;;  %1816 = vst.msk [vmem:[#allocation3 + $0xa8] sm:$0xff] %vm380_vm1, %v1784_v60  ;;  %v1789_v27 = vadd.f32 %v4700_v46, %v1757_v24  ;;  %v2450_v60 = vld [vmem:[#allocation3 + $0x18] sm:$0xff] }
 0x17f   : > { %v2111_v53 = vld [vmem:[#allocation3 + $0xb0] sm:$0xff]  ;;  %v1700_v4 = vpop.f32.mrf.mxu1  ;;  %v4734_v13 = vpop.f32.mrf.mxu0 }
 0x180   : > { %2170 = vst.msk [vmem:[#allocation3 + $0x88] sm:$0xff] %vm380_vm1, %v2138_v22  ;;  %v2143_v7 = vadd.f32 %v4730_v31, %v2111_v53  ;;  %1821 = vst.msk [vmem:[#allocation3 + $0xd0] sm:$0xff] %vm380_vm1, %v1789_v27  ;;  %v1787_v1 = vadd.f32 %v1755_v0, %v1700_v4  ;;  %v2448_v27 = vld [vmem:[#allocation3 + $0x8] sm:$0xff] }
 0x181   : > { %v2109_v14 = vld [vmem:[#allocation3 + $0xa0] sm:$0xff]  ;;  %v4701_v41 = vpop.f32.mrf.mxu1  ;;  %v2058_v52 = vpop.f32.mrf.mxu0 }
 0x182   : > { %2175 = vst.msk [vmem:[#allocation3 + $0xb0] sm:$0xff] %vm380_vm1, %v2143_v7  ;;  %v2141_v17 = vadd.f32 %v2109_v14, %v2042_v49  ;;  %1819 = vst.msk [vmem:[#allocation3 + $0xc0] sm:$0xff] %vm380_vm1, %v1787_v1  ;;  %v1790_v25 = vadd.f32 %v4701_v41, %v1758_v57  ;;  %v2453_v1 = vld [vmem:[#allocation3 + $0x30] sm:$0xff] }
 0x183   : > { %v2112_v26 = vld [vmem:[#allocation3 + $0xb8] sm:$0xff]  ;;  %v1703_v18 = vpop.f32.mrf.mxu1  ;;  %v4735_v33 = vpop.f32.mrf.mxu0 }
 0x184   : > { %2173 = vst.msk [vmem:[#allocation3 + $0xa0] sm:$0xff] %vm380_vm1, %v2141_v17  ;;  %v2144_v32 = vadd.f32 %v4731_v63, %v2112_v26  ;;  %1822 = vst.msk [vmem:[#allocation3 + $0xd8] sm:$0xff] %vm380_vm1, %v1790_v25  ;;  %v1788_v11 = vadd.f32 %v1756_v28, %v1703_v18  ;;  %v2451_v25 = vld [vmem:[#allocation3 + $0x20] sm:$0xff] }
 0x185   : > { %v2110_v54 = vld [vmem:[#allocation3 + $0xa8] sm:$0xff]  ;;  %v4704_v35 = vpop.f32.mrf.mxu1  ;;  %v2061_v5 = vpop.f32.mrf.mxu0 }
 0x186   : > { %2176 = vst.msk [vmem:[#allocation3 + $0xb8] sm:$0xff] %vm380_vm1, %v2144_v32  ;;  %v2142_v36 = vadd.f32 %v2110_v54, %v2045_v39  ;;  %1820 = vst.msk [vmem:[#allocation3 + $0xc8] sm:$0xff] %vm380_vm1, %v1788_v11  ;;  %v1793_v42 = vadd.f32 %v4704_v35, %v1761_v23  ;;  %v2454_v11 = vld [vmem:[#allocation3 + $0x38] sm:$0xff] }
 0x187   : > { %v2115_v55 = vld [vmem:[#allocation3 + $0xd0] sm:$0xff]  ;;  %v1716_v2 = vpop.f32.mrf.mxu1  ;;  %v4738_v48 = vpop.f32.mrf.mxu0 }
 0x188   : > { %2174 = vst.msk [vmem:[#allocation3 + $0xa8] sm:$0xff] %vm380_vm1, %v2142_v36  ;;  %v2147_v45 = vadd.f32 %v4734_v13, %v2115_v55  ;;  %1825 = vst.msk [vmem:[#allocation3 + $0xf0] sm:$0xff] %vm380_vm1, %v1793_v42  ;;  %v1791_v51 = vadd.f32 %v1759_v44, %v1716_v2  ;;  %v2452_v42 = vld [vmem:[#allocation3 + $0x28] sm:$0xff] }
 0x189   : > { %v2113_v19 = vld [vmem:[#allocation3 + $0xc0] sm:$0xff]  ;;  %v4705_v56 = vpop.f32.mrf.mxu1  ;;  %v2074_v9 = vpop.f32.mrf.mxu0 }
 0x18a   : > { %2179 = vst.msk [vmem:[#allocation3 + $0xd0] sm:$0xff] %vm380_vm1, %v2147_v45  ;;  %v2145_v61 = vadd.f32 %v2113_v19, %v2058_v52  ;;  %1823 = vst.msk [vmem:[#allocation3 + $0xe0] sm:$0xff] %vm380_vm1, %v1791_v51  ;;  %v1794_v62 = vadd.f32 %v4705_v56, %v1762_v10  ;;  %v2457_v51 = vld [vmem:[#allocation3 + $0x50] sm:$0xff] }
 0x18b   : > { %v2116_v3 = vld [vmem:[#allocation3 + $0xd8] sm:$0xff]  ;;  %v1719_v6 = vpop.f32.mrf.mxu1  ;;  %v4739_v37 = vpop.f32.mrf.mxu0 }
 0x18c   : > { %2177 = vst.msk [vmem:[#allocation3 + $0xc0] sm:$0xff] %vm380_vm1, %v2145_v61  ;;  %v2148_v40 = vadd.f32 %v4735_v33, %v2116_v3  ;;  %1826 = vst.msk [vmem:[#allocation3 + $0xf8] sm:$0xff] %vm380_vm1, %v1794_v62  ;;  %v1792_v30 = vadd.f32 %v1760_v38, %v1719_v6  ;;  %v2455_v62 = vld [vmem:[#allocation3 + $0x40] sm:$0xff] }
 0x18d   : > { %v2114_v47 = vld [vmem:[#allocation3 + $0xc8] sm:$0xff]  ;;  %v4744_v43 = vpop.f32.mrf.mxu1  ;;  %v2077_v8 = vpop.f32.mrf.mxu0 }
 0x18e   : > { %2180 = vst.msk [vmem:[#allocation3 + $0xd8] sm:$0xff] %vm380_vm1, %v2148_v40  ;;  %v2146_v31 = vadd.f32 %v2114_v47, %v2061_v5  ;;  %1824 = vst.msk [vmem:[#allocation3 + $0xe8] sm:$0xff] %vm380_vm1, %v1792_v30  ;;  %v2481_v16 = vadd.f32 %v4744_v43, %v2449_v12  ;;  %v2458_v30 = vld [vmem:[#allocation3 + $0x58] sm:$0xff] }
 0x18f   : > { %v2119_v50 = vld [vmem:[#allocation3 + $0xf0] sm:$0xff]  ;;  %v2320_v15 = vpop.f32.mrf.mxu1  ;;  %v4778_v58 = vpop.f32.mrf.mxu0 }
 0x190   : > { %2178 = vst.msk [vmem:[#allocation3 + $0xc8] sm:$0xff] %vm380_vm1, %v2146_v31  ;;  %v2151_v49 = vadd.f32 %v4738_v48, %v2119_v50  ;;  %2513 = vst.msk [vmem:[#allocation3 + $0x10] sm:$0xff] %vm380_vm1, %v2481_v16  ;;  %v2479_v21 = vadd.f32 %v2447_v20, %v2320_v15  ;;  %v2456_v16 = vld [vmem:[#allocation3 + $0x48] sm:$0xff] }
 0x191   : > { %v2117_v29 = vld [vmem:[#allocation3 + $0xe0] sm:$0xff]  ;;  %v4745_v59 = vpop.f32.mrf.mxu1  ;;  %v2679_v46 = vpop.f32.mrf.mxu0 }
 0x192   : > { %2183 = vst.msk [vmem:[#allocation3 + $0xf0] sm:$0xff] %vm380_vm1, %v2151_v49  ;;  %v2149_v63 = vadd.f32 %v2117_v29, %v2074_v9  ;;  %2511 = vst.msk [vmem:[#allocation3] sm:$0xff] %vm380_vm1, %v2479_v21  ;;  %v2482_v34 = vadd.f32 %v4745_v59, %v2450_v60  ;;  %v2461_v21 = vld [vmem:[#allocation3 + $0x70] sm:$0xff] }
 0x193   : > { %v2120_v24 = vld [vmem:[#allocation3 + $0xf8] sm:$0xff]  ;;  %v2323_v22 = vpop.f32.mrf.mxu1  ;;  %v4779_v4 = vpop.f32.mrf.mxu0 }
 0x194   : > { %2181 = vst.msk [vmem:[#allocation3 + $0xe0] sm:$0xff] %vm380_vm1, %v2149_v63  ;;  %v2152_v39 = vadd.f32 %v4739_v37, %v2120_v24  ;;  %2514 = vst.msk [vmem:[#allocation3 + $0x18] sm:$0xff] %vm380_vm1, %v2482_v34  ;;  %v2480_v53 = vadd.f32 %v2448_v27, %v2323_v22  ;;  %v2459_v34 = vld [vmem:[#allocation3 + $0x60] sm:$0xff] }
 0x195   : > { %v2118_v0 = vld [vmem:[#allocation3 + $0xe8] sm:$0xff]  ;;  %v4748_v7 = vpop.f32.mrf.mxu1  ;;  %v2682_v41 = vpop.f32.mrf.mxu0 }
 0x196   : > { %2184 = vst.msk [vmem:[#allocation3 + $0xf8] sm:$0xff] %vm380_vm1, %v2152_v39  ;;  %v2150_v13 = vadd.f32 %v2118_v0, %v2077_v8  ;;  %2512 = vst.msk [vmem:[#allocation3 + $0x8] sm:$0xff] %vm380_vm1, %v2480_v53  ;;  %v2485_v14 = vadd.f32 %v4748_v7, %v2453_v1  ;;  %v2462_v53 = vld [vmem:[#allocation3 + $0x78] sm:$0xff] }
 0x197   : > { %v2808_v57 = vld [vmem:[#allocation3 + $0x10] sm:$0xff]  ;;  %v2336_v17 = vpop.f32.mrf.mxu1  ;;  %v4782_v18 = vpop.f32.mrf.mxu0 }
 0x198   : > { %2182 = vst.msk [vmem:[#allocation3 + $0xe8] sm:$0xff] %vm380_vm1, %v2150_v13  ;;  %v2840_v52 = vadd.f32 %v4778_v58, %v2808_v57  ;;  %2517 = vst.msk [vmem:[#allocation3 + $0x30] sm:$0xff] %vm380_vm1, %v2485_v14  ;;  %v2483_v26 = vadd.f32 %v2451_v25, %v2336_v17  ;;  %v2460_v14 = vld [vmem:[#allocation3 + $0x68] sm:$0xff] }
 0x199   : > { %v2806_v28 = vld [vmem:[#allocation3] sm:$0xff]  ;;  %v4749_v32 = vpop.f32.mrf.mxu1  ;;  %v2695_v35 = vpop.f32.mrf.mxu0 }
 0x19a   : > { %2872 = vst.msk [vmem:[#allocation3 + $0x10] sm:$0xff] %vm380_vm1, %v2840_v52  ;;  %v2838_v33 = vadd.f32 %v2806_v28, %v2679_v46  ;;  %2515 = vst.msk [vmem:[#allocation3 + $0x20] sm:$0xff] %vm380_vm1, %v2483_v26  ;;  %v2486_v54 = vadd.f32 %v4749_v32, %v2454_v11  ;;  %v2465_v26 = vld [vmem:[#allocation3 + $0x90] sm:$0xff] }
 0x19b   : > { %v2809_v23 = vld [vmem:[#allocation3 + $0x18] sm:$0xff]  ;;  %v2339_v36 = vpop.f32.mrf.mxu1  ;;  %v4783_v2 = vpop.f32.mrf.mxu0 }
 0x19c   : > { %2870 = vst.msk [vmem:[#allocation3] sm:$0xff] %vm380_vm1, %v2838_v33  ;;  %v2841_v5 = vadd.f32 %v4779_v4, %v2809_v23  ;;  %2518 = vst.msk [vmem:[#allocation3 + $0x38] sm:$0xff] %vm380_vm1, %v2486_v54  ;;  %v2484_v55 = vadd.f32 %v2452_v42, %v2339_v36  ;;  %v2463_v54 = vld [vmem:[#allocation3 + $0x80] sm:$0xff] }
 0x19d   : > { %v2807_v44 = vld [vmem:[#allocation3 + $0x8] sm:$0xff]  ;;  %v4752_v45 = vpop.f32.mrf.mxu1  ;;  %v2698_v56 = vpop.f32.mrf.mxu0 }
 0x19e   : > { %2873 = vst.msk [vmem:[#allocation3 + $0x18] sm:$0xff] %vm380_vm1, %v2841_v5  ;;  %v2839_v48 = vadd.f32 %v2807_v44, %v2682_v41  ;;  %2516 = vst.msk [vmem:[#allocation3 + $0x28] sm:$0xff] %vm380_vm1, %v2484_v55  ;;  %v2489_v19 = vadd.f32 %v4752_v45, %v2457_v51  ;;  %v2466_v55 = vld [vmem:[#allocation3 + $0x98] sm:$0xff] }
 0x19f   : > { %v2812_v10 = vld [vmem:[#allocation3 + $0x30] sm:$0xff]  ;;  %v2352_v61 = vpop.f32.mrf.mxu1  ;;  %v4786_v6 = vpop.f32.mrf.mxu0 }
 0x1a0   : > { %2871 = vst.msk [vmem:[#allocation3 + $0x8] sm:$0xff] %vm380_vm1, %v2839_v48  ;;  %v2844_v9 = vadd.f32 %v4782_v18, %v2812_v10  ;;  %2521 = vst.msk [vmem:[#allocation3 + $0x50] sm:$0xff] %vm380_vm1, %v2489_v19  ;;  %v2487_v3 = vadd.f32 %v2455_v62, %v2352_v61  ;;  %v2464_v19 = vld [vmem:[#allocation3 + $0x88] sm:$0xff] }
 0x1a1   : > { %v2810_v38 = vld [vmem:[#allocation3 + $0x20] sm:$0xff]  ;;  %v4753_v40 = vpop.f32.mrf.mxu1  ;;  %v2711_v43 = vpop.f32.mrf.mxu0 }
 0x1a2   : > { %2876 = vst.msk [vmem:[#allocation3 + $0x30] sm:$0xff] %vm380_vm1, %v2844_v9  ;;  %v2842_v37 = vadd.f32 %v2810_v38, %v2695_v35  ;;  %2519 = vst.msk [vmem:[#allocation3 + $0x40] sm:$0xff] %vm380_vm1, %v2487_v3  ;;  %v2490_v47 = vadd.f32 %v4753_v40, %v2458_v30  ;;  %v2469_v3 = vld [vmem:[#allocation3 + $0xb0] sm:$0xff] }
 0x1a3   : > { %v2813_v12 = vld [vmem:[#allocation3 + $0x38] sm:$0xff]  ;;  %v2355_v31 = vpop.f32.mrf.mxu1  ;;  %v4787_v15 = vpop.f32.mrf.mxu0 }
 0x1a4   : > { %2874 = vst.msk [vmem:[#allocation3 + $0x20] sm:$0xff] %vm380_vm1, %v2842_v37  ;;  %v2845_v8 = vadd.f32 %v4783_v2, %v2813_v12  ;;  %2522 = vst.msk [vmem:[#allocation3 + $0x58] sm:$0xff] %vm380_vm1, %v2490_v47  ;;  %v2488_v50 = vadd.f32 %v2456_v16, %v2355_v31  ;;  %v2467_v47 = vld [vmem:[#allocation3 + $0xa0] sm:$0xff] }
 0x1a5   : > { %v2811_v20 = vld [vmem:[#allocation3 + $0x28] sm:$0xff]  ;;  %v4756_v49 = vpop.f32.mrf.mxu1  ;;  %v2714_v59 = vpop.f32.mrf.mxu0 }
 0x1a6   : > { %2877 = vst.msk [vmem:[#allocation3 + $0x38] sm:$0xff] %vm380_vm1, %v2845_v8  ;;  %v2843_v58 = vadd.f32 %v2811_v20, %v2698_v56  ;;  %2520 = vst.msk [vmem:[#allocation3 + $0x48] sm:$0xff] %vm380_vm1, %v2488_v50  ;;  %v2493_v29 = vadd.f32 %v4756_v49, %v2461_v21  ;;  %v2470_v50 = vld [vmem:[#allocation3 + $0xb8] sm:$0xff] }
 0x1a7   : > { %v2816_v60 = vld [vmem:[#allocation3 + $0x50] sm:$0xff]  ;;  %v2368_v63 = vpop.f32.mrf.mxu1  ;;  %v4790_v22 = vpop.f32.mrf.mxu0 }
 0x1a8   : > { %2875 = vst.msk [vmem:[#allocation3 + $0x28] sm:$0xff] %vm380_vm1, %v2843_v58  ;;  %v2848_v46 = vadd.f32 %v4786_v6, %v2816_v60  ;;  %2525 = vst.msk [vmem:[#allocation3 + $0x70] sm:$0xff] %vm380_vm1, %v2493_v29  ;;  %v2491_v24 = vadd.f32 %v2459_v34, %v2368_v63  ;;  %v2468_v29 = vld [vmem:[#allocation3 + $0xa8] sm:$0xff] }
 0x1a9   : > { %v2814_v27 = vld [vmem:[#allocation3 + $0x40] sm:$0xff]  ;;  %v4757_v39 = vpop.f32.mrf.mxu1  ;;  %v2727_v7 = vpop.f32.mrf.mxu0 }
 0x1aa   : > { %2880 = vst.msk [vmem:[#allocation3 + $0x50] sm:$0xff] %vm380_vm1, %v2848_v46  ;;  %v2846_v4 = vadd.f32 %v2814_v27, %v2711_v43  ;;  %2523 = vst.msk [vmem:[#allocation3 + $0x60] sm:$0xff] %vm380_vm1, %v2491_v24  ;;  %v2494_v0 = vadd.f32 %v4757_v39, %v2462_v53  ;;  %v2473_v24 = vld [vmem:[#allocation3 + $0xd0] sm:$0xff] }
 0x1ab   : > { %v2817_v1 = vld [vmem:[#allocation3 + $0x58] sm:$0xff]  ;;  %v2371_v13 = vpop.f32.mrf.mxu1  ;;  %v4791_v17 = vpop.f32.mrf.mxu0 }
 0x1ac   : > { %2878 = vst.msk [vmem:[#allocation3 + $0x40] sm:$0xff] %vm380_vm1, %v2846_v4  ;;  %v2849_v41 = vadd.f32 %v4787_v15, %v2817_v1  ;;  %2526 = vst.msk [vmem:[#allocation3 + $0x78] sm:$0xff] %vm380_vm1, %v2494_v0  ;;  %v2492_v57 = vadd.f32 %v2460_v14, %v2371_v13  ;;  %v2471_v0 = vld [vmem:[#allocation3 + $0xc0] sm:$0xff] }
 0x1ad   : > { %v2815_v25 = vld [vmem:[#allocation3 + $0x48] sm:$0xff]  ;;  %v4760_v52 = vpop.f32.mrf.mxu1  ;;  %v2730_v32 = vpop.f32.mrf.mxu0 }
 0x1ae   : > { %2881 = vst.msk [vmem:[#allocation3 + $0x58] sm:$0xff] %vm380_vm1, %v2849_v41  ;;  %v2847_v18 = vadd.f32 %v2815_v25, %v2714_v59  ;;  %2524 = vst.msk [vmem:[#allocation3 + $0x68] sm:$0xff] %vm380_vm1, %v2492_v57  ;;  %v2497_v28 = vadd.f32 %v4760_v52, %v2465_v26  ;;  %v2474_v57 = vld [vmem:[#allocation3 + $0xd8] sm:$0xff] }
 0x1af   : > { %v2820_v11 = vld [vmem:[#allocation3 + $0x70] sm:$0xff]  ;;  %v2384_v33 = vpop.f32.mrf.mxu1  ;;  %v4794_v36 = vpop.f32.mrf.mxu0 }
 0x1b0   : > { %2879 = vst.msk [vmem:[#allocation3 + $0x48] sm:$0xff] %vm380_vm1, %v2847_v18  ;;  %v2852_v35 = vadd.f32 %v4790_v22, %v2820_v11  ;;  %2529 = vst.msk [vmem:[#allocation3 + $0x90] sm:$0xff] %vm380_vm1, %v2497_v28  ;;  %v2495_v23 = vadd.f32 %v2463_v54, %v2384_v33  ;;  %v2472_v28 = vld [vmem:[#allocation3 + $0xc8] sm:$0xff] }
 0x1b1   : > { %v2818_v42 = vld [vmem:[#allocation3 + $0x60] sm:$0xff]  ;;  %v4761_v5 = vpop.f32.mrf.mxu1  ;;  %v2743_v45 = vpop.f32.mrf.mxu0 }
 0x1b2   : > { %2884 = vst.msk [vmem:[#allocation3 + $0x70] sm:$0xff] %vm380_vm1, %v2852_v35  ;;  %v2850_v2 = vadd.f32 %v2818_v42, %v2727_v7  ;;  %2527 = vst.msk [vmem:[#allocation3 + $0x80] sm:$0xff] %vm380_vm1, %v2495_v23  ;;  %v2498_v44 = vadd.f32 %v4761_v5, %v2466_v55  ;;  %v2477_v23 = vld [vmem:[#allocation3 + $0xf0] sm:$0xff] }
 0x1b3   : > { %v2821_v51 = vld [vmem:[#allocation3 + $0x78] sm:$0xff]  ;;  %v2387_v48 = vpop.f32.mrf.mxu1  ;;  %v4795_v61 = vpop.f32.mrf.mxu0 }
 0x1b4   : > { %2882 = vst.msk [vmem:[#allocation3 + $0x60] sm:$0xff] %vm380_vm1, %v2850_v2  ;;  %v2853_v56 = vadd.f32 %v4791_v17, %v2821_v51  ;;  %2530 = vst.msk [vmem:[#allocation3 + $0x98] sm:$0xff] %vm380_vm1, %v2498_v44  ;;  %v2496_v10 = vadd.f32 %v2464_v19, %v2387_v48  ;;  %v2475_v44 = vld [vmem:[#allocation3 + $0xe0] sm:$0xff] }
 0x1b5   : > { %v2819_v62 = vld [vmem:[#allocation3 + $0x68] sm:$0xff]  ;;  %v4764_v9 = vpop.f32.mrf.mxu1  ;;  %v2746_v40 = vpop.f32.mrf.mxu0 }
 0x1b6   : > { %2885 = vst.msk [vmem:[#allocation3 + $0x78] sm:$0xff] %vm380_vm1, %v2853_v56  ;;  %v2851_v6 = vadd.f32 %v2819_v62, %v2730_v32  ;;  %2528 = vst.msk [vmem:[#allocation3 + $0x88] sm:$0xff] %vm380_vm1, %v2496_v10  ;;  %v2501_v38 = vadd.f32 %v4764_v9, %v2469_v3  ;;  %v2478_v10 = vld [vmem:[#allocation3 + $0xf8] sm:$0xff] }
 0x1b7   : > { %v2824_v30 = vld [vmem:[#allocation3 + $0x90] sm:$0xff]  ;;  %v2400_v37 = vpop.f32.mrf.mxu1  ;;  %v4798_v31 = vpop.f32.mrf.mxu0 }
 0x1b8   : > { %2883 = vst.msk [vmem:[#allocation3 + $0x68] sm:$0xff] %vm380_vm1, %v2851_v6  ;;  %v2856_v43 = vadd.f32 %v4794_v36, %v2824_v30  ;;  %2533 = vst.msk [vmem:[#allocation3 + $0xb0] sm:$0xff] %vm380_vm1, %v2501_v38  ;;  %v2499_v12 = vadd.f32 %v2467_v47, %v2400_v37  ;;  %v2476_v38 = vld [vmem:[#allocation3 + $0xe8] sm:$0xff] }
 0x1b9   : > { %v2822_v16 = vld [vmem:[#allocation3 + $0x80] sm:$0xff]  ;;  %v4765_v8 = vpop.f32.mrf.mxu1  ;;  %v2759_v49 = vpop.f32.mrf.mxu0 }
 0x1ba   : > { %2888 = vst.msk [vmem:[#allocation3 + $0x90] sm:$0xff] %vm380_vm1, %v2856_v43  ;;  %v2854_v15 = vadd.f32 %v2822_v16, %v2743_v45  ;;  %2531 = vst.msk [vmem:[#allocation3 + $0xa0] sm:$0xff] %vm380_vm1, %v2499_v12  ;;  %v2502_v20 = vadd.f32 %v4765_v8, %v2470_v50  ;;  %v3166_v12 = vld [vmem:[#allocation3 + $0x10] sm:$0xff] }
 0x1bb   : > { %v2825_v21 = vld [vmem:[#allocation3 + $0x98] sm:$0xff]  ;;  %v2403_v58 = vpop.f32.mrf.mxu1  ;;  %v4799_v63 = vpop.f32.mrf.mxu0 }
 0x1bc   : > { %2886 = vst.msk [vmem:[#allocation3 + $0x80] sm:$0xff] %vm380_vm1, %v2854_v15  ;;  %v2857_v59 = vadd.f32 %v4795_v61, %v2825_v21  ;;  %2534 = vst.msk [vmem:[#allocation3 + $0xb8] sm:$0xff] %vm380_vm1, %v2502_v20  ;;  %v2500_v60 = vadd.f32 %v2468_v29, %v2403_v58  ;;  %v3164_v20 = vld [vmem:[#allocation3] sm:$0xff] }
 0x1bd   : > { %v2823_v34 = vld [vmem:[#allocation3 + $0x88] sm:$0xff]  ;;  %v4768_v46 = vpop.f32.mrf.mxu1  ;;  %v2762_v39 = vpop.f32.mrf.mxu0 }
 0x1be   : > { %2889 = vst.msk [vmem:[#allocation3 + $0x98] sm:$0xff] %vm380_vm1, %v2857_v59  ;;  %v2855_v22 = vadd.f32 %v2823_v34, %v2746_v40  ;;  %2532 = vst.msk [vmem:[#allocation3 + $0xa8] sm:$0xff] %vm380_vm1, %v2500_v60  ;;  %v2505_v27 = vadd.f32 %v4768_v46, %v2473_v24  ;;  %v3167_v60 = vld [vmem:[#allocation3 + $0x18] sm:$0xff] }
 0x1bf   : > { %v2828_v53 = vld [vmem:[#allocation3 + $0xb0] sm:$0xff]  ;;  %v2416_v4 = vpop.f32.mrf.mxu1  ;;  %v4802_v13 = vpop.f32.mrf.mxu0 }
 0x1c0   : > { %2887 = vst.msk [vmem:[#allocation3 + $0x88] sm:$0xff] %vm380_vm1, %v2855_v22  ;;  %v2860_v7 = vadd.f32 %v4798_v31, %v2828_v53  ;;  %2537 = vst.msk [vmem:[#allocation3 + $0xd0] sm:$0xff] %vm380_vm1, %v2505_v27  ;;  %v2503_v1 = vadd.f32 %v2471_v0, %v2416_v4  ;;  %v3165_v27 = vld [vmem:[#allocation3 + $0x8] sm:$0xff] }
 0x1c1   : > { %v2826_v14 = vld [vmem:[#allocation3 + $0xa0] sm:$0xff]  ;;  %v4769_v41 = vpop.f32.mrf.mxu1  ;;  %v2775_v52 = vpop.f32.mrf.mxu0 }
 0x1c2   : > { %2892 = vst.msk [vmem:[#allocation3 + $0xb0] sm:$0xff] %vm380_vm1, %v2860_v7  ;;  %v2858_v17 = vadd.f32 %v2826_v14, %v2759_v49  ;;  %2535 = vst.msk [vmem:[#allocation3 + $0xc0] sm:$0xff] %vm380_vm1, %v2503_v1  ;;  %v2506_v25 = vadd.f32 %v4769_v41, %v2474_v57  ;;  %v3170_v1 = vld [vmem:[#allocation3 + $0x30] sm:$0xff] }
 0x1c3   : > { %v2829_v26 = vld [vmem:[#allocation3 + $0xb8] sm:$0xff]  ;;  %v2419_v18 = vpop.f32.mrf.mxu1  ;;  %v4803_v33 = vpop.f32.mrf.mxu0 }
 0x1c4   : > { %2890 = vst.msk [vmem:[#allocation3 + $0xa0] sm:$0xff] %vm380_vm1, %v2858_v17  ;;  %v2861_v32 = vadd.f32 %v4799_v63, %v2829_v26  ;;  %2538 = vst.msk [vmem:[#allocation3 + $0xd8] sm:$0xff] %vm380_vm1, %v2506_v25  ;;  %v2504_v11 = vadd.f32 %v2472_v28, %v2419_v18  ;;  %v3168_v25 = vld [vmem:[#allocation3 + $0x20] sm:$0xff] }
 0x1c5   : > { %v2827_v54 = vld [vmem:[#allocation3 + $0xa8] sm:$0xff]  ;;  %v4772_v35 = vpop.f32.mrf.mxu1  ;;  %v2778_v5 = vpop.f32.mrf.mxu0 }
 0x1c6   : > { %2893 = vst.msk [vmem:[#allocation3 + $0xb8] sm:$0xff] %vm380_vm1, %v2861_v32  ;;  %v2859_v36 = vadd.f32 %v2827_v54, %v2762_v39  ;;  %2536 = vst.msk [vmem:[#allocation3 + $0xc8] sm:$0xff] %vm380_vm1, %v2504_v11  ;;  %v2509_v42 = vadd.f32 %v4772_v35, %v2477_v23  ;;  %v3171_v11 = vld [vmem:[#allocation3 + $0x38] sm:$0xff] }
 0x1c7   : > { %v2832_v55 = vld [vmem:[#allocation3 + $0xd0] sm:$0xff]  ;;  %v2432_v2 = vpop.f32.mrf.mxu1  ;;  %v4806_v48 = vpop.f32.mrf.mxu0 }
 0x1c8   : > { %2891 = vst.msk [vmem:[#allocation3 + $0xa8] sm:$0xff] %vm380_vm1, %v2859_v36  ;;  %v2864_v45 = vadd.f32 %v4802_v13, %v2832_v55  ;;  %2541 = vst.msk [vmem:[#allocation3 + $0xf0] sm:$0xff] %vm380_vm1, %v2509_v42  ;;  %v2507_v51 = vadd.f32 %v2475_v44, %v2432_v2  ;;  %v3169_v42 = vld [vmem:[#allocation3 + $0x28] sm:$0xff] }
 0x1c9   : > { %v2830_v19 = vld [vmem:[#allocation3 + $0xc0] sm:$0xff]  ;;  %v4773_v56 = vpop.f32.mrf.mxu1  ;;  %v2791_v9 = vpop.f32.mrf.mxu0 }
 0x1ca   : > { %2896 = vst.msk [vmem:[#allocation3 + $0xd0] sm:$0xff] %vm380_vm1, %v2864_v45  ;;  %v2862_v61 = vadd.f32 %v2830_v19, %v2775_v52  ;;  %2539 = vst.msk [vmem:[#allocation3 + $0xe0] sm:$0xff] %vm380_vm1, %v2507_v51  ;;  %v2510_v62 = vadd.f32 %v4773_v56, %v2478_v10  ;;  %v3174_v51 = vld [vmem:[#allocation3 + $0x50] sm:$0xff] }
 0x1cb   : > { %v2833_v3 = vld [vmem:[#allocation3 + $0xd8] sm:$0xff]  ;;  %v2435_v6 = vpop.f32.mrf.mxu1  ;;  %v4807_v37 = vpop.f32.mrf.mxu0 }
 0x1cc   : > { %2894 = vst.msk [vmem:[#allocation3 + $0xc0] sm:$0xff] %vm380_vm1, %v2862_v61  ;;  %v2865_v40 = vadd.f32 %v4803_v33, %v2833_v3  ;;  %2542 = vst.msk [vmem:[#allocation3 + $0xf8] sm:$0xff] %vm380_vm1, %v2510_v62  ;;  %v2508_v30 = vadd.f32 %v2476_v38, %v2435_v6  ;;  %v3172_v62 = vld [vmem:[#allocation3 + $0x40] sm:$0xff] }
 0x1cd   : > { %v2831_v47 = vld [vmem:[#allocation3 + $0xc8] sm:$0xff]  ;;  %v4812_v43 = vpop.f32.mrf.mxu1  ;;  %v2794_v8 = vpop.f32.mrf.mxu0 }
 0x1ce   : > { %2897 = vst.msk [vmem:[#allocation3 + $0xd8] sm:$0xff] %vm380_vm1, %v2865_v40  ;;  %v2863_v31 = vadd.f32 %v2831_v47, %v2778_v5  ;;  %2540 = vst.msk [vmem:[#allocation3 + $0xe8] sm:$0xff] %vm380_vm1, %v2508_v30  ;;  %v3198_v16 = vadd.f32 %v4812_v43, %v3166_v12 }
 0x1cf   : > { %v2836_v50 = vld [vmem:[#allocation3 + $0xf0] sm:$0xff]  ;;  %v3037_v15 = vpop.f32.mrf.mxu1  ;;  %v4846_v58 = vpop.f32.mrf.mxu0 }
 0x1d0   : > { %2895 = vst.msk [vmem:[#allocation3 + $0xc8] sm:$0xff] %vm380_vm1, %v2863_v31  ;;  %v2868_v49 = vadd.f32 %v4806_v48, %v2836_v50  ;;  %3230 = vst.msk [vmem:[#allocation3 + $0x10] sm:$0xff] %vm380_vm1, %v3198_v16  ;;  %v3196_v21 = vadd.f32 %v3164_v20, %v3037_v15  ;;  %v3173_v15 = vld [vmem:[#allocation3 + $0x48] sm:$0xff] }
 0x1d1   : > { %v2834_v29 = vld [vmem:[#allocation3 + $0xe0] sm:$0xff]  ;;  %v4813_v59 = vpop.f32.mrf.mxu1  ;;  %v3395_v46 = vpop.f32.mrf.mxu0 }
 0x1d2   : > { %2900 = vst.msk [vmem:[#allocation3 + $0xf0] sm:$0xff] %vm380_vm1, %v2868_v49  ;;  %v2866_v63 = vadd.f32 %v2834_v29, %v2791_v9  ;;  %3228 = vst.msk [vmem:[#allocation3] sm:$0xff] %vm380_vm1, %v3196_v21  ;;  %v3199_v34 = vadd.f32 %v4813_v59, %v3167_v60 }
 0x1d3   : > { %v2837_v24 = vld [vmem:[#allocation3 + $0xf8] sm:$0xff]  ;;  %v3040_v22 = vpop.f32.mrf.mxu1  ;;  %v4847_v4 = vpop.f32.mrf.mxu0 }
 0x1d4   : > { %2898 = vst.msk [vmem:[#allocation3 + $0xe0] sm:$0xff] %vm380_vm1, %v2866_v63  ;;  %v2869_v39 = vadd.f32 %v4807_v37, %v2837_v24  ;;  %3231 = vst.msk [vmem:[#allocation3 + $0x18] sm:$0xff] %vm380_vm1, %v3199_v34  ;;  %v3197_v53 = vadd.f32 %v3165_v27, %v3040_v22  ;;  %v3175_v37 = vld [vmem:[#allocation3 + $0x58] sm:$0xff]  ;;  %v3178_v63 = vld [vmem:[#allocation3 + $0x70] sm:$0xff] }
 0x1d5   : > { %v2835_v0 = vld [vmem:[#allocation3 + $0xe8] sm:$0xff]  ;;  %v4816_v7 = vpop.f32.mrf.mxu1  ;;  %v3398_v41 = vpop.f32.mrf.mxu0 }
 0x1d6   : > { %2901 = vst.msk [vmem:[#allocation3 + $0xf8] sm:$0xff] %vm380_vm1, %v2869_v39  ;;  %v2867_v13 = vadd.f32 %v2835_v0, %v2794_v8  ;;  %3229 = vst.msk [vmem:[#allocation3 + $0x8] sm:$0xff] %vm380_vm1, %v3197_v53  ;;  %v3202_v14 = vadd.f32 %v4816_v7, %v3170_v1 }
 0x1d7   : > { %v3524_v57 = vld [vmem:[#allocation3 + $0x10] sm:$0xff]  ;;  %v3053_v17 = vpop.f32.mrf.mxu1  ;;  %v4850_v18 = vpop.f32.mrf.mxu0 }
 0x1d8   : > { %2899 = vst.msk [vmem:[#allocation3 + $0xe8] sm:$0xff] %vm380_vm1, %v2867_v13  ;;  %v3556_v52 = vadd.f32 %v4846_v58, %v3524_v57  ;;  %3234 = vst.msk [vmem:[#allocation3 + $0x30] sm:$0xff] %vm380_vm1, %v3202_v14  ;;  %v3200_v26 = vadd.f32 %v3168_v25, %v3053_v17  ;;  %v3176_v14 = vld [vmem:[#allocation3 + $0x60] sm:$0xff] }
 0x1d9   : > { %v3522_v28 = vld [vmem:[#allocation3] sm:$0xff]  ;;  %v4817_v32 = vpop.f32.mrf.mxu1  ;;  %v3411_v35 = vpop.f32.mrf.mxu0 }
 0x1da   : > { %3588 = vst.msk [vmem:[#allocation3 + $0x10] sm:$0xff] %vm380_vm1, %v3556_v52  ;;  %v3554_v33 = vadd.f32 %v3522_v28, %v3395_v46  ;;  %3232 = vst.msk [vmem:[#allocation3 + $0x20] sm:$0xff] %vm380_vm1, %v3200_v26  ;;  %v3203_v54 = vadd.f32 %v4817_v32, %v3171_v11 }
 0x1db   : > { %v3525_v23 = vld [vmem:[#allocation3 + $0x18] sm:$0xff]  ;;  %v3056_v36 = vpop.f32.mrf.mxu1  ;;  %v4851_v2 = vpop.f32.mrf.mxu0 }
 0x1dc   : > { %3586 = vst.msk [vmem:[#allocation3] sm:$0xff] %vm380_vm1, %v3554_v33  ;;  %v3557_v5 = vadd.f32 %v4847_v4, %v3525_v23  ;;  %3235 = vst.msk [vmem:[#allocation3 + $0x38] sm:$0xff] %vm380_vm1, %v3203_v54  ;;  %v3201_v55 = vadd.f32 %v3169_v42, %v3056_v36 }
 0x1dd   : > { %v3523_v44 = vld [vmem:[#allocation3 + $0x8] sm:$0xff]  ;;  %v4820_v45 = vpop.f32.mrf.mxu1  ;;  %v3414_v56 = vpop.f32.mrf.mxu0 }
 0x1de   : > { %3589 = vst.msk [vmem:[#allocation3 + $0x18] sm:$0xff] %vm380_vm1, %v3557_v5  ;;  %v3555_v48 = vadd.f32 %v3523_v44, %v3398_v41  ;;  %3233 = vst.msk [vmem:[#allocation3 + $0x28] sm:$0xff] %vm380_vm1, %v3201_v55  ;;  %v3206_v19 = vadd.f32 %v4820_v45, %v3174_v51 }
 0x1df   : > { %v3528_v10 = vld [vmem:[#allocation3 + $0x30] sm:$0xff]  ;;  %v3069_v61 = vpop.f32.mrf.mxu1  ;;  %v4854_v6 = vpop.f32.mrf.mxu0 }
 0x1e0   : > { %3587 = vst.msk [vmem:[#allocation3 + $0x8] sm:$0xff] %vm380_vm1, %v3555_v48  ;;  %v3560_v9 = vadd.f32 %v4850_v18, %v3528_v10  ;;  %3238 = vst.msk [vmem:[#allocation3 + $0x50] sm:$0xff] %vm380_vm1, %v3206_v19  ;;  %v3204_v3 = vadd.f32 %v3172_v62, %v3069_v61 }
 0x1e1   : > { %v3620_v38 = vld [vmem:[#allocation3 + $0x10] sm:$0xff]  ;;  %v3526_v40 = vld [vmem:[#allocation3 + $0x20] sm:$0xff]  ;;  %v4821_v30 = vpop.f32.mrf.mxu1  ;;  %v3427_v31 = vpop.f32.mrf.mxu0 }
 0x1e2   : > { %v4308_v47 = vpack.c.bf16 %v3620_v38, %v3620_v38  ;;  %3592 = vst.msk [vmem:[#allocation3 + $0x30] sm:$0xff] %vm380_vm1, %v3560_v9  ;;  %v3558_v43 = vadd.f32 %v3526_v40, %v3411_v35  ;;  %3236 = vst.msk [vmem:[#allocation3 + $0x40] sm:$0xff] %vm380_vm1, %v3204_v3  ;;  %v3207_v12 = vadd.f32 %v4821_v30, %v3175_v37  ;;  %v3179_v40 = vld [vmem:[#allocation3 + $0x78] sm:$0xff]  ;;  %v3177_v30 = vld [vmem:[#allocation3 + $0x68] sm:$0xff] }
 0x1e3   : > { %v3618_v16 = vld [vmem:[#allocation3] sm:$0xff]  ;;  %v3529_v8 = vld [vmem:[#allocation3 + $0x38] sm:$0xff]  ;;  %v3072_v50 = vpop.f32.mrf.mxu1  ;;  %v4855_v58 = vpop.f32.mrf.mxu0 }
 0x1e4   : > { %3990 = vst.msk [vmem:[%s5758_s21 + $0x8] sm:$0xf] %vm3987_vm4, %v4308_v47  ;;  %v4306_v20 = vpack.c.bf16 %v3618_v16, %v3618_v16  ;;  %v3561_v49 = vadd.f32 %v4851_v2, %v3529_v8  ;;  %v3205_v21 = vadd.f32 %v3173_v15, %v3072_v50 }
 0x1e5   : > { %3590 = vst.msk [vmem:[#allocation3 + $0x20] sm:$0xff] %vm380_vm1, %v3558_v43  ;;  %3239 = vst.msk [vmem:[#allocation3 + $0x58] sm:$0xff] %vm380_vm1, %v3207_v12  ;;  %v3621_v29 = vld [vmem:[#allocation3 + $0x18] sm:$0xff]  ;;  %v3527_v59 = vld [vmem:[#allocation3 + $0x28] sm:$0xff]  ;;  %v4824_v60 = vpop.f32.mrf.mxu1  ;;  %v3430_v27 = vpop.f32.mrf.mxu0 }
 0x1e6   : > { %3988 = vst.msk [vmem:[%s5758_s21] sm:$0xf] %vm3987_vm4, %v4306_v20  ;;  %v3651_v34 = vpack.c.bf16 %v3621_v29, %v3620_v38  ;;  %v4309_v46 = vpack.c.bf16 %v3621_v29, %v3621_v29  ;;  %v3559_v24 = vadd.f32 %v3527_v59, %v3414_v56  ;;  %v3210_v22 = vadd.f32 %v4824_v60, %v3178_v63 }
 0x1e7   : > { %3593 = vst.msk [vmem:[#allocation3 + $0x38] sm:$0xff] %vm380_vm1, %v3561_v49  ;;  %3237 = vst.msk [vmem:[#allocation3 + $0x48] sm:$0xff] %vm380_vm1, %v3205_v21  ;;  %v3619_v39 = vld [vmem:[#allocation3 + $0x8] sm:$0xff]  ;;  %v3532_v53 = vld [vmem:[#allocation3 + $0x50] sm:$0xff]  ;;  %v3085_v4 = vpop.f32.mrf.mxu1  ;;  %v4858_v41 = vpop.f32.mrf.mxu0 }
 0x1e8   : > { %v3668_v0 = vunpack.c.l.bf16 %v3651_v34  ;;  %v5770_v7 = vunpack.c.h.bf16 %v3651_v34  ;;  %3991 = vst.msk [vmem:[%s5758_s21 + $0xc] sm:$0xf] %vm3987_vm4, %v4309_v46  ;;  %v3650_v1 = vpack.c.bf16 %v3619_v39, %v3618_v16  ;;  %v4307_v13 = vpack.c.bf16 %v3619_v39, %v3619_v39 }
 0x1e9   : > { %3591 = vst.msk [vmem:[#allocation3 + $0x28] sm:$0xff] %vm380_vm1, %v3559_v24  ;;  %3242 = vst.msk [vmem:[#allocation3 + $0x70] sm:$0xff] %vm380_vm1, %v3210_v22  ;;  %v3624_v57 = vld [vmem:[#allocation3 + $0x30] sm:$0xff]  ;;  %v3564_v17 = vadd.f32 %v4854_v6, %v3532_v53  ;;  %v3530_v25 = vld [vmem:[#allocation3 + $0x40] sm:$0xff]  ;;  %v3208_v52 = vadd.f32 %v3176_v14, %v3085_v4  ;;  %v4825_v26 = vpop.f32.mrf.mxu1  ;;  %v5779_v32 = vpop.f32.mrf.mxu0 }
 0x1ea   : > { %v3701_v18 = vsel %vm380_vm1, %v3668_v0, 0.0  ;;  %v3769_v28 = vmul.f32 %v3668_v0, %v3668_v0  ;;  %3989 = vst.msk [vmem:[%s5758_s21 + $0x4] sm:$0xf] %vm3987_vm4, %v4307_v13  ;;  %v3666_v11 = vunpack.c.l.bf16 %v3650_v1  ;;  %v3667_v33 = vunpack.c.h.bf16 %v3650_v1 }
 0x1eb   : > { %v4312_v54 = vpack.c.bf16 %v3624_v57, %v3624_v57  ;;  %3596 = vst.msk [vmem:[#allocation3 + $0x50] sm:$0xff] %vm380_vm1, %v3564_v17  ;;  %v3562_v23 = vadd.f32 %v3530_v25, %v3427_v31  ;;  %3240 = vst.msk [vmem:[#allocation3 + $0x60] sm:$0xff] %vm380_vm1, %v3208_v52  ;;  %v3088_v42 = vpop.f32.mrf.mxu1  ;;  %v3770_v5 = vmul.f32 %v5770_v7, %v5770_v7  ;;  %v5786_v45 = vpop.f32.mrf.mxu0  ;;  %v3703_v53 = vsel %vm380_vm1, %v5770_v7, 0.0 }
 0x1ec   : > { %v3622_v35 = vld [vmem:[#allocation3 + $0x20] sm:$0xff]  ;;  %v3533_v36 = vld [vmem:[#allocation3 + $0x58] sm:$0xff]  ;;  %v3802_v55 = vsel %vm380_vm1, %v3769_v28, 0.0  ;;  %v3698_v51 = vsel %vm380_vm1, %v3666_v11, 0.0  ;;  %v3699_v48 = vsel %vm380_vm1, %v3667_v33, 0.0  ;;  %v3767_v19 = vmul.f32 %v3666_v11, %v3666_v11 }
 0x1ed   : > { %v4310_v2 = vpack.c.bf16 %v3622_v35, %v3622_v35  ;;  %v3565_v44 = vadd.f32 %v4855_v58, %v3533_v36  ;;  %v3768_v56 = vmul.f32 %v3667_v33, %v3667_v33  ;;  %3994 = vst.msk [vmem:[%s5758_s21 + $0x18] sm:$0xf] %vm3987_vm4, %v4312_v54  ;;  %v4828_v62 = vpop.f32.mrf.mxu1  ;;  %v3700_v9 = vadd.f32 %v3699_v48, %v3698_v51  ;;  %v5796_v37 = vpop.f32.mrf.mxu0  ;;  %v3182_v58 = vld [vmem:[#allocation3 + $0x90] sm:$0xff]  ;;  %v3180_v36 = vld [vmem:[#allocation3 + $0x80] sm:$0xff] }
 0x1ee   : > { %v3625_v10 = vld [vmem:[#allocation3 + $0x38] sm:$0xff]  ;;  %3594 = vst.msk [vmem:[#allocation3 + $0x40] sm:$0xff] %vm380_vm1, %v3562_v23  ;;  %v3531_v61 = vld [vmem:[#allocation3 + $0x48] sm:$0xff]  ;;  %v3799_v47 = vsel %vm380_vm1, %v3767_v19, 0.0  ;;  %v3211_v31 = vadd.f32 %v4825_v26, %v3179_v40  ;;  %v3209_v8 = vadd.f32 %v3177_v30, %v3088_v42  ;;  %v3214_v34 = vadd.f32 %v4828_v62, %v3182_v58 }
 0x1ef   : > { %3992 = vst.msk [vmem:[%s5758_s21 + $0x10] sm:$0xf] %vm3987_vm4, %v4310_v2  ;;  %v3653_v3 = vpack.c.bf16 %v3625_v10, %v3624_v57  ;;  %v4313_v6 = vpack.c.bf16 %v3625_v10, %v3625_v10  ;;  %v3563_v38 = vadd.f32 %v3531_v61, %v3430_v27  ;;  %v3800_v43 = vsel %vm380_vm1, %v3768_v56, 0.0  ;;  %v3101_v50 = vpop.f32.mrf.mxu1  ;;  %v5805_v29 = vpop.f32.mrf.mxu0  ;;  %v3183_v42 = vld [vmem:[#allocation3 + $0x98] sm:$0xff] }
 0x1f0   : > { %3597 = vst.msk [vmem:[#allocation3 + $0x58] sm:$0xff] %vm380_vm1, %v3565_v44  ;;  %v3623_v12 = vld [vmem:[#allocation3 + $0x28] sm:$0xff]  ;;  %v3536_v16 = vld [vmem:[#allocation3 + $0x70] sm:$0xff]  ;;  %v3702_v15 = vadd.f32 %v3701_v18, %v3700_v9  ;;  %v3801_v20 = vadd.f32 %v3800_v43, %v3799_v47  ;;  %3243 = vst.msk [vmem:[#allocation3 + $0x78] sm:$0xff] %vm380_vm1, %v3211_v31  ;;  %v3804_v4 = vsel %vm380_vm1, %v3770_v5, 0.0  ;;  %v3212_v51 = vadd.f32 %v3180_v36, %v3101_v50 }
 0x1f1   : > { %v3672_v49 = vunpack.c.l.bf16 %v3653_v3  ;;  %v5800_v21 = vunpack.c.h.bf16 %v3653_v3  ;;  %3995 = vst.msk [vmem:[%s5758_s21 + $0x1c] sm:$0xf] %vm3987_vm4, %v4313_v6  ;;  %v3652_v59 = vpack.c.bf16 %v3623_v12, %v3622_v35  ;;  %v4311_v60 = vpack.c.bf16 %v3623_v12, %v3623_v12  ;;  %v4829_v46 = vpop.f32.mrf.mxu1  ;;  %v5809_v39 = vpop.f32.mrf.mxu0 }
 0x1f2   : > { %3595 = vst.msk [vmem:[#allocation3 + $0x48] sm:$0xff] %vm380_vm1, %v3563_v38  ;;  %v3568_v63 = vadd.f32 %v4858_v41, %v3536_v16  ;;  %3241 = vst.msk [vmem:[#allocation3 + $0x68] sm:$0xff] %vm380_vm1, %v3209_v8  ;;  %v3803_v24 = vadd.f32 %v3802_v55, %v3801_v20  ;;  %v3628_v22 = vld [vmem:[#allocation3 + $0x50] sm:$0xff]  ;;  %v3534_v27 = vld [vmem:[#allocation3 + $0x60] sm:$0xff]  ;;  %v3704_v41 = vadd.f32 %v3703_v53, %v3702_v15 }
 0x1f3   : > { %v3670_v0 = vunpack.c.l.bf16 %v3652_v59  ;;  %v3671_v1 = vunpack.c.h.bf16 %v3652_v59  ;;  %3993 = vst.msk [vmem:[%s5758_s21 + $0x14] sm:$0xf] %vm3987_vm4, %v4311_v60  ;;  %v5818_v13 = vpop.f32.mrf.mxu1  ;;  %v3773_v14 = vmul.f32 %v3672_v49, %v3672_v49  ;;  %v4316_v57 = vpack.c.bf16 %v3628_v22, %v3628_v22  ;;  %v5821_v7 = vpop.f32.mrf.mxu0 }
 0x1f4   : > { %3600 = vst.msk [vmem:[#allocation3 + $0x70] sm:$0xff] %vm380_vm1, %v3568_v63  ;;  %3246 = vst.msk [vmem:[#allocation3 + $0x90] sm:$0xff] %vm380_vm1, %v3214_v34  ;;  %v3566_v25 = vadd.f32 %v3534_v27, %v5779_v32  ;;  %v3774_v52 = vmul.f32 %v5800_v21, %v5800_v21  ;;  %v3805_v28 = vadd.f32 %v3804_v4, %v3803_v24  ;;  %v3709_v56 = vsel %vm380_vm1, %v3672_v49, 0.0 }
 0x1f5   : > { %v3626_v17 = vld [vmem:[#allocation3 + $0x40] sm:$0xff]  ;;  %v3705_v26 = vsel %vm380_vm1, %v3670_v0, 0.0  ;;  %v3771_v18 = vmul.f32 %v3670_v0, %v3670_v0  ;;  %v5826_v33 = vpop.f32.mrf.mxu1  ;;  %v3707_v35 = vsel %vm380_vm1, %v3671_v1, 0.0  ;;  %v3772_v23 = vmul.f32 %v3671_v1, %v3671_v1  ;;  %3998 = vst.msk [vmem:[%s5758_s21 + $0x28] sm:$0xf] %vm3987_vm4, %v4316_v57  ;;  %v5832_v5 = vpop.f32.mrf.mxu0 }
 0x1f6   : > { %v3706_v54 = vadd.f32 %v3705_v26, %v3704_v41  ;;  %v4314_v32 = vpack.c.bf16 %v3626_v17, %v3626_v17  ;;  %3598 = vst.msk [vmem:[#allocation3 + $0x60] sm:$0xff] %vm380_vm1, %v3566_v25  ;;  %v3215_v48 = vadd.f32 %v4829_v46, %v3183_v42  ;;  %3244 = vst.msk [vmem:[#allocation3 + $0x80] sm:$0xff] %vm380_vm1, %v3212_v51  ;;  %v3711_v43 = vsel %vm380_vm1, %v5800_v21, 0.0 }
 0x1f7   : > { %v3629_v11 = vld [vmem:[#allocation3 + $0x58] sm:$0xff]  ;;  %v3806_v55 = vsel %vm380_vm1, %v3771_v18, 0.0  ;;  %v5835_v19 = vpop.f32.mrf.mxu1  ;;  %v5840_v3 = vpop.f32.mrf.mxu0  ;;  %v3808_v6 = vsel %vm380_vm1, %v3772_v23, 0.0  ;;  %v3810_v50 = vsel %vm380_vm1, %v3773_v14, 0.0  ;;  %v3812_v15 = vsel %vm380_vm1, %v3774_v52, 0.0 }
 0x1f8   : > { %v4317_v2 = vpack.c.bf16 %v3629_v11, %v3629_v11  ;;  %v3708_v10 = vadd.f32 %v3707_v35, %v3706_v54  ;;  %v3807_v61 = vadd.f32 %v3806_v55, %v3805_v28  ;;  %3996 = vst.msk [vmem:[%s5758_s21 + $0x20] sm:$0xf] %vm3987_vm4, %v4314_v32  ;;  %v3655_v62 = vpack.c.bf16 %v3629_v11, %v3628_v22  ;;  %v3537_v9 = vld [vmem:[#allocation3 + $0x78] sm:$0xff]  ;;  %v3186_v11 = vld [vmem:[#allocation3 + $0xb0] sm:$0xff]  ;;  %v3184_v54 = vld [vmem:[#allocation3 + $0xa0] sm:$0xff] }
 0x1f9   : > { %v3627_v44 = vld [vmem:[#allocation3 + $0x48] sm:$0xff]  ;;  %v3569_v30 = vadd.f32 %v5786_v45, %v3537_v9  ;;  %3247 = vst.msk [vmem:[#allocation3 + $0x98] sm:$0xff] %vm380_vm1, %v3215_v48  ;;  %v4833_v47 = vpop.f32.mrf.mxu1  ;;  %v5852_v8 = vpop.f32.mrf.mxu0  ;;  %v3218_v55 = vadd.f32 %v5826_v33, %v3186_v11  ;;  %v3195_v11 = vld [vmem:[#allocation3 + $0xf8] sm:$0xff] }
 0x1fa   : > { %3999 = vst.msk [vmem:[%s5758_s21 + $0x2c] sm:$0xf] %vm3987_vm4, %v4317_v2  ;;  %v3654_v38 = vpack.c.bf16 %v3627_v44, %v3626_v17  ;;  %v4315_v40 = vpack.c.bf16 %v3627_v44, %v3627_v44  ;;  %v3710_v12 = vadd.f32 %v3709_v56, %v3708_v10  ;;  %v3809_v31 = vadd.f32 %v3808_v6, %v3807_v61  ;;  %v3535_v63 = vld [vmem:[#allocation3 + $0x68] sm:$0xff]  ;;  %v3187_v44 = vld [vmem:[#allocation3 + $0xb8] sm:$0xff]  ;;  %v3190_v10 = vld [vmem:[#allocation3 + $0xd0] sm:$0xff] }
 0x1fb   : > { %v5850_v16 = vld [vmem:[#allocation3 + $0x70] sm:$0xff]  ;;  %3601 = vst.msk [vmem:[#allocation3 + $0x78] sm:$0xff] %vm380_vm1, %v3569_v30  ;;  %v3120_v49 = vpop.f32.mrf.mxu1  ;;  %v3676_v21 = vunpack.c.l.bf16 %v3655_v62  ;;  %v5861_v46 = vpop.f32.mrf.mxu0  ;;  %v5863_v24 = vunpack.c.h.bf16 %v3655_v62  ;;  %v3181_v17 = vld [vmem:[#allocation3 + $0x88] sm:$0xff]  ;;  %v3567_v26 = vadd.f32 %v3535_v63, %v5796_v37  ;;  %v3219_v48 = vadd.f32 %v4833_v47, %v3187_v44  ;;  %3250 = vst.msk [vmem:[#allocation3 + $0xb0] sm:$0xff] %vm380_vm1, %v3218_v55 }
 0x1fc   : > { %v3674_v20 = vunpack.c.l.bf16 %v3654_v38  ;;  %v3675_v45 = vunpack.c.h.bf16 %v3654_v38  ;;  %3997 = vst.msk [vmem:[%s5758_s21 + $0x24] sm:$0xf] %vm3987_vm4, %v4315_v40  ;;  %v3811_v58 = vadd.f32 %v3810_v50, %v3809_v31  ;;  %v3712_v59 = vadd.f32 %v3711_v43, %v3710_v12  ;;  %v3540_v34 = vld [vmem:[#allocation3 + $0x90] sm:$0xff]  ;;  %v3185_v56 = vld [vmem:[#allocation3 + $0xa8] sm:$0xff]  ;;  %v3188_v40 = vld [vmem:[#allocation3 + $0xc0] sm:$0xff] }
 0x1fd   : > { %v4320_v60 = vpack.c.bf16 %v5850_v16, %v5850_v16  ;;  %v5867_v4 = vld [vmem:[#allocation3 + $0x60] sm:$0xff]  ;;  %v4836_v0 = vpop.f32.mrf.mxu1  ;;  %v5873_v25 = vpop.f32.mrf.mxu0  ;;  %v3572_v18 = vadd.f32 %v5805_v29, %v3540_v34  ;;  %v3213_v28 = vadd.f32 %v3181_v17, %v5818_v13  ;;  %v3717_v23 = vsel %vm380_vm1, %v3676_v21, 0.0  ;;  %3599 = vst.msk [vmem:[#allocation3 + $0x68] sm:$0xff] %vm380_vm1, %v3567_v26  ;;  %v3191_v30 = vld [vmem:[#allocation3 + $0xd8] sm:$0xff]  ;;  %3251 = vst.msk [vmem:[#allocation3 + $0xb8] sm:$0xff] %vm380_vm1, %v3219_v48 }
 0x1fe   : > { %v3713_v22 = vsel %vm380_vm1, %v3674_v20, 0.0  ;;  %v3715_v27 = vsel %vm380_vm1, %v3675_v45, 0.0  ;;  %v3775_v53 = vmul.f32 %v3674_v20, %v3674_v20  ;;  %v3776_v14 = vmul.f32 %v3675_v45, %v3675_v45  ;;  %v3538_v42 = vld [vmem:[#allocation3 + $0x80] sm:$0xff]  ;;  %v3189_v31 = vld [vmem:[#allocation3 + $0xc8] sm:$0xff] }
 0x1ff   : > { %v3714_v1 = vadd.f32 %v3713_v22, %v3712_v59  ;;  %v3813_v41 = vadd.f32 %v3812_v15, %v3811_v58  ;;  %4002 = vst.msk [vmem:[%s5758_s21 + $0x38] sm:$0xf] %vm3987_vm4, %v4320_v60  ;;  %v4318_v57 = vpack.c.bf16 %v5867_v4, %v5867_v4  ;;  %v3133_v35 = vpop.f32.mrf.mxu1  ;;  %v5883_v51 = vpop.f32.mrf.mxu0  ;;  %v3570_v37 = vadd.f32 %v3538_v42, %v5809_v39 }
 0x200   : > { %v3814_v52 = vsel %vm380_vm1, %v3775_v53, 0.0  ;;  %v3541_v2 = vld [vmem:[#allocation3 + $0x98] sm:$0xff]  ;;  %3604 = vst.msk [vmem:[#allocation3 + $0x90] sm:$0xff] %vm380_vm1, %v3572_v18  ;;  %3245 = vst.msk [vmem:[#allocation3 + $0x88] sm:$0xff] %vm380_vm1, %v3213_v28  ;;  %v3216_v13 = vadd.f32 %v3184_v54, %v5835_v19  ;;  %v3777_v61 = vmul.f32 %v3676_v21, %v3676_v21  ;;  %v3816_v62 = vsel %vm380_vm1, %v3776_v14, 0.0  ;;  %v3194_v21 = vld [vmem:[#allocation3 + $0xf0] sm:$0xff] }
 0x201   : > { %v3716_v32 = vadd.f32 %v3715_v27, %v3714_v1  ;;  %v3815_v36 = vadd.f32 %v3814_v52, %v3813_v41  ;;  %4000 = vst.msk [vmem:[%s5758_s21 + $0x30] sm:$0xf] %vm3987_vm4, %v4318_v57  ;;  %v3573_v29 = vadd.f32 %v5821_v7, %v3541_v2  ;;  %v4837_v33 = vpop.f32.mrf.mxu1  ;;  %v3217_v6 = vadd.f32 %v3185_v56, %v3120_v49  ;;  %v5893_v43 = vpop.f32.mrf.mxu0  ;;  %v3192_v27 = vld [vmem:[#allocation3 + $0xe0] sm:$0xff] }
 0x202   : > { %v3633_v9 = vld [vmem:[#allocation3 + $0x78] sm:$0xff]  ;;  %v3222_v38 = vadd.f32 %v4836_v0, %v3190_v10  ;;  %3602 = vst.msk [vmem:[#allocation3 + $0x80] sm:$0xff] %vm380_vm1, %v3570_v37  ;;  %3248 = vst.msk [vmem:[#allocation3 + $0xa0] sm:$0xff] %vm380_vm1, %v3216_v13  ;;  %v3220_v19 = vadd.f32 %v3188_v40, %v3133_v35  ;;  %v3223_v47 = vadd.f32 %v4837_v33, %v3191_v30  ;;  %v3818_v59 = vsel %vm380_vm1, %v3777_v61, 0.0  ;;  %v3544_v18 = vld [vmem:[#allocation3 + $0xb0] sm:$0xff] }
 0x203   : > { %v3817_v39 = vadd.f32 %v3816_v62, %v3815_v36  ;;  %v4321_v7 = vpack.c.bf16 %v3633_v9, %v3633_v9  ;;  %3605 = vst.msk [vmem:[#allocation3 + $0x98] sm:$0xff] %vm380_vm1, %v3573_v29  ;;  %v3136_v12 = vpop.f32.mrf.mxu1  ;;  %v3778_v50 = vmul.f32 %v5863_v24, %v5863_v24  ;;  %v3718_v15 = vadd.f32 %v3717_v23, %v3716_v32  ;;  %v5903_v45 = vpop.f32.mrf.mxu0 }
 0x204   : > { %3249 = vst.msk [vmem:[#allocation3 + $0xa8] sm:$0xff] %vm380_vm1, %v3217_v6  ;;  %3254 = vst.msk [vmem:[#allocation3 + $0xd0] sm:$0xff] %vm380_vm1, %v3222_v38  ;;  %v3221_v20 = vadd.f32 %v3189_v31, %v3136_v12  ;;  %v3657_v49 = vpack.c.bf16 %v3633_v9, %v5850_v16  ;;  %v3719_v63 = vsel %vm380_vm1, %v5863_v24, 0.0  ;;  %v3631_v53 = vld [vmem:[#allocation3 + $0x68] sm:$0xff]  ;;  %v3576_v36 = vadd.f32 %v5840_v3, %v3544_v18  ;;  %v3545_v29 = vld [vmem:[#allocation3 + $0xb8] sm:$0xff] }
 0x205   : > { %4003 = vst.msk [vmem:[%s5758_s21 + $0x3c] sm:$0xf] %vm3987_vm4, %v4321_v7  ;;  %v4840_v58 = vpop.f32.mrf.mxu1  ;;  %v3819_v34 = vadd.f32 %v3818_v59, %v3817_v39  ;;  %v3820_v16 = vsel %vm380_vm1, %v3778_v50, 0.0  ;;  %v3720_v0 = vadd.f32 %v3719_v63, %v3718_v15  ;;  %v5918_v57 = vpop.f32.mrf.mxu0  ;;  %v3656_v24 = vpack.c.bf16 %v3631_v53, %v5867_v4 }
 0x206   : > { %3252 = vst.msk [vmem:[#allocation3 + $0xc0] sm:$0xff] %vm380_vm1, %v3220_v19  ;;  %3255 = vst.msk [vmem:[#allocation3 + $0xd8] sm:$0xff] %vm380_vm1, %v3223_v47  ;;  %v3226_v60 = vadd.f32 %v4840_v58, %v3194_v21  ;;  %v3680_v17 = vunpack.c.l.bf16 %v3657_v49  ;;  %v5920_v52 = vunpack.c.h.bf16 %v3657_v49  ;;  %v4319_v26 = vpack.c.bf16 %v3631_v53, %v3631_v53  ;;  %v3193_v21 = vld [vmem:[#allocation3 + $0xe8] sm:$0xff] }
 0x207   : > { %3253 = vst.msk [vmem:[#allocation3 + $0xc8] sm:$0xff] %vm380_vm1, %v3221_v20  ;;  %v3149_v22 = vpop.f32.mrf.mxu1  ;;  %v5915_v1 = vld [vmem:[#allocation3 + $0x90] sm:$0xff]  ;;  %v3539_v14 = vld [vmem:[#allocation3 + $0x88] sm:$0xff]  ;;  %v3678_v55 = vunpack.c.l.bf16 %v3656_v24  ;;  %v3679_v2 = vunpack.c.h.bf16 %v3656_v24  ;;  %v3821_v44 = vadd.f32 %v3820_v16, %v3819_v34  ;;  %3608 = vst.msk [vmem:[#allocation3 + $0xb0] sm:$0xff] %vm380_vm1, %v3576_v36  ;;  %v3577_v56 = vadd.f32 %v5861_v46, %v3545_v29  ;;  %v4874_v62 = vpop.f32.mrf.mxu0 }
 0x208   : > { %3258 = vst.msk [vmem:[#allocation3 + $0xf0] sm:$0xff] %vm380_vm1, %v3226_v60  ;;  %v3224_v41 = vadd.f32 %v3192_v27, %v3149_v22  ;;  %v4324_v54 = vpack.c.bf16 %v5915_v1, %v5915_v1  ;;  %v3571_v32 = vadd.f32 %v3539_v14, %v5832_v5  ;;  %v3781_v40 = vmul.f32 %v3680_v17, %v3680_v17 }
 0x209   : > { %v4841_v28 = vpop.f32.mrf.mxu1  ;;  %v5925_v35 = vld [vmem:[#allocation3 + $0x80] sm:$0xff]  ;;  %4001 = vst.msk [vmem:[%s5758_s21 + $0x34] sm:$0xf] %vm3987_vm4, %v4319_v26  ;;  %v3721_v9 = vsel %vm380_vm1, %v3678_v55, 0.0  ;;  %v3779_v6 = vmul.f32 %v3678_v55, %v3678_v55  ;;  %v3780_v38 = vmul.f32 %v3679_v2, %v3679_v2  ;;  %v3725_v31 = vsel %vm380_vm1, %v3680_v17, 0.0 }
 0x20a   : > { %v3637_v23 = vld [vmem:[#allocation3 + $0x98] sm:$0xff]  ;;  %v3542_v42 = vld [vmem:[#allocation3 + $0xa0] sm:$0xff]  ;;  %3256 = vst.msk [vmem:[#allocation3 + $0xe0] sm:$0xff] %vm380_vm1, %v3224_v41  ;;  %v3227_v4 = vadd.f32 %v4841_v28, %v3195_v11  ;;  %v4322_v37 = vpack.c.bf16 %v5925_v35, %v5925_v35  ;;  %3603 = vst.msk [vmem:[#allocation3 + $0x88] sm:$0xff] %vm380_vm1, %v3571_v32  ;;  %v3722_v30 = vadd.f32 %v3721_v9, %v3720_v0  ;;  %v3727_v27 = vsel %vm380_vm1, %v5920_v52, 0.0 }
 0x20b   : > { %v3543_v13 = vld [vmem:[#allocation3 + $0xa8] sm:$0xff]  ;;  %v3548_v48 = vld [vmem:[#allocation3 + $0xd0] sm:$0xff]  ;;  %4006 = vst.msk [vmem:[%s5758_s21 + $0x48] sm:$0xf] %vm3987_vm4, %v4324_v54  ;;  %v4325_v5 = vpack.c.bf16 %v3637_v23, %v3637_v23  ;;  %v3574_v3 = vadd.f32 %v3542_v42, %v5852_v8  ;;  %v3822_v39 = vsel %vm380_vm1, %v3779_v6, 0.0  ;;  %v3152_v12 = vpop.f32.mrf.mxu1  ;;  %v3782_v50 = vmul.f32 %v5920_v52, %v5920_v52 }
 0x20c   : > { %v3575_v10 = vadd.f32 %v3543_v13, %v5873_v25  ;;  %3259 = vst.msk [vmem:[#allocation3 + $0xf8] sm:$0xff] %vm380_vm1, %v3227_v4  ;;  %3609 = vst.msk [vmem:[#allocation3 + $0xb8] sm:$0xff] %vm380_vm1, %v3577_v56  ;;  %v3580_v8 = vadd.f32 %v5883_v51, %v3548_v48  ;;  %v3723_v25 = vsel %vm380_vm1, %v3679_v2, 0.0  ;;  %v3823_v20 = vadd.f32 %v3822_v39, %v3821_v44  ;;  %v3507_v51 = vpop.f32.mrf.mxu0 }
 0x20d   : > { %v3546_v33 = vld [vmem:[#allocation3 + $0xc0] sm:$0xff]  ;;  %v3549_v61 = vld [vmem:[#allocation3 + $0xd8] sm:$0xff]  ;;  %4004 = vst.msk [vmem:[%s5758_s21 + $0x40] sm:$0xf] %vm3987_vm4, %v4322_v37  ;;  %4007 = vst.msk [vmem:[%s5758_s21 + $0x4c] sm:$0xf] %vm3987_vm4, %v4325_v5  ;;  %v3724_v15 = vadd.f32 %v3723_v25, %v3722_v30  ;;  %v3659_v58 = vpack.c.bf16 %v3637_v23, %v5915_v1  ;;  %v3225_v34 = vadd.f32 %v3193_v21, %v3152_v12 }
 0x20e   : > { %3606 = vst.msk [vmem:[#allocation3 + $0xa0] sm:$0xff] %vm380_vm1, %v3574_v3  ;;  %3607 = vst.msk [vmem:[#allocation3 + $0xa8] sm:$0xff] %vm380_vm1, %v3575_v10  ;;  %v3547_v46 = vld [vmem:[#allocation3 + $0xc8] sm:$0xff]  ;;  %v3578_v7 = vadd.f32 %v3546_v33, %v5893_v43  ;;  %v3581_v19 = vadd.f32 %v5903_v45, %v3549_v61  ;;  %v3824_v49 = vsel %vm380_vm1, %v3780_v38, 0.0  ;;  %v3826_v16 = vsel %vm380_vm1, %v3781_v40, 0.0  ;;  %v3640_v0 = vld [vmem:[#allocation3 + $0xb0] sm:$0xff]  ;;  %v4875_v52 = vpop.f32.mrf.mxu0 }
 0x20f   : > { %v3552_v47 = vld [vmem:[#allocation3 + $0xf0] sm:$0xff]  ;;  %3612 = vst.msk [vmem:[#allocation3 + $0xd0] sm:$0xff] %vm380_vm1, %v3580_v8  ;;  %v3579_v43 = vadd.f32 %v3547_v46, %v5918_v57  ;;  %v3726_v60 = vadd.f32 %v3725_v31, %v3724_v15  ;;  %v3825_v63 = vadd.f32 %v3824_v49, %v3823_v20  ;;  %v3828_v14 = vsel %vm380_vm1, %v3782_v50, 0.0  ;;  %3257 = vst.msk [vmem:[#allocation3 + $0xe8] sm:$0xff] %vm380_vm1, %v3225_v34 }
 0x210   : > { %3610 = vst.msk [vmem:[#allocation3 + $0xc0] sm:$0xff] %vm380_vm1, %v3578_v7  ;;  %3613 = vst.msk [vmem:[#allocation3 + $0xd8] sm:$0xff] %vm380_vm1, %v3581_v19  ;;  %v3584_v45 = vadd.f32 %v4874_v62, %v3552_v47  ;;  %v3684_v24 = vunpack.c.l.bf16 %v3659_v58  ;;  %v4328_v18 = vpack.c.bf16 %v3640_v0, %v3640_v0  ;;  %v3685_v32 = vunpack.c.h.bf16 %v3659_v58 }
 0x211   : > { %v3550_v59 = vld [vmem:[#allocation3 + $0xe0] sm:$0xff]  ;;  %v3635_v53 = vld [vmem:[#allocation3 + $0x88] sm:$0xff]  ;;  %3611 = vst.msk [vmem:[#allocation3 + $0xc8] sm:$0xff] %vm380_vm1, %v3579_v43  ;;  %v3827_v41 = vadd.f32 %v3826_v16, %v3825_v63  ;;  %v3728_v26 = vadd.f32 %v3727_v27, %v3726_v60 }
 0x212   : > { %v3582_v22 = vadd.f32 %v3550_v59, %v3507_v51  ;;  %3616 = vst.msk [vmem:[#allocation3 + $0xf0] sm:$0xff] %vm380_vm1, %v3584_v45  ;;  %v3658_v57 = vpack.c.bf16 %v3635_v53, %v5925_v35  ;;  %v4323_v17 = vpack.c.bf16 %v3635_v53, %v3635_v53  ;;  %v3785_v5 = vmul.f32 %v3684_v24, %v3684_v24 }
 0x213   : > { %v3553_v1 = vld [vmem:[#allocation3 + $0xf8] sm:$0xff]  ;;  %v3829_v4 = vadd.f32 %v3828_v14, %v3827_v41  ;;  %4010 = vst.msk [vmem:[%s5758_s21 + $0x58] sm:$0xf] %vm3987_vm4, %v4328_v18  ;;  %v3786_v9 = vmul.f32 %v3685_v32, %v3685_v32  ;;  %v3733_v30 = vsel %vm380_vm1, %v3684_v24, 0.0  ;;  %v3735_v25 = vsel %vm380_vm1, %v3685_v32, 0.0 }
 0x214   : > { %3614 = vst.msk [vmem:[#allocation3 + $0xe0] sm:$0xff] %vm380_vm1, %v3582_v22  ;;  %v3641_v11 = vld [vmem:[#allocation3 + $0xb8] sm:$0xff]  ;;  %v3585_v23 = vadd.f32 %v4875_v52, %v3553_v1  ;;  %v3682_v36 = vunpack.c.l.bf16 %v3658_v57  ;;  %v3683_v42 = vunpack.c.h.bf16 %v3658_v57  ;;  %v3834_v31 = vsel %vm380_vm1, %v3785_v5, 0.0 }
 0x215   : > { %v3638_v28 = vld [vmem:[#allocation3 + $0xa0] sm:$0xff]  ;;  %v3639_v54 = vld [vmem:[#allocation3 + $0xa8] sm:$0xff]  ;;  %4005 = vst.msk [vmem:[%s5758_s21 + $0x44] sm:$0xf] %vm3987_vm4, %v4323_v17  ;;  %v4329_v55 = vpack.c.bf16 %v3641_v11, %v3641_v11  ;;  %v3661_v61 = vpack.c.bf16 %v3641_v11, %v3640_v0  ;;  %v3836_v49 = vsel %vm380_vm1, %v3786_v9, 0.0 }
 0x216   : > { %v4326_v35 = vpack.c.bf16 %v3638_v28, %v3638_v28  ;;  %v3660_v2 = vpack.c.bf16 %v3639_v54, %v3638_v28  ;;  %v4327_v44 = vpack.c.bf16 %v3639_v54, %v3639_v54  ;;  %v3644_v37 = vld [vmem:[#allocation3 + $0xd0] sm:$0xff]  ;;  %3617 = vst.msk [vmem:[#allocation3 + $0xf8] sm:$0xff] %vm380_vm1, %v3585_v23  ;;  %v3729_v29 = vsel %vm380_vm1, %v3682_v36, 0.0  ;;  %v3551_v54 = vld [vmem:[#allocation3 + $0xe8] sm:$0xff] }
 0x217   : > { %v3783_v13 = vmul.f32 %v3682_v36, %v3682_v36  ;;  %v3784_v48 = vmul.f32 %v3683_v42, %v3683_v42  ;;  %v3730_v3 = vadd.f32 %v3729_v29, %v3728_v26  ;;  %4011 = vst.msk [vmem:[%s5758_s21 + $0x5c] sm:$0xf] %vm3987_vm4, %v4329_v55  ;;  %v3731_v10 = vsel %vm380_vm1, %v3683_v42, 0.0  ;;  %v3642_v40 = vld [vmem:[#allocation3 + $0xc0] sm:$0xff]  ;;  %v3645_v47 = vld [vmem:[#allocation3 + $0xd8] sm:$0xff] }
 0x218   : > { %4008 = vst.msk [vmem:[%s5758_s21 + $0x50] sm:$0xf] %vm3987_vm4, %v4326_v35  ;;  %v3686_v56 = vunpack.c.l.bf16 %v3660_v2  ;;  %4009 = vst.msk [vmem:[%s5758_s21 + $0x54] sm:$0xf] %vm3987_vm4, %v4327_v44  ;;  %v4332_v62 = vpack.c.bf16 %v3644_v37, %v3644_v37  ;;  %v3687_v46 = vunpack.c.h.bf16 %v3660_v2  ;;  %v3643_v12 = vld [vmem:[#allocation3 + $0xc8] sm:$0xff]  ;;  %v3688_v50 = vunpack.c.l.bf16 %v3661_v61  ;;  %v3510_v2 = vpop.f32.mrf.mxu0 }
 0x219   : > { %v3830_v33 = vsel %vm380_vm1, %v3783_v13, 0.0  ;;  %v3732_v6 = vadd.f32 %v3731_v10, %v3730_v3  ;;  %v3832_v8 = vsel %vm380_vm1, %v3784_v48, 0.0  ;;  %v4330_v20 = vpack.c.bf16 %v3642_v40, %v3642_v40  ;;  %v3648_v51 = vld [vmem:[#allocation3 + $0xf0] sm:$0xff] }
 0x21a   : > { %v3831_v38 = vadd.f32 %v3830_v33, %v3829_v4  ;;  %4014 = vst.msk [vmem:[%s5758_s21 + $0x68] sm:$0xf] %vm3987_vm4, %v4332_v62  ;;  %v3787_v19 = vmul.f32 %v3686_v56, %v3686_v56  ;;  %v3737_v15 = vsel %vm380_vm1, %v3686_v56, 0.0  ;;  %v3689_v43 = vunpack.c.h.bf16 %v3661_v61 }
 0x21b   : > { %v3734_v39 = vadd.f32 %v3733_v30, %v3732_v6  ;;  %v3788_v21 = vmul.f32 %v3687_v46, %v3687_v46  ;;  %4012 = vst.msk [vmem:[%s5758_s21 + $0x60] sm:$0xf] %vm3987_vm4, %v4330_v20  ;;  %v4333_v60 = vpack.c.bf16 %v3645_v47, %v3645_v47  ;;  %v3662_v63 = vpack.c.bf16 %v3643_v12, %v3642_v40  ;;  %v3646_v53 = vld [vmem:[#allocation3 + $0xe0] sm:$0xff] }
 0x21c   : > { %v3833_v7 = vadd.f32 %v3832_v8, %v3831_v38  ;;  %v3838_v59 = vsel %vm380_vm1, %v3787_v19, 0.0  ;;  %v4331_v27 = vpack.c.bf16 %v3643_v12, %v3643_v12  ;;  %v4336_v16 = vpack.c.bf16 %v3648_v51, %v3648_v51 }
 0x21d   : > { %v3736_v45 = vadd.f32 %v3735_v25, %v3734_v39  ;;  %v3789_v0 = vmul.f32 %v3688_v50, %v3688_v50  ;;  %v3739_v1 = vsel %vm380_vm1, %v3687_v46, 0.0  ;;  %v3663_v14 = vpack.c.bf16 %v3645_v47, %v3644_v37  ;;  %4015 = vst.msk [vmem:[%s5758_s21 + $0x6c] sm:$0xf] %vm3987_vm4, %v4333_v60  ;;  %v3649_v11 = vld [vmem:[#allocation3 + $0xf8] sm:$0xff] }
 0x21e   : > { %v3835_v58 = vadd.f32 %v3834_v31, %v3833_v7  ;;  %v3741_v41 = vsel %vm380_vm1, %v3688_v50, 0.0  ;;  %v3690_v52 = vunpack.c.l.bf16 %v3662_v63  ;;  %4013 = vst.msk [vmem:[%s5758_s21 + $0x64] sm:$0xf] %vm3987_vm4, %v4331_v27  ;;  %4018 = vst.msk [vmem:[%s5758_s21 + $0x78] sm:$0xf] %vm3987_vm4, %v4336_v16  ;;  %v3790_v24 = vmul.f32 %v3689_v43, %v3689_v43 }
 0x21f   : > { %v3738_v34 = vadd.f32 %v3737_v15, %v3736_v45  ;;  %v3840_v26 = vsel %vm380_vm1, %v3788_v21, 0.0  ;;  %v3691_v18 = vunpack.c.h.bf16 %v3662_v63  ;;  %v4334_v28 = vpack.c.bf16 %v3646_v53, %v3646_v53 }
 0x220   : > { %v3837_v22 = vadd.f32 %v3836_v49, %v3835_v58  ;;  %v3743_v23 = vsel %vm380_vm1, %v3689_v43, 0.0  ;;  %v3842_v42 = vsel %vm380_vm1, %v3789_v0, 0.0  ;;  %v3692_v35 = vunpack.c.l.bf16 %v3663_v14 }
 0x221   : > { %v3740_v57 = vadd.f32 %v3739_v1, %v3738_v34  ;;  %v3745_v4 = vsel %vm380_vm1, %v3690_v52, 0.0  ;;  %v3791_v55 = vmul.f32 %v3690_v52, %v3690_v52  ;;  %4016 = vst.msk [vmem:[%s5758_s21 + $0x70] sm:$0xf] %vm3987_vm4, %v4334_v28  ;;  %v4337_v29 = vpack.c.bf16 %v3649_v11, %v3649_v11 }
 0x222   : > { %v3839_v17 = vadd.f32 %v3838_v59, %v3837_v22  ;;  %v3583_v13 = vadd.f32 %v3551_v54, %v3510_v2  ;;  %v3844_v48 = vsel %vm380_vm1, %v3790_v24, 0.0  ;;  %v3792_v5 = vmul.f32 %v3691_v18, %v3691_v18 }
 0x223   : > { %v3742_v32 = vadd.f32 %v3741_v41, %v3740_v57  ;;  %v3846_v3 = vsel %vm380_vm1, %v3791_v55, 0.0  ;;  %4019 = vst.msk [vmem:[%s5758_s21 + $0x7c] sm:$0xf] %vm3987_vm4, %v4337_v29  ;;  %v3747_v33 = vsel %vm380_vm1, %v3691_v18, 0.0  ;;  %v3693_v61 = vunpack.c.h.bf16 %v3663_v14 }
 0x224   : > { %v3841_v36 = vadd.f32 %v3840_v26, %v3839_v17  ;;  %3615 = vst.msk [vmem:[#allocation3 + $0xe8] sm:$0xff] %vm380_vm1, %v3583_v13  ;;  %v3793_v62 = vmul.f32 %v3692_v35, %v3692_v35  ;;  %v3848_v38 = vsel %vm380_vm1, %v3792_v5, 0.0  ;;  %v3749_v40 = vsel %vm380_vm1, %v3692_v35, 0.0 }
 0x225   : > { %v3744_v37 = vadd.f32 %v3743_v23, %v3742_v32  ;;  %v3794_v46 = vmul.f32 %v3693_v61, %v3693_v61  ;;  %v3665_v39 = vpack.c.bf16 %v3649_v11, %v3648_v51  ;;  %v3751_v47 = vsel %vm380_vm1, %v3693_v61, 0.0 }
 0x226   : > { %v3843_v44 = vadd.f32 %v3842_v42, %v3841_v36  ;;  %v3850_v25 = vsel %vm380_vm1, %v3793_v62, 0.0  ;;  %v3868_v23 = vlaneseq }
 0x227   : > { %v3746_v56 = vadd.f32 %v3745_v4, %v3744_v37  ;;  %v3852_v15 = vsel %vm380_vm1, %v3794_v46, 0.0  ;;  %v3696_v20 = vunpack.c.l.bf16 %v3665_v39  ;;  %v3697_v45 = vunpack.c.h.bf16 %v3665_v39 }
 0x228   : > { %v3845_v10 = vadd.f32 %v3844_v48, %v3843_v44  ;;  %v3869_v4 = vshrl.u32 %v3868_v23, 7 }
 0x229   : > { %v3748_v9 = vadd.f32 %v3747_v33, %v3746_v56  ;;  %v3797_v63 = vmul.f32 %v3696_v20, %v3696_v20  ;;  %v3798_v0 = vmul.f32 %v3697_v45, %v3697_v45  ;;  %v3759_v57 = vsel %vm380_vm1, %v3697_v45, 0.0 }
 0x22a   : > { %v3847_v6 = vadd.f32 %v3846_v3, %v3845_v10  ;;  %vm3871_vm5 = vcmp.eq.s32.totalorder %v3869_v4, 1  ;;  %vm3870_vm6 = vcmp.eq.s32.totalorder %v3869_v4, 0 }
 0x22b   : > { %v3750_v8 = vadd.f32 %v3749_v40, %v3748_v9  ;;  %v3647_v19 = vld [vmem:[#allocation3 + $0xe8] sm:$0xff]  ;;  %v3858_v17 = vsel %vm380_vm1, %v3797_v63, 0.0  ;;  %v3860_v26 = vsel %vm380_vm1, %v3798_v0, 0.0 }
 0x22c   : > { %v3849_v30 = vadd.f32 %v3848_v38, %v3847_v6  ;;  %v3664_v12 = vpack.c.bf16 %v3647_v19, %v3646_v53  ;;  %v4335_v31 = vpack.c.bf16 %v3647_v19, %v3647_v19  ;;  %v3757_v53 = vsel %vm380_vm1, %v3696_v20, 0.0 }
 0x22d   : > { %v3752_v50 = vadd.f32 %v3751_v47, %v3750_v8 }
 0x22e   : > { %v3851_v7 = vadd.f32 %v3850_v25, %v3849_v30  ;;  %v3694_v49 = vunpack.c.l.bf16 %v3664_v12  ;;  %v3695_v58 = vunpack.c.h.bf16 %v3664_v12  ;;  %4017 = vst.msk [vmem:[%s5758_s21 + $0x74] sm:$0xf] %vm3987_vm4, %v4335_v31 }
 0x230   : > { %v3853_v43 = vadd.f32 %v3852_v15, %v3851_v7  ;;  %v3753_v21 = vsel %vm380_vm1, %v3694_v49, 0.0  ;;  %v3795_v59 = vmul.f32 %v3694_v49, %v3694_v49  ;;  %v3796_v51 = vmul.f32 %v3695_v58, %v3695_v58 }
 0x231   : > { %v3754_v60 = vadd.f32 %v3753_v21, %v3752_v50  ;;  %v3755_v34 = vsel %vm380_vm1, %v3695_v58, 0.0 }
 0x232   : > { %v3854_v22 = vsel %vm380_vm1, %v3795_v59, 0.0  ;;  %v3856_v1 = vsel %vm380_vm1, %v3796_v51, 0.0 }
 0x233   : > { %v3756_v27 = vadd.f32 %v3755_v34, %v3754_v60  ;;  %v3855_v16 = vadd.f32 %v3854_v22, %v3853_v43 }
 0x235   : > { %v3758_v14 = vadd.f32 %v3757_v53, %v3756_v27  ;;  %v3857_v41 = vadd.f32 %v3856_v1, %v3855_v16 }
 0x237   : > { %v3760_v52 = vadd.f32 %v3759_v57, %v3758_v14  ;;  %v3859_v24 = vadd.f32 %v3858_v17, %v3857_v41 }
 0x239   : > { %v3761_v18 = vrot.slane %v3760_v52, 4  ;;  %v3861_v28 = vadd.f32 %v3860_v26, %v3859_v24 }
 0x23b   : > { %v3762_v11 = vadd.f32 %v3761_v18, %v3760_v52  ;;  %v3862_v54 = vrot.slane %v3861_v28, 4 }
 0x23d   : > { %v3763_v32 = vrot.slane %v3762_v11, 2  ;;  %v3863_v36 = vadd.f32 %v3862_v54, %v3861_v28 }
 0x23f   : > { %v3764_v42 = vadd.f32 %v3763_v32, %v3762_v11  ;;  %v3864_v35 = vrot.slane %v3863_v36, 2 }
 0x241   : > { %v3865_v55 = vadd.f32 %v3864_v35, %v3863_v36  ;;  %v3765_v2 = vrot.slane %v3764_v42, 1 }
 0x243   : > { %v3866_v44 = vrot.slane %v3865_v55, 1  ;;  %v3766_v29 = vadd.f32 %v3765_v2, %v3764_v42 }
 0x245   : > { %v3867_v37 = vadd.f32 %v3866_v44, %v3865_v55 }
 0x247   : > { %v3872_v13 = vsel %vm3871_vm5, %v3867_v37, 0.0 }
 0x248   : > { %v3873_v48 = vsel %vm3870_vm6, %v3766_v29, %v3872_v13 }
 0x249   : > { %3874 = vst.msk [vmem:[%s208_s25] sm:$0xff] %vm380_vm1, %v3873_v48 }
 0x24a PF: > { %s15_s15 = sadd.s32 1, %s4903_s15  }
 0x24b   : > { %p12_p4 = scmp.ge.s32.totalorder %s15_s15, 4  }
 0x24d   :  { %14 = sbr.rel (!%p12_p4) target bundleno = 1 (0x1), region = 85 }

</bundles_post_ra>
